<compile_context>
chip_gen: v5e
topology: v5e:2x2
jax: 0.10.0
libtpu: 0.0.40
codegen_flags: <defaults>
</compile_context>

<pallas_src>
import jax
import jax.numpy as jnp
from jax import lax
from jax.experimental import pallas as pl
from jax.experimental.pallas import tpu as pltpu

THRESH = 0.5   # global `thresh` in the original repo
DECAY = 0.2    # global `decay` in the original repo


def make_cell_call(N, H, W, C_pp, C_p, C_out):
    C_cat = 3 * C_out      # block_multiplier * C_out
    HW = H * W
    Hp, Wp = H + 2, W + 2
    f32 = jnp.float32
    bf16 = jnp.bfloat16

    def kernel(s0_ref, s1_ref, mem_ref, ws0_ref, ball_ref, w1_ref, w4_ref, w8_ref,
               out_ref, memo_ref, pad0, pad1, pads):

        def zero_border(pad, c):
            # Zero only the 1-wide halo; the interior is fully overwritten below.
            # Done every grid step so the kernel stays correct when the batch axis
            # is sharded across TensorCores ("parallel").
            pad[pl.ds(0, 1), :, :] = jnp.zeros((1, Wp, c), f32)
            pad[pl.ds(Hp - 1, 1), :, :] = jnp.zeros((1, Wp, c), f32)
            pad[:, pl.ds(0, 1), :] = jnp.zeros((Hp, 1, c), f32)
            pad[:, pl.ds(Wp - 1, 1), :] = jnp.zeros((Hp, 1, c), f32)

        def im2col(pad_ref, cin):
            # (H*W, 9*cin) patch matrix of the zero-padded input, taps ordered
            # (kh, kw, c) to match weight.reshape(9*cin, cout); cast to bf16 for MXU.
            taps = [pad_ref[pl.ds(kh, H), pl.ds(kw, W), :]
                    for kh in range(3) for kw in range(3)]
            return jnp.concatenate(taps, axis=-1).reshape(HW, 9 * cin).astype(bf16)

        zero_border(pad0, C_pp)
        zero_border(pad1, C_p)
        zero_border(pads, C_out)
        pad0[pl.ds(1, H), pl.ds(1, W), :] = s0_ref[0]
        pad1[pl.ds(1, H), pl.ds(1, W), :] = s1_ref[0]

        mem_in = mem_ref[0]                       # (H*W, 3*C_out) f32
        eye_b = jnp.eye(C_out, dtype=bf16)        # MXU-based transpose helper

        # Fused s0 conv: branches 0, 2, 5 share the s0 input -> one
        # (HW, 9*C_pp) x (9*C_pp, 3*C_out) matmul; per-step biases pre-folded.
        s0_part = jnp.dot(im2col(pad0, C_pp), ws0_ref[...],
                          preferred_element_type=f32) + ball_ref[...]

        def step(i, other):
            # membrane update + spike, f32 math
            m = mem_in[:, i * C_out:(i + 1) * C_out] \
                + s0_part[:, i * C_out:(i + 1) * C_out] + other
            spike = (m > THRESH).astype(f32)                      # (HW, C_out)
            # transpose (HW, C_out) -> (C_out, HW) on the MXU so the output store
            # is a lane-dense, sublane-aligned (C_out, 256) store.
            spike_t = lax.dot_general(eye_b, spike.astype(bf16),
                                      (((1,), (1,)), ((), ())),
                                      preferred_element_type=f32)
            out_ref[0, pl.ds(i * C_out, C_out), :] = spike_t
            return spike, m * DECAY * (1.0 - spike)

        # step 0: branch 0 (s0) + branch 1 (s1)
        spike0, mem0 = step(0, jnp.dot(im2col(pad1, C_p), w1_ref[...],
                                       preferred_element_type=f32))
        # step 1: branch 2 (s0) + branch 4 (spike0)
        pads[pl.ds(1, H), pl.ds(1, W), :] = spike0.reshape(H, W, C_out)
        spike1, mem1 = step(1, jnp.dot(im2col(pads, C_out), w4_ref[...],
                                       preferred_element_type=f32))
        # step 2: branch 5 (s0) + branch 8 (spike1)
        pads[pl.ds(1, H), pl.ds(1, W), :] = spike1.reshape(H, W, C_out)
        _, mem2 = step(2, jnp.dot(im2col(pads, C_out), w8_ref[...],
                                  preferred_element_type=f32))

        # persistent membrane state (internal-layout (HW, C_cat); round-trips only
        # through this kernel)
        memo_ref[0] = jnp.concatenate([mem0, mem1, mem2], axis=-1)

    def full2d(shape):
        return pl.BlockSpec(shape, lambda n: (0, 0))

    grid_spec = pltpu.PrefetchScalarGridSpec(
        num_scalar_prefetch=0,
        grid=(N,),  # one grid step per batch element
        in_specs=[pl.BlockSpec((1, H, W, C_pp), lambda n: (n, 0, 0, 0)),
                  pl.BlockSpec((1, H, W, C_p), lambda n: (n, 0, 0, 0)),
                  pl.BlockSpec((1, HW, C_cat), lambda n: (n, 0, 0)),
                  full2d((9 * C_pp, C_cat)),    # fused w0|w2|w5 (bf16)
                  full2d((1, C_cat)),           # per-step folded biases (f32)
                  full2d((9 * C_p, C_out)),     # w1 (bf16)
                  full2d((9 * C_out, C_out)),   # w4 (bf16)
                  full2d((9 * C_out, C_out))],  # w8 (bf16)
        out_specs=[pl.BlockSpec((1, C_cat, HW), lambda n: (n, 0, 0)),   # spikes, NCHW-flat
                   pl.BlockSpec((1, HW, C_cat), lambda n: (n, 0, 0))],  # membrane state
        scratch_shapes=[pltpu.VMEM((Hp, Wp, C_pp), f32),
                        pltpu.VMEM((Hp, Wp, C_p), f32),
                        pltpu.VMEM((Hp, Wp, C_out), f32)])

    return pl.pallas_call(
        kernel,
        out_shape=(jax.ShapeDtypeStruct((N, C_cat, HW), f32),
                   jax.ShapeDtypeStruct((N, HW, C_cat), f32)),
        grid_spec=grid_spec,
        compiler_params=pltpu.CompilerParams(
            dimension_semantics=("parallel",)),   # shards batch across v7x's 2 TCs
    )


def _prep_weights(params):
    """Fuse/reshape HWIO conv weights for the im2col kernel (bf16 for the MXU)."""
    bf16 = jnp.bfloat16
    ws0 = jnp.concatenate([params["w0"], params["w2"], params["w5"]], axis=-1)
    ws0 = ws0.reshape(-1, ws0.shape[-1]).astype(bf16)            # (9*C_pp, 3*C_out)
    b_all = jnp.concatenate([params["b0"] + params["b1"],
                             params["b2"] + params["b4"],
                             params["b5"] + params["b8"]],
                            axis=-1).astype(jnp.float32)         # (1, 3*C_out)
    w1 = params["w1"].reshape(-1, params["w1"].shape[-1]).astype(bf16)
    w4 = params["w4"].reshape(-1, params["w4"].shape[-1]).astype(bf16)
    w8 = params["w8"].reshape(-1, params["w8"].shape[-1]).astype(bf16)
    return ws0, b_all, w1, w4, w8


def cell_forward(prev_prev_input, prev_input, params, mem=None):
    """Mirrors Cell.forward (downup_sample=0). Inputs are NCHW.
    Returns (prev_input, concat_feature_NCHW, sparsity, new_mem)."""
    # TODO(synk): downup_sample != 0 bilinear (align_corners=True) resize path not
    # implemented; this instance uses downup_sample=0 with equal spatial dims.
    s0 = jnp.transpose(prev_prev_input, (0, 2, 3, 1))  # NCHW -> NHWC
    s1 = jnp.transpose(prev_input, (0, 2, 3, 1))
    N, H, W, C_pp = s0.shape
    C_p = s1.shape[-1]
    C_out = params["w0"].shape[-1]
    C_cat = 3 * C_out

    if mem is None:   # first call: self.mem == None -> membrane starts at zeros
        mem = jnp.zeros((N, H * W, C_cat), jnp.float32)

    call = make_cell_call(N, H, W, C_pp, C_p, C_out)
    spikes, new_mem = call(s0, s1, mem, *_prep_weights(params))

    concat = spikes.reshape(N, C_cat, H, W)       # (N, C_cat, H*W) is already NCHW order
    sparsity = jnp.sum(concat) / concat.size      # self.sparsity side attribute
    return prev_input, concat, sparsity, new_mem


def init_params(key, C_pp, C_p, C_out):
    branch_cins = {"0": C_pp, "1": C_p, "2": C_pp, "4": C_out, "5": C_pp, "8": C_out}
    params = {}
    for i, (b, cin) in enumerate(branch_cins.items()):
        kw, kb = jax.random.split(jax.random.fold_in(key, i))
        params["w" + b] = 0.3 * jax.random.normal(kw, (3, 3, cin, C_out), jnp.float32)
        params["b" + b] = 0.1 * jax.random.normal(kb, (1, C_out), jnp.float32)
    return params


if __name__ == "__main__":
    key = jax.random.PRNGKey(0)
    N, H, W = 2, 16, 16
    block_multiplier = 3
    prev_prev_fmult, prev_fmult, fmult = 2, 4, 8
    C_pp = block_multiplier * prev_prev_fmult   # C_prev_prev = 6
    C_p = block_multiplier * prev_fmult         # C_prev      = 12
    C_out = fmult                               # C_out       = 8

    k0, k1, kp = jax.random.split(key, 3)
    prev_prev_input = jax.random.normal(k0, (N, C_pp, H, W), jnp.float32)  # NCHW
    prev_input = jax.random.normal(k1, (N, C_p, H, W), jnp.float32)        # NCHW
    params = init_params(kp, C_pp, C_p, C_out)

    # First call (mem == None -> zeros), then a second call threading the membrane state.
    prev_out, concat_feature, sparsity, mem = cell_forward(prev_prev_input, prev_input, params)
    prev_out2, concat2, sparsity2, mem2 = cell_forward(prev_prev_input, prev_input, params, mem)
    jax.block_until_ready((concat_feature, concat2, mem2))

    assert prev_out.shape == prev_input.shape
    assert concat_feature.shape == (N, block_multiplier * C_out, H, W)
    assert mem.shape == (N, H * W, block_multiplier * C_out)
    # spikes are binary by construction
    assert bool(jnp.all((concat_feature == 0.0) | (concat_feature == 1.0)))
    assert bool(jnp.all((concat2 == 0.0) | (concat2 == 1.0)))
    assert bool(jnp.isfinite(sparsity)) and bool(jnp.isfinite(sparsity2))
    print("KERNEL_OK")
</pallas_src>

<mosaic_0001>
module attributes {stable_mosaic.version = 11 : i64} {
  func.func @kernel(%arg0: i32, %arg1: memref<1x16x16x6xf32, #tpu.memory_space<vmem>>, %arg2: memref<1x16x16x12xf32, #tpu.memory_space<vmem>>, %arg3: memref<1x256x24xf32, #tpu.memory_space<vmem>>, %arg4: memref<54x24xbf16, #tpu.memory_space<vmem>>, %arg5: memref<1x24xf32, #tpu.memory_space<vmem>>, %arg6: memref<108x8xbf16, #tpu.memory_space<vmem>>, %arg7: memref<72x8xbf16, #tpu.memory_space<vmem>>, %arg8: memref<72x8xbf16, #tpu.memory_space<vmem>>, %arg9: memref<1x24x256xf32, #tpu.memory_space<vmem>>, %arg10: memref<1x256x24xf32, #tpu.memory_space<vmem>>, %arg11: memref<18x18x6xf32, #tpu.memory_space<vmem>>, %arg12: memref<18x18x12xf32, #tpu.memory_space<vmem>>, %arg13: memref<18x18x8xf32, #tpu.memory_space<vmem>>) attributes {dimension_semantics = [#tpu.dimension_semantics<parallel>], iteration_bounds = array<i64: 2>, scalar_prefetch = 0 : i64, scratch_operands = 3 : i64, tpu.core_type = #tpu.core_type<tc>, window_params = [{transform_indices = @transform_0, window_bounds = array<i64: 1, 16, 16, 6>}, {transform_indices = @transform_1, window_bounds = array<i64: 1, 16, 16, 12>}, {transform_indices = @transform_2, window_bounds = array<i64: 1, 256, 24>}, {pipeline_mode = #tpu.pipeline_mode<synchronous>, transform_indices = @transform_3, window_bounds = array<i64: 54, 24>}, {pipeline_mode = #tpu.pipeline_mode<synchronous>, transform_indices = @transform_4, window_bounds = array<i64: 1, 24>}, {pipeline_mode = #tpu.pipeline_mode<synchronous>, transform_indices = @transform_5, window_bounds = array<i64: 108, 8>}, {pipeline_mode = #tpu.pipeline_mode<synchronous>, transform_indices = @transform_6, window_bounds = array<i64: 72, 8>}, {pipeline_mode = #tpu.pipeline_mode<synchronous>, transform_indices = @transform_7, window_bounds = array<i64: 72, 8>}, {transform_indices = @transform_8, window_bounds = array<i64: 1, 24, 256>}, {transform_indices = @transform_9, window_bounds = array<i64: 1, 256, 24>}]} {
    %cst = arith.constant 0.000000e+00 : f32
    %0 = vector.broadcast %cst : f32 to vector<1x18x6xf32>
    %c0 = arith.constant 0 : index
    %c0_0 = arith.constant 0 : index
    %c0_1 = arith.constant 0 : index
    %1 = vector.load %arg11[%c0, %c0_0, %c0_1] : memref<18x18x6xf32, #tpu.memory_space<vmem>>, vector<1x18x6xf32>
    tpu.vector_store %arg11[%c0, %c0_0, %c0_1], %0 {strides = array<i32>} : memref<18x18x6xf32, #tpu.memory_space<vmem>>, vector<1x18x6xf32>,
    %cst_2 = arith.constant 0.000000e+00 : f32
    %2 = vector.broadcast %cst_2 : f32 to vector<1x18x6xf32>
    %c17 = arith.constant 17 : index
    %c0_3 = arith.constant 0 : index
    %c0_4 = arith.constant 0 : index
    %3 = vector.load %arg11[%c17, %c0_3, %c0_4] : memref<18x18x6xf32, #tpu.memory_space<vmem>>, vector<1x18x6xf32>
    tpu.vector_store %arg11[%c17, %c0_3, %c0_4], %2 {strides = array<i32>} : memref<18x18x6xf32, #tpu.memory_space<vmem>>, vector<1x18x6xf32>,
    %cst_5 = arith.constant 0.000000e+00 : f32
    %4 = vector.broadcast %cst_5 : f32 to vector<18x1x6xf32>
    %c0_6 = arith.constant 0 : index
    %c0_7 = arith.constant 0 : index
    %c0_8 = arith.constant 0 : index
    %5 = vector.load %arg11[%c0_6, %c0_7, %c0_8] : memref<18x18x6xf32, #tpu.memory_space<vmem>>, vector<18x1x6xf32>
    tpu.vector_store %arg11[%c0_6, %c0_7, %c0_8], %4 {strides = array<i32>} : memref<18x18x6xf32, #tpu.memory_space<vmem>>, vector<18x1x6xf32>,
    %cst_9 = arith.constant 0.000000e+00 : f32
    %6 = vector.broadcast %cst_9 : f32 to vector<18x1x6xf32>
    %c0_10 = arith.constant 0 : index
    %c17_11 = arith.constant 17 : index
    %c0_12 = arith.constant 0 : index
    %7 = vector.load %arg11[%c0_10, %c17_11, %c0_12] : memref<18x18x6xf32, #tpu.memory_space<vmem>>, vector<18x1x6xf32>
    tpu.vector_store %arg11[%c0_10, %c17_11, %c0_12], %6 {strides = array<i32>} : memref<18x18x6xf32, #tpu.memory_space<vmem>>, vector<18x1x6xf32>,
    %cst_13 = arith.constant 0.000000e+00 : f32
    %8 = vector.broadcast %cst_13 : f32 to vector<1x18x12xf32>
    %c0_14 = arith.constant 0 : index
    %c0_15 = arith.constant 0 : index
    %c0_16 = arith.constant 0 : index
    %9 = vector.load %arg12[%c0_14, %c0_15, %c0_16] : memref<18x18x12xf32, #tpu.memory_space<vmem>>, vector<1x18x12xf32>
    tpu.vector_store %arg12[%c0_14, %c0_15, %c0_16], %8 {strides = array<i32>} : memref<18x18x12xf32, #tpu.memory_space<vmem>>, vector<1x18x12xf32>,
    %cst_17 = arith.constant 0.000000e+00 : f32
    %10 = vector.broadcast %cst_17 : f32 to vector<1x18x12xf32>
    %c17_18 = arith.constant 17 : index
    %c0_19 = arith.constant 0 : index
    %c0_20 = arith.constant 0 : index
    %11 = vector.load %arg12[%c17_18, %c0_19, %c0_20] : memref<18x18x12xf32, #tpu.memory_space<vmem>>, vector<1x18x12xf32>
    tpu.vector_store %arg12[%c17_18, %c0_19, %c0_20], %10 {strides = array<i32>} : memref<18x18x12xf32, #tpu.memory_space<vmem>>, vector<1x18x12xf32>,
    %cst_21 = arith.constant 0.000000e+00 : f32
    %12 = vector.broadcast %cst_21 : f32 to vector<18x1x12xf32>
    %c0_22 = arith.constant 0 : index
    %c0_23 = arith.constant 0 : index
    %c0_24 = arith.constant 0 : index
    %13 = vector.load %arg12[%c0_22, %c0_23, %c0_24] : memref<18x18x12xf32, #tpu.memory_space<vmem>>, vector<18x1x12xf32>
    tpu.vector_store %arg12[%c0_22, %c0_23, %c0_24], %12 {strides = array<i32>} : memref<18x18x12xf32, #tpu.memory_space<vmem>>, vector<18x1x12xf32>,
    %cst_25 = arith.constant 0.000000e+00 : f32
    %14 = vector.broadcast %cst_25 : f32 to vector<18x1x12xf32>
    %c0_26 = arith.constant 0 : index
    %c17_27 = arith.constant 17 : index
    %c0_28 = arith.constant 0 : index
    %15 = vector.load %arg12[%c0_26, %c17_27, %c0_28] : memref<18x18x12xf32, #tpu.memory_space<vmem>>, vector<18x1x12xf32>
    tpu.vector_store %arg12[%c0_26, %c17_27, %c0_28], %14 {strides = array<i32>} : memref<18x18x12xf32, #tpu.memory_space<vmem>>, vector<18x1x12xf32>,
    %cst_29 = arith.constant 0.000000e+00 : f32
    %16 = vector.broadcast %cst_29 : f32 to vector<1x18x8xf32>
    %c0_30 = arith.constant 0 : index
    %c0_31 = arith.constant 0 : index
    %c0_32 = arith.constant 0 : index
    %17 = vector.load %arg13[%c0_30, %c0_31, %c0_32] : memref<18x18x8xf32, #tpu.memory_space<vmem>>, vector<1x18x8xf32>
    tpu.vector_store %arg13[%c0_30, %c0_31, %c0_32], %16 {strides = array<i32>} : memref<18x18x8xf32, #tpu.memory_space<vmem>>, vector<1x18x8xf32>,
    %cst_33 = arith.constant 0.000000e+00 : f32
    %18 = vector.broadcast %cst_33 : f32 to vector<1x18x8xf32>
    %c17_34 = arith.constant 17 : index
    %c0_35 = arith.constant 0 : index
    %c0_36 = arith.constant 0 : index
    %19 = vector.load %arg13[%c17_34, %c0_35, %c0_36] : memref<18x18x8xf32, #tpu.memory_space<vmem>>, vector<1x18x8xf32>
    tpu.vector_store %arg13[%c17_34, %c0_35, %c0_36], %18 {strides = array<i32>} : memref<18x18x8xf32, #tpu.memory_space<vmem>>, vector<1x18x8xf32>,
    %cst_37 = arith.constant 0.000000e+00 : f32
    %20 = vector.broadcast %cst_37 : f32 to vector<18x1x8xf32>
    %c0_38 = arith.constant 0 : index
    %c0_39 = arith.constant 0 : index
    %c0_40 = arith.constant 0 : index
    %21 = vector.load %arg13[%c0_38, %c0_39, %c0_40] : memref<18x18x8xf32, #tpu.memory_space<vmem>>, vector<18x1x8xf32>
    tpu.vector_store %arg13[%c0_38, %c0_39, %c0_40], %20 {strides = array<i32>} : memref<18x18x8xf32, #tpu.memory_space<vmem>>, vector<18x1x8xf32>,
    %cst_41 = arith.constant 0.000000e+00 : f32
    %22 = vector.broadcast %cst_41 : f32 to vector<18x1x8xf32>
    %c0_42 = arith.constant 0 : index
    %c17_43 = arith.constant 17 : index
    %c0_44 = arith.constant 0 : index
    %23 = vector.load %arg13[%c0_42, %c17_43, %c0_44] : memref<18x18x8xf32, #tpu.memory_space<vmem>>, vector<18x1x8xf32>
    tpu.vector_store %arg13[%c0_42, %c17_43, %c0_44], %22 {strides = array<i32>} : memref<18x18x8xf32, #tpu.memory_space<vmem>>, vector<18x1x8xf32>,
    %c0_45 = arith.constant 0 : index
    %c0_46 = arith.constant 0 : index
    %c0_47 = arith.constant 0 : index
    %c0_48 = arith.constant 0 : index
    %24 = vector.load %arg1[%c0_45, %c0_46, %c0_47, %c0_48] : memref<1x16x16x6xf32, #tpu.memory_space<vmem>>, vector<1x16x16x6xf32>
    %25 = vector.shape_cast %24 : vector<1x16x16x6xf32> to vector<16x16x6xf32>
    %c1 = arith.constant 1 : index
    %c1_49 = arith.constant 1 : index
    %c0_50 = arith.constant 0 : index
    %26 = vector.load %arg11[%c1, %c1_49, %c0_50] : memref<18x18x6xf32, #tpu.memory_space<vmem>>, vector<16x16x6xf32>
    tpu.vector_store %arg11[%c1, %c1_49, %c0_50], %25 {strides = array<i32>} : memref<18x18x6xf32, #tpu.memory_space<vmem>>, vector<16x16x6xf32>,
    %c0_51 = arith.constant 0 : index
    %c0_52 = arith.constant 0 : index
    %c0_53 = arith.constant 0 : index
    %c0_54 = arith.constant 0 : index
    %27 = vector.load %arg2[%c0_51, %c0_52, %c0_53, %c0_54] : memref<1x16x16x12xf32, #tpu.memory_space<vmem>>, vector<1x16x16x12xf32>
    %28 = vector.shape_cast %27 : vector<1x16x16x12xf32> to vector<16x16x12xf32>
    %c1_55 = arith.constant 1 : index
    %c1_56 = arith.constant 1 : index
    %c0_57 = arith.constant 0 : index
    %29 = vector.load %arg12[%c1_55, %c1_56, %c0_57] : memref<18x18x12xf32, #tpu.memory_space<vmem>>, vector<16x16x12xf32>
    tpu.vector_store %arg12[%c1_55, %c1_56, %c0_57], %28 {strides = array<i32>} : memref<18x18x12xf32, #tpu.memory_space<vmem>>, vector<16x16x12xf32>,
    %c0_58 = arith.constant 0 : index
    %c0_59 = arith.constant 0 : index
    %c0_60 = arith.constant 0 : index
    %30 = vector.load %arg3[%c0_58, %c0_59, %c0_60] : memref<1x256x24xf32, #tpu.memory_space<vmem>>, vector<1x256x24xf32>
    %31 = vector.shape_cast %30 : vector<1x256x24xf32> to vector<256x24xf32>
    %32 = tpu.iota {dimensions = array<i32: 0>} : vector<8x8xi32>
    %33 = tpu.iota {dimensions = array<i32: 1>} : vector<8x8xi32>
    %c0_i32 = arith.constant 0 : i32
    %34 = vector.broadcast %c0_i32 : i32 to vector<8x8xi32>
    %35 = arith.addi %32, %34 : vector<8x8xi32>
    %36 = arith.cmpi eq, %35, %33 : vector<8x8xi32>
    %37 = arith.extui %36 : vector<8x8xi1> to vector<8x8xi32>
    %38 = arith.sitofp %37 : vector<8x8xi32> to vector<8x8xf32>
    %39 = arith.truncf %38 : vector<8x8xf32> to vector<8x8xbf16>
    %c0_61 = arith.constant 0 : index
    %c0_62 = arith.constant 0 : index
    %c0_63 = arith.constant 0 : index
    %40 = vector.load %arg11[%c0_61, %c0_62, %c0_63] : memref<18x18x6xf32, #tpu.memory_space<vmem>>, vector<16x16x6xf32>
    %c0_64 = arith.constant 0 : index
    %c1_65 = arith.constant 1 : index
    %c0_66 = arith.constant 0 : index
    %41 = vector.load %arg11[%c0_64, %c1_65, %c0_66] : memref<18x18x6xf32, #tpu.memory_space<vmem>>, vector<16x16x6xf32>
    %c0_67 = arith.constant 0 : index
    %c2 = arith.constant 2 : index
    %c0_68 = arith.constant 0 : index
    %42 = vector.load %arg11[%c0_67, %c2, %c0_68] : memref<18x18x6xf32, #tpu.memory_space<vmem>>, vector<16x16x6xf32>
    %c1_69 = arith.constant 1 : index
    %c0_70 = arith.constant 0 : index
    %c0_71 = arith.constant 0 : index
    %43 = vector.load %arg11[%c1_69, %c0_70, %c0_71] : memref<18x18x6xf32, #tpu.memory_space<vmem>>, vector<16x16x6xf32>
    %c1_72 = arith.constant 1 : index
    %c1_73 = arith.constant 1 : index
    %c0_74 = arith.constant 0 : index
    %44 = vector.load %arg11[%c1_72, %c1_73, %c0_74] : memref<18x18x6xf32, #tpu.memory_space<vmem>>, vector<16x16x6xf32>
    %c1_75 = arith.constant 1 : index
    %c2_76 = arith.constant 2 : index
    %c0_77 = arith.constant 0 : index
    %45 = vector.load %arg11[%c1_75, %c2_76, %c0_77] : memref<18x18x6xf32, #tpu.memory_space<vmem>>, vector<16x16x6xf32>
    %c2_78 = arith.constant 2 : index
    %c0_79 = arith.constant 0 : index
    %c0_80 = arith.constant 0 : index
    %46 = vector.load %arg11[%c2_78, %c0_79, %c0_80] : memref<18x18x6xf32, #tpu.memory_space<vmem>>, vector<16x16x6xf32>
    %c2_81 = arith.constant 2 : index
    %c1_82 = arith.constant 1 : index
    %c0_83 = arith.constant 0 : index
    %47 = vector.load %arg11[%c2_81, %c1_82, %c0_83] : memref<18x18x6xf32, #tpu.memory_space<vmem>>, vector<16x16x6xf32>
    %c2_84 = arith.constant 2 : index
    %c2_85 = arith.constant 2 : index
    %c0_86 = arith.constant 0 : index
    %48 = vector.load %arg11[%c2_84, %c2_85, %c0_86] : memref<18x18x6xf32, #tpu.memory_space<vmem>>, vector<16x16x6xf32>
    %49 = tpu.concatenate %40, %41, %42, %43, %44, %45, %46, %47, %48 in 2 : vector<16x16x6xf32>, vector<16x16x6xf32>, vector<16x16x6xf32>, vector<16x16x6xf32>, vector<16x16x6xf32>, vector<16x16x6xf32>, vector<16x16x6xf32>, vector<16x16x6xf32>, vector<16x16x6xf32> -> vector<16x16x54xf32>
    %50 = vector.shape_cast %49 : vector<16x16x54xf32> to vector<256x54xf32>
    %51 = arith.truncf %50 : vector<256x54xf32> to vector<256x54xbf16>
    %c0_87 = arith.constant 0 : index
    %c0_88 = arith.constant 0 : index
    %52 = vector.load %arg4[%c0_87, %c0_88] : memref<54x24xbf16, #tpu.memory_space<vmem>>, vector<54x24xbf16>
    %cst_89 = arith.constant dense<0.000000e+00> : vector<256x24xf32>
    %53 = tpu.matmul %51, %52, %cst_89 {dimension_numbers = #tpu.dot_dimension_numbers<[1], [0], [0], [1], [0, 0, 1, 1], [], []>} : vector<256x54xbf16>, vector<54x24xbf16>, vector<256x24xf32> -> vector<256x24xf32>
    %c0_90 = arith.constant 0 : index
    %c0_91 = arith.constant 0 : index
    %54 = vector.load %arg5[%c0_90, %c0_91] : memref<1x24xf32, #tpu.memory_space<vmem>>, vector<1x24xf32>
    %55 = vector.broadcast %54 : vector<1x24xf32> to vector<256x24xf32>
    %56 = arith.addf %53, %55 : vector<256x24xf32>
    %c0_92 = arith.constant 0 : index
    %c0_93 = arith.constant 0 : index
    %c0_94 = arith.constant 0 : index
    %57 = vector.load %arg12[%c0_92, %c0_93, %c0_94] : memref<18x18x12xf32, #tpu.memory_space<vmem>>, vector<16x16x12xf32>
    %c0_95 = arith.constant 0 : index
    %c1_96 = arith.constant 1 : index
    %c0_97 = arith.constant 0 : index
    %58 = vector.load %arg12[%c0_95, %c1_96, %c0_97] : memref<18x18x12xf32, #tpu.memory_space<vmem>>, vector<16x16x12xf32>
    %c0_98 = arith.constant 0 : index
    %c2_99 = arith.constant 2 : index
    %c0_100 = arith.constant 0 : index
    %59 = vector.load %arg12[%c0_98, %c2_99, %c0_100] : memref<18x18x12xf32, #tpu.memory_space<vmem>>, vector<16x16x12xf32>
    %c1_101 = arith.constant 1 : index
    %c0_102 = arith.constant 0 : index
    %c0_103 = arith.constant 0 : index
    %60 = vector.load %arg12[%c1_101, %c0_102, %c0_103] : memref<18x18x12xf32, #tpu.memory_space<vmem>>, vector<16x16x12xf32>
    %c1_104 = arith.constant 1 : index
    %c1_105 = arith.constant 1 : index
    %c0_106 = arith.constant 0 : index
    %61 = vector.load %arg12[%c1_104, %c1_105, %c0_106] : memref<18x18x12xf32, #tpu.memory_space<vmem>>, vector<16x16x12xf32>
    %c1_107 = arith.constant 1 : index
    %c2_108 = arith.constant 2 : index
    %c0_109 = arith.constant 0 : index
    %62 = vector.load %arg12[%c1_107, %c2_108, %c0_109] : memref<18x18x12xf32, #tpu.memory_space<vmem>>, vector<16x16x12xf32>
    %c2_110 = arith.constant 2 : index
    %c0_111 = arith.constant 0 : index
    %c0_112 = arith.constant 0 : index
    %63 = vector.load %arg12[%c2_110, %c0_111, %c0_112] : memref<18x18x12xf32, #tpu.memory_space<vmem>>, vector<16x16x12xf32>
    %c2_113 = arith.constant 2 : index
    %c1_114 = arith.constant 1 : index
    %c0_115 = arith.constant 0 : index
    %64 = vector.load %arg12[%c2_113, %c1_114, %c0_115] : memref<18x18x12xf32, #tpu.memory_space<vmem>>, vector<16x16x12xf32>
    %c2_116 = arith.constant 2 : index
    %c2_117 = arith.constant 2 : index
    %c0_118 = arith.constant 0 : index
    %65 = vector.load %arg12[%c2_116, %c2_117, %c0_118] : memref<18x18x12xf32, #tpu.memory_space<vmem>>, vector<16x16x12xf32>
    %66 = tpu.concatenate %57, %58, %59, %60, %61, %62, %63, %64, %65 in 2 : vector<16x16x12xf32>, vector<16x16x12xf32>, vector<16x16x12xf32>, vector<16x16x12xf32>, vector<16x16x12xf32>, vector<16x16x12xf32>, vector<16x16x12xf32>, vector<16x16x12xf32>, vector<16x16x12xf32> -> vector<16x16x108xf32>
    %67 = vector.shape_cast %66 : vector<16x16x108xf32> to vector<256x108xf32>
    %68 = arith.truncf %67 : vector<256x108xf32> to vector<256x108xbf16>
    %c0_119 = arith.constant 0 : index
    %c0_120 = arith.constant 0 : index
    %69 = vector.load %arg6[%c0_119, %c0_120] : memref<108x8xbf16, #tpu.memory_space<vmem>>, vector<108x8xbf16>
    %cst_121 = arith.constant dense<0.000000e+00> : vector<256x8xf32>
    %70 = tpu.matmul %68, %69, %cst_121 {dimension_numbers = #tpu.dot_dimension_numbers<[1], [0], [0], [1], [0, 0, 1, 1], [], []>} : vector<256x108xbf16>, vector<108x8xbf16>, vector<256x8xf32> -> vector<256x8xf32>
    %71 = vector.extract_strided_slice %31 {offsets = [0, 0], sizes = [256, 8], strides = [1, 1]} : vector<256x24xf32> to vector<256x8xf32>
    %72 = vector.extract_strided_slice %56 {offsets = [0, 0], sizes = [256, 8], strides = [1, 1]} : vector<256x24xf32> to vector<256x8xf32>
    %73 = arith.addf %71, %72 : vector<256x8xf32>
    %74 = arith.addf %73, %70 : vector<256x8xf32>
    %cst_122 = arith.constant 5.000000e-01 : f32
    %75 = vector.broadcast %cst_122 : f32 to vector<256x8xf32>
    %76 = arith.cmpf ogt, %74, %75 : vector<256x8xf32>
    %77 = arith.extui %76 : vector<256x8xi1> to vector<256x8xi32>
    %78 = arith.sitofp %77 : vector<256x8xi32> to vector<256x8xf32>
    %79 = arith.truncf %78 : vector<256x8xf32> to vector<256x8xbf16>
    %cst_123 = arith.constant dense<0.000000e+00> : vector<8x256xf32>
    %80 = tpu.matmul %39, %79, %cst_123 {dimension_numbers = #tpu.dot_dimension_numbers<[1], [1], [0], [0], [0, 0, 1, 0], [], []>} : vector<8x8xbf16>, vector<256x8xbf16>, vector<8x256xf32> -> vector<8x256xf32>
    %c0_124 = arith.constant 0 : index
    %c0_125 = arith.constant 0 : index
    %c0_126 = arith.constant 0 : index
    %81 = vector.load %arg9[%c0_124, %c0_125, %c0_126] : memref<1x24x256xf32, #tpu.memory_space<vmem>>, vector<1x8x256xf32>
    %82 = vector.shape_cast %81 : vector<1x8x256xf32> to vector<8x256xf32>
    %83 = vector.shape_cast %80 : vector<8x256xf32> to vector<1x8x256xf32>
    tpu.vector_store %arg9[%c0_124, %c0_125, %c0_126], %83 {strides = array<i32>} : memref<1x24x256xf32, #tpu.memory_space<vmem>>, vector<1x8x256xf32>,
    %cst_127 = arith.constant 2.000000e-01 : f32
    %84 = vector.broadcast %cst_127 : f32 to vector<256x8xf32>
    %85 = arith.mulf %74, %84 : vector<256x8xf32>
    %cst_128 = arith.constant 1.000000e+00 : f32
    %86 = vector.broadcast %cst_128 : f32 to vector<256x8xf32>
    %87 = arith.subf %86, %78 : vector<256x8xf32>
    %88 = arith.mulf %85, %87 : vector<256x8xf32>
    %89 = vector.shape_cast %78 : vector<256x8xf32> to vector<16x16x8xf32>
    %c1_129 = arith.constant 1 : index
    %c1_130 = arith.constant 1 : index
    %c0_131 = arith.constant 0 : index
    %90 = vector.load %arg13[%c1_129, %c1_130, %c0_131] : memref<18x18x8xf32, #tpu.memory_space<vmem>>, vector<16x16x8xf32>
    tpu.vector_store %arg13[%c1_129, %c1_130, %c0_131], %89 {strides = array<i32>} : memref<18x18x8xf32, #tpu.memory_space<vmem>>, vector<16x16x8xf32>,
    %c0_132 = arith.constant 0 : index
    %c0_133 = arith.constant 0 : index
    %c0_134 = arith.constant 0 : index
    %91 = vector.load %arg13[%c0_132, %c0_133, %c0_134] : memref<18x18x8xf32, #tpu.memory_space<vmem>>, vector<16x16x8xf32>
    %c0_135 = arith.constant 0 : index
    %c1_136 = arith.constant 1 : index
    %c0_137 = arith.constant 0 : index
    %92 = vector.load %arg13[%c0_135, %c1_136, %c0_137] : memref<18x18x8xf32, #tpu.memory_space<vmem>>, vector<16x16x8xf32>
    %c0_138 = arith.constant 0 : index
    %c2_139 = arith.constant 2 : index
    %c0_140 = arith.constant 0 : index
    %93 = vector.load %arg13[%c0_138, %c2_139, %c0_140] : memref<18x18x8xf32, #tpu.memory_space<vmem>>, vector<16x16x8xf32>
    %c1_141 = arith.constant 1 : index
    %c0_142 = arith.constant 0 : index
    %c0_143 = arith.constant 0 : index
    %94 = vector.load %arg13[%c1_141, %c0_142, %c0_143] : memref<18x18x8xf32, #tpu.memory_space<vmem>>, vector<16x16x8xf32>
    %c1_144 = arith.constant 1 : index
    %c1_145 = arith.constant 1 : index
    %c0_146 = arith.constant 0 : index
    %95 = vector.load %arg13[%c1_144, %c1_145, %c0_146] : memref<18x18x8xf32, #tpu.memory_space<vmem>>, vector<16x16x8xf32>
    %c1_147 = arith.constant 1 : index
    %c2_148 = arith.constant 2 : index
    %c0_149 = arith.constant 0 : index
    %96 = vector.load %arg13[%c1_147, %c2_148, %c0_149] : memref<18x18x8xf32, #tpu.memory_space<vmem>>, vector<16x16x8xf32>
    %c2_150 = arith.constant 2 : index
    %c0_151 = arith.constant 0 : index
    %c0_152 = arith.constant 0 : index
    %97 = vector.load %arg13[%c2_150, %c0_151, %c0_152] : memref<18x18x8xf32, #tpu.memory_space<vmem>>, vector<16x16x8xf32>
    %c2_153 = arith.constant 2 : index
    %c1_154 = arith.constant 1 : index
    %c0_155 = arith.constant 0 : index
    %98 = vector.load %arg13[%c2_153, %c1_154, %c0_155] : memref<18x18x8xf32, #tpu.memory_space<vmem>>, vector<16x16x8xf32>
    %c2_156 = arith.constant 2 : index
    %c2_157 = arith.constant 2 : index
    %c0_158 = arith.constant 0 : index
    %99 = vector.load %arg13[%c2_156, %c2_157, %c0_158] : memref<18x18x8xf32, #tpu.memory_space<vmem>>, vector<16x16x8xf32>
    %100 = tpu.concatenate %91, %92, %93, %94, %95, %96, %97, %98, %99 in 2 : vector<16x16x8xf32>, vector<16x16x8xf32>, vector<16x16x8xf32>, vector<16x16x8xf32>, vector<16x16x8xf32>, vector<16x16x8xf32>, vector<16x16x8xf32>, vector<16x16x8xf32>, vector<16x16x8xf32> -> vector<16x16x72xf32>
    %101 = vector.shape_cast %100 : vector<16x16x72xf32> to vector<256x72xf32>
    %102 = arith.truncf %101 : vector<256x72xf32> to vector<256x72xbf16>
    %c0_159 = arith.constant 0 : index
    %c0_160 = arith.constant 0 : index
    %103 = vector.load %arg7[%c0_159, %c0_160] : memref<72x8xbf16, #tpu.memory_space<vmem>>, vector<72x8xbf16>
    %cst_161 = arith.constant dense<0.000000e+00> : vector<256x8xf32>
    %104 = tpu.matmul %102, %103, %cst_161 {dimension_numbers = #tpu.dot_dimension_numbers<[1], [0], [0], [1], [0, 0, 1, 1], [], []>} : vector<256x72xbf16>, vector<72x8xbf16>, vector<256x8xf32> -> vector<256x8xf32>
    %105 = vector.extract_strided_slice %31 {offsets = [0, 8], sizes = [256, 8], strides = [1, 1]} : vector<256x24xf32> to vector<256x8xf32>
    %106 = vector.extract_strided_slice %56 {offsets = [0, 8], sizes = [256, 8], strides = [1, 1]} : vector<256x24xf32> to vector<256x8xf32>
    %107 = arith.addf %105, %106 : vector<256x8xf32>
    %108 = arith.addf %107, %104 : vector<256x8xf32>
    %cst_162 = arith.constant 5.000000e-01 : f32
    %109 = vector.broadcast %cst_162 : f32 to vector<256x8xf32>
    %110 = arith.cmpf ogt, %108, %109 : vector<256x8xf32>
    %111 = arith.extui %110 : vector<256x8xi1> to vector<256x8xi32>
    %112 = arith.sitofp %111 : vector<256x8xi32> to vector<256x8xf32>
    %113 = arith.truncf %112 : vector<256x8xf32> to vector<256x8xbf16>
    %cst_163 = arith.constant dense<0.000000e+00> : vector<8x256xf32>
    %114 = tpu.matmul %39, %113, %cst_163 {dimension_numbers = #tpu.dot_dimension_numbers<[1], [1], [0], [0], [0, 0, 1, 0], [], []>} : vector<8x8xbf16>, vector<256x8xbf16>, vector<8x256xf32> -> vector<8x256xf32>
    %c0_164 = arith.constant 0 : index
    %c8 = arith.constant 8 : index
    %c0_165 = arith.constant 0 : index
    %115 = vector.load %arg9[%c0_164, %c8, %c0_165] : memref<1x24x256xf32, #tpu.memory_space<vmem>>, vector<1x8x256xf32>
    %116 = vector.shape_cast %115 : vector<1x8x256xf32> to vector<8x256xf32>
    %117 = vector.shape_cast %114 : vector<8x256xf32> to vector<1x8x256xf32>
    tpu.vector_store %arg9[%c0_164, %c8, %c0_165], %117 {strides = array<i32>} : memref<1x24x256xf32, #tpu.memory_space<vmem>>, vector<1x8x256xf32>,
    %cst_166 = arith.constant 2.000000e-01 : f32
    %118 = vector.broadcast %cst_166 : f32 to vector<256x8xf32>
    %119 = arith.mulf %108, %118 : vector<256x8xf32>
    %cst_167 = arith.constant 1.000000e+00 : f32
    %120 = vector.broadcast %cst_167 : f32 to vector<256x8xf32>
    %121 = arith.subf %120, %112 : vector<256x8xf32>
    %122 = arith.mulf %119, %121 : vector<256x8xf32>
    %123 = vector.shape_cast %112 : vector<256x8xf32> to vector<16x16x8xf32>
    %c1_168 = arith.constant 1 : index
    %c1_169 = arith.constant 1 : index
    %c0_170 = arith.constant 0 : index
    %124 = vector.load %arg13[%c1_168, %c1_169, %c0_170] : memref<18x18x8xf32, #tpu.memory_space<vmem>>, vector<16x16x8xf32>
    tpu.vector_store %arg13[%c1_168, %c1_169, %c0_170], %123 {strides = array<i32>} : memref<18x18x8xf32, #tpu.memory_space<vmem>>, vector<16x16x8xf32>,
    %c0_171 = arith.constant 0 : index
    %c0_172 = arith.constant 0 : index
    %c0_173 = arith.constant 0 : index
    %125 = vector.load %arg13[%c0_171, %c0_172, %c0_173] : memref<18x18x8xf32, #tpu.memory_space<vmem>>, vector<16x16x8xf32>
    %c0_174 = arith.constant 0 : index
    %c1_175 = arith.constant 1 : index
    %c0_176 = arith.constant 0 : index
    %126 = vector.load %arg13[%c0_174, %c1_175, %c0_176] : memref<18x18x8xf32, #tpu.memory_space<vmem>>, vector<16x16x8xf32>
    %c0_177 = arith.constant 0 : index
    %c2_178 = arith.constant 2 : index
    %c0_179 = arith.constant 0 : index
    %127 = vector.load %arg13[%c0_177, %c2_178, %c0_179] : memref<18x18x8xf32, #tpu.memory_space<vmem>>, vector<16x16x8xf32>
    %c1_180 = arith.constant 1 : index
    %c0_181 = arith.constant 0 : index
    %c0_182 = arith.constant 0 : index
    %128 = vector.load %arg13[%c1_180, %c0_181, %c0_182] : memref<18x18x8xf32, #tpu.memory_space<vmem>>, vector<16x16x8xf32>
    %c1_183 = arith.constant 1 : index
    %c1_184 = arith.constant 1 : index
    %c0_185 = arith.constant 0 : index
    %129 = vector.load %arg13[%c1_183, %c1_184, %c0_185] : memref<18x18x8xf32, #tpu.memory_space<vmem>>, vector<16x16x8xf32>
    %c1_186 = arith.constant 1 : index
    %c2_187 = arith.constant 2 : index
    %c0_188 = arith.constant 0 : index
    %130 = vector.load %arg13[%c1_186, %c2_187, %c0_188] : memref<18x18x8xf32, #tpu.memory_space<vmem>>, vector<16x16x8xf32>
    %c2_189 = arith.constant 2 : index
    %c0_190 = arith.constant 0 : index
    %c0_191 = arith.constant 0 : index
    %131 = vector.load %arg13[%c2_189, %c0_190, %c0_191] : memref<18x18x8xf32, #tpu.memory_space<vmem>>, vector<16x16x8xf32>
    %c2_192 = arith.constant 2 : index
    %c1_193 = arith.constant 1 : index
    %c0_194 = arith.constant 0 : index
    %132 = vector.load %arg13[%c2_192, %c1_193, %c0_194] : memref<18x18x8xf32, #tpu.memory_space<vmem>>, vector<16x16x8xf32>
    %c2_195 = arith.constant 2 : index
    %c2_196 = arith.constant 2 : index
    %c0_197 = arith.constant 0 : index
    %133 = vector.load %arg13[%c2_195, %c2_196, %c0_197] : memref<18x18x8xf32, #tpu.memory_space<vmem>>, vector<16x16x8xf32>
    %134 = tpu.concatenate %125, %126, %127, %128, %129, %130, %131, %132, %133 in 2 : vector<16x16x8xf32>, vector<16x16x8xf32>, vector<16x16x8xf32>, vector<16x16x8xf32>, vector<16x16x8xf32>, vector<16x16x8xf32>, vector<16x16x8xf32>, vector<16x16x8xf32>, vector<16x16x8xf32> -> vector<16x16x72xf32>
    %135 = vector.shape_cast %134 : vector<16x16x72xf32> to vector<256x72xf32>
    %136 = arith.truncf %135 : vector<256x72xf32> to vector<256x72xbf16>
    %c0_198 = arith.constant 0 : index
    %c0_199 = arith.constant 0 : index
    %137 = vector.load %arg8[%c0_198, %c0_199] : memref<72x8xbf16, #tpu.memory_space<vmem>>, vector<72x8xbf16>
    %cst_200 = arith.constant dense<0.000000e+00> : vector<256x8xf32>
    %138 = tpu.matmul %136, %137, %cst_200 {dimension_numbers = #tpu.dot_dimension_numbers<[1], [0], [0], [1], [0, 0, 1, 1], [], []>} : vector<256x72xbf16>, vector<72x8xbf16>, vector<256x8xf32> -> vector<256x8xf32>
    %139 = vector.extract_strided_slice %31 {offsets = [0, 16], sizes = [256, 8], strides = [1, 1]} : vector<256x24xf32> to vector<256x8xf32>
    %140 = vector.extract_strided_slice %56 {offsets = [0, 16], sizes = [256, 8], strides = [1, 1]} : vector<256x24xf32> to vector<256x8xf32>
    %141 = arith.addf %139, %140 : vector<256x8xf32>
    %142 = arith.addf %141, %138 : vector<256x8xf32>
    %cst_201 = arith.constant 5.000000e-01 : f32
    %143 = vector.broadcast %cst_201 : f32 to vector<256x8xf32>
    %144 = arith.cmpf ogt, %142, %143 : vector<256x8xf32>
    %145 = arith.extui %144 : vector<256x8xi1> to vector<256x8xi32>
    %146 = arith.sitofp %145 : vector<256x8xi32> to vector<256x8xf32>
    %147 = arith.truncf %146 : vector<256x8xf32> to vector<256x8xbf16>
    %cst_202 = arith.constant dense<0.000000e+00> : vector<8x256xf32>
    %148 = tpu.matmul %39, %147, %cst_202 {dimension_numbers = #tpu.dot_dimension_numbers<[1], [1], [0], [0], [0, 0, 1, 0], [], []>} : vector<8x8xbf16>, vector<256x8xbf16>, vector<8x256xf32> -> vector<8x256xf32>
    %c0_203 = arith.constant 0 : index
    %c16 = arith.constant 16 : index
    %c0_204 = arith.constant 0 : index
    %149 = vector.load %arg9[%c0_203, %c16, %c0_204] : memref<1x24x256xf32, #tpu.memory_space<vmem>>, vector<1x8x256xf32>
    %150 = vector.shape_cast %149 : vector<1x8x256xf32> to vector<8x256xf32>
    %151 = vector.shape_cast %148 : vector<8x256xf32> to vector<1x8x256xf32>
    tpu.vector_store %arg9[%c0_203, %c16, %c0_204], %151 {strides = array<i32>} : memref<1x24x256xf32, #tpu.memory_space<vmem>>, vector<1x8x256xf32>,
    %cst_205 = arith.constant 2.000000e-01 : f32
    %152 = vector.broadcast %cst_205 : f32 to vector<256x8xf32>
    %153 = arith.mulf %142, %152 : vector<256x8xf32>
    %cst_206 = arith.constant 1.000000e+00 : f32
    %154 = vector.broadcast %cst_206 : f32 to vector<256x8xf32>
    %155 = arith.subf %154, %146 : vector<256x8xf32>
    %156 = arith.mulf %153, %155 : vector<256x8xf32>
    %157 = tpu.concatenate %88, %122, %156 in 1 : vector<256x8xf32>, vector<256x8xf32>, vector<256x8xf32> -> vector<256x24xf32>
    %c0_207 = arith.constant 0 : index
    %c0_208 = arith.constant 0 : index
    %c0_209 = arith.constant 0 : index
    %158 = vector.load %arg10[%c0_207, %c0_208, %c0_209] : memref<1x256x24xf32, #tpu.memory_space<vmem>>, vector<1x256x24xf32>
    %159 = vector.shape_cast %158 : vector<1x256x24xf32> to vector<256x24xf32>
    %160 = vector.shape_cast %157 : vector<256x24xf32> to vector<1x256x24xf32>
    tpu.vector_store %arg10[%c0_207, %c0_208, %c0_209], %160 {strides = array<i32>} : memref<1x256x24xf32, #tpu.memory_space<vmem>>, vector<1x256x24xf32>,
    return
  }
  func.func @transform_0(%arg0: i32) -> (i32, i32, i32, i32) {
    %c0_i32 = arith.constant 0 : i32
    %c0_i32_0 = arith.constant 0 : i32
    %c0_i32_1 = arith.constant 0 : i32
    %c0_i32_2 = arith.constant 0 : i32
    return %arg0, %c0_i32, %c0_i32_0, %c0_i32_1 : i32, i32, i32, i32
  }
  func.func @transform_1(%arg0: i32) -> (i32, i32, i32, i32) {
    %c0_i32 = arith.constant 0 : i32
    %c0_i32_0 = arith.constant 0 : i32
    %c0_i32_1 = arith.constant 0 : i32
    %c0_i32_2 = arith.constant 0 : i32
    return %arg0, %c0_i32, %c0_i32_0, %c0_i32_1 : i32, i32, i32, i32
  }
  func.func @transform_2(%arg0: i32) -> (i32, i32, i32) {
    %c0_i32 = arith.constant 0 : i32
    %c0_i32_0 = arith.constant 0 : i32
    %c0_i32_1 = arith.constant 0 : i32
    return %arg0, %c0_i32, %c0_i32_0 : i32, i32, i32
  }
  func.func @transform_3(%arg0: i32) -> (i32, i32) {
    %c0_i32 = arith.constant 0 : i32
    %c0_i32_0 = arith.constant 0 : i32
    %c0_i32_1 = arith.constant 0 : i32
    return %c0_i32, %c0_i32_0 : i32, i32
  }
  func.func @transform_4(%arg0: i32) -> (i32, i32) {
    %c0_i32 = arith.constant 0 : i32
    %c0_i32_0 = arith.constant 0 : i32
    %c0_i32_1 = arith.constant 0 : i32
    return %c0_i32, %c0_i32_0 : i32, i32
  }
  func.func @transform_5(%arg0: i32) -> (i32, i32) {
    %c0_i32 = arith.constant 0 : i32
    %c0_i32_0 = arith.constant 0 : i32
    %c0_i32_1 = arith.constant 0 : i32
    return %c0_i32, %c0_i32_0 : i32, i32
  }
  func.func @transform_6(%arg0: i32) -> (i32, i32) {
    %c0_i32 = arith.constant 0 : i32
    %c0_i32_0 = arith.constant 0 : i32
    %c0_i32_1 = arith.constant 0 : i32
    return %c0_i32, %c0_i32_0 : i32, i32
  }
  func.func @transform_7(%arg0: i32) -> (i32, i32) {
    %c0_i32 = arith.constant 0 : i32
    %c0_i32_0 = arith.constant 0 : i32
    %c0_i32_1 = arith.constant 0 : i32
    return %c0_i32, %c0_i32_0 : i32, i32
  }
  func.func @transform_8(%arg0: i32) -> (i32, i32, i32) {
    %c0_i32 = arith.constant 0 : i32
    %c0_i32_0 = arith.constant 0 : i32
    %c0_i32_1 = arith.constant 0 : i32
    return %arg0, %c0_i32, %c0_i32_0 : i32, i32, i32
  }
  func.func @transform_9(%arg0: i32) -> (i32, i32, i32) {
    %c0_i32 = arith.constant 0 : i32
    %c0_i32_0 = arith.constant 0 : i32
    %c0_i32_1 = arith.constant 0 : i32
    return %arg0, %c0_i32, %c0_i32_0 : i32, i32, i32
  }
}

</mosaic_0001>

<bundles_post_ra>
// kernel: tpu_custom_call.1
= control target key start
LH: loop header
LB: loop body
LE: loop exit
PB: predicated region body
PF: predicated region fallthrough
CT: control target
= control target key end

     0   :  { %15 = vsyncpa [#allocation6], 0  ;;  %s19036_s0 = inlined_call_operand.vmem [shape: f32[2,16,16,6], index: 0, kind: input, shape index: {}]   ;;  %s19037_s1 = inlined_call_operand.vmem [shape: f32[2,16,16,12], index: 1, kind: input, shape index: {}]   ;;  %s19038_s2 = inlined_call_operand.vmem [shape: f32[2,256,24], index: 2, kind: input, shape index: {}]   ;;  %s19039_s3 = inlined_call_operand.vmem [shape: bf16[54,24], index: 3, kind: input, shape index: {}]   ;;  %s19040_s4 = inlined_call_operand.vmem [shape: f32[1,24], index: 4, kind: input, shape index: {}]   ;;  %s19041_s5 = inlined_call_operand.vmem [shape: bf16[108,8], index: 5, kind: input, shape index: {}]   ;;  %s19042_s6 = inlined_call_operand.vmem [shape: bf16[72,8], index: 6, kind: input, shape index: {}]   ;;  %s19043_s7 = inlined_call_operand.vmem [shape: bf16[72,8], index: 7, kind: input, shape index: {}]   ;;  %s19044_s8 = inlined_call_operand.hbm [shape: f32[2,24,256], index: 8, kind: output, shape index: {0}]   ;;  %s19045_s9 = inlined_call_operand.vmem [shape: f32[2,256,24], index: 9, kind: output, shape index: {1}]  }
   0x1   :  { %17 = vsyncpa [#allocation6 + $0x1], 0  ;;  %s12745_s30 = smov 0   ;;  %s12747_s10 = smov 0  }
   0x2   :  { %s12749_s11 = smov 0   ;;  %s12751_s12 = smov 0  }
   0x3 LB: > { %s12766_s13 = sadd.s32 4294967295, %s12671_s12   ;;  %s9530_s14 = sadd.s32 4294967294, %s12671_s12   ;;  %s12671_s12 = sphi %s12751_s12, %s19974_s12   ;;  %s12667_s11 = sphi %s12749_s11, %s19973_s11   ;;  %s12663_s10 = sphi %s12747_s10, %s19972_s10   ;;  %s12659_s30 = sphi %s12745_s30, %s19971_s30  }
   0x4   : > { %s12770_s15 = sadd.s32 1, %s12671_s12   ;;  %s213_s16 = sadd.s32 1, %s12667_s11 }
   0x5   : > { %s210_s17 = ssub.s32 %s12671_s12, %s12770_s15  ;;  %p223_p0 = scmp.ne.s32.totalorder %s12667_s11, %s12663_s10 }
   0x6   : > { %p211_p1 = scmp.eq.s32.totalorder %s210_s17, 0  ;;  %p224_p2 = scmp.eq.s32.totalorder %s12766_s13, 1 }
   0x7   : > { %p229_p3 = scmp.ne.s32.totalorder %s12663_s10, %s12659_s30  ;;  %p230_p4 = scmp.eq.s32.totalorder %s9530_s14, 1 }
   0x8   : > { %s12781_s18 = scalar_select %p211_p1, %s12667_s11, %s213_s16  }
   0x9   : > { %p12783_p5 = por %p224_p2, %p223_p0  ;;  %p12787_p6 = por %p230_p4, %p229_p3 }
   0xa   : > { %p9533_p7 = scmp.ge.s32.totalorder %s12671_s12, 1  ;;  %p313_p8 = scmp.lt.s32.totalorder %s12671_s12, 3 }
   0xc   : > { %p314_p9 = pnand %p9533_p7, %p313_p8 }
   0xe   : > { %317 = sbr.rel (%p314_p9) target bundleno = 3280 (0xcd0), region = 52 }
  0x13   : > { %vm385_vm0 = vcmask 48128   ;;  %vm388_vm1 = vcmask 41984   ;;  %v19046_v0 = vmov 0.0   ;;  %vm394_vm2 = vcmask 40960   ;;  %s12674_s21 = smov 6   ;;  %p364_p10 = scmp.lt.s32.totalorder %s12766_s13, 1 }
  0x14   : > { %386 = vst.msk [vmem:[#allocation2] sm:$0xff] %vm385_vm0, %v19046_v0  ;;  %s12675_s27 = smov 12   ;;  %s12676_s28 = smov 18   ;;  %vm431_vm3 = vcmask 97280   ;;  %vm434_vm4 = vcmask 91136   ;;  %vm440_vm5 = vcmask 90112  }
  0x15   : > { %387 = vst.msk [vmem:[#allocation2 + $0x8] sm:$0xff] %vm385_vm0, %v19046_v0  ;;  %s365_s22 = scalar_select %p364_p10, %s12766_s13, 1  ;;  %vm2070_vm6 = vcmask 146432   ;;  %vm2103_vm7 = vcmask 195584   ;;  %vm2136_vm8 = vcmask 244736   ;;  %vm2169_vm9 = vcmask 293888  }
  0x16   : > { %389 = vst.msk [vmem:[#allocation2 + $0x10] sm:$0x3] %vm388_vm1, %v19046_v0  ;;  %s12677_s29 = smov 24   ;;  %s12678_s14 = smov 30   ;;  %vm2202_vm10 = vcmask 343040   ;;  %vm2365_vm11 = vcmask 1042432  }
  0x17   : > { %393 = vst.msk [vmem:[#allocation2 + $0x1a8] sm:$0x3] %vm388_vm1, %v19046_v0  ;;  %s12860_s23 = sshll.u32 %s365_s22, 8  ;;  %s12679_s16 = smov 36   ;;  %vm2235_vm12 = vcmask 392192   ;;  %vm2316_vm13 = vcmask 441344  }
  0x18   : > { %413 = vst.msk [vmem:[#allocation2 + $0x11] sm:$0x1] %vm394_vm2, %v19046_v0  ;;  %s12872_s26 = scalar_lea.vmem %s19036_s0, %s12860_s23  ;;  %s12680_s17 = smov 42   ;;  %vm3899_vm14 = vcmask 490496   ;;  %vm4151_vm15 = vcmask 1045504   ;;  %vm3965_vm1 = vcmask 687104  }
  0x19   : > { %395 = vst.msk [vmem:[#allocation2] sm:$0x1] %vm394_vm2, %v19046_v0  ;;  %v529_v4 = vld [vmem:[%s12872_s26 + $0x30] sm:$0xff]  ;;  %v530_v5 = vld [vmem:[%s12872_s26 + $0x38] sm:$0xff]  ;;  %v523_v8 = vld [vmem:[%s12872_s26] sm:$0xff]  ;;  %s13418_s24 = scalar_lea.vmem %s19037_s1, %s12860_s23  ;;  %s12681_s25 = smov 48  }
  0x1a   : > { %391 = vst.msk [vmem:[#allocation2 + $0x198] sm:$0xff] %vm385_vm0, %v19046_v0  ;;  %v525_v6 = vld [vmem:[%s12872_s26 + $0x10] sm:$0xff]  ;;  %v526_v7 = vld [vmem:[%s12872_s26 + $0x18] sm:$0xff]  ;;  %v524_v9 = vld [vmem:[%s12872_s26 + $0x8] sm:$0xff]  ;;  %s15635_s22 = scalar_lea.vmem %s19038_s2, %s12860_s23 }
  0x1b   : > { %392 = vst.msk [vmem:[#allocation2 + $0x1a0] sm:$0xff] %vm385_vm0, %v19046_v0  ;;  %v531_v10 = vld [vmem:[%s12872_s26 + $0x40] sm:$0xff]  ;;  %v532_v11 = vld [vmem:[%s12872_s26 + $0x48] sm:$0xff]  ;;  %v533_v16 = vld [vmem:[%s12872_s26 + $0x50] sm:$0xff] }
  0x1c   : > { %v725_v1 = vld [vmem:[#allocation2 + $0x1] sm:$0xff]  ;;  %396 = vst.msk [vmem:[#allocation2 + $0x18] sm:$0x1] %vm394_vm2, %v19046_v0  ;;  %v534_v18 = vld [vmem:[%s12872_s26 + $0x58] sm:$0xff]  ;;  %v537_v20 = vld [vmem:[%s12872_s26 + $0x70] sm:$0xff] }
  0x1d   : > { %v726_v2 = vld [vmem:[#allocation2 + $0x9] sm:$0xff]  ;;  %397 = vst.msk [vmem:[#allocation2 + $0x30] sm:$0x1] %vm394_vm2, %v19046_v0  ;;  %v527_v12 = vld [vmem:[%s12872_s26 + $0x20] sm:$0xff]  ;;  %v538_v22 = vld [vmem:[%s12872_s26 + $0x78] sm:$0xff] }
  0x1e   : > { %v9878_v3 = vpack.i.bf16 %v726_v2, %v725_v1  ;;  %398 = vst.msk [vmem:[#allocation2 + $0x48] sm:$0x1] %vm394_vm2, %v19046_v0  ;;  %v528_v14 = vld [vmem:[%s12872_s26 + $0x28] sm:$0xff]  ;;  %v535_v25 = vld [vmem:[%s12872_s26 + $0x60] sm:$0xff]  ;;  %v541_v40 = vld [vmem:[%s12872_s26 + $0x90] sm:$0xff] }
  0x1f   : > { %399 = vst.msk [vmem:[#allocation2 + $0x60] sm:$0x1] %vm394_vm2, %v19046_v0  ;;  %v536_v27 = vld [vmem:[%s12872_s26 + $0x68] sm:$0xff]  ;;  %v539_v30 = vld [vmem:[%s12872_s26 + $0x80] sm:$0xff]  ;;  %v542_v42 = vld [vmem:[%s12872_s26 + $0x98] sm:$0xff] }
  0x20   : > { %9879 = vrot.lane.b32.xlu0 %v9878_v3, %s12674_s21  ;;  %400 = vst.msk [vmem:[#allocation2 + $0x78] sm:$0x1] %vm394_vm2, %v19046_v0  ;;  %v540_v32 = vld [vmem:[%s12872_s26 + $0x88] sm:$0xff]  ;;  %v543_v35 = vld [vmem:[%s12872_s26 + $0xa0] sm:$0xff]  ;;  %v545_v45 = vld [vmem:[%s12872_s26 + $0xb0] sm:$0xff] }
  0x21   : > { %401 = vst.msk [vmem:[#allocation2 + $0x90] sm:$0x1] %vm394_vm2, %v19046_v0  ;;  %v544_v37 = vld [vmem:[%s12872_s26 + $0xa8] sm:$0xff]  ;;  %v546_v47 = vld [vmem:[%s12872_s26 + $0xb8] sm:$0xff]  ;;  %v549_v48 = vld [vmem:[%s12872_s26 + $0xd0] sm:$0xff] }
  0x22   : > { %402 = vst.msk [vmem:[#allocation2 + $0xa8] sm:$0x1] %vm394_vm2, %v19046_v0  ;;  %v550_v52 = vld [vmem:[%s12872_s26 + $0xd8] sm:$0xff]  ;;  %v547_v53 = vld [vmem:[%s12872_s26 + $0xc0] sm:$0xff]  ;;  %v548_v56 = vld [vmem:[%s12872_s26 + $0xc8] sm:$0xff] }
  0x23   : > { %403 = vst.msk [vmem:[#allocation2 + $0xc0] sm:$0x1] %vm394_vm2, %v19046_v0  ;;  %v551_v58 = vld [vmem:[%s12872_s26 + $0xe0] sm:$0xff]  ;;  %v552_v59 = vld [vmem:[%s12872_s26 + $0xe8] sm:$0xff] }
  0x24   : > { %404 = vst.msk [vmem:[#allocation2 + $0xd8] sm:$0x1] %vm394_vm2, %v19046_v0 }
  0x25   : > { %405 = vst.msk [vmem:[#allocation2 + $0xf0] sm:$0x1] %vm394_vm2, %v19046_v0 }
  0x26   : > { %406 = vst.msk [vmem:[#allocation2 + $0x108] sm:$0x1] %vm394_vm2, %v19046_v0 }
  0x27   : > { %407 = vst.msk [vmem:[#allocation2 + $0x120] sm:$0x1] %vm394_vm2, %v19046_v0 }
  0x28   : > { %408 = vst.msk [vmem:[#allocation2 + $0x138] sm:$0x1] %vm394_vm2, %v19046_v0 }
  0x29   : > { %409 = vst.msk [vmem:[#allocation2 + $0x150] sm:$0x1] %vm394_vm2, %v19046_v0 }
  0x2a   : > { %410 = vst.msk [vmem:[#allocation2 + $0x168] sm:$0x1] %vm394_vm2, %v19046_v0 }
  0x2b   : > { %411 = vst.msk [vmem:[#allocation2 + $0x180] sm:$0x1] %vm394_vm2, %v19046_v0 }
  0x2c   : > { %414 = vst.msk [vmem:[#allocation2 + $0x29] sm:$0x1] %vm394_vm2, %v19046_v0 }
  0x2d   : > { %415 = vst.msk [vmem:[#allocation2 + $0x41] sm:$0x1] %vm394_vm2, %v19046_v0 }
  0x2e   : > { %416 = vst.msk [vmem:[#allocation2 + $0x59] sm:$0x1] %vm394_vm2, %v19046_v0 }
  0x2f   : > { %417 = vst.msk [vmem:[#allocation2 + $0x71] sm:$0x1] %vm394_vm2, %v19046_v0 }
  0x30   : > { %418 = vst.msk [vmem:[#allocation2 + $0x89] sm:$0x1] %vm394_vm2, %v19046_v0 }
  0x31   : > { %419 = vst.msk [vmem:[#allocation2 + $0xa1] sm:$0x1] %vm394_vm2, %v19046_v0 }
  0x32   : > { %420 = vst.msk [vmem:[#allocation2 + $0xb9] sm:$0x1] %vm394_vm2, %v19046_v0 }
  0x33   : > { %421 = vst.msk [vmem:[#allocation2 + $0xd1] sm:$0x1] %vm394_vm2, %v19046_v0 }
  0x34   : > { %422 = vst.msk [vmem:[#allocation2 + $0xe9] sm:$0x1] %vm394_vm2, %v19046_v0 }
  0x35   : > { %423 = vst.msk [vmem:[#allocation2 + $0x101] sm:$0x1] %vm394_vm2, %v19046_v0 }
  0x36   : > { %424 = vst.msk [vmem:[#allocation2 + $0x119] sm:$0x1] %vm394_vm2, %v19046_v0 }
  0x37   : > { %425 = vst.msk [vmem:[#allocation2 + $0x131] sm:$0x1] %vm394_vm2, %v19046_v0 }
  0x38   : > { %426 = vst.msk [vmem:[#allocation2 + $0x149] sm:$0x1] %vm394_vm2, %v19046_v0 }
  0x39   : > { %427 = vst.msk [vmem:[#allocation2 + $0x161] sm:$0x1] %vm394_vm2, %v19046_v0 }
  0x3a   : > { %428 = vst.msk [vmem:[#allocation2 + $0x179] sm:$0x1] %vm394_vm2, %v19046_v0 }
  0x3b   : > { %429 = vst.msk [vmem:[#allocation2 + $0x191] sm:$0x1] %vm394_vm2, %v19046_v0 }
  0x3c   : > { %430 = vst.msk [vmem:[#allocation2 + $0x1a9] sm:$0x1] %vm394_vm2, %v19046_v0 }
  0x3d   : > { %562 = vst.msk [vmem:[#allocation2 + $0x61] sm:$0xff] %vm385_vm0, %v529_v4 }
  0x3e   : > { %563 = vst.msk [vmem:[#allocation2 + $0x69] sm:$0xff] %vm385_vm0, %v530_v5 }
  0x3f   : > { %412 = vst.msk [vmem:[#allocation2 + $0x198] sm:$0x1] %vm394_vm2, %v19046_v0  ;;  %vm3998_vm2 = vcmask 785408  }
  0x40   : > { %558 = vst.msk [vmem:[#allocation2 + $0x31] sm:$0xff] %vm385_vm0, %v525_v6 }
  0x41   : > { %559 = vst.msk [vmem:[#allocation2 + $0x39] sm:$0xff] %vm385_vm0, %v526_v7 }
  0x42   : > { %556 = vst.msk [vmem:[#allocation2 + $0x19] sm:$0xff] %vm385_vm0, %v523_v8 }
  0x43   : > { %557 = vst.msk [vmem:[#allocation2 + $0x21] sm:$0xff] %vm385_vm0, %v524_v9 }
  0x44   : > { %v733_v13 = vld [vmem:[#allocation2 + $0x61] sm:$0xff]  ;;  %564 = vst.msk [vmem:[#allocation2 + $0x79] sm:$0xff] %vm385_vm0, %v531_v10 }
  0x45   : > { %v734_v15 = vld [vmem:[#allocation2 + $0x69] sm:$0xff]  ;;  %565 = vst.msk [vmem:[#allocation2 + $0x81] sm:$0xff] %vm385_vm0, %v532_v11 }
  0x46   : > { %v12905_v17 = vpack.i.bf16 %v734_v15, %v733_v13  ;;  %560 = vst.msk [vmem:[#allocation2 + $0x49] sm:$0xff] %vm385_vm0, %v527_v12 }
  0x47   : > { %v729_v19 = vld [vmem:[#allocation2 + $0x31] sm:$0xff]  ;;  %561 = vst.msk [vmem:[#allocation2 + $0x51] sm:$0xff] %vm385_vm0, %v528_v14 }
  0x48   : > { %9899 = vrot.lane.b32.xlu2 %v12905_v17, %s12674_s21  ;;  %v730_v21 = vld [vmem:[#allocation2 + $0x39] sm:$0xff]  ;;  %566 = vst.msk [vmem:[#allocation2 + $0x91] sm:$0xff] %vm385_vm0, %v533_v16 }
  0x49   : > { %v12915_v23 = vpack.i.bf16 %v730_v21, %v729_v19  ;;  %v727_v24 = vld [vmem:[#allocation2 + $0x19] sm:$0xff]  ;;  %567 = vst.msk [vmem:[#allocation2 + $0x99] sm:$0xff] %vm385_vm0, %v534_v18  ;;  %v757_v19 = vld [vmem:[#allocation2 + $0x2] sm:$0xff] }
  0x4a   : > { %v728_v26 = vld [vmem:[#allocation2 + $0x21] sm:$0xff]  ;;  %570 = vst.msk [vmem:[#allocation2 + $0xc1] sm:$0xff] %vm385_vm0, %v537_v20  ;;  %v758_v20 = vld [vmem:[#allocation2 + $0xa] sm:$0xff] }
  0x4b   : > { %9889 = vrot.lane.b32.xlu1 %v12915_v23, %s12674_s21  ;;  %v12923_v28 = vpack.i.bf16 %v728_v26, %v727_v24  ;;  %v735_v29 = vld [vmem:[#allocation2 + $0x79] sm:$0xff]  ;;  %571 = vst.msk [vmem:[#allocation2 + $0xc9] sm:$0xff] %vm385_vm0, %v538_v22  ;;  %v760_v18 = vld [vmem:[#allocation2 + $0x22] sm:$0xff] }
  0x4c   : > { %v736_v31 = vld [vmem:[#allocation2 + $0x81] sm:$0xff]  ;;  %568 = vst.msk [vmem:[#allocation2 + $0xa9] sm:$0xff] %vm385_vm0, %v535_v25  ;;  %v761_v22 = vld [vmem:[#allocation2 + $0x32] sm:$0xff]  ;;  %v9958_v25 = vpack.i.bf16 %v758_v20, %v757_v19 }
  0x4d   : > { %9884 = vrot.lane.b32.xlu0 %v12923_v28, %s12674_s21  ;;  %v12931_v33 = vpack.i.bf16 %v736_v31, %v735_v29  ;;  %v731_v34 = vld [vmem:[#allocation2 + $0x49] sm:$0xff]  ;;  %569 = vst.msk [vmem:[#allocation2 + $0xb1] sm:$0xff] %vm385_vm0, %v536_v27  ;;  %v759_v16 = vld [vmem:[#allocation2 + $0x1a] sm:$0xff] }
  0x4e   : > { %v732_v36 = vld [vmem:[#allocation2 + $0x51] sm:$0xff]  ;;  %572 = vst.msk [vmem:[#allocation2 + $0xd9] sm:$0xff] %vm385_vm0, %v539_v30  ;;  %v13004_v21 = vpack.i.bf16 %v760_v18, %v759_v16  ;;  %v762_v24 = vld [vmem:[#allocation2 + $0x3a] sm:$0xff]  ;;  %v765_v27 = vld [vmem:[#allocation2 + $0x62] sm:$0xff] }
  0x4f   : > { %v12937_v38 = vpack.i.bf16 %v732_v36, %v731_v34  ;;  %v737_v39 = vld [vmem:[#allocation2 + $0x91] sm:$0xff]  ;;  %573 = vst.msk [vmem:[#allocation2 + $0xe1] sm:$0xff] %vm385_vm0, %v540_v32  ;;  %v13010_v26 = vpack.i.bf16 %v762_v24, %v761_v22  ;;  %v767_v34 = vld [vmem:[#allocation2 + $0x7a] sm:$0xff] }
  0x50   : > { %9904 = vrot.lane.b32.xlu2 %v12931_v33, %s12674_s21  ;;  %v738_v41 = vld [vmem:[#allocation2 + $0x99] sm:$0xff]  ;;  %576 = vst.msk [vmem:[#allocation2 + $0x109] sm:$0xff] %vm385_vm0, %v543_v35  ;;  %v766_v29 = vld [vmem:[#allocation2 + $0x6a] sm:$0xff]  ;;  %v768_v35 = vld [vmem:[#allocation2 + $0x82] sm:$0xff] }
  0x51   : > { %v12945_v43 = vpack.i.bf16 %v738_v41, %v737_v39  ;;  %v741_v44 = vld [vmem:[#allocation2 + $0xc1] sm:$0xff]  ;;  %577 = vst.msk [vmem:[#allocation2 + $0x111] sm:$0xff] %vm385_vm0, %v544_v37  ;;  %v763_v30 = vld [vmem:[#allocation2 + $0x4a] sm:$0xff]  ;;  %v764_v31 = vld [vmem:[#allocation2 + $0x52] sm:$0xff]  ;;  %v13013_v32 = vpack.i.bf16 %v766_v29, %v765_v27  ;;  %v13021_v37 = vpack.i.bf16 %v768_v35, %v767_v34 }
  0x52   : > { %v742_v46 = vld [vmem:[#allocation2 + $0xc9] sm:$0xff]  ;;  %574 = vst.msk [vmem:[#allocation2 + $0xf1] sm:$0xff] %vm385_vm0, %v541_v40  ;;  %v13017_v36 = vpack.i.bf16 %v764_v31, %v763_v30  ;;  %v769_v41 = vld [vmem:[#allocation2 + $0x92] sm:$0xff]  ;;  %v795_v27 = vld [vmem:[#allocation2 + $0x60] sm:$0xff] }
  0x53   : > { %9894 = vrot.lane.b32.xlu1 %v12937_v38, %s12674_s21  ;;  %575 = vst.msk [vmem:[#allocation2 + $0xf9] sm:$0xff] %vm385_vm0, %v542_v42  ;;  %v12955_v49 = vpack.i.bf16 %v742_v46, %v741_v44  ;;  %v739_v50 = vld [vmem:[#allocation2 + $0xa9] sm:$0xff]  ;;  %v770_v42 = vld [vmem:[#allocation2 + $0x9a] sm:$0xff] }
  0x54   : > { %v740_v51 = vld [vmem:[#allocation2 + $0xb1] sm:$0xff]  ;;  %578 = vst.msk [vmem:[#allocation2 + $0x121] sm:$0xff] %vm385_vm0, %v545_v45  ;;  %v773_v45 = vld [vmem:[#allocation2 + $0xc2] sm:$0xff] }
  0x55   : > { %9909 = vrot.lane.b32.xlu0 %v12945_v43, %s12674_s21  ;;  %579 = vst.msk [vmem:[#allocation2 + $0x129] sm:$0xff] %vm385_vm0, %v546_v47  ;;  %v743_v54 = vld [vmem:[#allocation2 + $0xd9] sm:$0xff]  ;;  %v12965_v57 = vpack.i.bf16 %v740_v51, %v739_v50  ;;  %v771_v39 = vld [vmem:[#allocation2 + $0xaa] sm:$0xff]  ;;  %v13029_v47 = vpack.i.bf16 %v770_v42, %v769_v41 }
  0x56   : > { %v744_v55 = vld [vmem:[#allocation2 + $0xe1] sm:$0xff]  ;;  %582 = vst.msk [vmem:[#allocation2 + $0x151] sm:$0xff] %vm385_vm0, %v549_v48  ;;  %v772_v40 = vld [vmem:[#allocation2 + $0xb2] sm:$0xff]  ;;  %v774_v46 = vld [vmem:[#allocation2 + $0xca] sm:$0xff] }
  0x57   : > { %583 = vst.msk [vmem:[#allocation2 + $0x159] sm:$0xff] %vm385_vm0, %v550_v52  ;;  %v12973_v60 = vpack.i.bf16 %v744_v55, %v743_v54  ;;  %v747_v61 = vld [vmem:[#allocation2 + $0x109] sm:$0xff]  ;;  %v13025_v44 = vpack.i.bf16 %v772_v40, %v771_v39  ;;  %v13033_v48 = vpack.i.bf16 %v774_v46, %v773_v45  ;;  %v775_v52 = vld [vmem:[#allocation2 + $0xda] sm:$0xff] }
  0x58   : > { %9919 = vrot.lane.b32.xlu2 %v12955_v49, %s12674_s21  ;;  %580 = vst.msk [vmem:[#allocation2 + $0x139] sm:$0xff] %vm385_vm0, %v547_v53  ;;  %v748_v62 = vld [vmem:[#allocation2 + $0x111] sm:$0xff]  ;;  %v776_v53 = vld [vmem:[#allocation2 + $0xe2] sm:$0xff] }
  0x59   : > { %581 = vst.msk [vmem:[#allocation2 + $0x141] sm:$0xff] %vm385_vm0, %v548_v56  ;;  %v12980_v63 = vpack.i.bf16 %v748_v62, %v747_v61  ;;  %v745_v1 = vld [vmem:[#allocation2 + $0xf1] sm:$0xff]  ;;  %v796_v29 = vld [vmem:[#allocation2 + $0x68] sm:$0xff]  ;;  %v13080_v40 = vld [vmem:[#allocation2 + $0x80] sm:$0xff] }
  0x5a   : > { %584 = vst.msk [vmem:[#allocation2 + $0x169] sm:$0xff] %vm385_vm0, %v551_v58  ;;  %v746_v2 = vld [vmem:[#allocation2 + $0xf9] sm:$0xff]  ;;  %v779_v55 = vld [vmem:[#allocation2 + $0x10a] sm:$0xff]  ;;  %v13041_v58 = vpack.i.bf16 %v776_v53, %v775_v52  ;;  %v13074_v35 = vpack.i.bf16 %v796_v29, %v795_v27 }
  0x5b   : > { %9914 = vrot.lane.b32.xlu1 %v12965_v57, %s12674_s21  ;;  %585 = vst.msk [vmem:[#allocation2 + $0x171] sm:$0xff] %vm385_vm0, %v552_v59  ;;  %v749_v3 = vld [vmem:[#allocation2 + $0x121] sm:$0xff]  ;;  %v12984_v5 = vpack.i.bf16 %v746_v2, %v745_v1  ;;  %v777_v50 = vld [vmem:[#allocation2 + $0xf2] sm:$0xff] }
  0x5c   : > { %v750_v4 = vld [vmem:[#allocation2 + $0x129] sm:$0xff]  ;;  %v778_v51 = vld [vmem:[#allocation2 + $0xfa] sm:$0xff]  ;;  %v780_v56 = vld [vmem:[#allocation2 + $0x112] sm:$0xff]  ;;  %432 = vst.msk [vmem:[#allocation3] sm:$0xff] %vm431_vm3, %v19046_v0 }
  0x5d   : > { %9924 = vrot.lane.b32.xlu0 %v12973_v60, %s12674_s21  ;;  %v12988_v6 = vpack.i.bf16 %v750_v4, %v749_v3  ;;  %v753_v7 = vld [vmem:[#allocation2 + $0x151] sm:$0xff]  ;;  %v13037_v54 = vpack.i.bf16 %v778_v51, %v777_v50  ;;  %v13045_v59 = vpack.i.bf16 %v780_v56, %v779_v55  ;;  %v781_v1 = vld [vmem:[#allocation2 + $0x122] sm:$0xff]  ;;  %433 = vst.msk [vmem:[#allocation3 + $0x8] sm:$0xff] %vm431_vm3, %v19046_v0 }
  0x5e   : > { %v754_v8 = vld [vmem:[#allocation2 + $0x159] sm:$0xff]  ;;  %v782_v2 = vld [vmem:[#allocation2 + $0x12a] sm:$0xff]  ;;  %437 = vst.msk [vmem:[#allocation3 + $0x198] sm:$0xff] %vm431_vm3, %v19046_v0 }
  0x5f   : > { %v12992_v9 = vpack.i.bf16 %v754_v8, %v753_v7  ;;  %v751_v10 = vld [vmem:[#allocation2 + $0x139] sm:$0xff]  ;;  %v13053_v8 = vpack.i.bf16 %v782_v2, %v781_v1  ;;  %v791_v19 = vld [vmem:[#allocation2 + $0x30] sm:$0xff]  ;;  %v793_v31 = vld [vmem:[#allocation2 + $0x48] sm:$0xff]  ;;  %438 = vst.msk [vmem:[#allocation3 + $0x1a0] sm:$0xff] %vm431_vm3, %v19046_v0 }
  0x60   : > { %9934 = vrot.lane.b32.xlu2 %v12980_v63, %s12674_s21  ;;  %v752_v11 = vld [vmem:[#allocation2 + $0x141] sm:$0xff]  ;;  %v785_v4 = vld [vmem:[#allocation2 + $0x152] sm:$0xff] }
  0x61   : > { %v755_v12 = vld [vmem:[#allocation2 + $0x169] sm:$0xff]  ;;  %v12996_v14 = vpack.i.bf16 %v752_v11, %v751_v10  ;;  %v783_v61 = vld [vmem:[#allocation2 + $0x13a] sm:$0xff] }
  0x62   : > { %v756_v13 = vld [vmem:[#allocation2 + $0x171] sm:$0xff]  ;;  %v784_v62 = vld [vmem:[#allocation2 + $0x142] sm:$0xff]  ;;  %v786_v7 = vld [vmem:[#allocation2 + $0x15a] sm:$0xff] }
  0x63   : > { %9929 = vrot.lane.b32.xlu1 %v12984_v5, %s12674_s21  ;;  %v13000_v15 = vpack.i.bf16 %v756_v13, %v755_v12  ;;  %v13049_v3 = vpack.i.bf16 %v784_v62, %v783_v61  ;;  %v13057_v10 = vpack.i.bf16 %v786_v7, %v785_v4  ;;  %v789_v11 = vld [vmem:[#allocation2 + $0x18] sm:$0xff]  ;;  %v790_v12 = vld [vmem:[#allocation2 + $0x20] sm:$0xff]  ;;  %v787_v13 = vld [vmem:[#allocation2 + $0x16a] sm:$0xff] }
  0x64   : > { %v788_v16 = vld [vmem:[#allocation2 + $0x172] sm:$0xff]  ;;  %v10038_v18 = vpack.i.bf16 %v790_v12, %v789_v11  ;;  %v801_v45 = vld [vmem:[#allocation2 + $0xa8] sm:$0xff]  ;;  %v13098_v55 = vld [vmem:[#allocation2 + $0xc0] sm:$0xff] }
  0x65   : > { %9939 = vrot.lane.b32.xlu0 %v12988_v6, %s12674_s21  ;;  %v792_v20 = vld [vmem:[#allocation2 + $0x38] sm:$0xff]  ;;  %v13063_v22 = vpack.i.bf16 %v788_v16, %v787_v13  ;;  %v553_v24 = vld [vmem:[%s12872_s26 + $0xf0] sm:$0xff]  ;;  %v13100_v56 = vld [vmem:[#allocation2 + $0xc8] sm:$0xff] }
  0x66   : > { %v554_v30 = vld [vmem:[%s12872_s26 + $0xf8] sm:$0xff]  ;;  %586 = vst.msk [vmem:[#allocation2 + $0x181] sm:$0xff] %vm385_vm0, %v553_v24  ;;  %v794_v34 = vld [vmem:[#allocation2 + $0x50] sm:$0xff]  ;;  %v13108_v62 = vpack.i.bf16 %v13100_v56, %v13098_v55  ;;  %v806_v11 = vld [vmem:[#allocation2 + $0xe0] sm:$0xff]  ;;  %s12686_s26 = smov 8  }
  0x67   : > { %587 = vst.msk [vmem:[#allocation2 + $0x189] sm:$0xff] %vm385_vm0, %v554_v30  ;;  %v13078_v39 = vld [vmem:[#allocation2 + $0x78] sm:$0xff]  ;;  %v13082_v41 = vpack.i.bf16 %v794_v34, %v793_v31  ;;  %v802_v46 = vld [vmem:[#allocation2 + $0xb0] sm:$0xff]  ;;  %v809_v13 = vld [vmem:[#allocation2 + $0x108] sm:$0xff] }
  0x68   : > { %9949 = vrot.lane.b32.xlu2 %v12992_v9, %s12674_s21  ;;  %v13088_v42 = vpack.i.bf16 %v13080_v40, %v13078_v39  ;;  %v799_v51 = vld [vmem:[#allocation2 + $0x90] sm:$0xff]  ;;  %v800_v52 = vld [vmem:[#allocation2 + $0x98] sm:$0xff]  ;;  %v13094_v53 = vpack.i.bf16 %v802_v46, %v801_v45  ;;  %v814_v24 = vld [vmem:[#allocation2 + $0x140] sm:$0xff] }
  0x69   : > { %v13102_v61 = vpack.i.bf16 %v800_v52, %v799_v51  ;;  %v807_v1 = vld [vmem:[#allocation2 + $0xf0] sm:$0xff]  ;;  %v808_v2 = vld [vmem:[#allocation2 + $0xf8] sm:$0xff]  ;;  %v811_v29 = vld [vmem:[#allocation2 + $0x120] sm:$0xff] }
  0x6a   : > { %v805_v7 = vld [vmem:[#allocation2 + $0xd8] sm:$0xff]  ;;  %v13114_v12 = vpack.i.bf16 %v808_v2, %v807_v1  ;;  %v810_v16 = vld [vmem:[#allocation2 + $0x110] sm:$0xff]  ;;  %v812_v30 = vld [vmem:[#allocation2 + $0x128] sm:$0xff] }
  0x6b   : > { %9944 = vrot.lane.b32.xlu1 %v12996_v14, %s12674_s21  ;;  %v815_v45 = vld [vmem:[#allocation2 + $0x150] sm:$0xff]  ;;  %v816_v46 = vld [vmem:[#allocation2 + $0x158] sm:$0xff]  ;;  %v13142_v51 = vpack.i.bf16 %v812_v30, %v811_v29 }
  0x6c   : > { %v13146_v52 = vpack.i.bf16 %v816_v46, %v815_v45 }
  0x6d   : > { %9954 = vrot.lane.b32.xlu0 %v13000_v15, %s12674_s21  ;;  %v819_v1 = vld [vmem:[#allocation2 + $0x180] sm:$0xff] }
  0x6e   : > { %v820_v2 = vld [vmem:[#allocation2 + $0x188] sm:$0xff] }
  0x70   : > { %9964 = vrot.lane.b32.xlu2 %v13004_v21, %s12675_s27 }
  0x73   : > { %9959 = vrot.lane.b32.xlu1 %v9958_v25, %s12675_s27  ;;  %v13067_v25 = vpack.i.bf16 %v792_v20, %v791_v19  ;;  %v13124_v19 = vpack.i.bf16 %v810_v16, %v809_v13  ;;  %v813_v20 = vld [vmem:[#allocation2 + $0x138] sm:$0xff]  ;;  %v818_v13 = vld [vmem:[#allocation2 + $0x170] sm:$0xff]  ;;  %v13152_v16 = vpack.i.bf16 %v820_v2, %v819_v1 }
  0x74   : > { %v13136_v31 = vpack.i.bf16 %v814_v24, %v813_v20 }
  0x75   : > { %9969 = vrot.lane.b32.xlu0 %v13010_v26, %s12675_s27 }
  0x78   : > { %9979 = vrot.lane.b32.xlu2 %v13013_v32, %s12675_s27 }
  0x7b   : > { %9974 = vrot.lane.b32.xlu1 %v13017_v36, %s12675_s27 }
  0x7d   : > { %9984 = vrot.lane.b32.xlu0 %v13021_v37, %s12675_s27 }
  0x80   : > { %9994 = vrot.lane.b32.xlu2 %v13025_v44, %s12675_s27 }
  0x83   : > { %9989 = vrot.lane.b32.xlu1 %v13029_v47, %s12675_s27 }
  0x85   : > { %9999 = vrot.lane.b32.xlu0 %v13033_v48, %s12675_s27 }
  0x88   : > { %10009 = vrot.lane.b32.xlu2 %v13037_v54, %s12675_s27 }
  0x8b   : > { %10004 = vrot.lane.b32.xlu1 %v13041_v58, %s12675_s27 }
  0x8d   : > { %10014 = vrot.lane.b32.xlu0 %v13045_v59, %s12675_s27 }
  0x90   : > { %10024 = vrot.lane.b32.xlu2 %v13049_v3, %s12675_s27 }
  0x92   : > { %v13140_v34 = vpop.permute.xlu0 %9879 }
  0x93   : > { %10019 = vrot.lane.b32.xlu1 %v13053_v8, %s12675_s27 }
  0x95   : > { %10029 = vrot.lane.b32.xlu0 %v13057_v10, %s12675_s27 }
  0x98   : > { %10039 = vrot.lane.b32.xlu2 %v10038_v18, %s12676_s28  ;;  %v13118_v18 = vpack.i.bf16 %v806_v11, %v805_v7  ;;  %v817_v11 = vld [vmem:[#allocation2 + $0x168] sm:$0xff] }
  0x99   : > { %v13160_v29 = vpack.i.bf16 %v818_v13, %v817_v11  ;;  %v852_v13 = vld [vmem:[#allocation2 + $0x189] sm:$0xff] }
  0x9b   : > { %10034 = vrot.lane.b32.xlu1 %v13063_v22, %s12675_s27 }
  0x9d   : > { %10044 = vrot.lane.b32.xlu0 %v13067_v25, %s12676_s28 }
  0xa0   : > { %10054 = vrot.lane.b32.xlu2 %v13074_v35, %s12676_s28 }
  0xa2   : > { %v13090_v50 = vpop.permute.xlu2 %9899 }
  0xa3   : > { %10049 = vrot.lane.b32.xlu1 %v13082_v41, %s12676_s28 }
  0xa5   : > { %10059 = vrot.lane.b32.xlu0 %v13088_v42, %s12676_s28 }
  0xa8   : > { %10069 = vrot.lane.b32.xlu2 %v13094_v53, %s12676_s28 }
  0xaa   : > { %v13110_v4 = vpop.permute.xlu2 %9904 }
  0xab   : > { %10064 = vrot.lane.b32.xlu1 %v13102_v61, %s12676_s28 }
  0xad   : > { %10074 = vrot.lane.b32.xlu0 %v13108_v62, %s12676_s28 }
  0xb0   : > { %10084 = vrot.lane.b32.xlu2 %v13114_v12, %s12676_s28 }
  0xb2   : > { %v13128_v27 = vpop.permute.xlu2 %9919 }
  0xb3   : > { %10079 = vrot.lane.b32.xlu1 %v13118_v18, %s12676_s28 }
  0xb5   : > { %10089 = vrot.lane.b32.xlu0 %v13124_v19, %s12676_s28 }
  0xb8   : > { %10099 = vrot.lane.b32.xlu2 %v13136_v31, %s12676_s28 }
  0xba   : > { %v13148_v7 = vpop.permute.xlu2 %9934 }
  0xbb   : > { %10094 = vrot.lane.b32.xlu1 %v13142_v51, %s12676_s28 }
  0xbd   : > { %v13154_v20 = vpop.permute.xlu1 %9889  ;;  %10104 = vrot.lane.b32.xlu0 %v13146_v52, %s12676_s28 }
  0xbf   : > { %v13158_v24 = vpop.permute.xlu0 %9884 }
  0xc0   : > { %10114 = vrot.lane.b32.xlu2 %v13152_v16, %s12676_s28 }
  0xc2   : > { %v13164_v30 = vpop.permute.xlu2 %9949 }
  0xc3   : > { %10109 = vrot.lane.b32.xlu1 %v13160_v29, %s12676_s28  ;;  %s19306_s28 = smov 16  }
  0xc5   : > { %v13168_v45 = vpop.permute.xlu1 %9894  ;;  %10119 = vrot.lane.b32.xlu0 %v12923_v28, %s12677_s29 }
  0xc7   : > { %v13172_v46 = vpop.permute.xlu0 %9909 }
  0xc8   : > { %19309 = vst [vmem:[#allocation8_spill] sm:$0xff] %v13172_v46  ;;  %10129 = vrot.lane.b32.xlu2 %v12937_v38, %s12677_s29 }
  0xca   : > { %v13176_v1 = vpop.permute.xlu2 %9964 }
  0xcb   : > { %10124 = vrot.lane.b32.xlu1 %v12915_v23, %s12677_s29 }
  0xcd   : > { %v13180_v2 = vpop.permute.xlu1 %9914  ;;  %10134 = vrot.lane.b32.xlu0 %v12905_v17, %s12677_s29 }
  0xce   : > { %19310 = vst [vmem:[#allocation9_spill] sm:$0xff] %v13180_v2 }
  0xcf   : > { %v13184_v11 = vpop.permute.xlu0 %9924 }
  0xd0   : > { %19311 = vst [vmem:[#allocation10_spill] sm:$0xff] %v13184_v11  ;;  %10144 = vrot.lane.b32.xlu2 %v12945_v43, %s12677_s29 }
  0xd2   : > { %v13188_v28 = vpop.permute.xlu2 %9979 }
  0xd3   : > { %10139 = vrot.lane.b32.xlu1 %v12931_v33, %s12677_s29 }
  0xd5   : > { %v13192_v38 = vpop.permute.xlu1 %9929  ;;  %10149 = vrot.lane.b32.xlu0 %v12965_v57, %s12677_s29 }
  0xd6   : > { %19312 = vst [vmem:[#allocation11_spill] sm:$0xff] %v13192_v38 }
  0xd7   : > { %v13196_v23 = vpop.permute.xlu0 %9939 }
  0xd8   : > { %19313 = vst [vmem:[#allocation12_spill] sm:$0xff] %v13196_v23  ;;  %10159 = vrot.lane.b32.xlu2 %v12973_v60, %s12677_s29 }
  0xda   : > { %v13200_v17 = vpop.permute.xlu2 %9994 }
  0xdb   : > { %19314 = vst [vmem:[#allocation13_spill] sm:$0xff] %v13200_v17  ;;  %10154 = vrot.lane.b32.xlu1 %v12955_v49, %s12677_s29  ;;  %v851_v49 = vld [vmem:[#allocation2 + $0x181] sm:$0xff] }
  0xdc   : > { %v925_v17 = vld [vmem:[#allocation2 + $0x81] sm:$0xff] }
  0xdd   : > { %v13204_v43 = vpop.permute.xlu1 %9944  ;;  %10164 = vrot.lane.b32.xlu0 %v12984_v5, %s12677_s29  ;;  %v13224_v5 = vpack.i.bf16 %v852_v13, %v851_v49  ;;  %v884_v13 = vld [vmem:[#allocation2 + $0x18a] sm:$0xff] }
  0xdf   : > { %v13208_v33 = vpop.permute.xlu0 %9954 }
  0xe0   : > { %10174 = vrot.lane.b32.xlu2 %v12988_v6, %s12677_s29 }
  0xe2   : > { %v13212_v57 = vpop.permute.xlu2 %10009 }
  0xe3   : > { %19315 = vst [vmem:[#allocation14_spill] sm:$0xff] %v13212_v57  ;;  %10169 = vrot.lane.b32.xlu1 %v12980_v63, %s12677_s29 }
  0xe5   : > { %v13216_v60 = vpop.permute.xlu1 %9959  ;;  %10179 = vrot.lane.b32.xlu0 %v12996_v14, %s12677_s29 }
  0xe7   : > { %v13220_v0 = vpop.permute.xlu0 %9969 }
  0xe8   : > { %10189 = vrot.lane.b32.xlu2 %v13000_v15, %s12677_s29 }
  0xea   : > { %v13226_v6 = vpop.permute.xlu2 %10024 }
  0xeb   : > { %10184 = vrot.lane.b32.xlu1 %v12992_v9, %s12677_s29 }
  0xed   : > { %v13230_v63 = vpop.permute.xlu1 %9974  ;;  %10194 = vrot.lane.b32.xlu0 %v13224_v5, %s12677_s29 }
  0xee   : > { %19316 = vst [vmem:[#allocation15_spill] sm:$0xff] %v13230_v63 }
  0xef   : > { %v13234_v14 = vpop.permute.xlu0 %9984 }
  0xf0   : > { %10204 = vrot.lane.b32.xlu2 %v13010_v26, %s12678_s14 }
  0xf2   : > { %v13238_v23 = vpop.permute.xlu2 %10039 }
  0xf3   : > { %10199 = vrot.lane.b32.xlu1 %v13004_v21, %s12678_s14 }
  0xf5   : > { %v13242_v15 = vpop.permute.xlu1 %9989  ;;  %10209 = vrot.lane.b32.xlu0 %v13017_v36, %s12678_s14 }
  0xf6   : > { %19317 = vst [vmem:[#allocation16_spill] sm:$0xff] %v13242_v15 }
  0xf7   : > { %v13246_v9 = vpop.permute.xlu0 %9999 }
  0xf8   : > { %10219 = vrot.lane.b32.xlu2 %v13021_v37, %s12678_s14 }
  0xfa   : > { %v13250_v49 = vpop.permute.xlu2 %10054 }
  0xfb   : > { %19318 = vst [vmem:[#allocation17_spill] sm:$0xff] %v13250_v49  ;;  %10214 = vrot.lane.b32.xlu1 %v13013_v32, %s12678_s14 }
  0xfd   : > { %v13254_v26 = vpop.permute.xlu1 %10004  ;;  %10224 = vrot.lane.b32.xlu0 %v13029_v47, %s12678_s14 }
  0xfe   : > { %19319 = vst [vmem:[#allocation18_spill] sm:$0xff] %v13254_v26  ;;  %v923_v26 = vld [vmem:[#allocation2 + $0x69] sm:$0xff] }
  0xff   : > { %v13258_v21 = vpop.permute.xlu0 %10014 }
 0x100   : > { %10234 = vrot.lane.b32.xlu2 %v13033_v48, %s12678_s14 }
 0x102   : > { %v13262_v36 = vpop.permute.xlu2 %10069 }
 0x103   : > { %19320 = vst [vmem:[#allocation19_spill] sm:$0xff] %v13262_v36  ;;  %10229 = vrot.lane.b32.xlu1 %v13025_v44, %s12678_s14  ;;  %v929_v36 = vld [vmem:[#allocation2 + $0xb1] sm:$0xff] }
 0x105   : > { %v13266_v37 = vpop.permute.xlu1 %10019  ;;  %10239 = vrot.lane.b32.xlu0 %v13041_v58, %s12678_s14 }
 0x106   : > { %19321 = vst [vmem:[#allocation20_spill] sm:$0xff] %v13266_v37 }
 0x107   : > { %v13270_v32 = vpop.permute.xlu0 %10029 }
 0x108   : > { %19322 = vst [vmem:[#allocation21_spill] sm:$0xff] %v13270_v32  ;;  %10249 = vrot.lane.b32.xlu2 %v13045_v59, %s12678_s14  ;;  %v883_v59 = vld [vmem:[#allocation2 + $0x182] sm:$0xff] }
 0x10a   : > { %v13274_v47 = vpop.permute.xlu2 %10084 }
 0x10b   : > { %19323 = vst [vmem:[#allocation22_spill] sm:$0xff] %v13274_v47  ;;  %10244 = vrot.lane.b32.xlu1 %v13037_v54, %s12678_s14  ;;  %v922_v47 = vld [vmem:[#allocation2 + $0x61] sm:$0xff] }
 0x10d   : > { %v13278_v48 = vpop.permute.xlu1 %10034  ;;  %10254 = vrot.lane.b32.xlu0 %v13053_v8, %s12678_s14  ;;  %v13296_v8 = vpack.i.bf16 %v884_v13, %v883_v59  ;;  %v917_v13 = vld [vmem:[#allocation2 + $0x1a0] sm:$0xff] }
 0x10e   : > { %19324 = vst [vmem:[#allocation23_spill] sm:$0xff] %v13278_v48  ;;  %v943_v48 = vld [vmem:[#allocation2 + $0x159] sm:$0xff] }
 0x10f   : > { %v13282_v44 = vpop.permute.xlu0 %10044 }
 0x110   : > { %10264 = vrot.lane.b32.xlu2 %v13057_v10, %s12678_s14 }
 0x112   : > { %v13286_v58 = vpop.permute.xlu2 %10099 }
 0x113   : > { %19325 = vst [vmem:[#allocation24_spill] sm:$0xff] %v13286_v58  ;;  %10259 = vrot.lane.b32.xlu1 %v13049_v3, %s12678_s14 }
 0x115   : > { %v13290_v37 = vpop.permute.xlu1 %10049  ;;  %10269 = vrot.lane.b32.xlu0 %v13063_v22, %s12678_s14 }
 0x116   : > { %19326 = vst [vmem:[#allocation25_spill] sm:$0xff] %v13290_v37 }
 0x117   : > { %v13294_v54 = vpop.permute.xlu0 %10059 }
 0x118   : > { %10279 = vrot.lane.b32.xlu2 %v13067_v25, %s12679_s16 }
 0x11a   : > { %v13300_v10 = vpop.permute.xlu2 %10114 }
 0x11b   : > { %19327 = vst [vmem:[#allocation26_spill] sm:$0xff] %v13300_v10  ;;  %10274 = vrot.lane.b32.xlu1 %v13296_v8, %s12678_s14  ;;  %v937_v10 = vld [vmem:[#allocation2 + $0x111] sm:$0xff]  ;;  %s12685_s14 = smov 96  }
 0x11d   : > { %v13304_v3 = vpop.permute.xlu1 %10064  ;;  %10284 = vrot.lane.b32.xlu0 %v13082_v41, %s12679_s16 }
 0x11f   : > { %v13308_v58 = vpop.permute.xlu0 %10074 }
 0x120   : > { %19328 = vst [vmem:[#allocation27_spill] sm:$0xff] %v13308_v58  ;;  %10294 = vrot.lane.b32.xlu2 %v13088_v42, %s12679_s16 }
 0x122   : > { %v13312_v22 = vpop.permute.xlu2 %10129 }
 0x123   : > { %19329 = vst [vmem:[#allocation28_spill] sm:$0xff] %v13312_v22  ;;  %10289 = vrot.lane.b32.xlu1 %v13074_v35, %s12679_s16  ;;  %v590_v22 = vld [vmem:[%s13418_s24 + $0x10] sm:$0xff] }
 0x124   : > { %623 = vst.msk [vmem:[#allocation3 + $0x31] sm:$0xff] %vm431_vm3, %v590_v22  ;;  %v967_v22 = vld [vmem:[#allocation2 + $0xfa] sm:$0xff] }
 0x125   : > { %v13316_v25 = vpop.permute.xlu1 %10079  ;;  %10299 = vrot.lane.b32.xlu0 %v13102_v61, %s12679_s16 }
 0x127   : > { %v13320_v59 = vpop.permute.xlu0 %10089 }
 0x128   : > { %19330 = vst [vmem:[#allocation29_spill] sm:$0xff] %v13320_v59  ;;  %10309 = vrot.lane.b32.xlu2 %v13108_v62, %s12679_s16 }
 0x12a   : > { %v13324_v41 = vpop.permute.xlu2 %10144 }
 0x12b   : > { %10304 = vrot.lane.b32.xlu1 %v13094_v53, %s12679_s16 }
 0x12d   : > { %v13328_v42 = vpop.permute.xlu1 %10094  ;;  %10314 = vrot.lane.b32.xlu0 %v13118_v18, %s12679_s16  ;;  %v916_v18 = vld [vmem:[#allocation2 + $0x198] sm:$0xff] }
 0x12f   : > { %v13332_v35 = vpop.permute.xlu0 %10104 }
 0x130   : > { %10324 = vrot.lane.b32.xlu2 %v13124_v19, %s12679_s16  ;;  %v10353_v19 = vpack.i.bf16 %v917_v13, %v916_v18  ;;  %v921_v18 = vld [vmem:[#allocation2 + $0x51] sm:$0xff]  ;;  %v10368_v13 = vpack.i.bf16 %v923_v26, %v922_v47  ;;  %v927_v26 = vld [vmem:[#allocation2 + $0x99] sm:$0xff] }
 0x132   : > { %v13336_v61 = vpop.permute.xlu2 %10159 }
 0x133   : > { %10319 = vrot.lane.b32.xlu1 %v13114_v12, %s12679_s16  ;;  %v918_v12 = vld [vmem:[#allocation2 + $0x31] sm:$0xff] }
 0x135   : > { %v13340_v62 = vpop.permute.xlu1 %10109  ;;  %10329 = vrot.lane.b32.xlu0 %v13142_v51, %s12679_s16  ;;  %v919_v51 = vld [vmem:[#allocation2 + $0x39] sm:$0xff] }
 0x136   : > { %19331 = vst [vmem:[#allocation30_spill] sm:$0xff] %v13340_v62  ;;  %v965_v62 = vld [vmem:[#allocation2 + $0xe2] sm:$0xff] }
 0x137   : > { %v13344_v53 = vpop.permute.xlu0 %10119 }
 0x138   : > { %10339 = vrot.lane.b32.xlu2 %v13146_v52, %s12679_s16  ;;  %v10358_v52 = vpack.i.bf16 %v919_v51, %v918_v12  ;;  %v928_v51 = vld [vmem:[#allocation2 + $0xa9] sm:$0xff] }
 0x139   : > { %v10383_v47 = vpack.i.bf16 %v929_v36, %v928_v51  ;;  %v933_v36 = vld [vmem:[#allocation2 + $0xe1] sm:$0xff] }
 0x13a   : > { %v13348_v59 = vpop.permute.xlu2 %10174 }
 0x13b   : > { %10334 = vrot.lane.b32.xlu1 %v13136_v31, %s12679_s16  ;;  %v920_v31 = vld [vmem:[#allocation2 + $0x49] sm:$0xff] }
 0x13d   : > { %v13352_v57 = vpop.permute.xlu1 %10124  ;;  %10344 = vrot.lane.b32.xlu0 %v13160_v29, %s12679_s16  ;;  %v924_v29 = vld [vmem:[#allocation2 + $0x79] sm:$0xff] }
 0x13e   : > { %v10373_v12 = vpack.i.bf16 %v925_v17, %v924_v29 }
 0x13f   : > { %v13356_v38 = vpop.permute.xlu0 %10134 }
 0x140   : > { %19332 = vst [vmem:[#allocation31_spill] sm:$0xff] %v13356_v38  ;;  %10354 = vrot.lane.b32.xlu2 %v10353_v19, %s12679_s16  ;;  %v10363_v19 = vpack.i.bf16 %v921_v18, %v920_v31  ;;  %v931_v38 = vld [vmem:[#allocation2 + $0xc9] sm:$0xff]  ;;  %v934_v18 = vld [vmem:[#allocation2 + $0xf1] sm:$0xff] }
 0x142   : > { %v13359_v11 = vpop.permute.xlu2 %10189 }
 0x143   : > { %19333 = vst [vmem:[#allocation32_spill] sm:$0xff] %v13359_v11  ;;  %10349 = vrot.lane.b32.xlu1 %v13152_v16, %s12679_s16  ;;  %v926_v16 = vld [vmem:[#allocation2 + $0x91] sm:$0xff] }
 0x144   : > { %v10378_v31 = vpack.i.bf16 %v927_v26, %v926_v16  ;;  %v940_v26 = vld [vmem:[#allocation2 + $0x139] sm:$0xff] }
 0x145   : > { %v13363_v58 = vpop.permute.xlu1 %10139  ;;  %10359 = vrot.lane.b32.xlu0 %v10358_v52, %s12680_s17  ;;  %v930_v52 = vld [vmem:[#allocation2 + $0xc1] sm:$0xff] }
 0x146   : > { %v10388_v17 = vpack.i.bf16 %v931_v38, %v930_v52 }
 0x147   : > { %v13366_v2 = vpop.permute.xlu0 %10149 }
 0x148   : > { %19334 = vst [vmem:[#allocation33_spill] sm:$0xff] %v13366_v2  ;;  %10369 = vrot.lane.b32.xlu2 %v10368_v13, %s12680_s17  ;;  %v935_v13 = vld [vmem:[#allocation2 + $0xf9] sm:$0xff] }
 0x149   : > { %v10398_v51 = vpack.i.bf16 %v935_v13, %v934_v18  ;;  %v939_v18 = vld [vmem:[#allocation2 + $0x129] sm:$0xff] }
 0x14a   : > { %v13369_v15 = vpop.permute.xlu2 %10204 }
 0x14b   : > { %19335 = vst [vmem:[#allocation34_spill] sm:$0xff] %v13369_v15  ;;  %10364 = vrot.lane.b32.xlu1 %v10363_v19, %s12680_s17  ;;  %v932_v19 = vld [vmem:[#allocation2 + $0xd9] sm:$0xff] }
 0x14c   : > { %v10393_v16 = vpack.i.bf16 %v933_v36, %v932_v19 }
 0x14d   : > { %v13372_v46 = vpop.permute.xlu1 %10154  ;;  %10374 = vrot.lane.b32.xlu0 %v10373_v12, %s12680_s17  ;;  %v936_v12 = vld [vmem:[#allocation2 + $0x109] sm:$0xff] }
 0x14e   : > { %19336 = vst [vmem:[#allocation35_spill] sm:$0xff] %v13372_v46  ;;  %v10403_v38 = vpack.i.bf16 %v937_v10, %v936_v12  ;;  %v945_v12 = vld [vmem:[#allocation2 + $0x171] sm:$0xff] }
 0x14f   : > { %v13375_v2 = vpop.permute.xlu0 %10164 }
 0x150   : > { %19337 = vst [vmem:[#allocation36_spill] sm:$0xff] %v13375_v2  ;;  %10384 = vrot.lane.b32.xlu2 %v10383_v47, %s12680_s17  ;;  %v941_v47 = vld [vmem:[#allocation2 + $0x141] sm:$0xff] }
 0x151   : > { %v10413_v13 = vpack.i.bf16 %v941_v47, %v940_v26  ;;  %v948_v26 = vld [vmem:[#allocation2 + $0x199] sm:$0xff] }
 0x152   : > { %v13378_v29 = vpop.permute.xlu2 %10219 }
 0x153   : > { %10379 = vrot.lane.b32.xlu1 %v10378_v31, %s12680_s17  ;;  %v938_v31 = vld [vmem:[#allocation2 + $0x121] sm:$0xff] }
 0x154   : > { %v10408_v19 = vpack.i.bf16 %v939_v18, %v938_v31  ;;  %v952_v31 = vld [vmem:[#allocation2 + $0x4a] sm:$0xff]  ;;  %v953_v18 = vld [vmem:[#allocation2 + $0x52] sm:$0xff] }
 0x155   : > { %v13381_v46 = vpop.permute.xlu1 %10169  ;;  %10389 = vrot.lane.b32.xlu0 %v10388_v17, %s12680_s17  ;;  %v942_v17 = vld [vmem:[#allocation2 + $0x151] sm:$0xff] }
 0x156   : > { %19338 = vst [vmem:[#allocation37_spill] sm:$0xff] %v13381_v46  ;;  %v10418_v10 = vpack.i.bf16 %v943_v48, %v942_v17  ;;  %v950_v17 = vld [vmem:[#allocation2 + $0x32] sm:$0xff] }
 0x157   : > { %v13384_v2 = vpop.permute.xlu0 %10179 }
 0x158   : > { %19339 = vst [vmem:[#allocation38_spill] sm:$0xff] %v13384_v2  ;;  %10399 = vrot.lane.b32.xlu2 %v10398_v51, %s12680_s17  ;;  %v944_v51 = vld [vmem:[#allocation2 + $0x169] sm:$0xff] }
 0x15a   : > { %v13387_v52 = vpop.permute.xlu2 %10234 }
 0x15b   : > { %19340 = vst [vmem:[#allocation39_spill] sm:$0xff] %v13387_v52  ;;  %10394 = vrot.lane.b32.xlu1 %v10393_v16, %s12680_s17  ;;  %v10423_v52 = vpack.i.bf16 %v945_v12, %v944_v51  ;;  %v955_v51 = vld [vmem:[#allocation2 + $0x6a] sm:$0xff] }
 0x15d   : > { %v13390_v46 = vpop.permute.xlu1 %10184  ;;  %10404 = vrot.lane.b32.xlu0 %v10403_v38, %s12680_s17  ;;  %v949_v38 = vld [vmem:[#allocation2 + $0x1a1] sm:$0xff] }
 0x15e   : > { %v10433_v48 = vpack.i.bf16 %v949_v38, %v948_v26  ;;  %v959_v26 = vld [vmem:[#allocation2 + $0x9a] sm:$0xff] }
 0x15f   : > { %v13393_v2 = vpop.permute.xlu0 %10194 }
 0x160   : > { %19341 = vst [vmem:[#allocation40_spill] sm:$0xff] %v13393_v2  ;;  %10414 = vrot.lane.b32.xlu2 %v10413_v13, %s12680_s17  ;;  %v954_v2 = vld [vmem:[#allocation2 + $0x62] sm:$0xff] }
 0x162   : > { %v13396_v36 = vpop.permute.xlu2 %10249 }
 0x163   : > { %19342 = vst [vmem:[#allocation41_spill] sm:$0xff] %v13396_v36  ;;  %10409 = vrot.lane.b32.xlu1 %v10408_v19, %s12680_s17  ;;  %v951_v19 = vld [vmem:[#allocation2 + $0x3a] sm:$0xff]  ;;  %v10443_v36 = vpack.i.bf16 %v953_v18, %v952_v31  ;;  %v589_v18 = vld [vmem:[%s13418_s24 + $0x8] sm:$0xff] }
 0x164   : > { %v10438_v11 = vpack.i.bf16 %v951_v19, %v950_v17  ;;  %v588_v31 = vld [vmem:[%s13418_s24] sm:$0xff]  ;;  %622 = vst.msk [vmem:[#allocation3 + $0x21] sm:$0xff] %vm431_vm3, %v589_v18 }
 0x165   : > { %v13399_v16 = vpop.permute.xlu1 %10199  ;;  %10419 = vrot.lane.b32.xlu0 %v10418_v10, %s12680_s17  ;;  %v956_v17 = vld [vmem:[#allocation2 + $0x7a] sm:$0xff]  ;;  %v957_v19 = vld [vmem:[#allocation2 + $0x82] sm:$0xff]  ;;  %621 = vst.msk [vmem:[#allocation3 + $0x19] sm:$0xff] %vm431_vm3, %v588_v31  ;;  %v963_v31 = vld [vmem:[#allocation2 + $0xca] sm:$0xff] }
 0x167   : > { %v13402_v47 = vpop.permute.xlu0 %10209 }
 0x168   : > { %19343 = vst [vmem:[#allocation42_spill] sm:$0xff] %v13402_v47  ;;  %10429 = vrot.lane.b32.xlu2 %v13224_v5, %s12680_s17  ;;  %v10448_v5 = vpack.i.bf16 %v955_v51, %v954_v2  ;;  %v961_v51 = vld [vmem:[#allocation2 + $0xb2] sm:$0xff]  ;;  %v964_v47 = vld [vmem:[#allocation2 + $0xda] sm:$0xff] }
 0x169   : > { %v10473_v18 = vpack.i.bf16 %v965_v62, %v964_v47  ;;  %v970_v62 = vld [vmem:[#allocation2 + $0x122] sm:$0xff]  ;;  %v971_v47 = vld [vmem:[#allocation2 + $0x12a] sm:$0xff] }
 0x16a   : > { %v13406_v13 = vpop.permute.xlu2 %10264 }
 0x16b   : > { %10424 = vrot.lane.b32.xlu1 %v10423_v52, %s12680_s17  ;;  %v958_v52 = vld [vmem:[#allocation2 + $0x92] sm:$0xff] }
 0x16d   : > { %v13409_v10 = vpop.permute.xlu1 %10214  ;;  %10434 = vrot.lane.b32.xlu0 %v10433_v48, %s12680_s17  ;;  %v19345_v48 = vmov 0.0   ;;  %s19304_s17 = sand.u32 1, %s12663_s10  }
 0x16e   : > { %19344 = vst [vmem:[#allocation43_spill] sm:$0xff] %v13409_v10  ;;  %v10458_v10 = vpack.i.bf16 %v959_v26, %v958_v52  ;;  %v591_v52 = vld [vmem:[%s13418_s24 + $0x18] sm:$0xff]  ;;  %s9815_s21 = smul.u32 48, %s19304_s17 }
 0x16f   : > { %v13412_v12 = vpop.permute.xlu0 %10224  ;;  %435 = vst.msk [vmem:[#allocation3 + $0x10] sm:$0x3] %vm434_vm4, %v19345_v48 }
 0x170   : > { %10444 = vrot.lane.b32.xlu2 %v10443_v36, %s12681_s25  ;;  %439 = vst.msk [vmem:[#allocation3 + $0x1a8] sm:$0x3] %vm434_vm4, %v19345_v48  ;;  %v960_v36 = vld [vmem:[#allocation2 + $0xaa] sm:$0xff]  ;;  %vm477_vm4 = vcmask 64512  }
 0x171   : > { %v10463_v63 = vpack.i.bf16 %v961_v51, %v960_v36  ;;  %624 = vst.msk [vmem:[#allocation3 + $0x39] sm:$0xff] %vm431_vm3, %v591_v52  ;;  %v969_v52 = vld [vmem:[#allocation2 + $0x112] sm:$0xff] }
 0x172   : > { %v13421_v38 = vpop.permute.xlu2 %10279  ;;  %441 = vst.msk [vmem:[#allocation3] sm:$0x1] %vm440_vm5, %v19345_v48 }
 0x173   : > { %10439 = vrot.lane.b32.xlu1 %v10438_v11, %s12681_s25  ;;  %v10453_v11 = vpack.i.bf16 %v957_v19, %v956_v17  ;;  %442 = vst.msk [vmem:[#allocation3 + $0x18] sm:$0x1] %vm440_vm5, %v19345_v48  ;;  %v966_v17 = vld [vmem:[#allocation2 + $0xf2] sm:$0xff] }
 0x174   : > { %443 = vst.msk [vmem:[#allocation3 + $0x30] sm:$0x1] %vm440_vm5, %v19345_v48 }
 0x175   : > { %v13429_v2 = vpop.permute.xlu1 %10229  ;;  %10449 = vrot.lane.b32.xlu0 %v10448_v5, %s12681_s25  ;;  %v962_v5 = vld [vmem:[#allocation2 + $0xc2] sm:$0xff]  ;;  %444 = vst.msk [vmem:[#allocation3 + $0x48] sm:$0x1] %vm440_vm5, %v19345_v48 }
 0x176   : > { %19346 = vst [vmem:[#allocation44_spill] sm:$0xff] %v13429_v2  ;;  %v10468_v36 = vpack.i.bf16 %v963_v31, %v962_v5  ;;  %v10488_v5 = vpack.i.bf16 %v971_v47, %v970_v62  ;;  %v976_v62 = vld [vmem:[#allocation2 + $0x16a] sm:$0xff]  ;;  %v977_v47 = vld [vmem:[#allocation2 + $0x172] sm:$0xff] }
 0x177   : > { %v13433_v49 = vpop.permute.xlu0 %10239  ;;  %445 = vst.msk [vmem:[#allocation3 + $0x60] sm:$0x1] %vm440_vm5, %v19345_v48  ;;  %v594_v2 = vld [vmem:[%s13418_s24 + $0x30] sm:$0xff] }
 0x178   : > { %10459 = vrot.lane.b32.xlu2 %v10458_v10, %s12681_s25  ;;  %446 = vst.msk [vmem:[#allocation3 + $0x78] sm:$0x1] %vm440_vm5, %v19345_v48 }
 0x179   : > { %447 = vst.msk [vmem:[#allocation3 + $0x90] sm:$0x1] %vm440_vm5, %v19345_v48 }
 0x17a   : > { %v13438_v26 = vpop.permute.xlu2 %10294  ;;  %448 = vst.msk [vmem:[#allocation3 + $0xa8] sm:$0x1] %vm440_vm5, %v19345_v48 }
 0x17b   : > { %19347 = vst [vmem:[#allocation45_spill] sm:$0xff] %v13438_v26  ;;  %10454 = vrot.lane.b32.xlu1 %v10453_v11, %s12681_s25  ;;  %v968_v11 = vld [vmem:[#allocation2 + $0x10a] sm:$0xff]  ;;  %v596_v26 = vld [vmem:[%s13418_s24 + $0x40] sm:$0xff] }
 0x17c   : > { %449 = vst.msk [vmem:[#allocation3 + $0xc0] sm:$0x1] %vm440_vm5, %v19345_v48 }
 0x17d   : > { %v13445_v10 = vpop.permute.xlu1 %10244  ;;  %10464 = vrot.lane.b32.xlu0 %v10463_v63, %s12681_s25  ;;  %v10478_v63 = vpack.i.bf16 %v967_v22, %v966_v17  ;;  %450 = vst.msk [vmem:[#allocation3 + $0xd8] sm:$0x1] %vm440_vm5, %v19345_v48  ;;  %v973_v17 = vld [vmem:[#allocation2 + $0x142] sm:$0xff] }
 0x17e   : > { %19348 = vst [vmem:[#allocation46_spill] sm:$0xff] %v13445_v10 }
 0x17f   : > { %v13452_v19 = vpop.permute.xlu0 %10254  ;;  %451 = vst.msk [vmem:[#allocation3 + $0xf0] sm:$0x1] %vm440_vm5, %v19345_v48 }
 0x180   : > { %10474 = vrot.lane.b32.xlu2 %v10473_v18, %s12681_s25  ;;  %v972_v18 = vld [vmem:[#allocation2 + $0x13a] sm:$0xff]  ;;  %452 = vst.msk [vmem:[#allocation3 + $0x108] sm:$0x1] %vm440_vm5, %v19345_v48 }
 0x181   : > { %453 = vst.msk [vmem:[#allocation3 + $0x120] sm:$0x1] %vm440_vm5, %v19345_v48 }
 0x182   : > { %v13461_v51 = vpop.permute.xlu2 %10309  ;;  %454 = vst.msk [vmem:[#allocation3 + $0x138] sm:$0x1] %vm440_vm5, %v19345_v48 }
 0x183   : > { %19349 = vst [vmem:[#allocation47_spill] sm:$0xff] %v13461_v51  ;;  %10469 = vrot.lane.b32.xlu1 %v10468_v36, %s12681_s25  ;;  %v10483_v36 = vpack.i.bf16 %v969_v52, %v968_v11  ;;  %v974_v11 = vld [vmem:[#allocation2 + $0x152] sm:$0xff]  ;;  %v975_v52 = vld [vmem:[#allocation2 + $0x15a] sm:$0xff] }
 0x184   : > { %455 = vst.msk [vmem:[#allocation3 + $0x150] sm:$0x1] %vm440_vm5, %v19345_v48 }
 0x185   : > { %v13470_v31 = vpop.permute.xlu1 %10259  ;;  %10479 = vrot.lane.b32.xlu0 %v10478_v63, %s12681_s25  ;;  %v10493_v63 = vpack.i.bf16 %v973_v17, %v972_v18  ;;  %456 = vst.msk [vmem:[#allocation3 + $0x168] sm:$0x1] %vm440_vm5, %v19345_v48 }
 0x186   : > { %19350 = vst [vmem:[#allocation48_spill] sm:$0xff] %v13470_v31 }
 0x187   : > { %v13477_v22 = vpop.permute.xlu0 %10269  ;;  %457 = vst.msk [vmem:[#allocation3 + $0x180] sm:$0x1] %vm440_vm5, %v19345_v48 }
 0x188   : > { %19351 = vst [vmem:[#allocation49_spill] sm:$0xff] %v13477_v22  ;;  %10489 = vrot.lane.b32.xlu2 %v10488_v5, %s12681_s25  ;;  %v10503_v5 = vpack.i.bf16 %v977_v47, %v976_v62  ;;  %v2490_v62 = vld [vmem:[#allocation3 + $0x1] sm:$0xff]  ;;  %v2491_v47 = vld [vmem:[#allocation3 + $0x9] sm:$0xff]  ;;  %v9987_v22 = vunpack.i.h.bf16 %v13234_v14 }
 0x189   : > { %458 = vst.msk [vmem:[#allocation3 + $0x198] sm:$0x1] %vm440_vm5, %v19345_v48 }
 0x18a   : > { %v13486_v31 = vpop.permute.xlu2 %10324  ;;  %459 = vst.msk [vmem:[#allocation3 + $0x11] sm:$0x1] %vm440_vm5, %v19345_v48 }
 0x18b   : > { %19352 = vst [vmem:[#allocation50_spill] sm:$0xff] %v13486_v31  ;;  %10484 = vrot.lane.b32.xlu1 %v10483_v36, %s12681_s25  ;;  %v10498_v36 = vpack.i.bf16 %v975_v52, %v974_v11  ;;  %v980_v11 = vld [vmem:[#allocation2 + $0x19a] sm:$0xff]  ;;  %v981_v52 = vld [vmem:[#allocation2 + $0x1a2] sm:$0xff] }
 0x18c   : > { %460 = vst.msk [vmem:[#allocation3 + $0x29] sm:$0x1] %vm440_vm5, %v19345_v48  ;;  %v10513_v51 = vpack.i.bf16 %v981_v52, %v980_v11  ;;  %v2495_v11 = vld [vmem:[#allocation3 + $0x39] sm:$0xff]  ;;  %v592_v52 = vld [vmem:[%s13418_s24 + $0x20] sm:$0xff] }
 0x18d   : > { %v13495_v18 = vpop.permute.xlu1 %10274  ;;  %10494 = vrot.lane.b32.xlu0 %v10493_v63, %s12681_s25  ;;  %461 = vst.msk [vmem:[#allocation3 + $0x41] sm:$0x1] %vm440_vm5, %v19345_v48 }
 0x18e   : > { %19353 = vst [vmem:[#allocation51_spill] sm:$0xff] %v13495_v18  ;;  %v9906_v18 = vunpack.i.l.bf16 %v13110_v4 }
 0x18f   : > { %v13502_v17 = vpop.permute.xlu0 %10284  ;;  %462 = vst.msk [vmem:[#allocation3 + $0x59] sm:$0x1] %vm440_vm5, %v19345_v48 }
 0x190   : > { %19354 = vst [vmem:[#allocation52_spill] sm:$0xff] %v13502_v17  ;;  %10504 = vrot.lane.b32.xlu2 %v10503_v5, %s12681_s25  ;;  %v10518_v5 = vpack.i.bf16 %v2491_v47, %v2490_v62  ;;  %v2494_v47 = vld [vmem:[#allocation3 + $0x31] sm:$0xff] }
 0x191   : > { %463 = vst.msk [vmem:[#allocation3 + $0x71] sm:$0x1] %vm440_vm5, %v19345_v48 }
 0x192   : > { %v13511_v63 = vpop.permute.xlu2 %10339  ;;  %464 = vst.msk [vmem:[#allocation3 + $0x89] sm:$0x1] %vm440_vm5, %v19345_v48 }
 0x193   : > { %19355 = vst [vmem:[#allocation53_spill] sm:$0xff] %v13511_v63  ;;  %10499 = vrot.lane.b32.xlu1 %v10498_v36, %s12681_s25  ;;  %v2492_v36 = vld [vmem:[#allocation3 + $0x19] sm:$0xff]  ;;  %v2493_v63 = vld [vmem:[#allocation3 + $0x21] sm:$0xff] }
 0x194   : > { %465 = vst.msk [vmem:[#allocation3 + $0xa1] sm:$0x1] %vm440_vm5, %v19345_v48 }
 0x195   : > { %v13520_v31 = vpop.permute.xlu1 %10289  ;;  %10509 = vrot.lane.b32.xlu0 %v13296_v8, %s12681_s25  ;;  %466 = vst.msk [vmem:[#allocation3 + $0xb9] sm:$0x1] %vm440_vm5, %v19345_v48  ;;  %v13537_v8 = vpack.i.bf16 %v2493_v63, %v2492_v36  ;;  %v13562_v36 = vpack.i.bf16 %v2495_v11, %v2494_v47  ;;  %v597_v47 = vld [vmem:[%s13418_s24 + $0x48] sm:$0xff]  ;;  %v9986_v11 = vunpack.i.l.bf16 %v13234_v14 }
 0x196   : > { %19356 = vst [vmem:[#allocation54_spill] sm:$0xff] %v13520_v31 }
 0x197   : > { %467 = vst.msk [vmem:[#allocation3 + $0xd1] sm:$0x1] %vm440_vm5, %v19345_v48  ;;  %v13528_v10 = vpop.permute.xlu0 %10299 }
 0x198   : > { %468 = vst.msk [vmem:[#allocation3 + $0xe9] sm:$0x1] %vm440_vm5, %v19345_v48  ;;  %10519 = vrot.lane.b32.xlu2 %v10518_v5, %s12675_s27 }
 0x199   : > { %469 = vst.msk [vmem:[#allocation3 + $0x101] sm:$0x1] %vm440_vm5, %v19345_v48 }
 0x19a   : > { %470 = vst.msk [vmem:[#allocation3 + $0x119] sm:$0x1] %vm440_vm5, %v19345_v48  ;;  %v13541_v62 = vpop.permute.xlu2 %10354 }
 0x19b   : > { %19357 = vst [vmem:[#allocation55_spill] sm:$0xff] %v13537_v8  ;;  %10514 = vrot.lane.b32.xlu1 %v10513_v51, %s12681_s25  ;;  %v593_v51 = vld [vmem:[%s13418_s24 + $0x28] sm:$0xff] }
 0x19c   : > { %471 = vst.msk [vmem:[#allocation3 + $0x131] sm:$0x1] %vm440_vm5, %v19345_v48 }
 0x19d   : > { %19358 = vst [vmem:[#allocation56_spill] sm:$0xff] %v13541_v62  ;;  %v13550_v63 = vpop.permute.xlu1 %10304  ;;  %10524 = vrot.lane.b32.xlu0 %v13537_v8, %s12675_s27  ;;  %v9907_v62 = vunpack.i.h.bf16 %v13110_v4  ;;  %v595_v8 = vld [vmem:[%s13418_s24 + $0x38] sm:$0xff]  ;;  %v598_v4 = vld [vmem:[%s13418_s24 + $0x50] sm:$0xff] }
 0x19e   : > { %472 = vst.msk [vmem:[#allocation3 + $0x149] sm:$0x1] %vm440_vm5, %v19345_v48 }
 0x19f   : > { %473 = vst.msk [vmem:[#allocation3 + $0x161] sm:$0x1] %vm440_vm5, %v19345_v48  ;;  %v13560_v5 = vpop.permute.xlu0 %10314 }
 0x1a0   : > { %474 = vst.msk [vmem:[#allocation3 + $0x179] sm:$0x1] %vm440_vm5, %v19345_v48 }
 0x1a1   : > { %475 = vst.msk [vmem:[#allocation3 + $0x191] sm:$0x1] %vm440_vm5, %v19345_v48 }
 0x1a2   : > { %476 = vst.msk [vmem:[#allocation3 + $0x1a9] sm:$0x1] %vm440_vm5, %v19345_v48  ;;  %v13572_v48 = vpop.permute.xlu2 %10369  ;;  %vm486_vm5 = vcmask 57344  }
 0x1a3   : > { %19359 = vst [vmem:[#allocation57_spill] sm:$0xff] %v13560_v5  ;;  %10529 = vrot.lane.b32.xlu1 %v13562_v36, %s12675_s27  ;;  %v10066_v5 = vunpack.i.l.bf16 %v13304_v3 }
 0x1a4   : > { %19360 = vst [vmem:[#allocation58_spill] sm:$0xff] %v13562_v36  ;;  %v10067_v36 = vunpack.i.h.bf16 %v13304_v3 }
 0x1a5   : > { %625 = vst.msk [vmem:[#allocation3 + $0x49] sm:$0xff] %vm431_vm3, %v592_v52  ;;  %v2017_v52 = vsel %vm385_vm0, %v13080_v40, %v9907_v62  ;;  %v13592_v31 = vpop.permute.xlu1 %10319  ;;  %v601_v62 = vld [vmem:[%s13418_s24 + $0x68] sm:$0xff] }
 0x1a6   : > { %626 = vst.msk [vmem:[#allocation3 + $0x51] sm:$0xff] %vm431_vm3, %v593_v51  ;;  %v2016_v51 = vsel %vm385_vm0, %v13078_v39, %v9906_v18  ;;  %v600_v39 = vld [vmem:[%s13418_s24 + $0x60] sm:$0xff]  ;;  %v2049_v40 = vsel %vm431_vm3, %v2017_v52, %v9987_v22  ;;  %v10226_v18 = vunpack.i.l.bf16 %v13412_v12 }
 0x1a7   : > { %19361 = vst [vmem:[#allocation59_spill] sm:$0xff] %v13572_v48  ;;  %v2048_v3 = vsel %vm431_vm3, %v2016_v51, %v9986_v11  ;;  %v10001_v48 = vunpack.i.l.bf16 %v13246_v9  ;;  %v13605_v32 = vpop.permute.xlu0 %10329  ;;  %v10306_v11 = vunpack.i.l.bf16 %v13550_v63  ;;  %v603_v51 = vld [vmem:[%s13418_s24 + $0x78] sm:$0xff] }
 0x1a8   : > { %627 = vst.msk [vmem:[#allocation3 + $0x61] sm:$0xff] %vm431_vm3, %v594_v2  ;;  %v599_v2 = vld [vmem:[%s13418_s24 + $0x58] sm:$0xff]  ;;  %v2081_v22 = vsel %vm2070_vm6, %v2048_v3, %v10066_v5  ;;  %v604_v5 = vld [vmem:[%s13418_s24 + $0x80] sm:$0xff]  ;;  %v10082_v3 = vunpack.i.h.bf16 %v13316_v25 }
 0x1a9   : > { %628 = vst.msk [vmem:[#allocation3 + $0x69] sm:$0xff] %vm431_vm3, %v595_v8  ;;  %v10146_v8 = vunpack.i.l.bf16 %v13324_v41 }
 0x1aa   : > { %629 = vst.msk [vmem:[#allocation3 + $0x79] sm:$0xff] %vm431_vm3, %v596_v26  ;;  %v10147_v26 = vunpack.i.h.bf16 %v13324_v41  ;;  %v602_v41 = vld [vmem:[%s13418_s24 + $0x70] sm:$0xff]  ;;  %v10385_v15 = vpop.permute.xlu2 %10384 }
 0x1ab   : > { %630 = vst.msk [vmem:[#allocation3 + $0x81] sm:$0xff] %vm431_vm3, %v597_v47  ;;  %v10227_v47 = vunpack.i.h.bf16 %v13412_v12  ;;  %v2082_v12 = vsel %vm2070_vm6, %v2049_v40, %v10067_v36  ;;  %v2114_v14 = vsel %vm2103_vm7, %v2081_v22, %v10146_v8  ;;  %v605_v36 = vld [vmem:[%s13418_s24 + $0x88] sm:$0xff]  ;;  %v10386_v22 = vunpack.i.l.bf16 %v10385_v15 }
 0x1ac   : > { %631 = vst.msk [vmem:[#allocation3 + $0x91] sm:$0xff] %vm431_vm3, %v598_v4  ;;  %v2496_v37 = vld [vmem:[#allocation3 + $0x49] sm:$0xff]  ;;  %v10307_v4 = vunpack.i.h.bf16 %v13550_v63  ;;  %v2115_v63 = vsel %vm2103_vm7, %v2082_v12, %v10147_v26  ;;  %v10081_v26 = vunpack.i.l.bf16 %v13316_v25 }
 0x1ad   : > { %19362 = vst [vmem:[#allocation60_spill] sm:$0xff] %v13605_v32  ;;  %v2497_v52 = vld [vmem:[#allocation3 + $0x51] sm:$0xff]  ;;  %v13642_v12 = vpop.permute.xlu1 %10334 }
 0x1ae   : > { %632 = vst.msk [vmem:[#allocation3 + $0x99] sm:$0xff] %vm431_vm3, %v599_v2  ;;  %v13616_v32 = vpack.i.bf16 %v2497_v52, %v2496_v37  ;;  %v2148_v37 = vsel %vm2136_vm8, %v2115_v63, %v10227_v47  ;;  %v607_v47 = vld [vmem:[%s13418_s24 + $0x98] sm:$0xff]  ;;  %v608_v25 = vld [vmem:[%s13418_s24 + $0xa0] sm:$0xff]  ;;  %v10162_v63 = vunpack.i.h.bf16 %v13336_v61 }
 0x1af   : > { %633 = vst.msk [vmem:[#allocation3 + $0xa9] sm:$0xff] %vm431_vm3, %v600_v39  ;;  %v2498_v2 = vld [vmem:[#allocation3 + $0x61] sm:$0xff]  ;;  %v2147_v39 = vsel %vm2136_vm8, %v2114_v14, %v10226_v18 }
 0x1b0   : > { %634 = vst.msk [vmem:[#allocation3 + $0xb1] sm:$0xff] %vm431_vm3, %v601_v62  ;;  %v2499_v17 = vld [vmem:[#allocation3 + $0x69] sm:$0xff]  ;;  %10534 = vrot.lane.b32.xlu2 %v13616_v32, %s12675_s27  ;;  %v10387_v62 = vunpack.i.h.bf16 %v10385_v15  ;;  %v606_v14 = vld [vmem:[%s13418_s24 + $0x90] sm:$0xff]  ;;  %v2180_v18 = vsel %vm2169_vm9, %v2147_v39, %v10306_v11  ;;  %v10241_v39 = vunpack.i.l.bf16 %v13433_v49 }
 0x1b1   : > { %635 = vst.msk [vmem:[#allocation3 + $0xc1] sm:$0xff] %vm431_vm3, %v602_v41  ;;  %v13628_v8 = vpack.i.bf16 %v2499_v17, %v2498_v2  ;;  %v2500_v40 = vld [vmem:[#allocation3 + $0x79] sm:$0xff]  ;;  %v2181_v41 = vsel %vm2169_vm9, %v2148_v37, %v10307_v4  ;;  %v10161_v17 = vunpack.i.l.bf16 %v13336_v61  ;;  %v13647_v4 = vsel %vm2202_vm10, %v2180_v18, %v10386_v22 }
 0x1b2   : > { %636 = vst.msk [vmem:[#allocation3 + $0xc9] sm:$0xff] %vm431_vm3, %v603_v51  ;;  %v2501_v52 = vld [vmem:[#allocation3 + $0x81] sm:$0xff]  ;;  %v13650_v11 = vsel %vm2202_vm10, %v2181_v41, %v10387_v62  ;;  %v19364_v2 = vunpack.i.l.bf16 %v13128_v27  ;;  %v10242_v18 = vunpack.i.h.bf16 %v13433_v49  ;;  %v13670_v41 = vpop.permute.xlu0 %10344  ;;  %v10322_v49 = vunpack.i.h.bf16 %v13592_v31 }
 0x1b3   : > { %637 = vst.msk [vmem:[#allocation3 + $0xd9] sm:$0xff] %vm431_vm3, %v604_v5  ;;  %10539 = vrot.lane.b32.xlu0 %v13628_v8, %s12675_s27  ;;  %v13640_v15 = vpack.i.bf16 %v2501_v52, %v2500_v40  ;;  %v2502_v51 = vld [vmem:[#allocation3 + $0x91] sm:$0xff]  ;;  %v19365_v40 = vunpack.i.h.bf16 %v13128_v27  ;;  %v610_v27 = vld [vmem:[%s13418_s24 + $0xb0] sm:$0xff]  ;;  %v10321_v52 = vunpack.i.l.bf16 %v13592_v31  ;;  %v9936_v31 = vunpack.i.l.bf16 %v13148_v7 }
 0x1b4   : > { %638 = vst.msk [vmem:[#allocation3 + $0xe1] sm:$0xff] %vm431_vm3, %v605_v36  ;;  %v2022_v5 = vsel %vm385_vm0, %v13098_v55, %v19364_v2  ;;  %v609_v36 = vld [vmem:[%s13418_s24 + $0xa8] sm:$0xff] }
 0x1b5   : > { %19363 = vst [vmem:[#allocation61_spill] sm:$0xff] %v13640_v15  ;;  %v2503_v37 = vld [vmem:[#allocation3 + $0x99] sm:$0xff]  ;;  %v2023_v62 = vsel %vm385_vm0, %v13100_v56, %v19365_v40  ;;  %v2054_v22 = vsel %vm431_vm3, %v2022_v5, %v10001_v48  ;;  %10544 = vrot.lane.b32.xlu1 %v13640_v15, %s12675_s27  ;;  %v9937_v5 = vunpack.i.h.bf16 %v13148_v7  ;;  %v10400_v15 = vpop.permute.xlu2 %10399 }
 0x1b6   : > { %639 = vst.msk [vmem:[#allocation3 + $0xf1] sm:$0xff] %vm431_vm3, %v606_v14  ;;  %v13668_v55 = vpack.i.bf16 %v2503_v37, %v2502_v51  ;;  %v2504_v61 = vld [vmem:[#allocation3 + $0xa9] sm:$0xff]  ;;  %v19366_v14 = vunpack.i.h.bf16 %v13246_v9  ;;  %v2087_v48 = vsel %vm2070_vm6, %v2054_v22, %v10081_v26  ;;  %v10402_v7 = vunpack.i.h.bf16 %v10400_v15 }
 0x1b7   : > { %640 = vst.msk [vmem:[#allocation3 + $0xf9] sm:$0xff] %vm431_vm3, %v607_v47  ;;  %v2505_v2 = vld [vmem:[#allocation3 + $0xb1] sm:$0xff]  ;;  %v611_v51 = vld [vmem:[%s13418_s24 + $0xb8] sm:$0xff]  ;;  %v2120_v37 = vsel %vm2103_vm7, %v2087_v48, %v10161_v17 }
 0x1b8   : > { %v2055_v56 = vsel %vm431_vm3, %v2023_v62, %v19366_v14  ;;  %641 = vst.msk [vmem:[#allocation3 + $0x109] sm:$0xff] %vm431_vm3, %v608_v25  ;;  %v13685_v9 = vpack.i.bf16 %v2505_v2, %v2504_v61  ;;  %v2506_v40 = vld [vmem:[#allocation3 + $0xc1] sm:$0xff]  ;;  %v612_v26 = vld [vmem:[%s13418_s24 + $0xc0] sm:$0xff]  ;;  %v10016_v62 = vunpack.i.l.bf16 %v13258_v21  ;;  %v2153_v22 = vsel %vm2136_vm8, %v2120_v37, %v10241_v39  ;;  %10549 = vrot.lane.b32.xlu2 %v13668_v55, %s12675_s27 }
 0x1b9   : > { %v2088_v47 = vsel %vm2070_vm6, %v2055_v56, %v10082_v3  ;;  %642 = vst.msk [vmem:[#allocation3 + $0x111] sm:$0xff] %vm431_vm3, %v609_v36  ;;  %v2507_v14 = vld [vmem:[#allocation3 + $0xc9] sm:$0xff]  ;;  %v613_v3 = vld [vmem:[%s13418_s24 + $0xc8] sm:$0xff]  ;;  %v10401_v61 = vunpack.i.l.bf16 %v10400_v15  ;;  %v10017_v39 = vunpack.i.h.bf16 %v13258_v21  ;;  %v10096_v56 = vunpack.i.l.bf16 %v13328_v42  ;;  %v13712_v21 = vpop.permute.xlu1 %10349 }
 0x1ba   : > { %19367 = vst [vmem:[#allocation62_spill] sm:$0xff] %v13685_v9  ;;  %v2121_v25 = vsel %vm2103_vm7, %v2088_v47, %v10162_v63  ;;  %v13698_v36 = vpack.i.bf16 %v2507_v14, %v2506_v40  ;;  %v614_v63 = vld [vmem:[%s13418_s24 + $0xd0] sm:$0xff]  ;;  %v615_v47 = vld [vmem:[%s13418_s24 + $0xd8] sm:$0xff]  ;;  %v10097_v15 = vunpack.i.h.bf16 %v13328_v42  ;;  %v10176_v37 = vunpack.i.l.bf16 %v13348_v59  ;;  %v12519_v40 = vld [vmem:[#allocation2 + $0x108] sm:$0xff] }
 0x1bb   : > { %643 = vst.msk [vmem:[#allocation3 + $0x121] sm:$0xff] %vm431_vm3, %v610_v27  ;;  %v2154_v17 = vsel %vm2136_vm8, %v2121_v25, %v10242_v18  ;;  %v2186_v27 = vsel %vm2169_vm9, %v2153_v22, %v10321_v52  ;;  %v2508_v18 = vld [vmem:[#allocation3 + $0xd9] sm:$0xff]  ;;  %v2509_v2 = vld [vmem:[#allocation3 + $0xe1] sm:$0xff]  ;;  %10554 = vrot.lane.b32.xlu0 %v13685_v9, %s12675_s27  ;;  %v616_v52 = vld [vmem:[%s13418_s24 + $0xe0] sm:$0xff]  ;;  %v10177_v42 = vunpack.i.h.bf16 %v13348_v59  ;;  %v10256_v25 = vunpack.i.l.bf16 %v13452_v19  ;;  %v13734_v59 = vpop.permute.xlu0 %10359 }
 0x1bc   : > { %644 = vst.msk [vmem:[#allocation3 + $0x129] sm:$0xff] %vm431_vm3, %v611_v51  ;;  %v2187_v48 = vsel %vm2169_vm9, %v2154_v17, %v10322_v49  ;;  %v13717_v49 = vsel %vm2202_vm10, %v2186_v27, %v10401_v61  ;;  %v617_v17 = vld [vmem:[%s13418_s24 + $0xe8] sm:$0xff] }
 0x1bd   : > { %645 = vst.msk [vmem:[#allocation3 + $0x139] sm:$0xff] %vm431_vm3, %v612_v26  ;;  %v13720_v51 = vsel %vm2202_vm10, %v2187_v48, %v10402_v7  ;;  %v2028_v26 = vsel %vm385_vm0, %v12519_v40, %v9936_v31  ;;  %v2510_v22 = vld [vmem:[#allocation3 + $0xf1] sm:$0xff]  ;;  %v10257_v7 = vunpack.i.h.bf16 %v13452_v19  ;;  %10559 = vrot.lane.b32.xlu1 %v13698_v36, %s12675_s27  ;;  %v13732_v31 = vpack.i.bf16 %v2509_v2, %v2508_v18 }
 0x1be   : > { %646 = vst.msk [vmem:[#allocation3 + $0x141] sm:$0xff] %vm431_vm3, %v613_v3  ;;  %v2511_v14 = vld [vmem:[#allocation3 + $0xf9] sm:$0xff]  ;;  %v2060_v61 = vsel %vm431_vm3, %v2028_v26, %v10016_v62  ;;  %v10337_v48 = vunpack.i.h.bf16 %v13642_v12  ;;  %v9902_v26 = vunpack.i.h.bf16 %v13090_v50 }
 0x1bf   : > { %647 = vst.msk [vmem:[#allocation3 + $0x151] sm:$0xff] %vm431_vm3, %v614_v63  ;;  %v12520_v3 = vld [vmem:[#allocation2 + $0x110] sm:$0xff]  ;;  %v2093_v63 = vsel %vm2070_vm6, %v2060_v61, %v10096_v56  ;;  %v2512_v62 = vld [vmem:[#allocation3 + $0x109] sm:$0xff]  ;;  %v13744_v2 = vpack.i.bf16 %v2511_v14, %v2510_v22 }
 0x1c0   : > { %v2029_v9 = vsel %vm385_vm0, %v12520_v3, %v9937_v5  ;;  %648 = vst.msk [vmem:[#allocation3 + $0x159] sm:$0xff] %vm431_vm3, %v615_v47  ;;  %v10336_v5 = vunpack.i.l.bf16 %v13642_v12  ;;  %v2513_v40 = vld [vmem:[#allocation3 + $0x111] sm:$0xff]  ;;  %v2126_v18 = vsel %vm2103_vm7, %v2093_v63, %v10176_v37  ;;  %v10415_v47 = vpop.permute.xlu2 %10414  ;;  %10564 = vrot.lane.b32.xlu2 %v13732_v31, %s12675_s27  ;;  %v2290_v63 = vld [vmem:[%s19039_s3 + $0x18] sm:$0x7] }
 0x1c1   : > { %v2061_v27 = vsel %vm431_vm3, %v2029_v9, %v10017_v39  ;;  %649 = vst.msk [vmem:[#allocation3 + $0x169] sm:$0xff] %vm431_vm3, %v616_v52  ;;  %v9901_v9 = vunpack.i.l.bf16 %v13090_v50  ;;  %v2159_v56 = vsel %vm2136_vm8, %v2126_v18, %v10256_v25  ;;  %v13753_v52 = vpack.i.bf16 %v2513_v40, %v2512_v62  ;;  %v13760_v25 = vpop.permute.xlu1 %10364  ;;  %v12522_v18 = vld [vmem:[#allocation2 + $0x68] sm:$0xff] }
 0x1c2   : > { %v2094_v19 = vsel %vm2070_vm6, %v2061_v27, %v10097_v15  ;;  %19368 = vst [vmem:[#allocation63_spill] sm:$0xff] %v13744_v2  ;;  %v10417_v15 = vunpack.i.h.bf16 %v10415_v47  ;;  %v10416_v37 = vunpack.i.l.bf16 %v10415_v47  ;;  %v2192_v22 = vsel %vm2169_vm9, %v2159_v56, %v10336_v5 }
 0x1c3   : > { %650 = vst.msk [vmem:[#allocation3 + $0x171] sm:$0xff] %vm431_vm3, %v617_v17  ;;  %v2127_v39 = vsel %vm2103_vm7, %v2094_v19, %v10177_v42  ;;  %v2514_v17 = vld [vmem:[#allocation3 + $0x121] sm:$0xff]  ;;  %v2515_v42 = vld [vmem:[#allocation3 + $0x129] sm:$0xff]  ;;  %10569 = vrot.lane.b32.xlu0 %v13744_v2, %s12675_s27  ;;  %v13777_v40 = vpop.permute.xlu0 %10374  ;;  %v2308_v19 = vunpack.c.l.b16 %v2290_v63  ;;  %v9982_v56 = vunpack.i.h.bf16 %v13188_v28  ;;  %v10061_v47 = vunpack.i.l.bf16 %v13294_v54 }
 0x1c4   : > { %v2160_v12 = vsel %vm2136_vm8, %v2127_v39, %v10257_v7  ;;  %19369 = vst [vmem:[#allocation64_spill] sm:$0xff] %v13753_v52  ;;  %v13763_v3 = vsel %vm2202_vm10, %v2192_v22, %v10416_v37  ;;  %v9981_v7 = vunpack.i.l.bf16 %v13188_v28  ;;  %v2516_v50 = vld [vmem:[#allocation3 + $0x139] sm:$0xff]  ;;  %v13775_v62 = vpack.i.bf16 %v2515_v42, %v2514_v17 }
 0x1c5   : > { %v2193_v14 = vsel %vm2169_vm9, %v2160_v12, %v10337_v48  ;;  %v2517_v27 = vld [vmem:[#allocation3 + $0x141] sm:$0xff]  ;;  %v12521_v48 = vld [vmem:[#allocation2 + $0x60] sm:$0xff]  ;;  %10574 = vrot.lane.b32.xlu1 %v13753_v52, %s12675_s27  ;;  %v2015_v39 = vsel %vm385_vm0, %v12522_v18, %v9902_v26  ;;  %v10062_v37 = vunpack.i.h.bf16 %v13294_v54  ;;  %v10142_v42 = vunpack.i.h.bf16 %v13363_v58 }
 0x1c6   : > { %v13766_v61 = vsel %vm2202_vm10, %v2193_v14, %v10417_v15  ;;  %v2014_v5 = vsel %vm385_vm0, %v12521_v48, %v9901_v9  ;;  %19370 = vst [vmem:[#allocation65_spill] sm:$0xff] %v13775_v62  ;;  %v2518_v12 = vld [vmem:[#allocation3 + $0x151] sm:$0xff]  ;;  %v10141_v9 = vunpack.i.l.bf16 %v13363_v58  ;;  %v13784_v22 = vpack.i.bf16 %v2517_v27, %v2516_v50  ;;  %v12529_v52 = vld [vmem:[#allocation2 + $0x138] sm:$0xff]  ;;  %v2543_v2 = vld [vmem:[#allocation3 + $0xfa] sm:$0xff] }
 0x1c7   : > { %v2519_v15 = vld [vmem:[#allocation3 + $0x159] sm:$0xff]  ;;  %v2312_v14 = vpack.c.b16 %v2308_v19, %v2308_v19  ;;  %v2046_v17 = vsel %vm431_vm3, %v2014_v5, %v9981_v7  ;;  %v10221_v63 = vunpack.i.l.bf16 %v13378_v29  ;;  %v10222_v28 = vunpack.i.h.bf16 %v13378_v29 }
 0x1c8   : > { %19371 = vst [vmem:[#allocation66_spill] sm:$0xff] %v13784_v22  ;;  %v13789_v26 = vpop.permute.xlu2 %10429  ;;  %v10301_v48 = vunpack.i.l.bf16 %v13528_v10  ;;  %10579 = vrot.lane.b32.xlu2 %v13775_v62, %s12675_s27  ;;  %v13795_v54 = vpack.i.bf16 %v2519_v15, %v2518_v12  ;;  %v2047_v27 = vsel %vm431_vm3, %v2015_v39, %v9982_v56  ;;  %v2079_v7 = vsel %vm2070_vm6, %v2046_v17, %v10061_v47  ;;  %v2520_v5 = vld [vmem:[#allocation3 + $0x169] sm:$0xff]  ;;  %v9790_v39 = vld [vmem:[%s19039_s3 + $0x10] sm:$0xff] }
 0x1c9   : > { %v2367_v50 = vsel %vm2365_vm11, %v2312_v14, 0  ;;  %v10302_v58 = vunpack.i.h.bf16 %v13528_v10  ;;  %v2080_v29 = vsel %vm2070_vm6, %v2047_v27, %v10062_v37  ;;  %v2112_v18 = vsel %vm2103_vm7, %v2079_v7, %v10141_v9  ;;  %v10380_v12 = vpop.permute.xlu1 %10379  ;;  %v2522_v14 = vld [vmem:[#allocation3 + $0x2] sm:$0xff]  ;;  %v2523_v17 = vld [vmem:[#allocation3 + $0xa] sm:$0xff] }
 0x1ca   : > { %19372 = vst [vmem:[#allocation67_spill] sm:$0xff] %v13795_v54  ;;  %v2521_v19 = vld [vmem:[#allocation3 + $0x171] sm:$0xff]  ;;  %2373 = vmatpush.bf16.msra.mxu0 %v2367_v50  ;;  %9806 = vmatpush.bf16.msra.mxu1 %v2367_v50  ;;  %v2113_v56 = vsel %vm2103_vm7, %v2080_v29, %v10142_v42  ;;  %v2145_v10 = vsel %vm2136_vm8, %v2112_v18, %v10221_v63  ;;  %v10382_v47 = vunpack.i.h.bf16 %v10380_v12  ;;  %v10381_v15 = vunpack.i.l.bf16 %v10380_v12  ;;  %v2524_v42 = vld [vmem:[#allocation3 + $0x1a] sm:$0xff]  ;;  %v2525_v29 = vld [vmem:[#allocation3 + $0x22] sm:$0xff] }
 0x1cb   : > { %10584 = vrot.lane.b32.xlu0 %v13784_v22, %s12675_s27  ;;  %v2146_v37 = vsel %vm2136_vm8, %v2113_v56, %v10222_v28  ;;  %v2178_v9 = vsel %vm2169_vm9, %v2145_v10, %v10301_v48  ;;  %v13813_v50 = vpack.i.bf16 %v2521_v19, %v2520_v5  ;;  %v13815_v27 = vpop.permute.xlu0 %10389  ;;  %v10598_v18 = vpack.i.bf16 %v2523_v17, %v2522_v14  ;;  %v9789_v48 = vld [vmem:[%s19039_s3 + $0x8] sm:$0xff]  ;;  %v9788_v56 = vld [vmem:[%s19039_s3] sm:$0xff]  ;;  %v2530_v17 = vld [vmem:[#allocation3 + $0x62] sm:$0xff] }
 0x1cc   : > { %19374 = vst [vmem:[#allocation69_spill] sm:$0xff] %v13815_v27  ;;  %v2179_v7 = vsel %vm2169_vm9, %v2146_v37, %v10302_v58  ;;  %v2211_v63 = vsel %vm2202_vm10, %v2178_v9, %v10381_v15  ;;  %v13827_v5 = vpack.i.bf16 %v2525_v29, %v2524_v42  ;;  %v2526_v58 = vld [vmem:[#allocation3 + $0x32] sm:$0xff]  ;;  %v2527_v19 = vld [vmem:[#allocation3 + $0x3a] sm:$0xff]  ;;  %v2528_v10 = vld [vmem:[#allocation3 + $0x4a] sm:$0xff]  ;;  %v9881_v42 = vunpack.i.l.bf16 %v13140_v34 }
 0x1cd   : > { %10589 = vrot.lane.b32.xlu1 %v13795_v54, %s12675_s27  ;;  %19373 = vst [vmem:[#allocation68_spill] sm:$0xff] %v13813_v50  ;;  %v2212_v28 = vsel %vm2202_vm10, %v2179_v7, %v10382_v47  ;;  %v2529_v47 = vld [vmem:[#allocation3 + $0x52] sm:$0xff]  ;;  %v13837_v15 = vpack.i.bf16 %v2527_v19, %v2526_v58  ;;  %v2531_v37 = vld [vmem:[#allocation3 + $0x6a] sm:$0xff]  ;;  %v9882_v7 = vunpack.i.h.bf16 %v13140_v34 }
 0x1ce   : > { %2374 = vmatpush.bf16.msra.mxu0 %v9790_v39  ;;  %9807 = vmatpush.bf16.msra.mxu1 %v9790_v39  ;;  %19375 = vst [vmem:[#allocation70_spill] sm:$0xff] %v13827_v5  ;;  %v13841_v9 = vpack.i.bf16 %v2529_v47, %v2528_v10  ;;  %v13848_v58 = vpack.i.bf16 %v2531_v37, %v2530_v17  ;;  %v9886_v10 = vunpack.i.l.bf16 %v13158_v24  ;;  %v2532_v47 = vld [vmem:[#allocation3 + $0x7a] sm:$0xff]  ;;  %v9887_v37 = vunpack.i.h.bf16 %v13158_v24  ;;  %v12525_v27 = vld [vmem:[#allocation2 + $0x18] sm:$0xff]  ;;  %v12528_v62 = vld [vmem:[#allocation2 + $0x140] sm:$0xff] }
 0x1cf   : > { %19377 = vst [vmem:[#allocation72_spill] sm:$0xff] %v13837_v15 }
 0x1d0   : > { %v13820_v12 = vpop.permute.xlu2 %10444  ;;  %10594 = vrot.lane.b32.xlu2 %v13813_v50, %s12675_s27  ;;  %19379 = vst [vmem:[#allocation74_spill] sm:$0xff] %v13841_v9  ;;  %v2008_v54 = vsel %vm385_vm0, %v12525_v27, %v9886_v10  ;;  %v2539_v10 = vld [vmem:[#allocation3 + $0xca] sm:$0xff]  ;;  %s12682_s27 = smov 60  }
 0x1d1   : > { %v13830_v39 = vpop.permute.xlu1 %10394  ;;  %19380 = vst [vmem:[#allocation75_spill] sm:$0xff] %v13848_v58 }
 0x1d2   : > { %2375 = vmatpush.bf16.msra.mxu0 %v9789_v48  ;;  %9808 = vmatpush.bf16.msra.mxu1 %v9789_v48  ;;  %19376 = vst [vmem:[#allocation71_spill] sm:$0xff] %v13830_v39  ;;  %v9891_v48 = vunpack.i.l.bf16 %v13154_v20  ;;  %v693_v39 = vld [vmem:[#allocation2] sm:$0xff] }
 0x1d3   : > { %10599 = vrot.lane.b32.xlu0 %v10598_v18, %s12677_s29  ;;  %v13839_v14 = vpop.permute.xlu0 %10404  ;;  %v694_v18 = vld [vmem:[#allocation2 + $0x8] sm:$0xff] }
 0x1d4   : > { %19378 = vst [vmem:[#allocation73_spill] sm:$0xff] %v13839_v14  ;;  %v2007_v22 = vsel %vm385_vm0, %v694_v18, %v9882_v7  ;;  %v9967_v7 = vunpack.i.h.bf16 %v13176_v1  ;;  %v2537_v18 = vld [vmem:[#allocation3 + $0xb2] sm:$0xff] }
 0x1d5   : > { %10604 = vrot.lane.b32.xlu1 %v13827_v5, %s12677_s29  ;;  %v2533_v5 = vld [vmem:[#allocation3 + $0x82] sm:$0xff] }
 0x1d6   : > { %2376 = vmatpush.bf16.msra.mxu0 %v9788_v56  ;;  %9809 = vmatpush.bf16.msra.mxu1 %v9788_v56  ;;  %v9892_v56 = vunpack.i.h.bf16 %v13154_v20  ;;  %v9952_v20 = vunpack.i.h.bf16 %v13164_v30 }
 0x1d8   : > { %v10460_v29 = vpop.permute.xlu2 %10459  ;;  %10609 = vrot.lane.b32.xlu2 %v13837_v15, %s12677_s29  ;;  %v2535_v15 = vld [vmem:[#allocation3 + $0x9a] sm:$0xff] }
 0x1d9   : > { %v10462_v19 = vunpack.i.h.bf16 %v10460_v29  ;;  %v10461_v14 = vunpack.i.l.bf16 %v10460_v29  ;;  %v13854_v34 = vpop.permute.xlu1 %10409  ;;  %v2534_v29 = vld [vmem:[#allocation3 + $0x92] sm:$0xff] }
 0x1da   : > { %19381 = vst [vmem:[#allocation76_spill] sm:$0xff] %v13854_v34  ;;  %v12523_v34 = vld [vmem:[#allocation2 + $0x30] sm:$0xff] }
 0x1db   : > { %10614 = vrot.lane.b32.xlu0 %v13841_v9, %s12677_s29  ;;  %v13857_v50 = vsel %vm2235_vm12, %v2211_v63, %v10461_v14  ;;  %v13860_v17 = vsel %vm2235_vm12, %v2212_v28, %v10462_v19  ;;  %v2006_v9 = vsel %vm385_vm0, %v693_v39, %v9881_v42  ;;  %v13869_v63 = vsel %vm385_vm0, %v12523_v34, %v9891_v48  ;;  %v13873_v24 = vpop.permute.xlu0 %10419  ;;  %v12524_v14 = vld [vmem:[#allocation2 + $0x38] sm:$0xff] }
 0x1dc   : > { %v10623_v28 = vpack.i.bf16 %v2533_v5, %v2532_v47  ;;  %19382 = vst [vmem:[#allocation77_spill] sm:$0xff] %v13873_v24  ;;  %v13876_v19 = vsel %vm385_vm0, %v12524_v14, %v9892_v56  ;;  %v9966_v39 = vunpack.i.l.bf16 %v13176_v1  ;;  %v2536_v42 = vld [vmem:[#allocation3 + $0xaa] sm:$0xff]  ;;  %v9947_v48 = vunpack.i.h.bf16 %v13204_v43 }
 0x1dd   : > { %10619 = vrot.lane.b32.xlu1 %v13848_v58, %s12677_s29  ;;  %v9946_v34 = vunpack.i.l.bf16 %v13204_v43  ;;  %v9962_v5 = vunpack.i.h.bf16 %v13216_v60  ;;  %v13884_v47 = vpack.i.bf16 %v2535_v15, %v2534_v29  ;;  %v12526_v24 = vld [vmem:[#allocation2 + $0x20] sm:$0xff]  ;;  %v12527_v14 = vld [vmem:[#allocation2 + $0x158] sm:$0xff]  ;;  %v9961_v1 = vunpack.i.l.bf16 %v13216_v60 }
 0x1de   : > { %v2009_v56 = vsel %vm385_vm0, %v12526_v24, %v9887_v37  ;;  %v13888_v27 = vsel %vm385_vm0, %v12527_v14, %v9952_v20  ;;  %v10027_v43 = vunpack.i.h.bf16 %v13226_v6  ;;  %v10026_v15 = vunpack.i.l.bf16 %v13226_v6  ;;  %v2538_v14 = vld [vmem:[#allocation3 + $0xc2] sm:$0xff] }
 0x1df   : > { %19383 = vst [vmem:[#allocation78_spill] sm:$0xff] %v13884_v47  ;;  %v10633_v29 = vpack.i.bf16 %v2537_v18, %v2536_v42  ;;  %v13900_v20 = vsel %vm431_vm3, %v2008_v54, %v9966_v39  ;;  %v13903_v24 = vsel %vm431_vm3, %v2009_v56, %v9967_v7  ;;  %v10042_v60 = vunpack.i.h.bf16 %v13238_v23  ;;  %v2541_v56 = vld [vmem:[#allocation3 + $0xe2] sm:$0xff] }
 0x1e0   : > { %v13892_v58 = vpop.permute.xlu2 %10474  ;;  %10624 = vrot.lane.b32.xlu2 %v10623_v28, %s12677_s29  ;;  %v2032_v6 = vsel %vm385_vm0, %v12529_v52, %v9946_v34  ;;  %v2039_v28 = vsel %vm431_vm3, %v2007_v22, %v9962_v5  ;;  %v10041_v42 = vunpack.i.l.bf16 %v13238_v23  ;;  %v2038_v7 = vsel %vm431_vm3, %v2006_v9, %v9961_v1 }
 0x1e1   : > { %19384 = vst [vmem:[#allocation79_spill] sm:$0xff] %v13892_v58  ;;  %v2033_v58 = vsel %vm385_vm0, %v12528_v62, %v9947_v48  ;;  %v13912_v54 = vpop.permute.xlu1 %10424  ;;  %v10107_v39 = vunpack.i.h.bf16 %v13332_v35  ;;  %v10106_v18 = vunpack.i.l.bf16 %v13332_v35  ;;  %v10122_v62 = vunpack.i.h.bf16 %v13344_v53  ;;  %v2540_v48 = vld [vmem:[#allocation3 + $0xda] sm:$0xff] }
 0x1e2   : > { %v2065_v52 = vsel %vm431_vm3, %v2033_v58, %v10027_v43  ;;  %v2064_v22 = vsel %vm431_vm3, %v2032_v6, %v10026_v15  ;;  %v10121_v23 = vunpack.i.l.bf16 %v13344_v53  ;;  %v10638_v34 = vpack.i.bf16 %v2539_v10, %v2538_v14 }
 0x1e3   : > { %10629 = vrot.lane.b32.xlu0 %v13884_v47, %s12677_s29  ;;  %v13922_v5 = vpop.permute.xlu0 %10434  ;;  %v2072_v9 = vsel %vm2070_vm6, %v2039_v28, %v10042_v60  ;;  %v10186_v1 = vunpack.i.l.bf16 %v13390_v46  ;;  %v10202_v35 = vunpack.i.h.bf16 %v13399_v16  ;;  %v10201_v37 = vunpack.i.l.bf16 %v13399_v16  ;;  %v2542_v47 = vld [vmem:[#allocation3 + $0xf2] sm:$0xff] }
 0x1e4   : > { %v2071_v58 = vsel %vm2070_vm6, %v2038_v7, %v10041_v42  ;;  %v10282_v43 = vunpack.i.h.bf16 %v13421_v38  ;;  %v10281_v53 = vunpack.i.l.bf16 %v13421_v38  ;;  %v13931_v15 = vpack.i.bf16 %v2541_v56, %v2540_v48  ;;  %v2545_v56 = vld [vmem:[#allocation3 + $0x112] sm:$0xff] }
 0x1e5   : > { %10634 = vrot.lane.b32.xlu1 %v10633_v29, %s12677_s29  ;;  %v10047_v10 = vunpack.i.h.bf16 %v13282_v44  ;;  %v2098_v29 = vsel %vm2070_vm6, %v2065_v52, %v10107_v39  ;;  %v2097_v60 = vsel %vm2070_vm6, %v2064_v22, %v10106_v18  ;;  %v2105_v14 = vsel %vm2103_vm7, %v2072_v9, %v10122_v62  ;;  %v2544_v62 = vld [vmem:[#allocation3 + $0x10a] sm:$0xff]  ;;  %v2546_v9 = vld [vmem:[#allocation3 + $0x122] sm:$0xff] }
 0x1e6   : > { %v2104_v16 = vsel %vm2103_vm7, %v2071_v58, %v10121_v23  ;;  %v10362_v28 = vunpack.i.h.bf16 %v13734_v59  ;;  %v10361_v42 = vunpack.i.l.bf16 %v13734_v59  ;;  %v10648_v38 = vpack.i.bf16 %v2543_v2, %v2542_v47 }
 0x1e7   : > { %v10187_v7 = vunpack.i.h.bf16 %v13390_v46  ;;  %v2130_v48 = vsel %vm2103_vm7, %v2097_v60, %v10186_v1  ;;  %v2137_v39 = vsel %vm2136_vm8, %v2104_v16, %v10201_v37  ;;  %v2138_v18 = vsel %vm2136_vm8, %v2105_v14, %v10202_v35  ;;  %v2547_v1 = vld [vmem:[#allocation3 + $0x12a] sm:$0xff]  ;;  %v2548_v14 = vld [vmem:[#allocation3 + $0x13a] sm:$0xff] }
 0x1e8   : > { %v13937_v6 = vpop.permute.xlu2 %10489  ;;  %10639 = vrot.lane.b32.xlu2 %v10638_v34, %s12677_s29  ;;  %v10267_v52 = vunpack.i.h.bf16 %v13406_v13  ;;  %v10266_v22 = vunpack.i.l.bf16 %v13406_v13  ;;  %v2170_v23 = vsel %vm2169_vm9, %v2137_v39, %v10281_v53  ;;  %v2171_v59 = vsel %vm2169_vm9, %v2138_v18, %v10282_v43 }
 0x1e9   : > { %v10440_v46 = vpop.permute.xlu1 %10439  ;;  %v10347_v2 = vunpack.i.h.bf16 %v13670_v41  ;;  %v10346_v47 = vunpack.i.l.bf16 %v13670_v41  ;;  %v10653_v35 = vpack.i.bf16 %v2545_v56, %v2544_v62  ;;  %v2203_v58 = vsel %vm2202_vm10, %v2170_v23, %v10361_v42  ;;  %v2549_v41 = vld [vmem:[#allocation3 + $0x142] sm:$0xff] }
 0x1ea   : > { %v10442_v37 = vunpack.i.h.bf16 %v10440_v46  ;;  %v10441_v34 = vunpack.i.l.bf16 %v10440_v46  ;;  %v2204_v43 = vsel %vm2202_vm10, %v2171_v59, %v10362_v28  ;;  %v10427_v53 = vunpack.i.h.bf16 %v13912_v54 }
 0x1eb   : > { %10644 = vrot.lane.b32.xlu0 %v13931_v15, %s12677_s29  ;;  %v13956_v13 = vpop.permute.xlu0 %10449  ;;  %v10426_v60 = vunpack.i.l.bf16 %v13912_v54  ;;  %v2163_v18 = vsel %vm2136_vm8, %v2130_v48, %v10266_v22  ;;  %v13966_v62 = vpack.i.bf16 %v2547_v1, %v2546_v9  ;;  %v10046_v28 = vunpack.i.l.bf16 %v13282_v44  ;;  %v2551_v9 = vld [vmem:[#allocation3 + $0x15a] sm:$0xff] }
 0x1ec   : > { %v2236_v16 = vsel %vm2235_vm12, %v2203_v58, %v10441_v34  ;;  %v2237_v39 = vsel %vm2235_vm12, %v2204_v43, %v10442_v37  ;;  %v10126_v56 = vunpack.i.l.bf16 %v13352_v57  ;;  %v2196_v54 = vsel %vm2169_vm9, %v2163_v18, %v10346_v47  ;;  %v2550_v34 = vld [vmem:[#allocation3 + $0x152] sm:$0xff] }
 0x1ed   : > { %10649 = vrot.lane.b32.xlu1 %v10648_v38, %s12677_s29  ;;  %v2131_v38 = vsel %vm2103_vm7, %v2098_v29, %v10187_v7  ;;  %v2268_v42 = vpack.c.bf16 %v2237_v39, %v2236_v16  ;;  %v13974_v37 = vpack.i.bf16 %v2549_v41, %v2548_v14  ;;  %v9957_v48 = vunpack.i.h.bf16 %v13208_v33  ;;  %v2553_v14 = vld [vmem:[#allocation3 + $0x172] sm:$0xff] }
 0x1ee   : > { %v2164_v23 = vsel %vm2136_vm8, %v2131_v38, %v10267_v52  ;;  %v9956_v22 = vunpack.i.l.bf16 %v13208_v33  ;;  %v2229_v52 = vsel %vm2202_vm10, %v2196_v54, %v10426_v60  ;;  %v10127_v1 = vunpack.i.h.bf16 %v13352_v57  ;;  %v2552_v57 = vld [vmem:[#allocation3 + $0x16a] sm:$0xff]  ;;  %v2555_v54 = vld [vmem:[#allocation3 + $0x20] sm:$0xff] }
 0x1ef   : > { %v2197_v46 = vsel %vm2169_vm9, %v2164_v23, %v10347_v2  ;;  %9555 = vmatmul.msk.bf16.vlgmr.msra.gmra.mxu0 %vm2316_vm13, %v2268_v42  ;;  %v9972_v2 = vunpack.i.h.bf16 %v13220_v0  ;;  %v9971_v33 = vunpack.i.l.bf16 %v13220_v0  ;;  %v2073_v60 = vsel %vm2070_vm6, %v13900_v20, %v10046_v28  ;;  %v19385_v39 = vld [vmem:[#allocation34_spill] sm:$0xff]  ;;  %v19386_v20 = vld [vmem:[#allocation52_spill] sm:$0xff] }
 0x1f0   : > { %v10505_v59 = vpop.permute.xlu2 %10504  ;;  %10654 = vrot.lane.b32.xlu2 %v10653_v35, %s12677_s29  ;;  %v2230_v47 = vsel %vm2202_vm10, %v2197_v46, %v10427_v53  ;;  %v2074_v53 = vsel %vm2070_vm6, %v13903_v24, %v10047_v10  ;;  %v2106_v16 = vsel %vm2103_vm7, %v2073_v60, %v10126_v56  ;;  %v10207_v38 = vunpack.i.h.bf16 %v19385_v39  ;;  %v2554_v10 = vld [vmem:[#allocation3 + $0x18] sm:$0xff]  ;;  %v12531_v60 = vld [vmem:[#allocation2 + $0x50] sm:$0xff] }
 0x1f1   : > { %v10507_v29 = vunpack.i.h.bf16 %v10505_v59  ;;  %v10506_v7 = vunpack.i.l.bf16 %v10505_v59  ;;  %v13985_v35 = vpop.permute.xlu1 %10454  ;;  %v10206_v18 = vunpack.i.l.bf16 %v19385_v39  ;;  %v10668_v0 = vpack.i.bf16 %v2551_v9, %v2550_v34  ;;  %v12532_v39 = vld [vmem:[#allocation2 + $0x48] sm:$0xff] }
 0x1f2   : > { %v10287_v28 = vunpack.i.h.bf16 %v19386_v20  ;;  %v10286_v44 = vunpack.i.l.bf16 %v19386_v20  ;;  %v2107_v56 = vsel %vm2103_vm7, %v2074_v53, %v10127_v1  ;;  %v10367_v59 = vunpack.i.h.bf16 %v13760_v25 }
 0x1f3   : > { %10659 = vrot.lane.b32.xlu0 %v13966_v62, %s12677_s29  ;;  %v2262_v58 = vsel %vm2235_vm12, %v2229_v52, %v10506_v7  ;;  %v2263_v43 = vsel %vm2235_vm12, %v2230_v47, %v10507_v29  ;;  %v10465_v42 = vpop.permute.xlu0 %10464  ;;  %v10366_v46 = vunpack.i.l.bf16 %v13760_v25  ;;  %v14007_v29 = vpack.i.bf16 %v2553_v14, %v2552_v57 }
 0x1f4   : > { %v2281_v41 = vpack.c.bf16 %v2263_v43, %v2262_v58  ;;  %v10467_v23 = vunpack.i.h.bf16 %v10465_v42  ;;  %v10466_v24 = vunpack.i.l.bf16 %v10465_v42  ;;  %v10447_v7 = vunpack.i.h.bf16 %v13820_v12  ;;  %v12530_v43 = vld [vmem:[#allocation2 + $0x150] sm:$0xff] }
 0x1f5   : > { %10664 = vrot.lane.b32.xlu1 %v13974_v37, %s12677_s29  ;;  %v10446_v34 = vunpack.i.l.bf16 %v13820_v12  ;;  %v2139_v47 = vsel %vm2136_vm8, %v2106_v16, %v10206_v18  ;;  %v2140_v1 = vsel %vm2136_vm8, %v2107_v56, %v10207_v38  ;;  %v10678_v25 = vpack.i.bf16 %v2555_v54, %v2554_v10  ;;  %v2557_v16 = vld [vmem:[#allocation3 + $0x38] sm:$0xff]  ;;  %v2559_v10 = vld [vmem:[#allocation3 + $0x50] sm:$0xff] }
 0x1f6   : > { %9568 = vmatmul.msk.bf16.vlgmr.msra.gmra.mxu1 %vm2316_vm13, %v2281_v41  ;;  %v14013_v9 = vsel %vm2235_vm12, %v13647_v4, %v10466_v24  ;;  %v14017_v52 = vsel %vm2235_vm12, %v13650_v11, %v10467_v23  ;;  %v19387_v12 = vunpack.i.l.bf16 %v13164_v30  ;;  %v19388_v53 = vunpack.i.h.bf16 %v13168_v45  ;;  %v2556_v41 = vld [vmem:[#allocation3 + $0x30] sm:$0xff]  ;;  %v12533_v30 = vld [vmem:[#allocation2 + $0x170] sm:$0xff]  ;;  %v2558_v24 = vld [vmem:[#allocation3 + $0x48] sm:$0xff] }
 0x1f7   : > { %v2172_v57 = vsel %vm2169_vm9, %v2139_v47, %v10286_v44  ;;  %v2173_v14 = vsel %vm2169_vm9, %v2140_v1, %v10287_v28  ;;  %v19389_v38 = vunpack.i.l.bf16 %v13168_v45  ;;  %v12534_v44 = vld [vmem:[#allocation2 + $0x168] sm:$0xff]  ;;  %v2043_v45 = vsel %vm431_vm3, %v13876_v19, %v9972_v2  ;;  %v19390_v47 = vld [vmem:[#allocation21_spill] sm:$0xff] }
 0x1f8   : > { %10669 = vrot.lane.b32.xlu2 %v10668_v0, %s12677_s29  ;;  %v2034_v4 = vsel %vm385_vm0, %v12530_v43, %v19387_v12  ;;  %v14030_v11 = vsel %vm385_vm0, %v12531_v60, %v19388_v53  ;;  %v14040_v0 = vsel %vm385_vm0, %v12533_v30, %v9957_v48  ;;  %v2205_v20 = vsel %vm2202_vm10, %v2172_v57, %v10366_v46  ;;  %v19391_v19 = vld [vmem:[#allocation25_spill] sm:$0xff]  ;;  %v19392_v53 = vld [vmem:[#allocation28_spill] sm:$0xff]  ;;  %v19393_v30 = vld [vmem:[#allocation30_spill] sm:$0xff] }
 0x1f9   : > { %v14037_v18 = vsel %vm385_vm0, %v12532_v39, %v19389_v38  ;;  %v14044_v42 = vpop.permute.xlu1 %10469  ;;  %v2206_v28 = vsel %vm2202_vm10, %v2173_v14, %v10367_v59  ;;  %v14049_v23 = vsel %vm385_vm0, %v12534_v44, %v9956_v22  ;;  %v2238_v48 = vsel %vm2235_vm12, %v2205_v20, %v10446_v34  ;;  %v2561_v60 = vld [vmem:[#allocation3 + $0x68] sm:$0xff]  ;;  %v618_v39 = vld [vmem:[%s13418_s24 + $0xf0] sm:$0xff] }
 0x1fa   : > { %v2239_v54 = vsel %vm2235_vm12, %v2206_v28, %v10447_v7  ;;  %v2042_v56 = vsel %vm431_vm3, %v13869_v63, %v9971_v33  ;;  %v10032_v46 = vunpack.i.h.bf16 %v19390_v47  ;;  %v10031_v59 = vunpack.i.l.bf16 %v19390_v47  ;;  %v2560_v7 = vld [vmem:[#allocation3 + $0x60] sm:$0xff]  ;;  %v619_v38 = vld [vmem:[%s13418_s24 + $0xf8] sm:$0xff]  ;;  %651 = vst.msk [vmem:[#allocation3 + $0x181] sm:$0xff] %vm431_vm3, %v618_v39  ;;  %v19394_v28 = vld [vmem:[#allocation15_spill] sm:$0xff]  ;;  %s12684_s24 = smov 84  }
 0x1fb   : > { %10674 = vrot.lane.b32.xlu0 %v14007_v29, %s12677_s29  ;;  %v10683_v22 = vpack.i.bf16 %v2557_v16, %v2556_v41  ;;  %v10480_v1 = vpop.permute.xlu0 %10479  ;;  %v10052_v2 = vunpack.i.h.bf16 %v19391_v19  ;;  %v10051_v43 = vunpack.i.l.bf16 %v19391_v19  ;;  %v10132_v63 = vunpack.i.h.bf16 %v19392_v53  ;;  %652 = vst.msk [vmem:[#allocation3 + $0x189] sm:$0xff] %vm431_vm3, %v619_v38 }
 0x1fc   : > { %v10482_v34 = vunpack.i.h.bf16 %v10480_v1  ;;  %v10481_v12 = vunpack.i.l.bf16 %v10480_v1  ;;  %v10131_v33 = vunpack.i.l.bf16 %v19392_v53  ;;  %v10688_v57 = vpack.i.bf16 %v2559_v10, %v2558_v24  ;;  %v19395_v24 = vld [vmem:[#allocation42_spill] sm:$0xff] }
 0x1fd   : > { %10679 = vrot.lane.b32.xlu1 %v10678_v25, %s12679_s16  ;;  %v2269_v14 = vpack.c.bf16 %v2239_v54, %v2238_v48  ;;  %v10112_v25 = vunpack.i.h.bf16 %v19393_v30  ;;  %v10111_v41 = vunpack.i.l.bf16 %v19393_v30  ;;  %v10211_v10 = vunpack.i.l.bf16 %v19395_v24  ;;  %v14080_v48 = vpop.permute.xlu2 %10519 }
 0x1fe   : > { %v14071_v16 = vsel %vm2235_vm12, %v13717_v49, %v10481_v12  ;;  %v14075_v20 = vsel %vm2235_vm12, %v13720_v51, %v10482_v34  ;;  %v10693_v54 = vpack.i.bf16 %v2561_v60, %v2560_v7  ;;  %v9976_v47 = vunpack.i.l.bf16 %v19394_v28  ;;  %v19396_v51 = vld [vmem:[#allocation17_spill] sm:$0xff]  ;;  %v2563_v12 = vld [vmem:[#allocation3 + $0x80] sm:$0xff]  ;;  %v2564_v49 = vld [vmem:[#allocation3 + $0x90] sm:$0xff] }
 0x1ff   : > { %9556 = vmatmul.msk.bf16.gmra.mxu0 %vm2316_vm13, %v2269_v14  ;;  %v2067_v34 = vsel %vm431_vm3, %v13888_v27, %v10032_v46  ;;  %v2066_v7 = vsel %vm431_vm3, %v2034_v4, %v10031_v59  ;;  %v2075_v60 = vsel %vm2070_vm6, %v2042_v56, %v10051_v43  ;;  %v2076_v53 = vsel %vm2070_vm6, %v2043_v45, %v10052_v2  ;;  %v2565_v4 = vld [vmem:[#allocation3 + $0x98] sm:$0xff]  ;;  %v19397_v59 = vld [vmem:[#allocation32_spill] sm:$0xff] }
 0x200   : > { %10684 = vrot.lane.b32.xlu2 %v10683_v22, %s12679_s16  ;;  %v2562_v22 = vld [vmem:[#allocation3 + $0x78] sm:$0xff]  ;;  %v10212_v14 = vunpack.i.h.bf16 %v19395_v24  ;;  %v2108_v38 = vsel %vm2103_vm7, %v2075_v60, %v10131_v33  ;;  %v2109_v30 = vsel %vm2103_vm7, %v2076_v53, %v10132_v63  ;;  %v2099_v27 = vsel %vm2070_vm6, %v2066_v7, %v10111_v41  ;;  %v19398_v24 = vld [vmem:[#allocation54_spill] sm:$0xff]  ;;  %v2566_v7 = vld [vmem:[#allocation3 + $0xa8] sm:$0xff] }
 0x201   : > { %v14096_v39 = vpop.permute.xlu1 %10484  ;;  %v2100_v46 = vsel %vm2070_vm6, %v2067_v34, %v10112_v25  ;;  %v10192_v56 = vunpack.i.h.bf16 %v19397_v59  ;;  %v10191_v45 = vunpack.i.l.bf16 %v19397_v59  ;;  %v2141_v2 = vsel %vm2136_vm8, %v2108_v38, %v10211_v10  ;;  %v2567_v25 = vld [vmem:[#allocation3 + $0xb0] sm:$0xff]  ;;  %v19399_v53 = vld [vmem:[#allocation59_spill] sm:$0xff]  ;;  %v19400_v38 = vld [vmem:[#allocation49_spill] sm:$0xff] }
 0x202   : > { %v10698_v43 = vpack.i.bf16 %v2563_v12, %v2562_v22  ;;  %v10292_v33 = vunpack.i.h.bf16 %v19398_v24  ;;  %v10291_v63 = vunpack.i.l.bf16 %v19398_v24  ;;  %v2142_v34 = vsel %vm2136_vm8, %v2109_v30, %v10212_v14 }
 0x203   : > { %10689 = vrot.lane.b32.xlu0 %v10688_v57, %s12679_s16  ;;  %v10495_v57 = vpop.permute.xlu0 %10494  ;;  %v10372_v58 = vunpack.i.h.bf16 %v19399_v53  ;;  %v10371_v59 = vunpack.i.l.bf16 %v19399_v53  ;;  %v10703_v19 = vpack.i.bf16 %v2565_v4, %v2564_v49  ;;  %v10452_v10 = vunpack.i.h.bf16 %v13956_v13 }
 0x204   : > { %v10497_v60 = vunpack.i.h.bf16 %v10495_v57  ;;  %v10496_v41 = vunpack.i.l.bf16 %v10495_v57  ;;  %v10272_v57 = vunpack.i.h.bf16 %v19400_v38  ;;  %v10271_v14 = vunpack.i.l.bf16 %v19400_v38 }
 0x205   : > { %10694 = vrot.lane.b32.xlu1 %v10693_v54, %s12679_s16  ;;  %v10451_v54 = vunpack.i.l.bf16 %v13956_v13  ;;  %v10708_v30 = vpack.i.bf16 %v2567_v25, %v2566_v7  ;;  %v2174_v13 = vsel %vm2169_vm9, %v2141_v2, %v10291_v63  ;;  %v2175_v4 = vsel %vm2169_vm9, %v2142_v34, %v10292_v33  ;;  %v2570_v7 = vld [vmem:[#allocation3 + $0xd8] sm:$0xff]  ;;  %v2571_v25 = vld [vmem:[#allocation3 + $0xe0] sm:$0xff] }
 0x206   : > { %v14115_v22 = vsel %vm2235_vm12, %v13763_v3, %v10496_v41  ;;  %v14119_v12 = vsel %vm2235_vm12, %v13766_v61, %v10497_v60  ;;  %v10352_v3 = vunpack.i.h.bf16 %v13712_v21  ;;  %v10351_v24 = vunpack.i.l.bf16 %v13712_v21  ;;  %v2568_v61 = vld [vmem:[#allocation3 + $0xc0] sm:$0xff]  ;;  %v2569_v60 = vld [vmem:[#allocation3 + $0xc8] sm:$0xff] }
 0x207   : > { %v2132_v41 = vsel %vm2103_vm7, %v2099_v27, %v10191_v45  ;;  %v2133_v53 = vsel %vm2103_vm7, %v2100_v46, %v10192_v56  ;;  %v2207_v2 = vsel %vm2202_vm10, %v2174_v13, %v10371_v59  ;;  %v2208_v33 = vsel %vm2202_vm10, %v2175_v4, %v10372_v58  ;;  %v19401_v56 = vld [vmem:[#allocation23_spill] sm:$0xff]  ;;  %v19402_v4 = vld [vmem:[#allocation26_spill] sm:$0xff] }
 0x208   : > { %10699 = vrot.lane.b32.xlu2 %v10698_v43, %s12679_s16  ;;  %v10432_v63 = vunpack.i.h.bf16 %v13789_v26  ;;  %v10431_v21 = vunpack.i.l.bf16 %v13789_v26  ;;  %v2240_v27 = vsel %vm2235_vm12, %v2207_v2, %v10451_v54  ;;  %v2241_v46 = vsel %vm2235_vm12, %v2208_v33, %v10452_v10  ;;  %v2572_v2 = vld [vmem:[#allocation3 + $0xf0] sm:$0xff]  ;;  %v2573_v10 = vld [vmem:[#allocation3 + $0xf8] sm:$0xff] }
 0x209   : > { %v14135_v43 = vpop.permute.xlu1 %10499  ;;  %v10037_v45 = vunpack.i.h.bf16 %v19401_v56  ;;  %v2166_v34 = vsel %vm2136_vm8, %v2133_v53, %v10272_v57  ;;  %v10713_v59 = vpack.i.bf16 %v2569_v60, %v2568_v61  ;;  %v10036_v13 = vunpack.i.l.bf16 %v19401_v56 }
 0x20a   : > { %v14132_v38 = vpop.permute.xlu2 %10534  ;;  %v10117_v26 = vunpack.i.h.bf16 %v19402_v4  ;;  %v2199_v54 = vsel %vm2169_vm9, %v2166_v34, %v10352_v3  ;;  %v10718_v33 = vpack.i.bf16 %v2571_v25, %v2570_v7  ;;  %v10116_v57 = vunpack.i.l.bf16 %v19402_v4 }
 0x20b   : > { %10704 = vrot.lane.b32.xlu0 %v10703_v19, %s12679_s16  ;;  %v2165_v19 = vsel %vm2136_vm8, %v2132_v41, %v10271_v14  ;;  %v10510_v58 = vpop.permute.xlu0 %10509  ;;  %v2270_v14 = vpack.c.bf16 %v2241_v46, %v2240_v27  ;;  %v19403_v41 = vld [vmem:[#allocation31_spill] sm:$0xff]  ;;  %v2232_v60 = vsel %vm2202_vm10, %v2199_v54, %v10432_v63  ;;  %v2044_v25 = vsel %vm431_vm3, %v14037_v18, %v9976_v47  ;;  %v19404_v27 = vld [vmem:[#allocation40_spill] sm:$0xff]  ;;  %v2575_v46 = vld [vmem:[#allocation3 + $0x110] sm:$0xff] }
 0x20c   : > { %v2198_v49 = vsel %vm2169_vm9, %v2165_v19, %v10351_v24  ;;  %v10512_v1 = vunpack.i.h.bf16 %v10510_v58  ;;  %v10511_v44 = vunpack.i.l.bf16 %v10510_v58  ;;  %v10136_v53 = vunpack.i.l.bf16 %v19403_v41 }
 0x20d   : > { %10709 = vrot.lane.b32.xlu1 %v10708_v30, %s12679_s16  ;;  %v10137_v30 = vunpack.i.h.bf16 %v19403_v41  ;;  %v2231_v61 = vsel %vm2202_vm10, %v2198_v49, %v10431_v21  ;;  %v10723_v24 = vpack.i.bf16 %v2573_v10, %v2572_v2  ;;  %v10197_v49 = vunpack.i.h.bf16 %v19404_v27  ;;  %v2574_v21 = vld [vmem:[#allocation3 + $0x108] sm:$0xff] }
 0x20e   : > { %v2264_v3 = vsel %vm2235_vm12, %v2231_v61, %v10511_v44  ;;  %v2265_v7 = vsel %vm2235_vm12, %v2232_v60, %v10512_v1  ;;  %v10196_v63 = vunpack.i.l.bf16 %v19404_v27  ;;  %v19405_v19 = vunpack.i.h.bf16 %v19394_v28  ;;  %v2578_v60 = vld [vmem:[#allocation3 + $0x138] sm:$0xff] }
 0x20f   : > { %9557 = vmatmul.msk.bf16.gmra.mxu0 %vm2316_vm13, %v2270_v14  ;;  %v2282_v56 = vpack.c.bf16 %v2265_v7, %v2264_v3  ;;  %v2068_v44 = vsel %vm431_vm3, %v14049_v23, %v10036_v13  ;;  %v2069_v1 = vsel %vm431_vm3, %v14040_v0, %v10037_v45  ;;  %v19407_v4 = vunpack.i.h.bf16 %v19396_v51  ;;  %v2576_v45 = vld [vmem:[#allocation3 + $0x120] sm:$0xff]  ;;  %v2577_v13 = vld [vmem:[#allocation3 + $0x128] sm:$0xff]  ;;  %v19410_v27 = vld [vmem:[#allocation51_spill] sm:$0xff] }
 0x210   : > { %10714 = vrot.lane.b32.xlu2 %v10713_v59, %s12679_s16  ;;  %v2045_v34 = vsel %vm431_vm3, %v14030_v11, %v19405_v19  ;;  %v19406_v59 = vld [vmem:[#allocation43_spill] sm:$0xff]  ;;  %v19408_v11 = vunpack.i.l.bf16 %v19396_v51  ;;  %v2101_v23 = vsel %vm2070_vm6, %v2068_v44, %v10116_v57  ;;  %v2102_v0 = vsel %vm2070_vm6, %v2069_v1, %v10117_v26  ;;  %v19409_v57 = vld [vmem:[#allocation45_spill] sm:$0xff]  ;;  %v2579_v3 = vld [vmem:[#allocation3 + $0x140] sm:$0xff] }
 0x211   : > { %v10216_v18 = vunpack.i.l.bf16 %v19406_v59  ;;  %v14178_v58 = vpop.permute.xlu1 %10514  ;;  %v2078_v28 = vsel %vm2070_vm6, %v2045_v34, %v19407_v4  ;;  %9569 = vmatmul.msk.bf16.gmra.mxu1 %vm2316_vm13, %v2282_v56  ;;  %v10728_v14 = vpack.i.bf16 %v2575_v46, %v2574_v21  ;;  %v2134_v51 = vsel %vm2103_vm7, %v2101_v23, %v10196_v63  ;;  %v19411_v56 = vld [vmem:[#allocation56_spill] sm:$0xff]  ;;  %v2580_v4 = vld [vmem:[#allocation3 + $0x150] sm:$0xff] }
 0x212   : > { %v14175_v47 = vpop.permute.xlu2 %10549  ;;  %v2077_v54 = vsel %vm2070_vm6, %v2044_v25, %v19408_v11  ;;  %v2111_v2 = vsel %vm2103_vm7, %v2078_v28, %v10137_v30  ;;  %v2135_v41 = vsel %vm2103_vm7, %v2102_v0, %v10197_v49  ;;  %v10297_v61 = vunpack.i.h.bf16 %v19409_v57  ;;  %v2581_v28 = vld [vmem:[#allocation3 + $0x158] sm:$0xff] }
 0x213   : > { %10719 = vrot.lane.b32.xlu0 %v10718_v33, %s12679_s16  ;;  %v2110_v10 = vsel %vm2103_vm7, %v2077_v54, %v10136_v53  ;;  %v10217_v33 = vunpack.i.h.bf16 %v19406_v59  ;;  %v10296_v26 = vunpack.i.l.bf16 %v19409_v57  ;;  %v10377_v30 = vunpack.i.h.bf16 %v13777_v40  ;;  %v14217_v23 = vpop.permute.xlu0 %10524 }
 0x214   : > { %v2143_v7 = vsel %vm2136_vm8, %v2110_v10, %v10216_v18  ;;  %v10376_v53 = vunpack.i.l.bf16 %v13777_v40  ;;  %v10733_v25 = vpack.i.bf16 %v2577_v13, %v2576_v45  ;;  %v10276_v21 = vunpack.i.l.bf16 %v19410_v27  ;;  %v2583_v10 = vld [vmem:[#allocation3 + $0x170] sm:$0xff] }
 0x215   : > { %10724 = vrot.lane.b32.xlu1 %v10723_v24, %s12679_s16  ;;  %v10277_v24 = vunpack.i.h.bf16 %v19410_v27  ;;  %v10457_v63 = vunpack.i.h.bf16 %v13985_v35  ;;  %v10456_v49 = vunpack.i.l.bf16 %v13985_v35  ;;  %v2144_v46 = vsel %vm2136_vm8, %v2111_v2, %v10217_v33  ;;  %v2582_v2 = vld [vmem:[#allocation3 + $0x168] sm:$0xff] }
 0x216   : > { %v10357_v19 = vunpack.i.h.bf16 %v19411_v56  ;;  %v10356_v34 = vunpack.i.l.bf16 %v19411_v56  ;;  %v10738_v44 = vpack.i.bf16 %v2579_v3, %v2578_v60  ;;  %v2176_v40 = vsel %vm2169_vm9, %v2143_v7, %v10296_v26  ;;  %v2584_v60 = vld [vmem:[#allocation3 + $0x180] sm:$0xff]  ;;  %v2585_v3 = vld [vmem:[#allocation3 + $0x188] sm:$0xff] }
 0x217   : > { %v2177_v1 = vsel %vm2169_vm9, %v2144_v46, %v10297_v61  ;;  %v10437_v59 = vunpack.i.h.bf16 %v13922_v5  ;;  %v10436_v18 = vunpack.i.l.bf16 %v13922_v5  ;;  %v10517_v35 = vunpack.i.h.bf16 %v14178_v58  ;;  %v19412_v46 = vld [vmem:[#allocation55_spill] sm:$0xff] }
 0x218   : > { %10729 = vrot.lane.b32.xlu2 %v10728_v14, %s12679_s16  ;;  %v10516_v11 = vunpack.i.l.bf16 %v14178_v58  ;;  %v2209_v0 = vsel %vm2202_vm10, %v2176_v40, %v10376_v53  ;;  %v2210_v45 = vsel %vm2202_vm10, %v2177_v1, %v10377_v30  ;;  %v2167_v13 = vsel %vm2136_vm8, %v2134_v51, %v10276_v21 }
 0x219   : > { %v2168_v5 = vsel %vm2136_vm8, %v2135_v41, %v10277_v24  ;;  %v2242_v33 = vsel %vm2235_vm12, %v2209_v0, %v10456_v49  ;;  %v2243_v58 = vsel %vm2235_vm12, %v2210_v45, %v10457_v63  ;;  %v2200_v14 = vsel %vm2169_vm9, %v2167_v13, %v10356_v34  ;;  %v14228_v26 = vpop.permute.xlu1 %10529 }
 0x21a   : > { %v14214_v54 = vpop.permute.xlu2 %10564  ;;  %v2201_v57 = vsel %vm2169_vm9, %v2168_v5, %v10357_v19  ;;  %v10743_v61 = vpack.i.bf16 %v2581_v28, %v2580_v4  ;;  %v2233_v51 = vsel %vm2202_vm10, %v2200_v14, %v10436_v18  ;;  %v10748_v7 = vpack.i.bf16 %v2583_v10, %v2582_v2  ;;  %v19413_v19 = vld [vmem:[#allocation58_spill] sm:$0xff]  ;;  %v19417_v28 = vld [vmem:[#allocation8_spill] sm:$0xff]  ;;  %v19421_v5 = vld [vmem:[#allocation19_spill] sm:$0xff] }
 0x21b   : > { %10734 = vrot.lane.b32.xlu0 %v10733_v25, %s12679_s16  ;;  %v2234_v41 = vsel %vm2202_vm10, %v2201_v57, %v10437_v59  ;;  %v2271_v30 = vpack.c.bf16 %v2243_v58, %v2242_v33  ;;  %v2266_v53 = vsel %vm2235_vm12, %v2233_v51, %v10516_v11  ;;  %v10753_v27 = vpack.i.bf16 %v2585_v3, %v2584_v60  ;;  %v19415_v59 = vld [vmem:[#allocation61_spill] sm:$0xff]  ;;  %v19416_v4 = vld [vmem:[#allocation62_spill] sm:$0xff]  ;;  %v19418_v11 = vld [vmem:[#allocation63_spill] sm:$0xff] }
 0x21c   : > { %v2267_v25 = vsel %vm2235_vm12, %v2234_v41, %v10517_v35  ;;  %v19414_v40 = vpack.c.bf16 %v13860_v17, %v13857_v50  ;;  %v9912_v35 = vunpack.i.h.bf16 %v19417_v28  ;;  %v19419_v0 = vpack.c.bf16 %v14017_v52, %v14013_v9  ;;  %v19422_v33 = vld [vmem:[#allocation64_spill] sm:$0xff]  ;;  %v19423_v58 = vld [vmem:[#allocation33_spill] sm:$0xff] }
 0x21d   : > { %10739 = vrot.lane.b32.xlu1 %v10738_v44, %s12679_s16  ;;  %v2283_v24 = vpack.c.bf16 %v2267_v25, %v2266_v53  ;;  %v10071_v2 = vunpack.i.l.bf16 %v19421_v5  ;;  %v10152_v14 = vunpack.i.h.bf16 %v19423_v58  ;;  %v10151_v57 = vunpack.i.l.bf16 %v19423_v58  ;;  %v12535_v9 = vld [vmem:[#allocation2 + $0x98] sm:$0xff]  ;;  %v19424_v3 = vld [vmem:[#allocation44_spill] sm:$0xff] }
 0x21e   : > { %v2019_v52 = vsel %vm385_vm0, %v12535_v9, %v9912_v35  ;;  %v10232_v51 = vunpack.i.h.bf16 %v19424_v3  ;;  %v10231_v41 = vunpack.i.l.bf16 %v19424_v3  ;;  %v2617_v58 = vld [vmem:[#allocation3 + $0x189] sm:$0xff]  ;;  %v19430_v3 = vld [vmem:[#allocation68_spill] sm:$0xff] }
 0x21f   : > { %9558 = vmatmul.msk.bf16.gmra.mxu0 %vm2316_vm13, %v2271_v30  ;;  %v19425_v30 = vld [vmem:[#allocation65_spill] sm:$0xff] }
 0x220   : > { %10744 = vrot.lane.b32.xlu2 %v10743_v61, %s12679_s16  ;;  %v12536_v61 = vld [vmem:[#allocation2 + $0x90] sm:$0xff] }
 0x221   : > { %9570 = vmatmul.msk.bf16.gmra.mxu1 %vm2316_vm13, %v2283_v24 }
 0x222   : > { %v14236_v21 = vpop.permute.xlu2 %10579 }
 0x223   : > { %10749 = vrot.lane.b32.xlu0 %v10748_v7, %s12679_s16 }
 0x225   : > { %v14240_v63 = vpop.permute.xlu0 %10539  ;;  %10754 = vrot.lane.b32.xlu1 %v10753_v27, %s12679_s16  ;;  %v19426_v27 = vld [vmem:[#allocation47_spill] sm:$0xff]  ;;  %s12683_s16 = smov 72  }
 0x226   : > { %v10312_v24 = vunpack.i.h.bf16 %v19426_v27 }
 0x227   : > { %v14243_v49 = vpop.permute.xlu1 %10544 }
 0x228   : > { %10759 = vrot.lane.b32.xlu2 %v19412_v46, %s12681_s25  ;;  %v10311_v46 = vunpack.i.l.bf16 %v19426_v27 }
 0x22a   : > { %v14247_v56 = vpop.permute.xlu2 %10594 }
 0x22b   : > { %10764 = vrot.lane.b32.xlu0 %v19413_v19, %s12681_s25 }
 0x22d   : > { %v14251_v34 = vpop.permute.xlu0 %10554  ;;  %10769 = vrot.lane.b32.xlu1 %v13616_v32, %s12681_s25 }
 0x22f   : > { %v14255_v44 = vpop.permute.xlu1 %10559  ;;  %9559 = vmatmul.msk.bf16.gmra.mxu0 %vm2316_vm13, %v19414_v40 }
 0x230   : > { %10774 = vrot.lane.b32.xlu2 %v13628_v8, %s12681_s25 }
 0x232   : > { %v14263_v1 = vpop.permute.xlu2 %10609 }
 0x233   : > { %10779 = vrot.lane.b32.xlu0 %v19415_v59, %s12681_s25  ;;  %v19427_v59 = vld [vmem:[#allocation69_spill] sm:$0xff] }
 0x235   : > { %v14267_v18 = vpop.permute.xlu0 %10569  ;;  %10784 = vrot.lane.b32.xlu1 %v13668_v55, %s12681_s25  ;;  %v9911_v55 = vunpack.i.l.bf16 %v19417_v28  ;;  %v10391_v28 = vunpack.i.l.bf16 %v19427_v59 }
 0x237   : > { %v14271_v32 = vpop.permute.xlu1 %10574  ;;  %v2018_v60 = vsel %vm385_vm0, %v12536_v61, %v9911_v55 }
 0x238   : > { %10789 = vrot.lane.b32.xlu2 %v19416_v4, %s12681_s25  ;;  %v10392_v4 = vunpack.i.h.bf16 %v19427_v59 }
 0x23a   : > { %v14275_v8 = vpop.permute.xlu2 %10624 }
 0x23b   : > { %10794 = vrot.lane.b32.xlu0 %v13698_v36, %s12681_s25  ;;  %v19420_v36 = vld [vmem:[#allocation16_spill] sm:$0xff] }
 0x23c   : > { %v9992_v45 = vunpack.i.h.bf16 %v19420_v36  ;;  %v9991_v13 = vunpack.i.l.bf16 %v19420_v36  ;;  %v10471_v36 = vunpack.i.l.bf16 %v14044_v42 }
 0x23d   : > { %v14279_v50 = vpop.permute.xlu0 %10584  ;;  %10799 = vrot.lane.b32.xlu1 %v13732_v31, %s12681_s25  ;;  %v10072_v31 = vunpack.i.h.bf16 %v19421_v5  ;;  %v19428_v5 = vld [vmem:[#allocation66_spill] sm:$0xff] }
 0x23e   : > { %v2050_v53 = vsel %vm431_vm3, %v2018_v60, %v9991_v13  ;;  %v2051_v25 = vsel %vm431_vm3, %v2019_v52, %v9992_v45 }
 0x23f   : > { %v14283_v17 = vpop.permute.xlu1 %10589  ;;  %9560 = vmatmul.msk.bf16.gmra.mxu0 %vm2316_vm13, %v19419_v0  ;;  %v2083_v19 = vsel %vm2070_vm6, %v2050_v53, %v10071_v2  ;;  %v2084_v40 = vsel %vm2070_vm6, %v2051_v25, %v10072_v31  ;;  %v10472_v0 = vunpack.i.h.bf16 %v14044_v42  ;;  %v19431_v53 = vld [vmem:[#allocation9_spill] sm:$0xff] }
 0x240   : > { %10804 = vrot.lane.b32.xlu2 %v19418_v11, %s12681_s25  ;;  %v2116_v55 = vsel %vm2103_vm7, %v2083_v19, %v10151_v57  ;;  %v2117_v11 = vsel %vm2103_vm7, %v2084_v40, %v10152_v14  ;;  %v19429_v14 = vld [vmem:[#allocation67_spill] sm:$0xff]  ;;  %v9917_v25 = vunpack.i.h.bf16 %v19431_v53  ;;  %v9916_v27 = vunpack.i.l.bf16 %v19431_v53  ;;  %v2627_v53 = vld [vmem:[#allocation3 + $0x82] sm:$0xff] }
 0x241   : > { %v2149_v45 = vsel %vm2136_vm8, %v2116_v55, %v10231_v41  ;;  %v2150_v13 = vsel %vm2136_vm8, %v2117_v11, %v10232_v51  ;;  %v19433_v40 = vld [vmem:[#allocation27_spill] sm:$0xff]  ;;  %v19434_v55 = vld [vmem:[#allocation70_spill] sm:$0xff] }
 0x242   : > { %v14297_v10 = vpop.permute.xlu2 %10639  ;;  %v2182_v31 = vsel %vm2169_vm9, %v2149_v45, %v10311_v46  ;;  %v2183_v2 = vsel %vm2169_vm9, %v2150_v13, %v10312_v24  ;;  %v19432_v24 = vld [vmem:[#allocation13_spill] sm:$0xff]  ;;  %v10077_v59 = vunpack.i.h.bf16 %v19433_v40  ;;  %v19435_v11 = vld [vmem:[#allocation35_spill] sm:$0xff]  ;;  %v12537_v45 = vld [vmem:[#allocation2 + $0xb0] sm:$0xff] }
 0x243   : > { %10809 = vrot.lane.b32.xlu0 %v19422_v33, %s12681_s25  ;;  %v2616_v33 = vld [vmem:[#allocation3 + $0x181] sm:$0xff]  ;;  %v2215_v42 = vsel %vm2202_vm10, %v2182_v31, %v10391_v28  ;;  %v2216_v9 = vsel %vm2202_vm10, %v2183_v2, %v10392_v4  ;;  %v9997_v46 = vunpack.i.h.bf16 %v19432_v24  ;;  %v9996_v19 = vunpack.i.l.bf16 %v19432_v24  ;;  %v19436_v2 = vld [vmem:[#allocation39_spill] sm:$0xff] }
 0x244   : > { %v2248_v52 = vsel %vm2235_vm12, %v2215_v42, %v10471_v36  ;;  %v2249_v61 = vsel %vm2235_vm12, %v2216_v9, %v10472_v0  ;;  %v10833_v51 = vpack.i.bf16 %v2617_v58, %v2616_v33  ;;  %v10076_v4 = vunpack.i.l.bf16 %v19433_v40  ;;  %v19437_v42 = vld [vmem:[#allocation72_spill] sm:$0xff]  ;;  %v19439_v24 = vld [vmem:[#allocation71_spill] sm:$0xff] }
 0x245   : > { %v14307_v7 = vpop.permute.xlu0 %10599  ;;  %10814 = vrot.lane.b32.xlu1 %v19425_v30, %s12681_s25  ;;  %v2274_v30 = vpack.c.bf16 %v2249_v61, %v2248_v52  ;;  %v10157_v0 = vunpack.i.h.bf16 %v19435_v11  ;;  %v10156_v36 = vunpack.i.l.bf16 %v19435_v11  ;;  %v2021_v13 = vsel %vm385_vm0, %v12537_v45, %v9917_v25  ;;  %v19438_v61 = vld [vmem:[#allocation57_spill] sm:$0xff]  ;;  %v19441_v45 = vld [vmem:[#allocation79_spill] sm:$0xff] }
 0x246   : > { %v10237_v33 = vunpack.i.h.bf16 %v19436_v2  ;;  %v10236_v58 = vunpack.i.l.bf16 %v19436_v2  ;;  %v2053_v9 = vsel %vm431_vm3, %v2021_v13, %v9997_v46  ;;  %v10397_v40 = vunpack.i.h.bf16 %v19439_v24 }
 0x247   : > { %v14319_v35 = vpop.permute.xlu1 %10604  ;;  %v2086_v25 = vsel %vm2070_vm6, %v2053_v9, %v10077_v59  ;;  %v10477_v13 = vunpack.i.h.bf16 %v19441_v45 }
 0x248   : > { %10819 = vrot.lane.b32.xlu2 %v19428_v5, %s12681_s25  ;;  %v12538_v5 = vld [vmem:[#allocation2 + $0xa8] sm:$0xff] }
 0x249   : > { %v2020_v31 = vsel %vm385_vm0, %v12538_v5, %v9916_v27  ;;  %v10476_v5 = vunpack.i.l.bf16 %v19441_v45  ;;  %v2636_v45 = vld [vmem:[#allocation3 + $0xf2] sm:$0xff] }
 0x24a   : > { %v14331_v57 = vpop.permute.xlu2 %10654  ;;  %v2052_v52 = vsel %vm431_vm3, %v2020_v31, %v9996_v19  ;;  %v2119_v19 = vsel %vm2103_vm7, %v2086_v25, %v10157_v0  ;;  %v19444_v0 = vld [vmem:[#allocation75_spill] sm:$0xff] }
 0x24b   : > { %10824 = vrot.lane.b32.xlu0 %v19429_v14, %s12681_s25  ;;  %v2085_v27 = vsel %vm2070_vm6, %v2052_v52, %v10076_v4  ;;  %v2152_v59 = vsel %vm2136_vm8, %v2119_v19, %v10237_v33  ;;  %v19442_v4 = vld [vmem:[#allocation74_spill] sm:$0xff] }
 0x24c   : > { %v2118_v46 = vsel %vm2103_vm7, %v2085_v27, %v10156_v36  ;;  %v2631_v25 = vld [vmem:[#allocation3 + $0xb2] sm:$0xff] }
 0x24d   : > { %v14339_v60 = vpop.permute.xlu0 %10614  ;;  %10829 = vrot.lane.b32.xlu1 %v19430_v3, %s12681_s25  ;;  %v10317_v3 = vunpack.i.h.bf16 %v19438_v61  ;;  %v2151_v31 = vsel %vm2136_vm8, %v2118_v46, %v10236_v58  ;;  %v2630_v58 = vld [vmem:[#allocation3 + $0xaa] sm:$0xff] }
 0x24f   : > { %v14343_v41 = vpop.permute.xlu1 %10619  ;;  %9561 = vmatmul.msk.bf16.gmra.mxu0 %vm2316_vm13, %v2274_v30  ;;  %v2626_v30 = vld [vmem:[#allocation3 + $0x7a] sm:$0xff]  ;;  %v2185_v9 = vsel %vm2169_vm9, %v2152_v59, %v10317_v3  ;;  %v2632_v3 = vld [vmem:[#allocation3 + $0xc2] sm:$0xff]  ;;  %v2639_v59 = vld [vmem:[#allocation3 + $0x112] sm:$0xff] }
 0x250   : > { %10834 = vrot.lane.b32.xlu2 %v10833_v51, %s12681_s25  ;;  %v10316_v51 = vunpack.i.l.bf16 %v19438_v61  ;;  %v10858_v2 = vpack.i.bf16 %v2627_v53, %v2626_v30  ;;  %v2218_v61 = vsel %vm2202_vm10, %v2185_v9, %v10397_v40 }
 0x251   : > { %v2251_v27 = vsel %vm2235_vm12, %v2218_v61, %v10477_v13  ;;  %v2637_v13 = vld [vmem:[#allocation3 + $0xfa] sm:$0xff] }
 0x252   : > { %v14353_v28 = vpop.permute.xlu2 %10669  ;;  %v2645_v61 = vld [vmem:[#allocation3 + $0x15a] sm:$0xff] }
 0x253   : > { %10839 = vrot.lane.b32.xlu0 %v19434_v55, %s12682_s27  ;;  %v10396_v55 = vunpack.i.l.bf16 %v19439_v24  ;;  %v10868_v24 = vpack.i.bf16 %v2631_v25, %v2630_v58  ;;  %v19451_v25 = vld [vmem:[#allocation10_spill] sm:$0xff] }
 0x255   : > { %v14363_v14 = vpop.permute.xlu0 %10629  ;;  %10844 = vrot.lane.b32.xlu1 %v19437_v42, %s12682_s27  ;;  %v2184_v42 = vsel %vm2169_vm9, %v2151_v31, %v10316_v51  ;;  %v2633_v51 = vld [vmem:[#allocation3 + $0xca] sm:$0xff] }
 0x256   : > { %v2217_v36 = vsel %vm2202_vm10, %v2184_v42, %v10396_v55  ;;  %v19446_v55 = vld [vmem:[#allocation78_spill] sm:$0xff]  ;;  %v10873_v40 = vpack.i.bf16 %v2633_v51, %v2632_v3 }
 0x257   : > { %v14375_v11 = vpop.permute.xlu1 %10634  ;;  %v2250_v33 = vsel %vm2235_vm12, %v2217_v36, %v10476_v5  ;;  %v2638_v31 = vld [vmem:[#allocation3 + $0x10a] sm:$0xff]  ;;  %v2644_v36 = vld [vmem:[#allocation3 + $0x152] sm:$0xff] }
 0x258   : > { %19440 = vst [vmem:[#allocation34_spill] sm:$0xff] %v14375_v11  ;;  %10849 = vrot.lane.b32.xlu2 %v19442_v4, %s12682_s27  ;;  %v2275_v46 = vpack.c.bf16 %v2251_v27, %v2250_v33  ;;  %v10888_v42 = vpack.i.bf16 %v2639_v59, %v2638_v31  ;;  %v9926_v33 = vunpack.i.l.bf16 %v19451_v25  ;;  %v9927_v27 = vunpack.i.h.bf16 %v19451_v25  ;;  %v19452_v3 = vld [vmem:[#allocation18_spill] sm:$0xff]  ;;  %v12539_v31 = vld [vmem:[#allocation2 + $0xd8] sm:$0xff]  ;;  %v19456_v59 = vld [vmem:[#allocation36_spill] sm:$0xff] }
 0x259   : > { %v10006_v51 = vunpack.i.l.bf16 %v19452_v3 }
 0x25a   : > { %v14387_v52 = vpop.permute.xlu2 %10684 }
 0x25b   : > { %19443 = vst [vmem:[#allocation52_spill] sm:$0xff] %v14387_v52  ;;  %10854 = vrot.lane.b32.xlu0 %v19444_v0, %s12682_s27  ;;  %v2688_v52 = vld [vmem:[#allocation3 + $0x69] sm:$0xff] }
 0x25d   : > { %v14395_v30 = vpop.permute.xlu0 %10644  ;;  %10859 = vrot.lane.b32.xlu1 %v10858_v2, %s12682_s27  ;;  %v10883_v2 = vpack.i.bf16 %v2637_v13, %v2636_v45 }
 0x25f   : > { %v14398_v53 = vpop.permute.xlu1 %10649  ;;  %9562 = vmatmul.msk.bf16.gmra.mxu0 %vm2316_vm13, %v2275_v46  ;;  %v10007_v46 = vunpack.i.h.bf16 %v19452_v3  ;;  %v19457_v3 = vld [vmem:[#allocation46_spill] sm:$0xff] }
 0x260   : > { %19445 = vst [vmem:[#allocation21_spill] sm:$0xff] %v14398_v53  ;;  %10864 = vrot.lane.b32.xlu2 %v19446_v55, %s12682_s27  ;;  %v19454_v55 = vld [vmem:[#allocation22_spill] sm:$0xff]  ;;  %v2687_v53 = vld [vmem:[#allocation3 + $0x61] sm:$0xff] }
 0x261   : > { %v10087_v45 = vunpack.i.h.bf16 %v19454_v55 }
 0x262   : > { %v14403_v19 = vpop.permute.xlu2 %10699 }
 0x263   : > { %19447 = vst [vmem:[#allocation25_spill] sm:$0xff] %v14403_v19  ;;  %10869 = vrot.lane.b32.xlu0 %v10868_v24, %s12682_s27  ;;  %v19453_v24 = vpack.c.bf16 %v14075_v20, %v14071_v16  ;;  %v10166_v16 = vunpack.i.l.bf16 %v19456_v59  ;;  %v2648_v20 = vld [vmem:[#allocation3 + $0x182] sm:$0xff] }
 0x265   : > { %v14406_v5 = vpop.permute.xlu0 %10659  ;;  %10874 = vrot.lane.b32.xlu1 %v10873_v40, %s12682_s27  ;;  %v10086_v40 = vunpack.i.l.bf16 %v19454_v55  ;;  %v10246_v55 = vunpack.i.l.bf16 %v19457_v3 }
 0x267   : > { %v14409_v4 = vpop.permute.xlu1 %10664 }
 0x268   : > { %19448 = vst [vmem:[#allocation28_spill] sm:$0xff] %v14409_v4  ;;  %10879 = vrot.lane.b32.xlu2 %v13931_v15, %s12682_s27  ;;  %v10903_v15 = vpack.i.bf16 %v2645_v61, %v2644_v36  ;;  %v12540_v36 = vld [vmem:[#allocation2 + $0xe0] sm:$0xff] }
 0x269   : > { %v2025_v61 = vsel %vm385_vm0, %v12540_v36, %v9927_v27  ;;  %v2652_v27 = vld [vmem:[#allocation3 + $0x38] sm:$0xff] }
 0x26a   : > { %v14413_v9 = vpop.permute.xlu2 %10714 }
 0x26b   : > { %19449 = vst [vmem:[#allocation30_spill] sm:$0xff] %v14413_v9  ;;  %10884 = vrot.lane.b32.xlu0 %v10883_v2, %s12682_s27  ;;  %v10167_v2 = vunpack.i.h.bf16 %v19456_v59  ;;  %v2651_v9 = vld [vmem:[#allocation3 + $0x30] sm:$0xff] }
 0x26d   : > { %v14416_v0 = vpop.permute.xlu0 %10674  ;;  %10889 = vrot.lane.b32.xlu1 %v10888_v42, %s12682_s27  ;;  %v2649_v42 = vld [vmem:[#allocation3 + $0x18a] sm:$0xff] }
 0x26f   : > { %v14419_v58 = vpop.permute.xlu1 %10679  ;;  %9563 = vmatmul.msk.bf16.gmra.mxu0 %vm2316_vm13, %v19453_v24  ;;  %v10247_v24 = vunpack.i.h.bf16 %v19457_v3 }
 0x270   : > { %19450 = vst [vmem:[#allocation15_spill] sm:$0xff] %v14419_v58  ;;  %10894 = vrot.lane.b32.xlu2 %v13966_v62, %s12682_s27  ;;  %v2024_v62 = vsel %vm385_vm0, %v12539_v31, %v9926_v33  ;;  %v19459_v31 = vld [vmem:[#allocation50_spill] sm:$0xff] }
 0x271   : > { %v2056_v25 = vsel %vm431_vm3, %v2024_v62, %v10006_v51  ;;  %v10327_v59 = vunpack.i.h.bf16 %v19459_v31  ;;  %v10326_v58 = vunpack.i.l.bf16 %v19459_v31  ;;  %v19460_v62 = vld [vmem:[#allocation73_spill] sm:$0xff] }
 0x272   : > { %v14433_v13 = vpop.permute.xlu2 %10729  ;;  %v2089_v33 = vsel %vm2070_vm6, %v2056_v25, %v10086_v40  ;;  %v10407_v36 = vunpack.i.h.bf16 %v19460_v62  ;;  %v10406_v3 = vunpack.i.l.bf16 %v19460_v62  ;;  %v10487_v40 = vunpack.i.h.bf16 %v14096_v39 }
 0x273   : > { %19455 = vst [vmem:[#allocation42_spill] sm:$0xff] %v14433_v13  ;;  %10899 = vrot.lane.b32.xlu0 %v13974_v37, %s12682_s27  ;;  %v2057_v37 = vsel %vm431_vm3, %v2025_v61, %v10007_v46  ;;  %v10486_v61 = vunpack.i.l.bf16 %v14096_v39 }
 0x274   : > { %v2090_v51 = vsel %vm2070_vm6, %v2057_v37, %v10087_v45  ;;  %v10918_v45 = vpack.i.bf16 %v2652_v27, %v2651_v9  ;;  %v2658_v27 = vld [vmem:[#allocation3 + $0x80] sm:$0xff] }
 0x275   : > { %v14444_v13 = vpop.permute.xlu0 %10689  ;;  %10904 = vrot.lane.b32.xlu1 %v10903_v15, %s12682_s27  ;;  %v2122_v15 = vsel %vm2103_vm7, %v2089_v33, %v10166_v16  ;;  %v2123_v46 = vsel %vm2103_vm7, %v2090_v51, %v10167_v2  ;;  %v2654_v16 = vld [vmem:[#allocation3 + $0x50] sm:$0xff] }
 0x276   : > { %19458 = vst [vmem:[#allocation17_spill] sm:$0xff] %v14444_v13  ;;  %v10913_v13 = vpack.i.bf16 %v2649_v42, %v2648_v20  ;;  %v2155_v25 = vsel %vm2136_vm8, %v2122_v15, %v10246_v55  ;;  %v2156_v31 = vsel %vm2136_vm8, %v2123_v46, %v10247_v24  ;;  %v2653_v42 = vld [vmem:[#allocation3 + $0x48] sm:$0xff]  ;;  %v2655_v55 = vld [vmem:[#allocation3 + $0x60] sm:$0xff]  ;;  %v19464_v15 = vld [vmem:[#allocation11_spill] sm:$0xff] }
 0x277   : > { %v14454_v4 = vpop.permute.xlu1 %10694  ;;  %v2188_v37 = vsel %vm2169_vm9, %v2155_v25, %v10326_v58  ;;  %v2189_v20 = vsel %vm2169_vm9, %v2156_v31, %v10327_v59  ;;  %v2656_v24 = vld [vmem:[#allocation3 + $0x68] sm:$0xff]  ;;  %v10923_v58 = vpack.i.bf16 %v2654_v16, %v2653_v42  ;;  %v2657_v59 = vld [vmem:[#allocation3 + $0x78] sm:$0xff]  ;;  %v9931_v46 = vunpack.i.l.bf16 %v19464_v15  ;;  %v19465_v25 = vld [vmem:[#allocation14_spill] sm:$0xff] }
 0x278   : > { %19461 = vst [vmem:[#allocation32_spill] sm:$0xff] %v14454_v4  ;;  %10909 = vrot.lane.b32.xlu2 %v14007_v29, %s12682_s27  ;;  %v2221_v39 = vsel %vm2202_vm10, %v2188_v37, %v10406_v3  ;;  %v2222_v2 = vsel %vm2202_vm10, %v2189_v20, %v10407_v36  ;;  %v9932_v36 = vunpack.i.h.bf16 %v19464_v15  ;;  %v10011_v31 = vunpack.i.l.bf16 %v19465_v25  ;;  %v2659_v20 = vld [vmem:[#allocation3 + $0x90] sm:$0xff]  ;;  %v2660_v42 = vld [vmem:[#allocation3 + $0x98] sm:$0xff]  ;;  %v2664_v4 = vld [vmem:[#allocation3 + $0xc8] sm:$0xff] }
 0x279   : > { %v2254_v51 = vsel %vm2235_vm12, %v2221_v39, %v10486_v61  ;;  %v2255_v29 = vsel %vm2235_vm12, %v2222_v2, %v10487_v40  ;;  %v10012_v61 = vunpack.i.h.bf16 %v19465_v25  ;;  %v10933_v40 = vpack.i.bf16 %v2658_v27, %v2657_v59  ;;  %v12541_v2 = vld [vmem:[#allocation2 + $0xf8] sm:$0xff] }
 0x27a   : > { %v14466_v33 = vpop.permute.xlu2 %10744  ;;  %v2277_v3 = vpack.c.bf16 %v2255_v29, %v2254_v51  ;;  %v19468_v29 = vld [vmem:[#allocation37_spill] sm:$0xff] }
 0x27b   : > { %19462 = vst [vmem:[#allocation54_spill] sm:$0xff] %v14466_v33  ;;  %10914 = vrot.lane.b32.xlu0 %v10913_v13, %s12682_s27  ;;  %v10928_v13 = vpack.i.bf16 %v2656_v24, %v2655_v55  ;;  %v2027_v55 = vsel %vm385_vm0, %v12541_v2, %v9932_v36  ;;  %v12542_v24 = vld [vmem:[#allocation2 + $0xf0] sm:$0xff]  ;;  %v10171_v59 = vunpack.i.l.bf16 %v19468_v29  ;;  %v2661_v27 = vld [vmem:[#allocation3 + $0xa8] sm:$0xff]  ;;  %s12688_s27 = smov 32  }
 0x27c   : > { %v2026_v51 = vsel %vm385_vm0, %v12542_v24, %v9931_v46  ;;  %v2059_v15 = vsel %vm431_vm3, %v2027_v55, %v10012_v61  ;;  %v19469_v25 = vld [vmem:[#allocation41_spill] sm:$0xff]  ;;  %v19471_v2 = vld [vmem:[#allocation60_spill] sm:$0xff] }
 0x27d   : > { %v14473_v9 = vpop.permute.xlu0 %10704  ;;  %10919 = vrot.lane.b32.xlu1 %v10918_v45, %s12683_s16  ;;  %v19466_v45 = vld [vmem:[#allocation29_spill] sm:$0xff]  ;;  %v2058_v36 = vsel %vm431_vm3, %v2026_v51, %v10011_v31  ;;  %v10332_v24 = vunpack.i.h.bf16 %v19471_v2  ;;  %v2663_v33 = vld [vmem:[#allocation3 + $0xc0] sm:$0xff] }
 0x27e   : > { %19463 = vst [vmem:[#allocation59_spill] sm:$0xff] %v14473_v9  ;;  %v10092_v37 = vunpack.i.h.bf16 %v19466_v45  ;;  %v10091_v16 = vunpack.i.l.bf16 %v19466_v45  ;;  %v10252_v45 = vunpack.i.h.bf16 %v19469_v25  ;;  %v19472_v55 = vld [vmem:[#allocation76_spill] sm:$0xff] }
 0x27f   : > { %v14476_v62 = vpop.permute.xlu1 %10709  ;;  %9564 = vmatmul.msk.bf16.gmra.mxu0 %vm2316_vm13, %v2277_v3  ;;  %v2662_v3 = vld [vmem:[#allocation3 + $0xb0] sm:$0xff]  ;;  %v10412_v19 = vunpack.i.h.bf16 %v19472_v55 }
 0x280   : > { %10924 = vrot.lane.b32.xlu2 %v10923_v58, %s12683_s16  ;;  %v10172_v58 = vunpack.i.h.bf16 %v19468_v29  ;;  %v2092_v46 = vsel %vm2070_vm6, %v2059_v15, %v10092_v37  ;;  %v10331_v29 = vunpack.i.l.bf16 %v19471_v2  ;;  %v2091_v61 = vsel %vm2070_vm6, %v2058_v36, %v10091_v16 }
 0x281   : > { %v10492_v37 = vunpack.i.h.bf16 %v13937_v6  ;;  %v10948_v16 = vpack.i.bf16 %v2664_v4, %v2663_v33 }
 0x282   : > { %v14486_v39 = vpop.permute.xlu2 %10759  ;;  %v2125_v31 = vsel %vm2103_vm7, %v2092_v46, %v10172_v58  ;;  %v2668_v46 = vld [vmem:[#allocation3 + $0xf8] sm:$0xff] }
 0x283   : > { %19467 = vst [vmem:[#allocation49_spill] sm:$0xff] %v14486_v39  ;;  %10929 = vrot.lane.b32.xlu0 %v10928_v13, %s12683_s16  ;;  %v10251_v39 = vunpack.i.l.bf16 %v19469_v25  ;;  %v10938_v13 = vpack.i.bf16 %v2660_v42, %v2659_v20  ;;  %v10411_v25 = vunpack.i.l.bf16 %v19472_v55  ;;  %v2124_v20 = vsel %vm2103_vm7, %v2091_v61, %v10171_v59 }
 0x284   : > { %v10491_v42 = vunpack.i.l.bf16 %v13937_v6  ;;  %v2158_v15 = vsel %vm2136_vm8, %v2125_v31, %v10252_v45 }
 0x285   : > { %v14496_v9 = vpop.permute.xlu0 %10719  ;;  %10934 = vrot.lane.b32.xlu1 %v10933_v40, %s12683_s16  ;;  %v10943_v40 = vpack.i.bf16 %v2662_v3, %v2661_v27  ;;  %v2157_v51 = vsel %vm2136_vm8, %v2124_v20, %v10251_v39  ;;  %v2191_v2 = vsel %vm2169_vm9, %v2158_v15, %v10332_v24  ;;  %v2665_v27 = vld [vmem:[#allocation3 + $0xd8] sm:$0xff]  ;;  %v2666_v3 = vld [vmem:[#allocation3 + $0xe0] sm:$0xff]  ;;  %v2667_v39 = vld [vmem:[#allocation3 + $0xf0] sm:$0xff] }
 0x286   : > { %19470 = vst [vmem:[#allocation23_spill] sm:$0xff] %v14496_v9  ;;  %v2190_v36 = vsel %vm2169_vm9, %v2157_v51, %v10331_v29  ;;  %v2224_v6 = vsel %vm2202_vm10, %v2191_v2, %v10412_v19  ;;  %v2669_v24 = vld [vmem:[#allocation3 + $0x108] sm:$0xff]  ;;  %v2670_v29 = vld [vmem:[#allocation3 + $0x110] sm:$0xff]  ;;  %v10958_v55 = vpack.i.bf16 %v2668_v46, %v2667_v39  ;;  %v2679_v46 = vld [vmem:[#allocation3 + $0x180] sm:$0xff] }
 0x287   : > { %v14506_v9 = vpop.permute.xlu1 %10724  ;;  %v2223_v58 = vsel %vm2202_vm10, %v2190_v36, %v10411_v25  ;;  %v2257_v4 = vsel %vm2235_vm12, %v2224_v6, %v10492_v37  ;;  %v10963_v19 = vpack.i.bf16 %v2670_v29, %v2669_v24  ;;  %v2671_v25 = vld [vmem:[#allocation3 + $0x120] sm:$0xff]  ;;  %v2672_v20 = vld [vmem:[#allocation3 + $0x128] sm:$0xff]  ;;  %v2673_v37 = vld [vmem:[#allocation3 + $0x138] sm:$0xff] }
 0x288   : > { %10939 = vrot.lane.b32.xlu2 %v10938_v13, %s12683_s16  ;;  %v2256_v45 = vsel %vm2235_vm12, %v2223_v58, %v10491_v42  ;;  %v10953_v13 = vpack.i.bf16 %v2666_v3, %v2665_v27  ;;  %v2674_v42 = vld [vmem:[#allocation3 + $0x140] sm:$0xff]  ;;  %v10968_v15 = vpack.i.bf16 %v2672_v20, %v2671_v25  ;;  %v2676_v36 = vld [vmem:[#allocation3 + $0x158] sm:$0xff]  ;;  %v2677_v58 = vld [vmem:[#allocation3 + $0x168] sm:$0xff] }
 0x289   : > { %v10973_v27 = vpack.i.bf16 %v2674_v42, %v2673_v37  ;;  %v2678_v6 = vld [vmem:[#allocation3 + $0x170] sm:$0xff]  ;;  %v2681_v24 = vld [vmem:[#allocation3 + $0x198] sm:$0xff]  ;;  %v2682_v29 = vld [vmem:[#allocation3 + $0x1a0] sm:$0xff] }
 0x28a   : > { %v14517_v59 = vpop.permute.xlu2 %10774  ;;  %v19479_v37 = vld [vmem:[#allocation20_spill] sm:$0xff] }
 0x28b   : > { %19473 = vst [vmem:[#allocation26_spill] sm:$0xff] %v14517_v59  ;;  %10944 = vrot.lane.b32.xlu0 %v10943_v40, %s12683_s16  ;;  %v2278_v40 = vpack.c.bf16 %v2257_v4, %v2256_v45  ;;  %v2680_v45 = vld [vmem:[#allocation3 + $0x188] sm:$0xff]  ;;  %v10021_v42 = vunpack.i.l.bf16 %v19479_v37  ;;  %v2686_v59 = vld [vmem:[#allocation3 + $0x51] sm:$0xff] }
 0x28d   : > { %v14524_v33 = vpop.permute.xlu0 %10734  ;;  %10949 = vrot.lane.b32.xlu1 %v10948_v16, %s12683_s16  ;;  %v2675_v16 = vld [vmem:[#allocation3 + $0x150] sm:$0xff] }
 0x28e   : > { %19474 = vst [vmem:[#allocation31_spill] sm:$0xff] %v14524_v33  ;;  %v10978_v3 = vpack.i.bf16 %v2676_v36, %v2675_v16  ;;  %v19480_v16 = vpack.c.bf16 %v14119_v12, %v14115_v22  ;;  %v10022_v36 = vunpack.i.h.bf16 %v19479_v37  ;;  %v19482_v12 = vld [vmem:[#allocation38_spill] sm:$0xff] }
 0x28f   : > { %v14527_v61 = vpop.permute.xlu1 %10739  ;;  %9565 = vmatmul.msk.bf16.gmra.mxu0 %vm2316_vm13, %v2278_v40  ;;  %v10988_v40 = vpack.i.bf16 %v2680_v45, %v2679_v46  ;;  %v10181_v37 = vunpack.i.l.bf16 %v19482_v12 }
 0x290   : > { %10954 = vrot.lane.b32.xlu2 %v10953_v13, %s12683_s16  ;;  %v10983_v13 = vpack.i.bf16 %v2678_v6, %v2677_v58  ;;  %v2683_v58 = vld [vmem:[#allocation3 + $0x31] sm:$0xff]  ;;  %v2684_v6 = vld [vmem:[#allocation3 + $0x39] sm:$0xff] }
 0x292   : > { %v14531_v31 = vpop.permute.xlu2 %10789 }
 0x293   : > { %10959 = vrot.lane.b32.xlu0 %v10958_v55, %s12683_s16 }
 0x295   : > { %v14534_v51 = vpop.permute.xlu0 %10749  ;;  %10964 = vrot.lane.b32.xlu1 %v10963_v19, %s12683_s16  ;;  %v19478_v19 = vld [vmem:[#allocation12_spill] sm:$0xff] }
 0x296   : > { %19475 = vst [vmem:[#allocation40_spill] sm:$0xff] %v14534_v51  ;;  %v9942_v25 = vunpack.i.h.bf16 %v19478_v19  ;;  %v9941_v20 = vunpack.i.l.bf16 %v19478_v19  ;;  %v12543_v19 = vld [vmem:[#allocation2 + $0x128] sm:$0xff] }
 0x297   : > { %v14537_v2 = vpop.permute.xlu1 %10754 }
 0x298   : > { %10969 = vrot.lane.b32.xlu2 %v10968_v15, %s12683_s16  ;;  %v10993_v15 = vpack.i.bf16 %v2682_v29, %v2681_v24  ;;  %v12544_v24 = vld [vmem:[#allocation2 + $0x120] sm:$0xff]  ;;  %v10182_v29 = vunpack.i.h.bf16 %v19482_v12 }
 0x299   : > { %v2030_v22 = vsel %vm385_vm0, %v12544_v24, %v9941_v20 }
 0x29a   : > { %v14540_v39 = vpop.permute.xlu2 %10804 }
 0x29b   : > { %10974 = vrot.lane.b32.xlu0 %v10973_v27, %s12683_s16  ;;  %v19481_v27 = vld [vmem:[#allocation24_spill] sm:$0xff] }
 0x29c   : > { %v10102_v46 = vunpack.i.h.bf16 %v19481_v27 }
 0x29d   : > { %v14543_v4 = vpop.permute.xlu0 %10764  ;;  %10979 = vrot.lane.b32.xlu1 %v10978_v3, %s12683_s16  ;;  %v10101_v3 = vunpack.i.l.bf16 %v19481_v27 }
 0x29e   : > { %19476 = vst [vmem:[#allocation43_spill] sm:$0xff] %v14543_v4  ;;  %v19483_v4 = vld [vmem:[#allocation48_spill] sm:$0xff] }
 0x29f   : > { %v14546_v55 = vpop.permute.xlu1 %10769  ;;  %9566 = vmatmul.msk.bf16.gmra.mxu0 %vm2316_vm13, %v19480_v16  ;;  %v2685_v16 = vld [vmem:[#allocation3 + $0x49] sm:$0xff]  ;;  %v10262_v27 = vunpack.i.h.bf16 %v19483_v4  ;;  %v10261_v51 = vunpack.i.l.bf16 %v19483_v4 }
 0x2a0   : > { %19477 = vst [vmem:[#allocation45_spill] sm:$0xff] %v14546_v55  ;;  %10984 = vrot.lane.b32.xlu2 %v10983_v13, %s12683_s16  ;;  %v2031_v13 = vsel %vm385_vm0, %v12543_v19, %v9942_v25  ;;  %v2062_v55 = vsel %vm431_vm3, %v2030_v22, %v10021_v42  ;;  %v19485_v19 = vld [vmem:[#allocation53_spill] sm:$0xff]  ;;  %vm3932_vm0 = vcmask 588800  }
 0x2a1   : > { %v2063_v25 = vsel %vm431_vm3, %v2031_v13, %v10022_v36  ;;  %v2095_v20 = vsel %vm2070_vm6, %v2062_v55, %v10101_v3  ;;  %v10342_v24 = vunpack.i.h.bf16 %v19485_v19  ;;  %v10341_v12 = vunpack.i.l.bf16 %v19485_v19  ;;  %v19486_v22 = vld [vmem:[#allocation77_spill] sm:$0xff] }
 0x2a2   : > { %v14559_v45 = vpop.permute.xlu2 %10819  ;;  %v2096_v42 = vsel %vm2070_vm6, %v2063_v25, %v10102_v46  ;;  %v10422_v11 = vunpack.i.h.bf16 %v19486_v22  ;;  %v10421_v4 = vunpack.i.l.bf16 %v19486_v22  ;;  %v2128_v36 = vsel %vm2103_vm7, %v2095_v20, %v10181_v37  ;;  %v2690_v37 = vld [vmem:[#allocation3 + $0x81] sm:$0xff] }
 0x2a3   : > { %10989 = vrot.lane.b32.xlu0 %v10988_v40, %s12683_s16  ;;  %v10998_v40 = vpack.i.bf16 %v2684_v6, %v2683_v58  ;;  %v11003_v58 = vpack.i.bf16 %v2686_v59, %v2685_v16  ;;  %v2129_v55 = vsel %vm2103_vm7, %v2096_v42, %v10182_v29  ;;  %v10502_v3 = vunpack.i.h.bf16 %v14135_v43  ;;  %v2689_v16 = vld [vmem:[#allocation3 + $0x79] sm:$0xff] }
 0x2a4   : > { %v10501_v6 = vunpack.i.l.bf16 %v14135_v43  ;;  %v2161_v13 = vsel %vm2136_vm8, %v2128_v36, %v10261_v51  ;;  %v2162_v46 = vsel %vm2136_vm8, %v2129_v55, %v10262_v27  ;;  %v11008_v25 = vpack.i.bf16 %v2688_v52, %v2687_v53  ;;  %v2691_v27 = vld [vmem:[#allocation3 + $0x91] sm:$0xff]  ;;  %v2692_v52 = vld [vmem:[#allocation3 + $0x99] sm:$0xff]  ;;  %v2695_v55 = vld [vmem:[#allocation3 + $0xc1] sm:$0xff] }
 0x2a5   : > { %v14569_v33 = vpop.permute.xlu0 %10779  ;;  %10994 = vrot.lane.b32.xlu1 %v10993_v15, %s12683_s16  ;;  %v2194_v19 = vsel %vm2169_vm9, %v2161_v13, %v10341_v12  ;;  %v2195_v59 = vsel %vm2169_vm9, %v2162_v46, %v10342_v24  ;;  %v2693_v24 = vld [vmem:[#allocation3 + $0xa9] sm:$0xff]  ;;  %v2694_v12 = vld [vmem:[#allocation3 + $0xb1] sm:$0xff]  ;;  %v2697_v13 = vld [vmem:[#allocation3 + $0xd9] sm:$0xff]  ;;  %vm480_vm8 = vcmask 58368   ;;  %s12689_s16 = smov 40  }
 0x2a6   : > { %19484 = vst [vmem:[#allocation51_spill] sm:$0xff] %v14569_v33  ;;  %v14579_v33 = vpop.f32.mrf.mxu0  ;;  %v2227_v29 = vsel %vm2202_vm10, %v2194_v19, %v10421_v4  ;;  %v2228_v20 = vsel %vm2202_vm10, %v2195_v59, %v10422_v11  ;;  %v11018_v11 = vpack.i.bf16 %v2692_v52, %v2691_v27  ;;  %v2698_v46 = vld [vmem:[#allocation3 + $0xe1] sm:$0xff]  ;;  %v2699_v59 = vld [vmem:[#allocation3 + $0xf1] sm:$0xff] }
 0x2a7   : > { %19487 = vst [vmem:[#allocation56_spill] sm:$0xff] %v14579_v33  ;;  %v14581_v15 = vpop.permute.xlu1 %10784  ;;  %v2260_v43 = vsel %vm2235_vm12, %v2227_v29, %v10501_v6  ;;  %v2261_v51 = vsel %vm2235_vm12, %v2228_v20, %v10502_v3  ;;  %v2696_v3 = vld [vmem:[#allocation3 + $0xc9] sm:$0xff]  ;;  %v11033_v29 = vpack.i.bf16 %v2698_v46, %v2697_v13  ;;  %v2703_v52 = vld [vmem:[#allocation3 + $0x121] sm:$0xff]  ;;  %v2707_v13 = vld [vmem:[#allocation3 + $0x151] sm:$0xff] }
 0x2a8   : > { %10999 = vrot.lane.b32.xlu2 %v10998_v40, %s12684_s24  ;;  %v11013_v40 = vpack.i.bf16 %v2690_v37, %v2689_v16  ;;  %v2280_v4 = vpack.c.bf16 %v2261_v51, %v2260_v43  ;;  %v11028_v19 = vpack.i.bf16 %v2696_v3, %v2695_v55  ;;  %v2700_v16 = vld [vmem:[#allocation3 + $0xf9] sm:$0xff]  ;;  %v2701_v43 = vld [vmem:[#allocation3 + $0x109] sm:$0xff]  ;;  %v2702_v51 = vld [vmem:[#allocation3 + $0x111] sm:$0xff] }
 0x2a9   : > { %v11038_v20 = vpack.i.bf16 %v2700_v16, %v2699_v59  ;;  %v2708_v46 = vld [vmem:[#allocation3 + $0x159] sm:$0xff]  ;;  %v2709_v59 = vld [vmem:[#allocation3 + $0x169] sm:$0xff]  ;;  %v2710_v16 = vld [vmem:[#allocation3 + $0x171] sm:$0xff] }
 0x2aa   : > { %v14594_v42 = vpop.permute.xlu2 %10834  ;;  %v2716_v33 = vld [vmem:[#allocation3 + $0x3a] sm:$0xff] }
 0x2ab   : > { %11004 = vrot.lane.b32.xlu0 %v11003_v58, %s12684_s24  ;;  %v11023_v58 = vpack.i.bf16 %v2694_v12, %v2693_v24  ;;  %v11043_v12 = vpack.i.bf16 %v2702_v51, %v2701_v43  ;;  %v2711_v43 = vld [vmem:[#allocation3 + $0x181] sm:$0xff]  ;;  %v2712_v51 = vld [vmem:[#allocation3 + $0x189] sm:$0xff] }
 0x2ad   : > { %v14599_v53 = vpop.permute.xlu0 %10794  ;;  %11009 = vrot.lane.b32.xlu1 %v11008_v25, %s12684_s24 }
 0x2ae   : > { %v14604_v36 = vpop.f32.mrf.mxu0 }
 0x2af   : > { %v14602_v22 = vpop.permute.xlu1 %10799  ;;  %19488 = vst [vmem:[#allocation55_spill] sm:$0xff] %v14604_v36  ;;  %9567 = vmatmul.msk.bf16.gmra.mxu0 %vm2316_vm13, %v2280_v4  ;;  %v2706_v4 = vld [vmem:[#allocation3 + $0x141] sm:$0xff] }
 0x2b0   : > { %11014 = vrot.lane.b32.xlu2 %v11013_v40, %s12684_s24  ;;  %v2704_v40 = vld [vmem:[#allocation3 + $0x129] sm:$0xff] }
 0x2b1   : > { %v11048_v55 = vpack.i.bf16 %v2704_v40, %v2703_v52  ;;  %v11063_v52 = vpack.i.bf16 %v2710_v16, %v2709_v59  ;;  %v11068_v40 = vpack.i.bf16 %v2712_v51, %v2711_v43  ;;  %v10552_v16 = vunpack.i.h.bf16 %v14175_v47 }
 0x2b2   : > { %v14608_v6 = vpop.permute.xlu2 %10849  ;;  %v10632_v43 = vunpack.i.h.bf16 %v14363_v14  ;;  %v10631_v51 = vunpack.i.l.bf16 %v14363_v14  ;;  %v10521_v14 = vunpack.i.l.bf16 %v14080_v48 }
 0x2b3   : > { %19489 = vst [vmem:[#allocation58_spill] sm:$0xff] %v14608_v6  ;;  %11019 = vrot.lane.b32.xlu0 %v11018_v11, %s12684_s24  ;;  %v2705_v11 = vld [vmem:[#allocation3 + $0x139] sm:$0xff] }
 0x2b4   : > { %v11053_v3 = vpack.i.bf16 %v2706_v4, %v2705_v11  ;;  %v2714_v11 = vld [vmem:[#allocation3 + $0x1a1] sm:$0xff] }
 0x2b5   : > { %v14611_v25 = vpop.permute.xlu0 %10809  ;;  %11024 = vrot.lane.b32.xlu1 %v11023_v58, %s12684_s24  ;;  %v2458_v6 = vld [vmem:[#allocation3] sm:$0xff] }
 0x2b6   : > { %19490 = vst [vmem:[#allocation61_spill] sm:$0xff] %v14611_v25 }
 0x2b7   : > { %v14614_v37 = vpop.permute.xlu1 %10814 }
 0x2b8   : > { %19491 = vst [vmem:[#allocation62_spill] sm:$0xff] %v14614_v37  ;;  %11029 = vrot.lane.b32.xlu2 %v11028_v19, %s12684_s24 }
 0x2ba   : > { %v14617_v27 = vpop.permute.xlu2 %10864 }
 0x2bb   : > { %19492 = vst [vmem:[#allocation8_spill] sm:$0xff] %v14617_v27  ;;  %11034 = vrot.lane.b32.xlu0 %v11033_v29, %s12684_s24 }
 0x2bd   : > { %v14620_v24 = vpop.permute.xlu0 %10824  ;;  %11039 = vrot.lane.b32.xlu1 %v11038_v20, %s12684_s24  ;;  %v11058_v20 = vpack.i.bf16 %v2708_v46, %v2707_v13  ;;  %v2717_v13 = vld [vmem:[#allocation3 + $0x4a] sm:$0xff]  ;;  %v2718_v46 = vld [vmem:[#allocation3 + $0x52] sm:$0xff] }
 0x2be   : > { %19493 = vst [vmem:[#allocation63_spill] sm:$0xff] %v14620_v24  ;;  %v10536_v24 = vunpack.i.l.bf16 %v14132_v38 }
 0x2bf   : > { %v14623_v58 = vpop.permute.xlu1 %10829 }
 0x2c0   : > { %19494 = vst [vmem:[#allocation16_spill] sm:$0xff] %v14623_v58  ;;  %11044 = vrot.lane.b32.xlu2 %v11043_v12, %s12684_s24  ;;  %v2713_v12 = vld [vmem:[#allocation3 + $0x199] sm:$0xff]  ;;  %v2722_v58 = vld [vmem:[#allocation3 + $0x82] sm:$0xff] }
 0x2c2   : > { %v14626_v19 = vpop.permute.xlu2 %10879 }
 0x2c3   : > { %19495 = vst [vmem:[#allocation19_spill] sm:$0xff] %v14626_v19  ;;  %11049 = vrot.lane.b32.xlu0 %v11048_v55, %s12684_s24  ;;  %v2715_v55 = vld [vmem:[#allocation3 + $0x32] sm:$0xff]  ;;  %v2721_v19 = vld [vmem:[#allocation3 + $0x7a] sm:$0xff] }
 0x2c4   : > { %v11078_v59 = vpack.i.bf16 %v2716_v33, %v2715_v55  ;;  %v10792_v33 = vunpack.i.h.bf16 %v14531_v31  ;;  %v10791_v55 = vunpack.i.l.bf16 %v14531_v31 }
 0x2c5   : > { %v14629_v29 = vpop.permute.xlu0 %10839  ;;  %11054 = vrot.lane.b32.xlu1 %v11053_v3, %s12684_s24  ;;  %v11073_v3 = vpack.i.bf16 %v2714_v11, %v2713_v12  ;;  %v2719_v12 = vld [vmem:[#allocation3 + $0x62] sm:$0xff]  ;;  %v2720_v11 = vld [vmem:[#allocation3 + $0x6a] sm:$0xff] }
 0x2c6   : > { %19496 = vst [vmem:[#allocation64_spill] sm:$0xff] %v14629_v29 }
 0x2c7   : > { %v14632_v36 = vpop.permute.xlu1 %10844 }
 0x2c8   : > { %19497 = vst [vmem:[#allocation33_spill] sm:$0xff] %v14632_v36  ;;  %11059 = vrot.lane.b32.xlu2 %v11058_v20, %s12684_s24  ;;  %v10551_v20 = vunpack.i.l.bf16 %v14175_v47 }
 0x2ca   : > { %v14635_v4 = vpop.permute.xlu2 %10894 }
 0x2cb   : > { %19498 = vst [vmem:[#allocation44_spill] sm:$0xff] %v14635_v4  ;;  %11064 = vrot.lane.b32.xlu0 %v11063_v52, %s12684_s24  ;;  %v11083_v52 = vpack.i.bf16 %v2718_v46, %v2717_v13  ;;  %v10522_v4 = vunpack.i.h.bf16 %v14080_v48  ;;  %v12545_v13 = vld [vmem:[#allocation3 + $0x98] sm:$0xff]  ;;  %v12546_v46 = vld [vmem:[#allocation3 + $0x90] sm:$0xff]  ;;  %v11088_v48 = vpack.i.bf16 %v2720_v11, %v2719_v12  ;;  %v10566_v12 = vunpack.i.l.bf16 %v14214_v54 }
 0x2cc   : > { %v10646_v11 = vunpack.i.l.bf16 %v14395_v30 }
 0x2cd   : > { %v14638_v29 = vpop.permute.xlu0 %10854  ;;  %11069 = vrot.lane.b32.xlu1 %v11068_v40, %s12684_s24  ;;  %v10711_v40 = vunpack.i.l.bf16 %v14476_v62 }
 0x2ce   : > { %19499 = vst [vmem:[#allocation65_spill] sm:$0xff] %v14638_v29  ;;  %v10712_v29 = vunpack.i.h.bf16 %v14476_v62  ;;  %v3784_v62 = vsel %vm431_vm3, %v12545_v13, %v10552_v16 }
 0x2cf   : > { %v14641_v36 = vpop.permute.xlu1 %10859  ;;  %v3816_v31 = vsel %vm2103_vm7, %v3784_v62, %v10632_v43  ;;  %v12548_v62 = vld [vmem:[#allocation3 + $0x48] sm:$0xff] }
 0x2d0   : > { %19500 = vst [vmem:[#allocation47_spill] sm:$0xff] %v14641_v36  ;;  %11074 = vrot.lane.b32.xlu2 %v11073_v3, %s12684_s24  ;;  %v10537_v3 = vunpack.i.h.bf16 %v14132_v38  ;;  %v3783_v36 = vsel %vm431_vm3, %v12546_v46, %v10551_v20  ;;  %v3848_v16 = vsel %vm2169_vm9, %v3816_v31, %v10712_v29  ;;  %v2723_v20 = vld [vmem:[#allocation3 + $0x92] sm:$0xff]  ;;  %v2724_v46 = vld [vmem:[#allocation3 + $0x9a] sm:$0xff]  ;;  %v14693_v31 = vsel %vm431_vm3, %v12548_v62, %v10536_v24  ;;  %s19268_s24 = smov 56  }
 0x2d1   : > { %v3880_v43 = vsel %vm2235_vm12, %v3848_v16, %v10792_v33  ;;  %v10727_v33 = vunpack.i.h.bf16 %v14506_v9  ;;  %v10532_v24 = vunpack.i.h.bf16 %v14228_v26 }
 0x2d2   : > { %v14653_v47 = vpop.permute.xlu2 %10909 }
 0x2d3   : > { %19501 = vst [vmem:[#allocation69_spill] sm:$0xff] %v14653_v47  ;;  %11079 = vrot.lane.b32.xlu0 %v11078_v59, %s12685_s14  ;;  %v3815_v47 = vsel %vm2103_vm7, %v3783_v36, %v10631_v51  ;;  %v2459_v59 = vld [vmem:[#allocation3 + $0x8] sm:$0xff]  ;;  %v11093_v51 = vpack.i.bf16 %v2722_v58, %v2721_v19  ;;  %v11098_v58 = vpack.i.bf16 %v2724_v46, %v2723_v20 }
 0x2d4   : > { %v3847_v37 = vsel %vm2169_vm9, %v3815_v47, %v10711_v40  ;;  %v14679_v29 = vsel %vm431_vm3, %v2459_v59, %v10522_v4  ;;  %v14685_v19 = vsel %vm431_vm3, %v2458_v6, %v10521_v14  ;;  %v2725_v4 = vld [vmem:[#allocation3 + $0xaa] sm:$0xff]  ;;  %v2726_v47 = vld [vmem:[#allocation3 + $0xb2] sm:$0xff]  ;;  %v10806_v6 = vunpack.i.l.bf16 %v14540_v39  ;;  %v2727_v20 = vld [vmem:[#allocation3 + $0xc2] sm:$0xff] }
 0x2d5   : > { %v10870_v27 = vpop.permute.xlu0 %10869  ;;  %11084 = vrot.lane.b32.xlu1 %v11083_v52, %s12685_s14  ;;  %v3879_v38 = vsel %vm2235_vm12, %v3847_v37, %v10791_v55  ;;  %v10567_v52 = vunpack.i.h.bf16 %v14214_v54  ;;  %v10647_v37 = vunpack.i.h.bf16 %v14395_v30  ;;  %v12547_v54 = vld [vmem:[#allocation3 + $0x50] sm:$0xff]  ;;  %v10726_v55 = vunpack.i.l.bf16 %v14506_v9  ;;  %v12550_v9 = vld [vmem:[#allocation3 + $0xd8] sm:$0xff] }
 0x2d6   : > { %v10872_v13 = vunpack.i.h.bf16 %v10870_v27  ;;  %v10871_v25 = vunpack.i.l.bf16 %v10870_v27  ;;  %v10527_v30 = vunpack.i.h.bf16 %v14217_v23  ;;  %v3789_v16 = vsel %vm431_vm3, %v12550_v9, %v10566_v12  ;;  %v2728_v46 = vld [vmem:[#allocation3 + $0xca] sm:$0xff]  ;;  %v2730_v9 = vld [vmem:[#allocation3 + $0xe2] sm:$0xff] }
 0x2d7   : > { %v14668_v36 = vpop.permute.xlu1 %10874 }
 0x2d8   : > { %19502 = vst [vmem:[#allocation66_spill] sm:$0xff] %v14668_v36  ;;  %v14673_v40 = vsel %vm3899_vm14, %v3879_v38, %v10871_v25  ;;  %v14676_v27 = vsel %vm3899_vm14, %v3880_v43, %v10872_v13  ;;  %11089 = vrot.lane.b32.xlu2 %v11088_v48, %s12685_s14  ;;  %v14688_v25 = vsel %vm431_vm3, %v12547_v54, %v10537_v3  ;;  %v10807_v48 = vunpack.i.h.bf16 %v14540_v39  ;;  %v12549_v3 = vld [vmem:[#allocation3 + $0xe0] sm:$0xff]  ;;  %v2736_v36 = vld [vmem:[#allocation3 + $0x12a] sm:$0xff] }
 0x2d9   : > { %v3790_v59 = vsel %vm431_vm3, %v12549_v3, %v10567_v52  ;;  %v10526_v13 = vunpack.i.l.bf16 %v14217_v23  ;;  %v10531_v38 = vunpack.i.l.bf16 %v14228_v26  ;;  %v3821_v43 = vsel %vm2103_vm7, %v3789_v16, %v10646_v11  ;;  %v2729_v3 = vld [vmem:[#allocation3 + $0xda] sm:$0xff] }
 0x2da   : > { %v14698_v14 = vpop.permute.xlu2 %10924  ;;  %v3822_v39 = vsel %vm2103_vm7, %v3790_v59, %v10647_v37  ;;  %v3853_v52 = vsel %vm2169_vm9, %v3821_v43, %v10726_v55  ;;  %v11108_v11 = vpack.i.bf16 %v2728_v46, %v2727_v20  ;;  %v12551_v16 = vld [vmem:[#allocation3 + $0x20] sm:$0xff]  ;;  %v10581_v55 = vunpack.i.l.bf16 %v14236_v21  ;;  %v12553_v46 = vld [vmem:[#allocation3 + $0x38] sm:$0xff] }
 0x2db   : > { %19503 = vst [vmem:[#allocation67_spill] sm:$0xff] %v14698_v14  ;;  %11094 = vrot.lane.b32.xlu0 %v11093_v51, %s12685_s14  ;;  %v11103_v51 = vpack.i.bf16 %v2726_v47, %v2725_v4  ;;  %v3854_v12 = vsel %vm2169_vm9, %v3822_v39, %v10727_v33  ;;  %v10582_v14 = vunpack.i.h.bf16 %v14236_v21  ;;  %v3885_v26 = vsel %vm2235_vm12, %v3853_v52, %v10806_v6  ;;  %v12552_v47 = vld [vmem:[#allocation3 + $0x18] sm:$0xff]  ;;  %v12554_v39 = vld [vmem:[#allocation3 + $0x30] sm:$0xff] }
 0x2dc   : > { %v3886_v37 = vsel %vm2235_vm12, %v3854_v12, %v10807_v48  ;;  %v14727_v6 = vsel %vm431_vm3, %v12552_v47, %v10526_v13  ;;  %v10662_v48 = vunpack.i.h.bf16 %v14406_v5  ;;  %v10661_v20 = vunpack.i.l.bf16 %v14406_v5  ;;  %v2731_v52 = vld [vmem:[#allocation3 + $0xf2] sm:$0xff]  ;;  %v2732_v12 = vld [vmem:[#allocation3 + $0xfa] sm:$0xff] }
 0x2dd   : > { %v10885_v54 = vpop.permute.xlu0 %10884  ;;  %11099 = vrot.lane.b32.xlu1 %v11098_v58, %s12685_s14  ;;  %v14717_v58 = vsel %vm431_vm3, %v12551_v16, %v10527_v30  ;;  %v11113_v30 = vpack.i.bf16 %v2730_v9, %v2729_v3  ;;  %v14733_v21 = vsel %vm431_vm3, %v12553_v46, %v10532_v24  ;;  %v14736_v43 = vsel %vm431_vm3, %v12554_v39, %v10531_v38  ;;  %v12556_v38 = vld [vmem:[#allocation3 + $0x120] sm:$0xff]  ;;  %v2734_v16 = vld [vmem:[#allocation3 + $0x112] sm:$0xff] }
 0x2de   : > { %v10887_v62 = vunpack.i.h.bf16 %v10885_v54  ;;  %v10886_v23 = vunpack.i.l.bf16 %v10885_v54  ;;  %v10742_v54 = vunpack.i.h.bf16 %v14527_v61  ;;  %v10741_v13 = vunpack.i.l.bf16 %v14527_v61 }
 0x2df   : > { %v14714_v59 = vpop.permute.xlu1 %10889  ;;  %v10821_v24 = vunpack.i.l.bf16 %v14559_v45  ;;  %v3795_v9 = vsel %vm431_vm3, %v12556_v38, %v10581_v55  ;;  %v10541_v61 = vunpack.i.l.bf16 %v14240_v63  ;;  %v10596_v47 = vunpack.i.l.bf16 %v14247_v56 }
 0x2e0   : > { %19504 = vst [vmem:[#allocation68_spill] sm:$0xff] %v14714_v59  ;;  %v14721_v33 = vsel %vm3899_vm14, %v3885_v26, %v10886_v23  ;;  %v14724_v4 = vsel %vm3899_vm14, %v3886_v37, %v10887_v62  ;;  %11104 = vrot.lane.b32.xlu2 %v11103_v51, %s12685_s14  ;;  %v12555_v62 = vld [vmem:[#allocation3 + $0x128] sm:$0xff]  ;;  %v10542_v51 = vunpack.i.h.bf16 %v14240_v63  ;;  %v10822_v23 = vunpack.i.h.bf16 %v14559_v45 }
 0x2e1   : > { %19505 = vst [vmem:[#allocation9_spill] sm:$0xff] %v14724_v4  ;;  %v3796_v5 = vsel %vm431_vm3, %v12555_v62, %v10582_v14  ;;  %v10547_v26 = vunpack.i.h.bf16 %v14243_v49  ;;  %v10597_v37 = vunpack.i.h.bf16 %v14247_v56  ;;  %v2733_v14 = vld [vmem:[#allocation3 + $0x10a] sm:$0xff]  ;;  %v3827_v45 = vsel %vm2103_vm7, %v3795_v9, %v10661_v20  ;;  %v2735_v59 = vld [vmem:[#allocation3 + $0x122] sm:$0xff] }
 0x2e2   : > { %v14744_v3 = vpop.permute.xlu2 %10939  ;;  %v3828_v46 = vsel %vm2103_vm7, %v3796_v5, %v10662_v48  ;;  %v3859_v55 = vsel %vm2169_vm9, %v3827_v45, %v10741_v13  ;;  %v11128_v9 = vpack.i.bf16 %v2736_v36, %v2735_v59  ;;  %v10756_v45 = vunpack.i.l.bf16 %v14537_v2 }
 0x2e3   : > { %19506 = vst [vmem:[#allocation13_spill] sm:$0xff] %v14744_v3  ;;  %11109 = vrot.lane.b32.xlu0 %v11108_v11, %s12685_s14  ;;  %v11118_v11 = vpack.i.bf16 %v2732_v12, %v2731_v52  ;;  %v3860_v63 = vsel %vm2169_vm9, %v3828_v46, %v10742_v54  ;;  %v12557_v3 = vld [vmem:[#allocation3 + $0x68] sm:$0xff]  ;;  %v3891_v56 = vsel %vm2235_vm12, %v3859_v55, %v10821_v24  ;;  %v12558_v52 = vld [vmem:[#allocation3 + $0x60] sm:$0xff]  ;;  %v10546_v54 = vunpack.i.l.bf16 %v14243_v49 }
 0x2e4   : > { %v14758_v4 = vsel %vm431_vm3, %v12557_v3, %v10542_v51  ;;  %v3892_v48 = vsel %vm2235_vm12, %v3860_v63, %v10822_v23  ;;  %v14765_v13 = vsel %vm431_vm3, %v12558_v52, %v10541_v61  ;;  %v12559_v51 = vld [vmem:[#allocation3 + $0x80] sm:$0xff]  ;;  %v10677_v23 = vunpack.i.h.bf16 %v14416_v0  ;;  %v12560_v61 = vld [vmem:[#allocation3 + $0x170] sm:$0xff] }
 0x2e5   : > { %v10900_v39 = vpop.permute.xlu0 %10899  ;;  %11114 = vrot.lane.b32.xlu1 %v11113_v30, %s12685_s14  ;;  %v11123_v30 = vpack.i.bf16 %v2734_v16, %v2733_v14  ;;  %v14775_v24 = vsel %vm431_vm3, %v12559_v51, %v10547_v26  ;;  %v10676_v3 = vunpack.i.l.bf16 %v14416_v0  ;;  %v3802_v49 = vsel %vm431_vm3, %v12560_v61, %v10597_v37  ;;  %v12561_v14 = vld [vmem:[#allocation3 + $0x168] sm:$0xff] }
 0x2e6   : > { %v10902_v62 = vunpack.i.h.bf16 %v10900_v39  ;;  %v10901_v38 = vunpack.i.l.bf16 %v10900_v39  ;;  %v3801_v16 = vsel %vm431_vm3, %v12561_v14, %v10596_v47  ;;  %v10757_v46 = vunpack.i.h.bf16 %v14537_v2  ;;  %v2737_v39 = vld [vmem:[#allocation3 + $0x13a] sm:$0xff]  ;;  %v2738_v26 = vld [vmem:[#allocation3 + $0x142] sm:$0xff]  ;;  %v2741_v14 = vld [vmem:[#allocation3 + $0x16a] sm:$0xff] }
 0x2e7   : > { %v14762_v20 = vpop.permute.xlu1 %10904  ;;  %v10557_v55 = vunpack.i.h.bf16 %v14251_v34  ;;  %v10556_v63 = vunpack.i.l.bf16 %v14251_v34  ;;  %v10837_v0 = vunpack.i.h.bf16 %v14594_v42  ;;  %v10836_v36 = vunpack.i.l.bf16 %v14594_v42 }
 0x2e8   : > { %19507 = vst [vmem:[#allocation27_spill] sm:$0xff] %v14762_v20  ;;  %v14769_v12 = vsel %vm3899_vm14, %v3891_v56, %v10901_v38  ;;  %v14772_v5 = vsel %vm3899_vm14, %v3892_v48, %v10902_v62  ;;  %11119 = vrot.lane.b32.xlu2 %v11118_v11, %s12685_s14  ;;  %v10562_v37 = vunpack.i.h.bf16 %v14255_v44  ;;  %v10561_v47 = vunpack.i.l.bf16 %v14255_v44  ;;  %v2739_v62 = vld [vmem:[#allocation3 + $0x152] sm:$0xff]  ;;  %v2740_v38 = vld [vmem:[#allocation3 + $0x15a] sm:$0xff] }
 0x2e9   : > { %v10612_v2 = vunpack.i.h.bf16 %v14263_v1  ;;  %v10611_v11 = vunpack.i.l.bf16 %v14263_v1  ;;  %v10572_v34 = vunpack.i.h.bf16 %v14267_v18  ;;  %v3834_v56 = vsel %vm2103_vm7, %v3802_v49, %v10677_v23  ;;  %v2742_v1 = vld [vmem:[#allocation3 + $0x172] sm:$0xff] }
 0x2ea   : > { %v14788_v59 = vpop.permute.xlu2 %10954  ;;  %v3833_v42 = vsel %vm2103_vm7, %v3801_v16, %v10676_v3  ;;  %v3866_v44 = vsel %vm2169_vm9, %v3834_v56, %v10757_v46  ;;  %v10571_v20 = vunpack.i.l.bf16 %v14267_v18  ;;  %v11138_v3 = vpack.i.bf16 %v2740_v38, %v2739_v62  ;;  %v12562_v16 = vld [vmem:[#allocation3 + $0x78] sm:$0xff]  ;;  %v12564_v18 = vld [vmem:[#allocation3 + $0xa8] sm:$0xff] }
 0x2eb   : > { %19508 = vst [vmem:[#allocation70_spill] sm:$0xff] %v14788_v59  ;;  %11124 = vrot.lane.b32.xlu0 %v11123_v30, %s12685_s14  ;;  %v11133_v30 = vpack.i.bf16 %v2738_v26, %v2737_v39  ;;  %v3865_v52 = vsel %vm2169_vm9, %v3833_v42, %v10756_v45  ;;  %v3898_v23 = vsel %vm2235_vm12, %v3866_v44, %v10837_v0  ;;  %v12563_v39 = vld [vmem:[#allocation3 + $0xb0] sm:$0xff]  ;;  %v12565_v0 = vld [vmem:[#allocation3 + $0xc8] sm:$0xff]  ;;  %v10577_v38 = vunpack.i.h.bf16 %v14271_v32  ;;  %v12567_v44 = vld [vmem:[#allocation3 + $0xf8] sm:$0xff] }
 0x2ec   : > { %v3897_v59 = vsel %vm2235_vm12, %v3865_v52, %v10836_v36  ;;  %v14808_v45 = vsel %vm431_vm3, %v12563_v39, %v10557_v55  ;;  %v14817_v36 = vsel %vm431_vm3, %v12564_v18, %v10556_v63  ;;  %v3788_v62 = vsel %vm431_vm3, %v12565_v0, %v10562_v37  ;;  %v12566_v55 = vld [vmem:[#allocation3 + $0xc0] sm:$0xff]  ;;  %v2744_v52 = vld [vmem:[#allocation3 + $0x18a] sm:$0xff] }
 0x2ed   : > { %v10915_v48 = vpop.permute.xlu0 %10914  ;;  %11129 = vrot.lane.b32.xlu1 %v11128_v9, %s12685_s14  ;;  %v3781_v9 = vsel %vm431_vm3, %v12562_v16, %v10546_v54  ;;  %v11143_v54 = vpack.i.bf16 %v2742_v1, %v2741_v14  ;;  %v3787_v56 = vsel %vm431_vm3, %v12566_v55, %v10561_v47  ;;  %v10576_v42 = vunpack.i.l.bf16 %v14271_v32  ;;  %v2746_v14 = vld [vmem:[#allocation3 + $0x1a2] sm:$0xff]  ;;  %v12569_v1 = vld [vmem:[#allocation3 + $0x110] sm:$0xff] }
 0x2ee   : > { %v10917_v51 = vunpack.i.h.bf16 %v10915_v48  ;;  %v10916_v61 = vunpack.i.l.bf16 %v10915_v48  ;;  %v10627_v63 = vunpack.i.h.bf16 %v14275_v8  ;;  %v2743_v48 = vld [vmem:[#allocation3 + $0x182] sm:$0xff]  ;;  %v14831_v37 = vsel %vm2103_vm7, %v14736_v43, %v10611_v11 }
 0x2ef   : > { %v14804_v49 = vpop.permute.xlu1 %10919  ;;  %v10587_v32 = vunpack.i.h.bf16 %v14279_v50  ;;  %v10592_v43 = vunpack.i.h.bf16 %v14283_v17  ;;  %v10591_v11 = vunpack.i.l.bf16 %v14283_v17  ;;  %v12570_v39 = vld [vmem:[#allocation3 + $0x108] sm:$0xff]  ;;  %v10602_v18 = vunpack.i.h.bf16 %v14307_v7 }
 0x2f0   : > { %v14811_v46 = vsel %vm3899_vm14, %v3897_v59, %v10916_v61  ;;  %v14814_v26 = vsel %vm3899_vm14, %v3898_v23, %v10917_v51  ;;  %11134 = vrot.lane.b32.xlu2 %v11133_v30, %s12685_s14  ;;  %v14825_v59 = vsel %vm2103_vm7, %v14733_v21, %v10612_v2  ;;  %v14834_v30 = vsel %vm431_vm3, %v12567_v44, %v10572_v34  ;;  %v12568_v51 = vld [vmem:[#allocation3 + $0xf0] sm:$0xff]  ;;  %v2745_v34 = vld [vmem:[#allocation3 + $0x19a] sm:$0xff] }
 0x2f1   : > { %v14837_v47 = vsel %vm431_vm3, %v12568_v51, %v10571_v20  ;;  %v10626_v21 = vunpack.i.l.bf16 %v14275_v8  ;;  %v10586_v61 = vunpack.i.l.bf16 %v14279_v50  ;;  %v3794_v20 = vsel %vm431_vm3, %v12569_v1, %v10577_v38  ;;  %v12573_v44 = vld [vmem:[#allocation3 + $0x158] sm:$0xff]  ;;  %v12574_v51 = vld [vmem:[#allocation3 + $0x150] sm:$0xff] }
 0x2f2   : > { %v14840_v2 = vpop.permute.xlu2 %10969  ;;  %v10642_v23 = vunpack.i.h.bf16 %v14297_v10  ;;  %v10641_v8 = vunpack.i.l.bf16 %v14297_v10  ;;  %v3793_v50 = vsel %vm431_vm3, %v12570_v39, %v10576_v42  ;;  %v14856_v17 = vsel %vm2103_vm7, %v14775_v24, %v10627_v63  ;;  %v12572_v24 = vld [vmem:[#allocation3 + $0x138] sm:$0xff]  ;;  %v19511_v39 = vld [vmem:[#allocation52_spill] sm:$0xff] }
 0x2f3   : > { %11139 = vrot.lane.b32.xlu0 %v11138_v3, %s12685_s14  ;;  %v11148_v3 = vpack.i.bf16 %v2744_v52, %v2743_v48  ;;  %v10601_v0 = vunpack.i.l.bf16 %v14307_v7  ;;  %v14861_v38 = vsel %vm2103_vm7, %v3781_v9, %v10626_v21  ;;  %v10607_v10 = vunpack.i.h.bf16 %v14319_v35  ;;  %v12571_v52 = vld [vmem:[#allocation3 + $0x140] sm:$0xff] }
 0x2f4   : > { %v10606_v55 = vunpack.i.l.bf16 %v14319_v35  ;;  %v11153_v48 = vpack.i.bf16 %v2746_v14, %v2745_v34  ;;  %v14868_v42 = vsel %vm431_vm3, %v12571_v52, %v10587_v32  ;;  %v3797_v63 = vsel %vm431_vm3, %v12572_v24, %v10586_v61  ;;  %v19514_v24 = vld [vmem:[#allocation25_spill] sm:$0xff] }
 0x2f5   : > { %v14850_v16 = vpop.permute.xlu0 %10929  ;;  %11144 = vrot.lane.b32.xlu1 %v11143_v54, %s12685_s14  ;;  %v3800_v7 = vsel %vm431_vm3, %v12573_v44, %v10592_v43  ;;  %v3799_v9 = vsel %vm431_vm3, %v12574_v51, %v10591_v11  ;;  %v14874_v21 = vsel %vm2103_vm7, %v3788_v62, %v10642_v23  ;;  %v14877_v35 = vsel %vm2103_vm7, %v3787_v56, %v10641_v8  ;;  %v19510_v8 = vld [vmem:[#allocation34_spill] sm:$0xff] }
 0x2f6   : > { %v10657_v34 = vunpack.i.h.bf16 %v14331_v57  ;;  %v10656_v32 = vunpack.i.l.bf16 %v14331_v57  ;;  %v3804_v61 = vsel %vm2103_vm7, %v14679_v29, %v10602_v18  ;;  %v3803_v43 = vsel %vm2103_vm7, %v14685_v19, %v10601_v0 }
 0x2f7   : > { %v14865_v54 = vpop.permute.xlu1 %10934  ;;  %v10617_v11 = vunpack.i.h.bf16 %v14339_v60  ;;  %v10616_v62 = vunpack.i.l.bf16 %v14339_v60  ;;  %v3805_v56 = vsel %vm2103_vm7, %v14727_v6, %v10606_v55  ;;  %v3806_v14 = vsel %vm2103_vm7, %v14717_v58, %v10607_v10  ;;  %v19513_v55 = vld [vmem:[#allocation21_spill] sm:$0xff] }
 0x2f8   : > { %19509 = vst [vmem:[#allocation35_spill] sm:$0xff] %v14865_v54  ;;  %11149 = vrot.lane.b32.xlu2 %v11148_v3, %s12685_s14  ;;  %v10622_v57 = vunpack.i.h.bf16 %v14343_v41  ;;  %v10621_v1 = vunpack.i.l.bf16 %v14343_v41  ;;  %v10672_v29 = vunpack.i.h.bf16 %v14353_v28  ;;  %v10671_v19 = vunpack.i.l.bf16 %v14353_v28 }
 0x2f9   : > { %v10637_v60 = vunpack.i.h.bf16 %v19510_v8  ;;  %v10636_v3 = vunpack.i.l.bf16 %v19510_v8  ;;  %v14902_v6 = vsel %vm2103_vm7, %v3794_v20, %v10657_v34  ;;  %v14905_v58 = vsel %vm2103_vm7, %v3793_v50, %v10656_v32 }
 0x2fa   : > { %v14894_v23 = vpop.permute.xlu2 %10984  ;;  %v10687_v41 = vunpack.i.h.bf16 %v19511_v39  ;;  %v10686_v18 = vunpack.i.l.bf16 %v19511_v39  ;;  %v14913_v10 = vsel %vm2103_vm7, %v14688_v25, %v10617_v11  ;;  %v3809_v28 = vsel %vm2103_vm7, %v14693_v31, %v10616_v62  ;;  %v19515_v62 = vld [vmem:[#allocation28_spill] sm:$0xff] }
 0x2fb   : > { %11154 = vrot.lane.b32.xlu0 %v11153_v48, %s12685_s14  ;;  %19512 = vst [vmem:[#allocation39_spill] sm:$0xff] %v14913_v10  ;;  %v10652_v48 = vunpack.i.h.bf16 %v19513_v55  ;;  %v10651_v20 = vunpack.i.l.bf16 %v19513_v55  ;;  %v3811_v50 = vsel %vm2103_vm7, %v14765_v13, %v10621_v1  ;;  %v3812_v52 = vsel %vm2103_vm7, %v14758_v4, %v10622_v57  ;;  %s12691_s14 = smov 64  }
 0x2fc   : > { %v10702_v44 = vunpack.i.h.bf16 %v19514_v24  ;;  %v10701_v51 = vunpack.i.l.bf16 %v19514_v24  ;;  %v14928_v25 = vsel %vm2103_vm7, %v3800_v7, %v10672_v29  ;;  %v14931_v31 = vsel %vm2103_vm7, %v3799_v9, %v10671_v19  ;;  %v19517_v19 = vld [vmem:[#allocation15_spill] sm:$0xff]  ;;  %v19521_v24 = vld [vmem:[#allocation54_spill] sm:$0xff] }
 0x2fd   : > { %v14909_v0 = vpop.permute.xlu0 %10944  ;;  %v3817_v32 = vsel %vm2103_vm7, %v14817_v36, %v10636_v3  ;;  %v3818_v13 = vsel %vm2103_vm7, %v14808_v45, %v10637_v60  ;;  %v14938_v4 = vsel %vm2169_vm9, %v3805_v56, %v10686_v18  ;;  %v14941_v11 = vsel %vm2169_vm9, %v3806_v14, %v10687_v41  ;;  %v19516_v36 = vld [vmem:[#allocation30_spill] sm:$0xff]  ;;  %v19519_v41 = vld [vmem:[#allocation17_spill] sm:$0xff] }
 0x2fe   : > { %v10667_v57 = vunpack.i.h.bf16 %v19515_v62  ;;  %v10666_v7 = vunpack.i.l.bf16 %v19515_v62  ;;  %v3823_v9 = vsel %vm2103_vm7, %v14837_v47, %v10651_v20  ;;  %v3824_v1 = vsel %vm2103_vm7, %v14834_v30, %v10652_v48  ;;  %v19518_v47 = vld [vmem:[#allocation42_spill] sm:$0xff] }
 0x2ff   : > { %v14925_v34 = vpop.permute.xlu1 %10949  ;;  %v10717_v29 = vunpack.i.h.bf16 %v19516_v36  ;;  %v10716_v45 = vunpack.i.l.bf16 %v19516_v36  ;;  %v14952_v56 = vsel %vm2169_vm9, %v3811_v50, %v10701_v51  ;;  %v14955_v14 = vsel %vm2169_vm9, %v3812_v52, %v10702_v44  ;;  %v19520_v50 = vld [vmem:[#allocation32_spill] sm:$0xff] }
 0x300   : > { %v10682_v8 = vunpack.i.h.bf16 %v19517_v19  ;;  %v10681_v60 = vunpack.i.l.bf16 %v19517_v19  ;;  %v10732_v39 = vunpack.i.h.bf16 %v19518_v47  ;;  %v10731_v30 = vunpack.i.l.bf16 %v19518_v47  ;;  %v19522_v47 = vld [vmem:[#allocation59_spill] sm:$0xff] }
 0x301   : > { %v10692_v18 = vunpack.i.h.bf16 %v19519_v41  ;;  %v10691_v55 = vunpack.i.l.bf16 %v19519_v41  ;;  %v3829_v48 = vsel %vm2103_vm7, %v3797_v63, %v10666_v7  ;;  %v3830_v20 = vsel %vm2103_vm7, %v14868_v42, %v10667_v57  ;;  %v19523_v7 = vld [vmem:[#allocation49_spill] sm:$0xff] }
 0x302   : > { %v14959_v3 = vpop.permute.xlu2 %10999  ;;  %v10696_v52 = vunpack.i.l.bf16 %v19520_v50  ;;  %v10746_v44 = vunpack.i.l.bf16 %v19521_v24  ;;  %v14973_v62 = vsel %vm2169_vm9, %v3817_v32, %v10716_v45  ;;  %v14976_v36 = vsel %vm2169_vm9, %v3818_v13, %v10717_v29 }
 0x303   : > { %v10747_v19 = vunpack.i.h.bf16 %v19521_v24  ;;  %v10707_v41 = vunpack.i.h.bf16 %v19522_v47  ;;  %v3835_v63 = vsel %vm2169_vm9, %v3803_v43, %v10681_v60  ;;  %v3836_v42 = vsel %vm2169_vm9, %v3804_v61, %v10682_v8 }
 0x304   : > { %v10706_v57 = vunpack.i.l.bf16 %v19522_v47  ;;  %v10761_v10 = vunpack.i.l.bf16 %v19523_v7  ;;  %v14987_v32 = vsel %vm2169_vm9, %v3823_v9, %v10731_v30  ;;  %v14990_v13 = vsel %vm2169_vm9, %v3824_v1, %v10732_v39 }
 0x305   : > { %v14970_v51 = vpop.permute.xlu0 %10959  ;;  %v3840_v29 = vsel %vm2169_vm9, %v14825_v59, %v10692_v18  ;;  %v3839_v43 = vsel %vm2169_vm9, %v14831_v37, %v10691_v55  ;;  %v14998_v45 = vsel %vm2169_vm9, %v3809_v28, %v10696_v52  ;;  %v15001_v8 = vsel %vm2169_vm9, %v3829_v48, %v10746_v44  ;;  %v19525_v59 = vld [vmem:[#allocation23_spill] sm:$0xff]  ;;  %v19528_v52 = vld [vmem:[#allocation40_spill] sm:$0xff] }
 0x306   : > { %19524 = vst [vmem:[#allocation72_spill] sm:$0xff] %v14998_v45  ;;  %v10762_v9 = vunpack.i.h.bf16 %v19523_v7  ;;  %v15005_v60 = vsel %vm2169_vm9, %v3830_v20, %v10747_v19  ;;  %v15009_v1 = vsel %vm2169_vm9, %v14856_v17, %v10707_v41  ;;  %v10722_v39 = vunpack.i.h.bf16 %v19525_v59  ;;  %v19526_v18 = vld [vmem:[#allocation31_spill] sm:$0xff] }
 0x307   : > { %v14984_v54 = vpop.permute.xlu1 %10964  ;;  %v10721_v37 = vunpack.i.l.bf16 %v19525_v59  ;;  %v3845_v28 = vsel %vm2169_vm9, %v14861_v38, %v10706_v57  ;;  %v15016_v30 = vsel %vm2235_vm12, %v3835_v63, %v10761_v10  ;;  %v10737_v55 = vunpack.i.h.bf16 %v19526_v18  ;;  %v19529_v44 = vld [vmem:[#allocation43_spill] sm:$0xff]  ;;  %v9597_v38 = vld [vmem:[%s19041_s5 + $0x30] sm:$0xf]  ;;  %v9797_v10 = vld [vmem:[%s19041_s5 + $0x30] sm:$0x30] }
 0x308   : > { %v10736_v48 = vunpack.i.l.bf16 %v19526_v18  ;;  %v10752_v24 = vunpack.i.h.bf16 %v19528_v52  ;;  %v10751_v17 = vunpack.i.l.bf16 %v19528_v52  ;;  %v10767_v19 = vunpack.i.h.bf16 %v19529_v44  ;;  %v19530_v63 = vld [vmem:[#allocation45_spill] sm:$0xff] }
 0x309   : > { %v10766_v47 = vunpack.i.l.bf16 %v19529_v44  ;;  %v15033_v41 = vsel %vm2235_vm12, %v3836_v42, %v10762_v9  ;;  %v10772_v57 = vunpack.i.h.bf16 %v19530_v63  ;;  %v10771_v7 = vunpack.i.l.bf16 %v19530_v63  ;;  %v19533_v63 = vld [vmem:[#allocation58_spill] sm:$0xff] }
 0x30a   : > { %v15020_v20 = vpop.permute.xlu2 %11014  ;;  %v9598_v18 = vor.u32 %v9797_v10, %v9597_v38  ;;  %v3852_v52 = vsel %vm2169_vm9, %v14874_v21, %v10722_v39  ;;  %v3851_v44 = vsel %vm2169_vm9, %v14877_v35, %v10721_v37  ;;  %v15047_v42 = vsel %vm2169_vm9, %v14902_v6, %v10737_v55 }
 0x30b   : > { %19527 = vst [vmem:[#allocation57_spill] sm:$0xff] %v15020_v20  ;;  %v15051_v9 = vsel %vm2169_vm9, %v14905_v58, %v10736_v48  ;;  %v15057_v21 = vsel %vm2169_vm9, %v14928_v25, %v10752_v24  ;;  %v15061_v35 = vsel %vm2169_vm9, %v14931_v31, %v10751_v17  ;;  %v15065_v39 = vsel %vm2235_vm12, %v14938_v4, %v10766_v47  ;;  %v19532_v48 = vld [vmem:[#allocation51_spill] sm:$0xff]  ;;  %v19534_v20 = vld [vmem:[#allocation61_spill] sm:$0xff] }
 0x30c   : > { %v4153_v10 = vsel %vm4151_vm15, %v9598_v18, 0  ;;  %v15069_v6 = vsel %vm2235_vm12, %v14941_v11, %v10767_v19  ;;  %v3871_v58 = vsel %vm2235_vm12, %v3839_v43, %v10771_v7  ;;  %v3872_v37 = vsel %vm2235_vm12, %v3840_v29, %v10772_v57  ;;  %v9796_v11 = vld [vmem:[%s19041_s5 + $0x28] sm:$0xff] }
 0x30d   : > { %v15037_v59 = vpop.permute.xlu0 %10974  ;;  %4156 = vmatpush.bf16.msrb.mxu1 %v4153_v10  ;;  %v10952_v25 = vunpack.i.h.bf16 %v14925_v34  ;;  %v10951_v55 = vunpack.i.l.bf16 %v14925_v34  ;;  %v10782_v31 = vunpack.i.h.bf16 %v19532_v48  ;;  %v10781_v24 = vunpack.i.l.bf16 %v19532_v48 }
 0x30e   : > { %v10787_v4 = vunpack.i.h.bf16 %v14581_v15  ;;  %v10786_v17 = vunpack.i.l.bf16 %v14581_v15  ;;  %v10797_v43 = vunpack.i.h.bf16 %v14599_v53  ;;  %v10796_v29 = vunpack.i.l.bf16 %v14599_v53 }
 0x30f   : > { %v15053_v38 = vpop.permute.xlu1 %10979  ;;  %v10802_v19 = vunpack.i.h.bf16 %v14602_v22  ;;  %v10801_v34 = vunpack.i.l.bf16 %v14602_v22  ;;  %v10852_v57 = vunpack.i.h.bf16 %v19533_v63  ;;  %v10851_v15 = vunpack.i.l.bf16 %v19533_v63 }
 0x310   : > { %v3945_v10 = vsel %vm3932_vm0, %v14673_v40, %v10951_v55  ;;  %v3946_v48 = vsel %vm3932_vm0, %v14676_v27, %v10952_v25  ;;  %v10812_v22 = vunpack.i.h.bf16 %v19534_v20  ;;  %v10811_v45 = vunpack.i.l.bf16 %v19534_v20 }
 0x311   : > { %4157 = vmatpush.bf16.msrb.mxu1 %v9796_v11  ;;  %v15107_v40 = vsel %vm2235_vm12, %v14952_v56, %v10781_v24  ;;  %v15111_v27 = vsel %vm2235_vm12, %v14955_v14, %v10782_v31  ;;  %v3877_v20 = vsel %vm2235_vm12, %v3845_v28, %v10786_v17  ;;  %v3878_v25 = vsel %vm2235_vm12, %v15009_v1, %v10787_v4  ;;  %v19538_v4 = vld [vmem:[#allocation8_spill] sm:$0xff] }
 0x312   : > { %v11030_v47 = vpop.permute.xlu2 %11029  ;;  %v3883_v56 = vsel %vm2235_vm12, %v3851_v44, %v10801_v34  ;;  %v3884_v14 = vsel %vm2235_vm12, %v3852_v52, %v10802_v19  ;;  %v15129_v28 = vsel %vm3899_vm14, %v3871_v58, %v10851_v15  ;;  %v15132_v1 = vsel %vm3899_vm14, %v3872_v37, %v10852_v57  ;;  %v19537_v52 = vld [vmem:[#allocation62_spill] sm:$0xff]  ;;  %v9794_v37 = vld [vmem:[%s19041_s5 + $0x18] sm:$0xff]  ;;  %v19540_v19 = vld [vmem:[#allocation16_spill] sm:$0xff] }
 0x313   : > { %v11032_v7 = vunpack.i.h.bf16 %v11030_v47  ;;  %v11031_v18 = vunpack.i.l.bf16 %v11030_v47  ;;  %v9795_v47 = vld [vmem:[%s19041_s5 + $0x20] sm:$0xff]  ;;  %v10967_v31 = vunpack.i.h.bf16 %v14984_v54  ;;  %v15138_v24 = vsel %vm2235_vm12, %v14987_v32, %v10811_v45 }
 0x314   : > { %v10817_v44 = vunpack.i.h.bf16 %v19537_v52  ;;  %v10816_v58 = vunpack.i.l.bf16 %v19537_v52  ;;  %v10867_v17 = vunpack.i.h.bf16 %v19538_v4  ;;  %v10831_v34 = vunpack.i.l.bf16 %v19540_v19  ;;  %v19542_v52 = vld [vmem:[#allocation9_spill] sm:$0xff] }
 0x315   : > { %v15092_v53 = vpop.permute.xlu0 %10989  ;;  %v15100_v11 = vsel %vm3965_vm1, %v3945_v10, %v11031_v18  ;;  %v15103_v63 = vsel %vm3965_vm1, %v3946_v48, %v11032_v7  ;;  %v15120_v18 = vsel %vm2235_vm12, %v14973_v62, %v10796_v29  ;;  %v15124_v7 = vsel %vm2235_vm12, %v14976_v36, %v10797_v43  ;;  %4158 = vmatpush.bf16.msrb.mxu1 %v9795_v47  ;;  %v19539_v43 = vld [vmem:[#allocation63_spill] sm:$0xff] }
 0x316   : > { %19535 = vst [vmem:[#allocation71_spill] sm:$0xff] %v15100_v11  ;;  %v10966_v62 = vunpack.i.l.bf16 %v14984_v54  ;;  %v15142_v36 = vsel %vm2235_vm12, %v14990_v13, %v10812_v22  ;;  %v10866_v54 = vunpack.i.l.bf16 %v19538_v4  ;;  %v10827_v29 = vunpack.i.h.bf16 %v19539_v43  ;;  %v19541_v10 = vld [vmem:[#allocation19_spill] sm:$0xff] }
 0x317   : > { %19536 = vst [vmem:[#allocation79_spill] sm:$0xff] %v15103_v63  ;;  %v15116_v55 = vpop.permute.xlu1 %10994  ;;  %v10826_v32 = vunpack.i.l.bf16 %v19539_v43  ;;  %v10832_v13 = vunpack.i.h.bf16 %v19540_v19  ;;  %v10882_v48 = vunpack.i.h.bf16 %v19541_v10  ;;  %v10881_v22 = vunpack.i.l.bf16 %v19541_v10  ;;  %v19543_v43 = vld [vmem:[#allocation64_spill] sm:$0xff] }
 0x318   : > { %v3951_v47 = vsel %vm3932_vm0, %v14721_v33, %v10966_v62  ;;  %v3952_v4 = vsel %vm3932_vm0, %v19542_v52, %v10967_v31  ;;  %v10842_v11 = vunpack.i.h.bf16 %v19543_v43  ;;  %v10841_v61 = vunpack.i.l.bf16 %v19543_v43 }
 0x319   : > { %4159 = vmatpush.bf16.msrb.mxu1 %v9794_v37  ;;  %v3889_v33 = vsel %vm2235_vm12, %v15051_v9, %v10816_v58  ;;  %v3890_v31 = vsel %vm2235_vm12, %v15047_v42, %v10817_v44  ;;  %v3910_v62 = vsel %vm3899_vm14, %v3877_v20, %v10866_v54  ;;  %v3911_v10 = vsel %vm3899_vm14, %v3878_v25, %v10867_v17  ;;  %v19545_v17 = vld [vmem:[#allocation44_spill] sm:$0xff]  ;;  %v19546_v54 = vld [vmem:[#allocation13_spill] sm:$0xff] }
 0x31a   : > { %v11045_v45 = vpop.permute.xlu2 %11044  ;;  %v15194_v42 = vsel %vm2235_vm12, %v15061_v35, %v10831_v34  ;;  %v15198_v20 = vsel %vm2235_vm12, %v15057_v21, %v10832_v13  ;;  %v10981_v25 = vunpack.i.l.bf16 %v15053_v38  ;;  %v15206_v44 = vsel %vm3899_vm14, %v3884_v14, %v10882_v48  ;;  %v9792_v21 = vld [vmem:[%s19041_s5 + $0x8] sm:$0xff] }
 0x31b   : > { %v11047_v57 = vunpack.i.h.bf16 %v11045_v45  ;;  %v11046_v15 = vunpack.i.l.bf16 %v11045_v45  ;;  %v9793_v45 = vld [vmem:[%s19041_s5 + $0x10] sm:$0xff]  ;;  %v15210_v58 = vsel %vm3899_vm14, %v15016_v30, %v10841_v61  ;;  %v15214_v35 = vsel %vm3899_vm14, %v15033_v41, %v10842_v11 }
 0x31c   : > { %v10941_v14 = vunpack.i.l.bf16 %v19546_v54  ;;  %v10947_v13 = vunpack.i.h.bf16 %v14909_v0  ;;  %v10946_v34 = vunpack.i.l.bf16 %v14909_v0  ;;  %v3957_v48 = vsel %vm3932_vm0, %v14769_v12, %v10981_v25  ;;  %v19547_v0 = vld [vmem:[#allocation66_spill] sm:$0xff] }
 0x31d   : > { %v15161_v63 = vpop.permute.xlu0 %11004  ;;  %v15166_v19 = vsel %vm3965_vm1, %v3951_v47, %v11046_v15  ;;  %v15169_v37 = vsel %vm3965_vm1, %v3952_v4, %v11047_v57  ;;  %v15184_v57 = vsel %vm2235_vm12, %v15001_v8, %v10826_v32  ;;  %v15188_v15 = vsel %vm2235_vm12, %v15005_v60, %v10827_v29  ;;  %v19544_v47 = vld [vmem:[#allocation47_spill] sm:$0xff]  ;;  %4160 = vmatpush.bf16.msrb.mxu1 %v9793_v45 }
 0x31e   : > { %v10862_v4 = vunpack.i.h.bf16 %v19544_v47  ;;  %v10861_v9 = vunpack.i.l.bf16 %v19544_v47  ;;  %v10982_v8 = vunpack.i.h.bf16 %v15053_v38  ;;  %v15203_v60 = vsel %vm3899_vm14, %v3883_v56, %v10881_v22 }
 0x31f   : > { %v15180_v52 = vpop.permute.xlu1 %11009  ;;  %v10897_v38 = vunpack.i.h.bf16 %v19545_v17  ;;  %v10896_v56 = vunpack.i.l.bf16 %v19545_v17  ;;  %v10942_v29 = vunpack.i.h.bf16 %v19546_v54  ;;  %v10876_v12 = vunpack.i.l.bf16 %v19547_v0 }
 0x320   : > { %v3908_v61 = vsel %vm3899_vm14, %v15107_v40, %v10861_v9  ;;  %v3909_v30 = vsel %vm3899_vm14, %v15111_v27, %v10862_v4  ;;  %v3958_v22 = vsel %vm3932_vm0, %v14772_v5, %v10982_v8  ;;  %v9791_v4 = vld [vmem:[%s19041_s5] sm:$0xff]  ;;  %v10877_v9 = vunpack.i.h.bf16 %v19547_v0 }
 0x321   : > { %4161 = vmatpush.bf16.msrb.mxu1 %v9792_v21  ;;  %v3941_v25 = vsel %vm3932_vm0, %v3908_v61, %v10941_v14  ;;  %v3942_v5 = vsel %vm3932_vm0, %v3909_v30, %v10942_v29  ;;  %v10996_v14 = vunpack.i.l.bf16 %v15116_v55  ;;  %v15257_v29 = vsel %vm3899_vm14, %v3889_v33, %v10896_v56 }
 0x322   : > { %v11060_v32 = vpop.permute.xlu2 %11059  ;;  %v15260_v61 = vsel %vm3899_vm14, %v3890_v31, %v10897_v38  ;;  %vm4102_vm3 = vcmask 883712  }
 0x323   : > { %v11062_v41 = vunpack.i.h.bf16 %v11060_v32  ;;  %v11061_v11 = vunpack.i.l.bf16 %v11060_v32 }
 0x325   : > { %v11020_v43 = vpop.permute.xlu0 %11019  ;;  %v15234_v45 = vsel %vm3965_vm1, %v3957_v48, %v11061_v11  ;;  %v15237_v40 = vsel %vm3965_vm1, %v3958_v22, %v11062_v41  ;;  %4162 = vmatpush.bf16.msrb.mxu1 %v9791_v4  ;;  %v3943_v41 = vsel %vm3932_vm0, %v3910_v62, %v10946_v34  ;;  %v3944_v11 = vsel %vm3932_vm0, %v3911_v10, %v10947_v13  ;;  %v19548_v13 = vld [vmem:[#allocation70_spill] sm:$0xff]  ;;  %v19549_v34 = vld [vmem:[#allocation68_spill] sm:$0xff] }
 0x326   : > { %v11022_v27 = vunpack.i.h.bf16 %v11020_v43  ;;  %v11021_v47 = vunpack.i.l.bf16 %v11020_v43  ;;  %v10997_v48 = vunpack.i.h.bf16 %v15116_v55  ;;  %v3914_v62 = vsel %vm3899_vm14, %v15120_v18, %v10876_v12 }
 0x327   : > { %v11025_v8 = vpop.permute.xlu1 %11024  ;;  %v3915_v10 = vsel %vm3899_vm14, %v15124_v7, %v10877_v9  ;;  %v10957_v55 = vunpack.i.h.bf16 %v19548_v13  ;;  %v10956_v33 = vunpack.i.l.bf16 %v19548_v13  ;;  %v10892_v31 = vunpack.i.h.bf16 %v19549_v34 }
 0x328   : > { %v11027_v21 = vunpack.i.h.bf16 %v11025_v8  ;;  %v11026_v17 = vunpack.i.l.bf16 %v11025_v8  ;;  %v15247_v54 = vsel %vm3965_vm1, %v3941_v25, %v11021_v47  ;;  %v15250_v32 = vsel %vm3965_vm1, %v3942_v5, %v11022_v27 }
 0x329   : > { %v10891_v38 = vunpack.i.l.bf16 %v19549_v34  ;;  %v10962_v47 = vunpack.i.h.bf16 %v14970_v51  ;;  %v10961_v4 = vunpack.i.l.bf16 %v14970_v51  ;;  %v3963_v18 = vsel %vm3932_vm0, %v14811_v46, %v10996_v14 }
 0x32a   : > { %v15263_v30 = vsel %vm3965_vm1, %v3943_v41, %v11026_v17  ;;  %v15266_v22 = vsel %vm3965_vm1, %v3944_v11, %v11027_v21  ;;  %v11075_v56 = vpop.permute.xlu2 %11074  ;;  %v3964_v7 = vsel %vm3932_vm0, %v14814_v26, %v10997_v48  ;;  %v3947_v8 = vsel %vm3932_vm0, %v3914_v62, %v10956_v33 }
 0x32b   : > { %v11077_v43 = vunpack.i.h.bf16 %v11075_v56  ;;  %v11076_v27 = vunpack.i.l.bf16 %v11075_v56  ;;  %v3948_v21 = vsel %vm3932_vm0, %v3915_v10, %v10957_v55  ;;  %v10932_v51 = vunpack.i.h.bf16 %v14850_v16 }
 0x32c   : > { %v10931_v46 = vunpack.i.l.bf16 %v14850_v16  ;;  %v3949_v14 = vsel %vm3932_vm0, %v15203_v60, %v10961_v4  ;;  %v3950_v62 = vsel %vm3932_vm0, %v15206_v44, %v10962_v47  ;;  %v11012_v10 = vunpack.i.h.bf16 %v15180_v52  ;;  %v19550_v16 = vld [vmem:[#allocation69_spill] sm:$0xff] }
 0x32d   : > { %v11035_v0 = vpop.permute.xlu0 %11034  ;;  %v15283_v9 = vsel %vm3965_vm1, %v3963_v18, %v11076_v27  ;;  %v15286_v12 = vsel %vm3965_vm1, %v3964_v7, %v11077_v43  ;;  %v11011_v13 = vunpack.i.l.bf16 %v15180_v52  ;;  %v10912_v55 = vunpack.i.h.bf16 %v19550_v16 }
 0x32e   : > { %v11037_v25 = vunpack.i.h.bf16 %v11035_v0  ;;  %v11036_v5 = vunpack.i.l.bf16 %v11035_v0  ;;  %v3920_v33 = vsel %vm3899_vm14, %v15138_v24, %v10891_v38  ;;  %v3921_v60 = vsel %vm3899_vm14, %v15142_v36, %v10892_v31 }
 0x32f   : > { %v11040_v17 = vpop.permute.xlu1 %11039  ;;  %v10972_v44 = vunpack.i.h.bf16 %v14840_v2  ;;  %v10971_v43 = vunpack.i.l.bf16 %v14840_v2  ;;  %v3937_v52 = vsel %vm3932_vm0, %v15129_v28, %v10931_v46  ;;  %v3938_v24 = vsel %vm3932_vm0, %v15132_v1, %v10932_v51 }
 0x330   : > { %v11042_v41 = vunpack.i.h.bf16 %v11040_v17  ;;  %v11041_v26 = vunpack.i.l.bf16 %v11040_v17  ;;  %v15293_v11 = vsel %vm3965_vm1, %v3947_v8, %v11036_v5  ;;  %v15296_v48 = vsel %vm3965_vm1, %v3948_v21, %v11037_v25 }
 0x331   : > { %v10977_v4 = vunpack.i.h.bf16 %v15037_v59  ;;  %v10976_v18 = vunpack.i.l.bf16 %v15037_v59  ;;  %v3970_v36 = vsel %vm3965_vm1, %v3937_v52, %v11011_v13  ;;  %v3971_v31 = vsel %vm3965_vm1, %v3938_v24, %v11012_v10 }
 0x332   : > { %v15308_v56 = vsel %vm3965_vm1, %v3949_v14, %v11041_v26  ;;  %v15311_v34 = vsel %vm3965_vm1, %v3950_v62, %v11042_v41  ;;  %v11090_v27 = vpop.permute.xlu2 %11089  ;;  %v10911_v1 = vunpack.i.l.bf16 %v19550_v16  ;;  %v3953_v5 = vsel %vm3932_vm0, %v3920_v33, %v10971_v43  ;;  %v19551_v26 = vld [vmem:[#allocation27_spill] sm:$0xff]  ;;  %v19552_v16 = vld [vmem:[#allocation33_spill] sm:$0xff] }
 0x333   : > { %v11092_v38 = vunpack.i.h.bf16 %v11090_v27  ;;  %v11091_v47 = vunpack.i.l.bf16 %v11090_v27  ;;  %v3954_v8 = vsel %vm3932_vm0, %v3921_v60, %v10972_v44  ;;  %v10907_v14 = vunpack.i.h.bf16 %v19551_v26 }
 0x334   : > { %v10906_v62 = vunpack.i.l.bf16 %v19551_v26  ;;  %v3955_v10 = vsel %vm3932_vm0, %v15257_v29, %v10976_v18  ;;  %v3956_v13 = vsel %vm3932_vm0, %v15260_v61, %v10977_v4  ;;  %v10847_v33 = vunpack.i.h.bf16 %v19552_v16 }
 0x335   : > { %v11050_v7 = vpop.permute.xlu0 %11049  ;;  %v15326_v25 = vsel %vm3998_vm2, %v3970_v36, %v11091_v47  ;;  %v15329_v28 = vsel %vm3998_vm2, %v3971_v31, %v11092_v38  ;;  %v10846_v60 = vunpack.i.l.bf16 %v19552_v16  ;;  %v3928_v27 = vsel %vm3899_vm14, %v15194_v42, %v10911_v1  ;;  %v19553_v38 = vld [vmem:[#allocation67_spill] sm:$0xff] }
 0x336   : > { %v11052_v2 = vunpack.i.h.bf16 %v11050_v7  ;;  %v11051_v0 = vunpack.i.l.bf16 %v11050_v7  ;;  %v4033_v21 = vpack.c.bf16 %v15329_v28, %v15326_v25  ;;  %v3929_v52 = vsel %vm3899_vm14, %v15198_v20, %v10912_v55  ;;  %v15551_v25 = vpop.f32.mrf.mxu1 }
 0x337   : > { %v11055_v59 = vpop.permute.xlu1 %11054  ;;  %v10987_v29 = vunpack.i.h.bf16 %v14894_v23  ;;  %v10986_v61 = vunpack.i.l.bf16 %v14894_v23  ;;  %v10927_v47 = vunpack.i.h.bf16 %v19553_v38  ;;  %v10926_v4 = vunpack.i.l.bf16 %v19553_v38 }
 0x338   : > { %v15337_v51 = vsel %vm3965_vm1, %v3953_v5, %v11051_v0  ;;  %v15340_v46 = vsel %vm3965_vm1, %v3954_v8, %v11052_v2  ;;  %v11057_v17 = vunpack.i.h.bf16 %v11055_v59  ;;  %v11056_v41 = vunpack.i.l.bf16 %v11055_v59 }
 0x339   : > { %v3926_v36 = vsel %vm3899_vm14, %v15184_v57, %v10906_v62  ;;  %v3927_v42 = vsel %vm3899_vm14, %v15188_v15, %v10907_v14  ;;  %v10992_v31 = vunpack.i.h.bf16 %v15092_v53  ;;  %v10991_v20 = vunpack.i.l.bf16 %v15092_v53 }
 0x33a   : > { %v15351_v44 = vsel %vm3965_vm1, %v3955_v10, %v11056_v41  ;;  %v15354_v43 = vsel %vm3965_vm1, %v3956_v13, %v11057_v17  ;;  %v11105_v24 = vpop.permute.xlu2 %11104  ;;  %v10921_v57 = vunpack.i.l.bf16 %v14804_v49  ;;  %v3959_v5 = vsel %vm3932_vm0, %v3926_v36, %v10986_v61  ;;  %v19554_v13 = vld [vmem:[#allocation65_spill] sm:$0xff] }
 0x33b   : > { %v11107_v18 = vunpack.i.h.bf16 %v11105_v24  ;;  %v11106_v7 = vunpack.i.l.bf16 %v11105_v24  ;;  %v3960_v15 = vsel %vm3932_vm0, %v3927_v42, %v10987_v29  ;;  %v10922_v26 = vunpack.i.h.bf16 %v14804_v49 }
 0x33c   : > { %v3961_v14 = vsel %vm3932_vm0, %v3928_v27, %v10991_v20  ;;  %v3962_v62 = vsel %vm3932_vm0, %v3929_v52, %v10992_v31  ;;  %v3903_v10 = vsel %vm3899_vm14, %v15069_v6, %v10847_v33  ;;  %v10857_v16 = vunpack.i.h.bf16 %v19554_v13 }
 0x33d   : > { %v11065_v55 = vpop.permute.xlu0 %11064  ;;  %v15372_v0 = vsel %vm3998_vm2, %v15263_v30, %v11106_v7  ;;  %v15376_v1 = vsel %vm3998_vm2, %v15266_v22, %v11107_v18  ;;  %v3902_v22 = vsel %vm3899_vm14, %v15065_v39, %v10846_v60  ;;  %v10856_v24 = vunpack.i.l.bf16 %v19554_v13  ;;  %v19555_v7 = vld [vmem:[#allocation35_spill] sm:$0xff] }
 0x33e   : > { %v11067_v2 = vunpack.i.h.bf16 %v11065_v55  ;;  %v11066_v23 = vunpack.i.l.bf16 %v11065_v55  ;;  %v4036_v53 = vpack.c.bf16 %v15376_v1, %v15372_v0  ;;  %v3935_v39 = vsel %vm3932_vm0, %v3902_v22, %v10926_v4  ;;  %v19557_v22 = vld [vmem:[#allocation39_spill] sm:$0xff]  ;;  %v15553_v28 = vpop.f32.mrf.mxu1 }
 0x33f   : > { %v11070_v8 = vpop.permute.xlu1 %11069  ;;  %v11002_v49 = vunpack.i.h.bf16 %v14959_v3  ;;  %v11001_v60 = vunpack.i.l.bf16 %v14959_v3  ;;  %v3936_v52 = vsel %vm3932_vm0, %v3903_v10, %v10927_v47  ;;  %v3933_v6 = vsel %vm3932_vm0, %v15210_v58, %v10921_v57  ;;  %v19560_v10 = vld [vmem:[#allocation72_spill] sm:$0xff] }
 0x340   : > { %v15384_v59 = vsel %vm3965_vm1, %v3959_v5, %v11066_v23  ;;  %v15387_v30 = vsel %vm3965_vm1, %v3960_v15, %v11067_v2  ;;  %v11072_v17 = vunpack.i.h.bf16 %v11070_v8  ;;  %v11071_v41 = vunpack.i.l.bf16 %v11070_v8 }
 0x341   : > { %v3934_v18 = vsel %vm3932_vm0, %v15214_v35, %v10922_v26  ;;  %v10937_v36 = vunpack.i.h.bf16 %v19555_v7  ;;  %v11007_v42 = vunpack.i.h.bf16 %v15161_v63  ;;  %v11006_v4 = vunpack.i.l.bf16 %v15161_v63 }
 0x342   : > { %v15398_v29 = vsel %vm3965_vm1, %v3961_v14, %v11071_v41  ;;  %v15401_v61 = vsel %vm3965_vm1, %v3962_v62, %v11072_v17  ;;  %v11120_v27 = vpop.permute.xlu2 %11119  ;;  %v3966_v55 = vsel %vm3965_vm1, %v3933_v6, %v11001_v60  ;;  %v3967_v35 = vsel %vm3965_vm1, %v3934_v18, %v11002_v49  ;;  %v19558_v14 = vld [vmem:[#allocation26_spill] sm:$0xff]  ;;  %v19562_v6 = vld [vmem:[#allocation57_spill] sm:$0xff] }
 0x343   : > { %v11122_v33 = vunpack.i.h.bf16 %v11120_v27  ;;  %v11121_v38 = vunpack.i.l.bf16 %v11120_v27  ;;  %v10936_v15 = vunpack.i.l.bf16 %v19555_v7  ;;  %v3969_v17 = vsel %vm3965_vm1, %v3936_v52, %v11007_v42 }
 0x344   : > { %v19556_v41 = vunpack.i.h.bf16 %v19520_v50  ;;  %v19559_v62 = vunpack.i.l.bf16 %v19558_v14  ;;  %v19561_v27 = vunpack.i.h.bf16 %v19558_v14  ;;  %v11017_v52 = vunpack.i.h.bf16 %v19562_v6 }
 0x345   : > { %v11080_v31 = vpop.permute.xlu0 %11079  ;;  %v15417_v47 = vsel %vm3998_vm2, %v15308_v56, %v11121_v38  ;;  %v15421_v58 = vsel %vm3998_vm2, %v15311_v34, %v11122_v33  ;;  %v3968_v34 = vsel %vm3965_vm1, %v3935_v39, %v11006_v4  ;;  %v11016_v50 = vunpack.i.l.bf16 %v19562_v6 }
 0x346   : > { %v11082_v20 = vunpack.i.h.bf16 %v11080_v31  ;;  %v11081_v3 = vunpack.i.l.bf16 %v11080_v31  ;;  %v4039_v63 = vpack.c.bf16 %v15421_v58, %v15417_v47  ;;  %v3842_v26 = vsel %vm2169_vm9, %v19557_v22, %v19556_v41 }
 0x347   : > { %v11085_v2 = vpop.permute.xlu1 %11084  ;;  %v3873_v13 = vsel %vm2235_vm12, %v19560_v10, %v19559_v62  ;;  %v3874_v39 = vsel %vm2235_vm12, %v3842_v26, %v19561_v27 }
 0x348   : > { %v3999_v23 = vsel %vm3998_vm2, %v3966_v55, %v11081_v3  ;;  %v4000_v57 = vsel %vm3998_vm2, %v3967_v35, %v11082_v20  ;;  %v11087_v5 = vunpack.i.h.bf16 %v11085_v2  ;;  %v11086_v56 = vunpack.i.l.bf16 %v11085_v2 }
 0x349   : > { %v4031_v8 = vpack.c.bf16 %v4000_v57, %v3999_v23  ;;  %v3906_v18 = vsel %vm3899_vm14, %v3873_v13, %v10856_v24  ;;  %v3907_v7 = vsel %vm3899_vm14, %v3874_v39, %v10857_v16  ;;  %v19563_v39 = vld [vmem:[#allocation71_spill] sm:$0xff] }
 0x34a   : > { %v4001_v49 = vsel %vm3998_vm2, %v3968_v34, %v11086_v56  ;;  %v4002_v60 = vsel %vm3998_vm2, %v3969_v17, %v11087_v5  ;;  %v11135_v33 = vpop.permute.xlu2 %11134  ;;  %v3939_v31 = vsel %vm3932_vm0, %v3906_v18, %v10936_v15  ;;  %v3940_v20 = vsel %vm3932_vm0, %v3907_v7, %v10937_v36 }
 0x34b   : > { %9599 = vmatmul.msk.bf16.vlgmr.msrb.gmra.mxu1 %vm4102_vm3, %v4031_v8  ;;  %v4032_v38 = vpack.c.bf16 %v4002_v60, %v4001_v49  ;;  %v11137_v42 = vunpack.i.h.bf16 %v11135_v33  ;;  %v11136_v4 = vunpack.i.l.bf16 %v11135_v33  ;;  %v3972_v16 = vsel %vm3965_vm1, %v3939_v31, %v11016_v50 }
 0x34c   : > { %v3973_v57 = vsel %vm3965_vm1, %v3940_v20, %v11017_v52  ;;  %v19564_v52 = vld [vmem:[#allocation79_spill] sm:$0xff] }
 0x34d   : > { %v11095_v3 = vpop.permute.xlu0 %11094  ;;  %v15454_v55 = vsel %vm3998_vm2, %v15351_v44, %v11136_v4  ;;  %v15458_v35 = vsel %vm3998_vm2, %v15354_v43, %v11137_v42 }
 0x34e   : > { %v11097_v2 = vunpack.i.h.bf16 %v11095_v3  ;;  %v11096_v23 = vunpack.i.l.bf16 %v11095_v3  ;;  %v4042_v5 = vpack.c.bf16 %v15458_v35, %v15454_v55 }
 0x34f   : > { %v11100_v24 = vpop.permute.xlu1 %11099 }
 0x350   : > { %v11102_v36 = vunpack.i.h.bf16 %v11100_v24  ;;  %v11101_v56 = vunpack.i.l.bf16 %v11100_v24  ;;  %v4005_v15 = vsel %vm3998_vm2, %v3972_v16, %v11096_v23  ;;  %v4006_v44 = vsel %vm3998_vm2, %v3973_v57, %v11097_v2 }
 0x351   : > { %v4034_v8 = vpack.c.bf16 %v4006_v44, %v4005_v15 }
 0x352   : > { %v4007_v43 = vsel %vm3998_vm2, %v15247_v54, %v11101_v56  ;;  %v4008_v34 = vsel %vm3998_vm2, %v15250_v32, %v11102_v36  ;;  %v11150_v17 = vpop.permute.xlu2 %11149 }
 0x353   : > { %v4035_v41 = vpack.c.bf16 %v4008_v34, %v4007_v43  ;;  %v11152_v22 = vunpack.i.h.bf16 %v11150_v17  ;;  %v11151_v26 = vunpack.i.l.bf16 %v11150_v17 }
 0x355   : > { %v11110_v14 = vpop.permute.xlu0 %11109  ;;  %v15472_v62 = vsel %vm3998_vm2, %v15398_v29, %v11151_v26  ;;  %v15476_v10 = vsel %vm3998_vm2, %v15401_v61, %v11152_v22 }
 0x356   : > { %v11112_v13 = vunpack.i.h.bf16 %v11110_v14  ;;  %v11111_v49 = vunpack.i.l.bf16 %v11110_v14  ;;  %v4045_v54 = vpack.c.bf16 %v15476_v10, %v15472_v62 }
 0x357   : > { %v11115_v60 = vpop.permute.xlu1 %11114 }
 0x358   : > { %v11117_v32 = vunpack.i.h.bf16 %v11115_v60  ;;  %v11116_v27 = vunpack.i.l.bf16 %v11115_v60  ;;  %v4011_v6 = vsel %vm3998_vm2, %v19563_v39, %v11111_v49  ;;  %v4012_v50 = vsel %vm3998_vm2, %v19564_v52, %v11112_v13  ;;  %v19566_v13 = vld [vmem:[#allocation56_spill] sm:$0xff]  ;;  %v653_v60 = vld [vmem:[%s15635_s22] sm:$0xff]  ;;  %v19568_v52 = vld [vmem:[#allocation55_spill] sm:$0xff] }
 0x359   : > { %v4037_v29 = vpack.c.bf16 %v4012_v50, %v4011_v6 }
 0x35a   : > { %v15486_v33 = vsel %vm3998_vm2, %v15293_v11, %v11116_v27  ;;  %v15490_v61 = vsel %vm3998_vm2, %v15296_v48, %v11117_v32 }
 0x35b   : > { %9600 = vmatmul.msk.bf16.gmra.mxu1 %vm4102_vm3, %v4032_v38  ;;  %v4038_v18 = vpack.c.bf16 %v15490_v61, %v15486_v33 }
 0x35d   : > { %v11125_v7 = vpop.permute.xlu0 %11124 }
 0x35e   : > { %v11127_v42 = vunpack.i.h.bf16 %v11125_v7  ;;  %v11126_v4 = vunpack.i.l.bf16 %v11125_v7 }
 0x35f   : > { %v11130_v31 = vpop.permute.xlu1 %11129 }
 0x360   : > { %v15497_v20 = vsel %vm3998_vm2, %v15166_v19, %v11126_v4  ;;  %v15501_v11 = vsel %vm3998_vm2, %v15169_v37, %v11127_v42  ;;  %v11132_v3 = vunpack.i.h.bf16 %v11130_v31  ;;  %v11131_v48 = vunpack.i.l.bf16 %v11130_v31  ;;  %v655_v4 = vld [vmem:[%s15635_s22 + $0x10] sm:$0xff] }
 0x361   : > { %v4040_v38 = vpack.c.bf16 %v15501_v11, %v15497_v20 }
 0x362   : > { %v15507_v2 = vsel %vm3998_vm2, %v15337_v51, %v11131_v48  ;;  %v15511_v23 = vsel %vm3998_vm2, %v15340_v46, %v11132_v3 }
 0x363   : > { %v4041_v19 = vpack.c.bf16 %v15511_v23, %v15507_v2 }
 0x365   : > { %v11140_v24 = vpop.permute.xlu0 %11139 }
 0x366   : > { %v11142_v16 = vunpack.i.h.bf16 %v11140_v24  ;;  %v11141_v37 = vunpack.i.l.bf16 %v11140_v24 }
 0x367   : > { %v11145_v57 = vpop.permute.xlu1 %11144 }
 0x368   : > { %v15517_v36 = vsel %vm3998_vm2, %v15234_v45, %v11141_v37  ;;  %v15521_v56 = vsel %vm3998_vm2, %v15237_v40, %v11142_v16  ;;  %v11147_v51 = vunpack.i.h.bf16 %v11145_v57  ;;  %v11146_v15 = vunpack.i.l.bf16 %v11145_v57 }
 0x369   : > { %v4043_v46 = vpack.c.bf16 %v15521_v56, %v15517_v36 }
 0x36a   : > { %v15527_v44 = vsel %vm3998_vm2, %v15384_v59, %v11146_v15  ;;  %v15531_v43 = vsel %vm3998_vm2, %v15387_v30, %v11147_v51 }
 0x36b   : > { %9601 = vmatmul.msk.bf16.gmra.mxu1 %vm4102_vm3, %v4033_v21  ;;  %v4044_v45 = vpack.c.bf16 %v15531_v43, %v15527_v44  ;;  %v15569_v21 = vpop.f32.mrf.mxu1 }
 0x36d   : > { %v11155_v40 = vpop.permute.xlu0 %11154 }
 0x36e   : > { %v11157_v34 = vunpack.i.h.bf16 %v11155_v40  ;;  %v11156_v17 = vunpack.i.l.bf16 %v11155_v40 }
 0x370   : > { %v15541_v22 = vsel %vm3998_vm2, %v15283_v9, %v11156_v17  ;;  %v15545_v59 = vsel %vm3998_vm2, %v15286_v12, %v11157_v34  ;;  %v19565_v9 = vmov 0.0   ;;  %v15567_v12 = vpop.f32.mrf.mxu0 }
 0x371   : > { %478 = vst.msk [vmem:[#allocation4] sm:$0xff] %vm477_vm4, %v19565_v9 }
 0x372   : > { %479 = vst.msk [vmem:[#allocation4 + $0x8] sm:$0xff] %vm477_vm4, %v19565_v9 }
 0x373   : > { %483 = vst.msk [vmem:[#allocation4 + $0x198] sm:$0xff] %vm477_vm4, %v19565_v9  ;;  %v15574_v1 = vpop.f32.mrf.mxu1 }
 0x374   : > { %484 = vst.msk [vmem:[#allocation4 + $0x1a0] sm:$0xff] %vm477_vm4, %v19565_v9 }
 0x375   : > { %488 = vst.msk [vmem:[#allocation4 + $0x18] sm:$0x1] %vm486_vm5, %v19565_v9 }
 0x376   : > { %487 = vst.msk [vmem:[#allocation4] sm:$0x1] %vm486_vm5, %v19565_v9 }
 0x377   : > { %489 = vst.msk [vmem:[#allocation4 + $0x30] sm:$0x1] %vm486_vm5, %v19565_v9 }
 0x378   : > { %v15572_v0 = vpop.f32.mrf.mxu0  ;;  %490 = vst.msk [vmem:[#allocation4 + $0x48] sm:$0x1] %vm486_vm5, %v19565_v9 }
 0x379   : > { %491 = vst.msk [vmem:[#allocation4 + $0x60] sm:$0x1] %vm486_vm5, %v19565_v9  ;;  %v4660_v16 = vld [vmem:[#allocation4 + $0x1] sm:$0xff] }
 0x37a   : > { %492 = vst.msk [vmem:[#allocation4 + $0x78] sm:$0x1] %vm486_vm5, %v19565_v9 }
 0x37b   : > { %9602 = vmatmul.msk.bf16.gmra.mxu1 %vm4102_vm3, %v4034_v8  ;;  %493 = vst.msk [vmem:[#allocation4 + $0x90] sm:$0x1] %vm486_vm5, %v19565_v9  ;;  %v15594_v8 = vpop.f32.mrf.mxu1 }
 0x37c   : > { %494 = vst.msk [vmem:[#allocation4 + $0xa8] sm:$0x1] %vm486_vm5, %v19565_v9 }
 0x37d   : > { %495 = vst.msk [vmem:[#allocation4 + $0xc0] sm:$0x1] %vm486_vm5, %v19565_v9 }
 0x37e   : > { %496 = vst.msk [vmem:[#allocation4 + $0xd8] sm:$0x1] %vm486_vm5, %v19565_v9 }
 0x37f   : > { %497 = vst.msk [vmem:[#allocation4 + $0xf0] sm:$0x1] %vm486_vm5, %v19565_v9 }
 0x380   : > { %498 = vst.msk [vmem:[#allocation4 + $0x108] sm:$0x1] %vm486_vm5, %v19565_v9 }
 0x381   : > { %499 = vst.msk [vmem:[#allocation4 + $0x120] sm:$0x1] %vm486_vm5, %v19565_v9 }
 0x382   : > { %500 = vst.msk [vmem:[#allocation4 + $0x138] sm:$0x1] %vm486_vm5, %v19565_v9 }
 0x383   : > { %501 = vst.msk [vmem:[#allocation4 + $0x150] sm:$0x1] %vm486_vm5, %v19565_v9  ;;  %v15627_v14 = vpop.f32.mrf.mxu1 }
 0x384   : > { %502 = vst.msk [vmem:[#allocation4 + $0x168] sm:$0x1] %vm486_vm5, %v19565_v9 }
 0x385   : > { %503 = vst.msk [vmem:[#allocation4 + $0x180] sm:$0x1] %vm486_vm5, %v19565_v9 }
 0x386   : > { %504 = vst.msk [vmem:[#allocation4 + $0x198] sm:$0x1] %vm486_vm5, %v19565_v9 }
 0x387   : > { %506 = vst.msk [vmem:[#allocation4 + $0x29] sm:$0x1] %vm486_vm5, %v19565_v9 }
 0x388   : > { %507 = vst.msk [vmem:[#allocation4 + $0x41] sm:$0x1] %vm486_vm5, %v19565_v9 }
 0x389   : > { %508 = vst.msk [vmem:[#allocation4 + $0x59] sm:$0x1] %vm486_vm5, %v19565_v9 }
 0x38a   : > { %509 = vst.msk [vmem:[#allocation4 + $0x71] sm:$0x1] %vm486_vm5, %v19565_v9 }
 0x38b   : > { %9603 = vmatmul.msk.bf16.gmra.mxu1 %vm4102_vm3, %v4035_v41  ;;  %v15621_v41 = vld [vmem:[%s19040_s4] ss:$0 sm:$0xff]  ;;  %510 = vst.msk [vmem:[#allocation4 + $0x89] sm:$0x1] %vm486_vm5, %v19565_v9 }
 0x38c   : > { %v2379_v49 = vadd.f32 %v15621_v41, %v19566_v13  ;;  %511 = vst.msk [vmem:[#allocation4 + $0xa1] sm:$0x1] %vm486_vm5, %v19565_v9  ;;  %v2381_v50 = vadd.f32 %v15621_v41, %v19568_v52  ;;  %v2384_v42 = vadd.f32 %v15621_v41, %v15567_v12  ;;  %v2386_v12 = vadd.f32 %v15621_v41, %v15572_v0  ;;  %v656_v13 = vld [vmem:[%s15635_s22 + $0x18] sm:$0xff] }
 0x38d   : > { %512 = vst.msk [vmem:[#allocation4 + $0xb9] sm:$0x1] %vm486_vm5, %v19565_v9 }
 0x38e   : > { %v15652_v32 = vadd.f32 %v2379_v49, %v653_v60  ;;  %513 = vst.msk [vmem:[#allocation4 + $0xd1] sm:$0x1] %vm486_vm5, %v19565_v9  ;;  %v15712_v15 = vadd.f32 %v2384_v42, %v655_v4 }
 0x38f   : > { %514 = vst.msk [vmem:[#allocation4 + $0xe9] sm:$0x1] %vm486_vm5, %v19565_v9 }
 0x390   : > { %19567 = vst [vmem:[#allocation74_spill] sm:$0xff] %v15652_v32 }
 0x391   : > { %515 = vst.msk [vmem:[#allocation4 + $0x101] sm:$0x1] %vm486_vm5, %v19565_v9 }
 0x392   : > { %516 = vst.msk [vmem:[#allocation4 + $0x119] sm:$0x1] %vm486_vm5, %v19565_v9 }
 0x393   : > { %517 = vst.msk [vmem:[#allocation4 + $0x131] sm:$0x1] %vm486_vm5, %v19565_v9 }
 0x394   : > { %518 = vst.msk [vmem:[#allocation4 + $0x149] sm:$0x1] %vm486_vm5, %v19565_v9 }
 0x395   : > { %481 = vst.msk [vmem:[#allocation4 + $0x10] sm:$0x3] %vm480_vm8, %v19565_v9 }
 0x396   : > { %485 = vst.msk [vmem:[#allocation4 + $0x1a8] sm:$0x3] %vm480_vm8, %v19565_v9 }
 0x397   : > { %505 = vst.msk [vmem:[#allocation4 + $0x11] sm:$0x1] %vm486_vm5, %v19565_v9 }
 0x398   : > { %519 = vst.msk [vmem:[#allocation4 + $0x161] sm:$0x1] %vm486_vm5, %v19565_v9 }
 0x399   : > { %520 = vst.msk [vmem:[#allocation4 + $0x179] sm:$0x1] %vm486_vm5, %v19565_v9 }
 0x39a   : > { %521 = vst.msk [vmem:[#allocation4 + $0x191] sm:$0x1] %vm486_vm5, %v19565_v9 }
 0x39b   : > { %9604 = vmatmul.msk.bf16.gmra.mxu1 %vm4102_vm3, %v4036_v53  ;;  %v15592_v53 = vpop.f32.mrf.mxu0  ;;  %522 = vst.msk [vmem:[#allocation4 + $0x1a9] sm:$0x1] %vm486_vm5, %v19565_v9 }
 0x39c   : > { %v4661_v37 = vld [vmem:[#allocation4 + $0x9] sm:$0xff]  ;;  %19571 = vst [vmem:[#allocation10_spill] sm:$0xff] %v15712_v15 }
 0x39d   : > { %v11158_v51 = vpack.i.bf16 %v4661_v37, %v4660_v16 }
 0x39f   : > { %11159 = vrot.lane.b32.xlu1 %v11158_v51, %s12686_s26 }
 0x3a3   : > { %v15625_v26 = vpop.f32.mrf.mxu0 }
 0x3a4   : > { %v2391_v51 = vadd.f32 %v15621_v41, %v15625_v26 }
 0x3ab   : > { %9605 = vmatmul.msk.bf16.gmra.mxu1 %vm4102_vm3, %v4037_v29  ;;  %v15661_v6 = vpop.f32.mrf.mxu0  ;;  %v654_v29 = vld [vmem:[%s15635_s22 + $0x8] sm:$0xff] }
 0x3ac   : > { %v15683_v47 = vadd.f32 %v2381_v50, %v654_v29  ;;  %v15733_v29 = vadd.f32 %v2386_v12, %v656_v13 }
 0x3ae   : > { %19569 = vst [vmem:[#allocation75_spill] sm:$0xff] %v15683_v47 }
 0x3af   : > { %19573 = vst [vmem:[#allocation22_spill] sm:$0xff] %v15733_v29 }
 0x3b3   : > { %v15700_v31 = vpop.f32.mrf.mxu0 }
 0x3bb   : > { %9606 = vmatmul.msk.bf16.gmra.mxu1 %vm4102_vm3, %v4038_v18  ;;  %v15731_v50 = vpop.f32.mrf.mxu0 }
 0x3c8   : > { %v4164_v27 = vpop.f32.mrf.mxu1 }
 0x3c9   : > { %v4276_v39 = vadd.f32 %v15652_v32, %v4164_v27 }
 0x3cb   : > { %vm4308_vm6 = vcmp.gt.f32.partialorder %v4276_v39, 0.5  ;;  %9607 = vmatmul.msk.bf16.gmra.mxu1 %vm4102_vm3, %v4039_v63  ;;  %v4499_v61 = vmul.f32 0.2, %v4276_v39 }
 0x3cc   : > { %v15675_v33 = vsel %vm4308_vm6, 1.0, %v19565_v9 }
 0x3cd   : > { %v4531_v18 = vsub.f32 1.0, %v15675_v33  ;;  %4596 = vst.msk [vmem:[#allocation4 + $0x19] sm:$0xff] %vm477_vm4, %v15675_v33 }
 0x3cf   : > { %v15685_v58 = vmul.f32 %v4531_v18, %v4499_v61  ;;  %v2389_v61 = vadd.f32 %v15621_v41, %v15592_v53  ;;  %v657_v18 = vld [vmem:[%s15635_s22 + $0x20] sm:$0xff]  ;;  %v2400_v53 = vpop.f32.mrf.mxu0 }
 0x3d0   : > { %v4166_v63 = vpop.f32.mrf.mxu1 }
 0x3d1   : > { %19570 = vst [vmem:[#allocation78_spill] sm:$0xff] %v15685_v58  ;;  %v4277_v7 = vadd.f32 %v15683_v47, %v4166_v63 }
 0x3d3   : > { %vm4309_vm9 = vcmp.gt.f32.partialorder %v4277_v7, 0.5  ;;  %v4500_v48 = vmul.f32 0.2, %v4277_v7 }
 0x3d4   : > { %v15703_v3 = vsel %vm4309_vm9, 1.0, %v19565_v9  ;;  %v4662_v60 = vld [vmem:[#allocation4 + $0x19] sm:$0xff] }
 0x3d5   : > { %v4532_v24 = vsub.f32 1.0, %v15703_v3  ;;  %4597 = vst.msk [vmem:[#allocation4 + $0x21] sm:$0xff] %vm477_vm4, %v15703_v3 }
 0x3d7   : > { %v15714_v40 = vmul.f32 %v4532_v24, %v4500_v48  ;;  %v15750_v48 = vadd.f32 %v2389_v61, %v657_v18 }
 0x3d8   : > { %v4169_v34 = vpop.f32.mrf.mxu1 }
 0x3d9   : > { %19572 = vst [vmem:[#allocation18_spill] sm:$0xff] %v15714_v40  ;;  %v4278_v17 = vadd.f32 %v15712_v15, %v4169_v34  ;;  %v658_v34 = vld [vmem:[%s15635_s22 + $0x28] sm:$0xff]  ;;  %v4756_v40 = vld [vmem:[#allocation4 + $0x19] sm:$0xff] }
 0x3da   : > { %19575 = vst [vmem:[#allocation46_spill] sm:$0xff] %v15750_v48 }
 0x3db   : > { %vm4310_vm10 = vcmp.gt.f32.partialorder %v4278_v17, 0.5  ;;  %9608 = vmatmul.msk.bf16.gmra.mxu1 %vm4102_vm3, %v4040_v38  ;;  %v4501_v39 = vmul.f32 0.2, %v4278_v17 }
 0x3dc   : > { %v15726_v49 = vsel %vm4310_vm10, 1.0, %v19565_v9  ;;  %v4663_v27 = vld [vmem:[#allocation4 + $0x21] sm:$0xff] }
 0x3dd   : > { %v4533_v52 = vsub.f32 1.0, %v15726_v49  ;;  %4598 = vst.msk [vmem:[#allocation4 + $0x31] sm:$0xff] %vm477_vm4, %v15726_v49  ;;  %v11163_v0 = vpack.i.bf16 %v4663_v27, %v4662_v60 }
 0x3df   : > { %v15735_v20 = vmul.f32 %v4533_v52, %v4501_v39  ;;  %11164 = vrot.lane.b32.xlu2 %v11163_v0, %s12686_s26  ;;  %v15768_v39 = vadd.f32 %v2391_v51, %v658_v34  ;;  %v2394_v0 = vadd.f32 %v15621_v41, %v15661_v6  ;;  %v2396_v51 = vadd.f32 %v15621_v41, %v15700_v31  ;;  %v660_v34 = vld [vmem:[%s15635_s22 + $0x38] sm:$0xff] }
 0x3e0   : > { %v4171_v11 = vpop.f32.mrf.mxu1 }
 0x3e1   : > { %19574 = vst [vmem:[#allocation36_spill] sm:$0xff] %v15735_v20  ;;  %v4279_v38 = vadd.f32 %v15733_v29, %v4171_v11  ;;  %v659_v11 = vld [vmem:[%s15635_s22 + $0x30] sm:$0xff] }
 0x3e2   : > { %19577 = vst [vmem:[#allocation73_spill] sm:$0xff] %v15768_v39 }
 0x3e3   : > { %vm4311_vm11 = vcmp.gt.f32.partialorder %v4279_v38, 0.5  ;;  %v4502_v7 = vmul.f32 0.2, %v4279_v38 }
 0x3e4   : > { %v15743_v63 = vsel %vm4311_vm11, 1.0, %v19565_v9  ;;  %v4664_v12 = vld [vmem:[#allocation4 + $0x31] sm:$0xff] }
 0x3e5   : > { %v4534_v42 = vsub.f32 1.0, %v15743_v63  ;;  %4599 = vst.msk [vmem:[#allocation4 + $0x39] sm:$0xff] %vm477_vm4, %v15743_v63 }
 0x3e7   : > { %v15752_v24 = vmul.f32 %v4534_v42, %v4502_v7  ;;  %v15785_v42 = vadd.f32 %v2394_v0, %v659_v11  ;;  %v2399_v0 = vadd.f32 %v15621_v41, %v15731_v50  ;;  %v661_v11 = vld [vmem:[%s15635_s22 + $0x40] sm:$0xff] }
 0x3e8   : > { %v4174_v16 = vpop.f32.mrf.mxu1 }
 0x3e9   : > { %19576 = vst [vmem:[#allocation50_spill] sm:$0xff] %v15752_v24  ;;  %v4280_v37 = vadd.f32 %v15750_v48, %v4174_v16 }
 0x3ea   : > { %19579 = vst [vmem:[#allocation14_spill] sm:$0xff] %v15785_v42 }
 0x3eb   : > { %vm4312_vm13 = vcmp.gt.f32.partialorder %v4280_v37, 0.5  ;;  %9609 = vmatmul.msk.bf16.gmra.mxu1 %vm4102_vm3, %v4041_v19  ;;  %v4503_v60 = vmul.f32 0.2, %v4280_v37  ;;  %v2403_v19 = vpop.f32.mrf.mxu0 }
 0x3ec   : > { %v15763_v17 = vsel %vm4312_vm13, 1.0, %v19565_v9  ;;  %v4665_v13 = vld [vmem:[#allocation4 + $0x39] sm:$0xff] }
 0x3ed   : > { %v4535_v27 = vsub.f32 1.0, %v15763_v17  ;;  %4600 = vst.msk [vmem:[#allocation4 + $0x49] sm:$0xff] %vm477_vm4, %v15763_v17  ;;  %v11168_v26 = vpack.i.bf16 %v4665_v13, %v4664_v12 }
 0x3ef   : > { %v15770_v52 = vmul.f32 %v4535_v27, %v4503_v60  ;;  %11169 = vrot.lane.b32.xlu0 %v11168_v26, %s12686_s26 }
 0x3f0   : > { %v4176_v2 = vpop.f32.mrf.mxu1 }
 0x3f1   : > { %19578 = vst [vmem:[#allocation11_spill] sm:$0xff] %v15770_v52  ;;  %v4281_v23 = vadd.f32 %v15768_v39, %v4176_v2 }
 0x3f3   : > { %vm4313_vm14 = vcmp.gt.f32.partialorder %v4281_v23, 0.5  ;;  %v4504_v61 = vmul.f32 0.2, %v4281_v23  ;;  %v2405_v12 = vpop.f32.mrf.mxu0  ;;  %v15803_v23 = vadd.f32 %v2396_v51, %v660_v34  ;;  %v15820_v34 = vadd.f32 %v2399_v0, %v661_v11 }
 0x3f4   : > { %v15778_v38 = vsel %vm4313_vm14, 1.0, %v19565_v9  ;;  %v4666_v60 = vld [vmem:[#allocation4 + $0x49] sm:$0xff] }
 0x3f5   : > { %v4536_v18 = vsub.f32 1.0, %v15778_v38  ;;  %4601 = vst.msk [vmem:[#allocation4 + $0x51] sm:$0xff] %vm477_vm4, %v15778_v38 }
 0x3f6   : > { %19581 = vst [vmem:[#allocation37_spill] sm:$0xff] %v15803_v23 }
 0x3f7   : > { %v15787_v16 = vmul.f32 %v4536_v18, %v4504_v61  ;;  %19583 = vst [vmem:[#allocation60_spill] sm:$0xff] %v15820_v34 }
 0x3f8   : > { %v4179_v37 = vpop.f32.mrf.mxu1 }
 0x3f9   : > { %19580 = vst [vmem:[#allocation29_spill] sm:$0xff] %v15787_v16  ;;  %v4282_v6 = vadd.f32 %v15785_v42, %v4179_v37 }
 0x3fb   : > { %vm4314_vm15 = vcmp.gt.f32.partialorder %v4282_v6, 0.5  ;;  %9610 = vmatmul.msk.bf16.gmra.mxu1 %vm4102_vm3, %v4042_v5  ;;  %v4505_v26 = vmul.f32 0.2, %v4282_v6  ;;  %v2408_v51 = vpop.f32.mrf.mxu0 }
 0x3fc   : > { %v15798_v13 = vsel %vm4314_vm15, 1.0, %v19565_v9  ;;  %v4667_v27 = vld [vmem:[#allocation4 + $0x51] sm:$0xff] }
 0x3fd   : > { %v4537_v2 = vsub.f32 1.0, %v15798_v13  ;;  %4602 = vst.msk [vmem:[#allocation4 + $0x61] sm:$0xff] %vm477_vm4, %v15798_v13  ;;  %v11173_v31 = vpack.i.bf16 %v4667_v27, %v4666_v60 }
 0x3ff   : > { %v15805_v55 = vmul.f32 %v4537_v2, %v4505_v26  ;;  %11174 = vrot.lane.b32.xlu1 %v11173_v31, %s12686_s26  ;;  %v2401_v26 = vadd.f32 %v15621_v41, %v2400_v53  ;;  %v662_v2 = vld [vmem:[%s15635_s22 + $0x48] sm:$0xff] }
 0x400   : > { %v4181_v35 = vpop.f32.mrf.mxu1 }
 0x401   : > { %19582 = vst [vmem:[#allocation41_spill] sm:$0xff] %v15805_v55  ;;  %v4283_v5 = vadd.f32 %v15803_v23, %v4181_v35 }
 0x403   : > { %vm4315_vm1 = vcmp.gt.f32.partialorder %v4283_v5, 0.5  ;;  %v4506_v18 = vmul.f32 0.2, %v4283_v5  ;;  %v2410_v36 = vpop.f32.mrf.mxu0 }
 0x404   : > { %v15813_v61 = vsel %vm4315_vm1, 1.0, %v19565_v9  ;;  %v4668_v35 = vld [vmem:[#allocation4 + $0x61] sm:$0xff] }
 0x405   : > { %v4538_v37 = vsub.f32 1.0, %v15813_v61  ;;  %4603 = vst.msk [vmem:[#allocation4 + $0x69] sm:$0xff] %vm477_vm4, %v15813_v61  ;;  %v4762_v32 = vld [vmem:[#allocation4 + $0x61] sm:$0xff] }
 0x407   : > { %v15822_v60 = vmul.f32 %v4538_v37, %v4506_v18  ;;  %v15837_v18 = vadd.f32 %v2401_v26, %v662_v2 }
 0x408   : > { %v4184_v50 = vpop.f32.mrf.mxu1 }
 0x409   : > { %19584 = vst [vmem:[#allocation76_spill] sm:$0xff] %v15822_v60  ;;  %v4284_v27 = vadd.f32 %v15820_v34, %v4184_v50  ;;  %v2404_v50 = vadd.f32 %v15621_v41, %v2403_v19  ;;  %v4636_v60 = vld [vmem:[#allocation4 + $0x60] sm:$0xff] }
 0x40a   : > { %19585 = vst [vmem:[#allocation12_spill] sm:$0xff] %v15837_v18 }
 0x40b   : > { %vm4316_vm2 = vcmp.gt.f32.partialorder %v4284_v27, 0.5  ;;  %9611 = vmatmul.msk.bf16.gmra.mxu1 %vm4102_vm3, %v4043_v46  ;;  %v4507_v0 = vmul.f32 0.2, %v4284_v27  ;;  %v663_v27 = vld [vmem:[%s15635_s22 + $0x50] sm:$0xff] }
 0x40c   : > { %v15832_v31 = vsel %vm4316_vm2, 1.0, %v19565_v9  ;;  %v4669_v5 = vld [vmem:[#allocation4 + $0x69] sm:$0xff] }
 0x40d   : > { %v4539_v11 = vsub.f32 1.0, %v15832_v31  ;;  %4604 = vst.msk [vmem:[#allocation4 + $0x79] sm:$0xff] %vm477_vm4, %v15832_v31  ;;  %v11178_v53 = vpack.i.bf16 %v4669_v5, %v4668_v35  ;;  %v15853_v35 = vadd.f32 %v2404_v50, %v663_v27  ;;  %v4763_v58 = vld [vmem:[#allocation4 + $0x69] sm:$0xff] }
 0x40f   : > { %v15839_v37 = vmul.f32 %v4539_v11, %v4507_v0  ;;  %11179 = vrot.lane.b32.xlu2 %v11178_v53, %s12686_s26  ;;  %19587 = vst [vmem:[#allocation24_spill] sm:$0xff] %v15853_v35  ;;  %v2413_v11 = vpop.f32.mrf.mxu0  ;;  %v2406_v53 = vadd.f32 %v15621_v41, %v2405_v12 }
 0x410   : > { %v4186_v56 = vpop.f32.mrf.mxu1 }
 0x411   : > { %19586 = vst [vmem:[#allocation20_spill] sm:$0xff] %v15839_v37  ;;  %v4285_v46 = vadd.f32 %v15837_v18, %v4186_v56  ;;  %v664_v56 = vld [vmem:[%s15635_s22 + $0x58] sm:$0xff] }
 0x413   : > { %vm4317_vm5 = vcmp.gt.f32.partialorder %v4285_v46, 0.5  ;;  %v4508_v4 = vmul.f32 0.2, %v4285_v46 }
 0x414   : > { %v15846_v57 = vsel %vm4317_vm5, 1.0, %v19565_v9  ;;  %v4670_v50 = vld [vmem:[#allocation4 + $0x79] sm:$0xff] }
 0x415   : > { %v4540_v26 = vsub.f32 1.0, %v15846_v57  ;;  %4605 = vst.msk [vmem:[#allocation4 + $0x81] sm:$0xff] %vm477_vm4, %v15846_v57 }
 0x417   : > { %v15855_v5 = vmul.f32 %v4540_v26, %v4508_v4  ;;  %v2415_v6 = vpop.f32.mrf.mxu0 }
 0x418   : > { %v4189_v19 = vpop.f32.mrf.mxu1 }
 0x419   : > { %19588 = vst [vmem:[#allocation38_spill] sm:$0xff] %v15855_v5  ;;  %v4286_v0 = vadd.f32 %v15853_v35, %v4189_v19  ;;  %v15870_v19 = vadd.f32 %v2406_v53, %v664_v56 }
 0x41b   : > { %vm4318_vm6 = vcmp.gt.f32.partialorder %v4286_v0, 0.5  ;;  %9612 = vmatmul.msk.bf16.gmra.mxu1 %vm4102_vm3, %v4044_v45  ;;  %v4509_v27 = vmul.f32 0.2, %v4286_v0  ;;  %19589 = vst [vmem:[#allocation48_spill] sm:$0xff] %v15870_v19  ;;  %v2409_v45 = vadd.f32 %v15621_v41, %v2408_v51  ;;  %v665_v0 = vld [vmem:[%s15635_s22 + $0x60] sm:$0xff]  ;;  %v2411_v51 = vadd.f32 %v15621_v41, %v2410_v36 }
 0x41c   : > { %v15865_v46 = vsel %vm4318_vm6, 1.0, %v19565_v9  ;;  %v4671_v4 = vld [vmem:[#allocation4 + $0x81] sm:$0xff] }
 0x41d   : > { %v4541_v26 = vsub.f32 1.0, %v15865_v46  ;;  %4606 = vst.msk [vmem:[#allocation4 + $0x91] sm:$0xff] %vm477_vm4, %v15865_v46  ;;  %v11183_v12 = vpack.i.bf16 %v4671_v4, %v4670_v50  ;;  %v15884_v56 = vadd.f32 %v2409_v45, %v665_v0 }
 0x41f   : > { %v15872_v7 = vmul.f32 %v4541_v26, %v4509_v27  ;;  %11184 = vrot.lane.b32.xlu0 %v11183_v12, %s12686_s26  ;;  %19591 = vst [vmem:[#allocation77_spill] sm:$0xff] %v15884_v56  ;;  %v666_v26 = vld [vmem:[%s15635_s22 + $0x68] sm:$0xff]  ;;  %v2418_v0 = vpop.f32.mrf.mxu0 }
 0x420   : > { %v4191_v44 = vpop.f32.mrf.mxu1 }
 0x421   : > { %19590 = vst [vmem:[#allocation53_spill] sm:$0xff] %v15872_v7  ;;  %v4287_v43 = vadd.f32 %v15870_v19, %v4191_v44 }
 0x423   : > { %vm4319_vm8 = vcmp.gt.f32.partialorder %v4287_v43, 0.5  ;;  %v4510_v30 = vmul.f32 0.2, %v4287_v43 }
 0x424   : > { %v15879_v2 = vsel %vm4319_vm8, 1.0, %v19565_v9  ;;  %v4672_v44 = vld [vmem:[#allocation4 + $0x91] sm:$0xff] }
 0x425   : > { %v4542_v53 = vsub.f32 1.0, %v15879_v2  ;;  %4607 = vst.msk [vmem:[#allocation4 + $0x99] sm:$0xff] %vm477_vm4, %v15879_v2 }
 0x427   : > { %v15886_v50 = vmul.f32 %v4542_v53, %v4510_v30  ;;  %v15901_v53 = vadd.f32 %v2411_v51, %v666_v26 }
 0x428   : > { %v4194_v4 = vpop.f32.mrf.mxu1 }
 0x429   : > { %19592 = vst [vmem:[#allocation34_spill] sm:$0xff] %v15886_v50  ;;  %v4288_v27 = vadd.f32 %v15884_v56, %v4194_v4  ;;  %v2414_v4 = vadd.f32 %v15621_v41, %v2413_v11  ;;  %v19597_v11 = vpack.c.bf16 %v15545_v59, %v15541_v22 }
 0x42a   : > { %19593 = vst [vmem:[#allocation52_spill] sm:$0xff] %v15901_v53 }
 0x42b   : > { %vm4320_vm9 = vcmp.gt.f32.partialorder %v4288_v27, 0.5  ;;  %9613 = vmatmul.msk.bf16.gmra.mxu1 %vm4102_vm3, %v4045_v54  ;;  %v4511_v30 = vmul.f32 0.2, %v4288_v27  ;;  %v667_v27 = vld [vmem:[%s15635_s22 + $0x70] sm:$0xff] }
 0x42c   : > { %v15896_v12 = vsel %vm4320_vm9, 1.0, %v19565_v9  ;;  %v4673_v43 = vld [vmem:[#allocation4 + $0x99] sm:$0xff]  ;;  %v15911_v51 = vadd.f32 %v2414_v4, %v667_v27 }
 0x42d   : > { %v4543_v45 = vsub.f32 1.0, %v15896_v12  ;;  %4608 = vst.msk [vmem:[#allocation4 + $0xa9] sm:$0xff] %vm477_vm4, %v15896_v12  ;;  %v11188_v36 = vpack.i.bf16 %v4673_v43, %v4672_v44  ;;  %v2420_v44 = vpop.f32.mrf.mxu0 }
 0x42e   : > { %19595 = vst [vmem:[#allocation25_spill] sm:$0xff] %v15911_v51 }
 0x42f   : > { %v15903_v62 = vmul.f32 %v4543_v45, %v4511_v30  ;;  %11189 = vrot.lane.b32.xlu1 %v11188_v36, %s12686_s26  ;;  %v2416_v45 = vadd.f32 %v15621_v41, %v2415_v6  ;;  %v668_v36 = vld [vmem:[%s15635_s22 + $0x78] sm:$0xff] }
 0x430   : > { %v4196_v10 = vpop.f32.mrf.mxu1 }
 0x431   : > { %19594 = vst [vmem:[#allocation21_spill] sm:$0xff] %v15903_v62  ;;  %v4289_v54 = vadd.f32 %v15901_v53, %v4196_v10  ;;  %v669_v53 = vld [vmem:[%s15635_s22 + $0x80] sm:$0xff] }
 0x433   : > { %vm4321_vm10 = vcmp.gt.f32.partialorder %v4289_v54, 0.5  ;;  %v4512_v7 = vmul.f32 0.2, %v4289_v54 }
 0x434   : > { %v9628_v56 = vsel %vm4321_vm10, 1.0, %v19565_v9  ;;  %v4674_v54 = vld [vmem:[#allocation4 + $0xa9] sm:$0xff] }
 0x435   : > { %v4544_v35 = vsub.f32 1.0, %v9628_v56  ;;  %4609 = vst.msk [vmem:[#allocation4 + $0xb1] sm:$0xff] %vm477_vm4, %v9628_v56 }
 0x437   : > { %v15913_v26 = vmul.f32 %v4544_v35, %v4512_v7 }
 0x438   : > { %v4199_v43 = vpop.f32.mrf.mxu1 }
 0x439   : > { %19596 = vst [vmem:[#allocation28_spill] sm:$0xff] %v15913_v26  ;;  %v4290_v30 = vadd.f32 %v15911_v51, %v4199_v43  ;;  %v15924_v43 = vadd.f32 %v2416_v45, %v668_v36  ;;  %v2419_v26 = vadd.f32 %v15621_v41, %v2418_v0 }
 0x43b   : > { %vm4322_vm11 = vcmp.gt.f32.partialorder %v4290_v30, 0.5  ;;  %9614 = vmatmul.msk.bf16.gmra.mxu1 %vm4102_vm3, %v19597_v11  ;;  %v4513_v7 = vmul.f32 0.2, %v4290_v30  ;;  %19598 = vst [vmem:[#allocation30_spill] sm:$0xff] %v15924_v43  ;;  %v2423_v11 = vpop.f32.mrf.mxu0  ;;  %v15934_v36 = vadd.f32 %v2419_v26, %v669_v53 }
 0x43c   : > { %v9629_v10 = vsel %vm4322_vm11, 1.0, %v19565_v9  ;;  %v4675_v4 = vld [vmem:[#allocation4 + $0xb1] sm:$0xff] }
 0x43d   : > { %v4545_v35 = vsub.f32 1.0, %v9629_v10  ;;  %4610 = vst.msk [vmem:[#allocation4 + $0xc1] sm:$0xff] %vm477_vm4, %v9629_v10  ;;  %v11193_v27 = vpack.i.bf16 %v4675_v4, %v4674_v54 }
 0x43e   : > { %19600 = vst [vmem:[#allocation42_spill] sm:$0xff] %v15934_v36 }
 0x43f   : > { %v15926_v6 = vmul.f32 %v4545_v35, %v4513_v7  ;;  %11194 = vrot.lane.b32.xlu2 %v11193_v27, %s12686_s26  ;;  %v2421_v35 = vadd.f32 %v15621_v41, %v2420_v44  ;;  %v4410_v27 = vpack.c.bf16 %v9628_v56, %v15896_v12 }
 0x440   : > { %v4201_v22 = vpop.f32.mrf.mxu1 }
 0x441   : > { %19599 = vst [vmem:[#allocation15_spill] sm:$0xff] %v15926_v6  ;;  %v4291_v59 = vadd.f32 %v15924_v43, %v4201_v22  ;;  %v670_v22 = vld [vmem:[%s15635_s22 + $0x88] sm:$0xff]  ;;  %v4442_v56 = vsel %vm477_vm4, %v4410_v27, 0 }
 0x442   : > { %v15951_v44 = vadd.f32 %v2421_v35, %v670_v22 }
 0x443   : > { %vm4323_vm3 = vcmp.gt.f32.partialorder %v4291_v59, 0.5  ;;  %v4514_v62 = vmul.f32 0.2, %v4291_v59  ;;  %v2425_v59 = vpop.f32.mrf.mxu0 }
 0x444   : > { %v9630_v30 = vsel %vm4323_vm3, 1.0, %v19565_v9  ;;  %v4676_v53 = vld [vmem:[#allocation4 + $0xc1] sm:$0xff]  ;;  %19602 = vst [vmem:[#allocation32_spill] sm:$0xff] %v15951_v44 }
 0x445   : > { %v4546_v51 = vsub.f32 1.0, %v9630_v30  ;;  %4611 = vst.msk [vmem:[#allocation4 + $0xc9] sm:$0xff] %vm477_vm4, %v9630_v30  ;;  %v4411_v45 = vpack.c.bf16 %v9630_v30, %v9629_v10 }
 0x447   : > { %v15936_v54 = vmul.f32 %v4546_v51, %v4514_v62  ;;  %v4445_v4 = vsel %vm477_vm4, %v4411_v45, 0 }
 0x448   : > { %v4204_v7 = vpop.f32.mrf.mxu1  ;;  %4471 = vmatpush.bf16.xpose.msra.mxu2 %v4445_v4  ;;  %v2424_v4 = vadd.f32 %v15621_v41, %v2423_v11 }
 0x449   : > { %19601 = vst [vmem:[#allocation17_spill] sm:$0xff] %v15936_v54  ;;  %v4292_v0 = vadd.f32 %v15934_v36, %v4204_v7  ;;  %v4409_v7 = vpack.c.bf16 %v15879_v2, %v15865_v46  ;;  %v4694_v36 = vld [vmem:[#allocation4 + $0x1a] sm:$0xff]  ;;  %v4704_v54 = vld [vmem:[#allocation4 + $0x92] sm:$0xff] }
 0x44b   : > { %vm4324_vm13 = vcmp.gt.f32.partialorder %v4292_v0, 0.5  ;;  %v4515_v51 = vmul.f32 0.2, %v4292_v0  ;;  %v671_v0 = vld [vmem:[%s15635_s22 + $0x90] sm:$0xff]  ;;  %v4439_v2 = vsel %vm477_vm4, %v4409_v7, 0 }
 0x44c   : > { %v15944_v43 = vsel %vm4324_vm13, 1.0, %v19565_v9  ;;  %v4677_v62 = vld [vmem:[#allocation4 + $0xc9] sm:$0xff]  ;;  %v15971_v11 = vadd.f32 %v2424_v4, %v671_v0 }
 0x44d   : > { %v4547_v26 = vsub.f32 1.0, %v15944_v43  ;;  %4612 = vst.msk [vmem:[#allocation4 + $0xd9] sm:$0xff] %vm477_vm4, %v15944_v43  ;;  %v15949_v10 = vpack.i.bf16 %v4677_v62, %v4676_v53  ;;  %v2428_v62 = vpop.f32.mrf.mxu0 }
 0x44e   : > { %19604 = vst [vmem:[#allocation59_spill] sm:$0xff] %v15971_v11 }
 0x44f   : > { %v15953_v30 = vmul.f32 %v4547_v26, %v4515_v51  ;;  %11199 = vrot.lane.b32.xlu0 %v15949_v10, %s12686_s26 }
 0x450   : > { %v4206_v12 = vpop.f32.mrf.mxu1  ;;  %4472 = vmatpush.bf16.xpose.msra.mxu2 %v4442_v56  ;;  %v2426_v56 = vadd.f32 %v15621_v41, %v2425_v59  ;;  %v19608_v59 = vpack.c.bf16 %v15846_v57, %v15832_v31 }
 0x451   : > { %19603 = vst [vmem:[#allocation54_spill] sm:$0xff] %v15953_v30  ;;  %v4293_v45 = vadd.f32 %v15951_v44, %v4206_v12  ;;  %v672_v12 = vld [vmem:[%s15635_s22 + $0x98] sm:$0xff] }
 0x453   : > { %vm4325_vm14 = vcmp.gt.f32.partialorder %v4293_v45, 0.5  ;;  %v4516_v22 = vmul.f32 0.2, %v4293_v45 }
 0x454   : > { %v15964_v35 = vsel %vm4325_vm14, 1.0, %v19565_v9  ;;  %v4678_v30 = vld [vmem:[#allocation4 + $0xd9] sm:$0xff] }
 0x455   : > { %v4548_v53 = vsub.f32 1.0, %v15964_v35  ;;  %4613 = vst.msk [vmem:[#allocation4 + $0xe1] sm:$0xff] %vm477_vm4, %v15964_v35  ;;  %v4646_v19 = vld [vmem:[#allocation4 + $0xd8] sm:$0xff] }
 0x457   : > { %v15973_v51 = vmul.f32 %v4548_v53, %v4516_v22  ;;  %v15987_v22 = vadd.f32 %v2426_v56, %v672_v12 }
 0x458   : > { %v4209_v46 = vpop.f32.mrf.mxu1  ;;  %4473 = vmatpush.bf16.xpose.msra.mxu2 %v4439_v2  ;;  %v4436_v2 = vsel %vm477_vm4, %v19608_v59, 0 }
 0x459   : > { %19605 = vst [vmem:[#allocation49_spill] sm:$0xff] %v15973_v51  ;;  %v4294_v26 = vadd.f32 %v15971_v11, %v4209_v46  ;;  %v2430_v46 = vpop.f32.mrf.mxu0  ;;  %v4705_v51 = vld [vmem:[#allocation4 + $0x9a] sm:$0xff] }
 0x45a   : > { %19606 = vst [vmem:[#allocation23_spill] sm:$0xff] %v15987_v22 }
 0x45b   : > { %vm4326_vm15 = vcmp.gt.f32.partialorder %v4294_v26, 0.5  ;;  %v4517_v4 = vmul.f32 0.2, %v4294_v26 }
 0x45c   : > { %v15980_v45 = vsel %vm4326_vm15, 1.0, %v19565_v9  ;;  %v4679_v27 = vld [vmem:[#allocation4 + $0xe1] sm:$0xff] }
 0x45d   : > { %v4549_v0 = vsub.f32 1.0, %v15980_v45  ;;  %4614 = vst.msk [vmem:[#allocation4 + $0xf1] sm:$0xff] %vm477_vm4, %v15980_v45  ;;  %v15985_v7 = vpack.i.bf16 %v4679_v27, %v4678_v30  ;;  %v2429_v30 = vadd.f32 %v15621_v41, %v2428_v62  ;;  %v673_v27 = vld [vmem:[%s15635_s22 + $0xa0] sm:$0xff]  ;;  %v19611_v62 = vpack.c.bf16 %v15813_v61, %v15798_v13 }
 0x45e   : > { %v4711_v44 = vld [vmem:[#allocation4 + $0xe2] sm:$0xff] }
 0x45f   : > { %v15989_v53 = vmul.f32 %v4549_v0, %v4517_v4  ;;  %11204 = vrot.lane.b32.xlu1 %v15985_v7, %s12686_s26  ;;  %v16008_v31 = vadd.f32 %v2429_v30, %v673_v27  ;;  %v4433_v59 = vsel %vm477_vm4, %v19611_v62, 0 }
 0x460   : > { %v4211_v26 = vpop.f32.mrf.mxu1  ;;  %4474 = vmatpush.bf16.xpose.msra.mxu2 %v4436_v2 }
 0x461   : > { %19607 = vst [vmem:[#allocation31_spill] sm:$0xff] %v15989_v53  ;;  %v4295_v11 = vadd.f32 %v15987_v22, %v4211_v26  ;;  %v2433_v26 = vpop.f32.mrf.mxu0  ;;  %v2431_v22 = vadd.f32 %v15621_v41, %v2430_v46  ;;  %v674_v53 = vld [vmem:[%s15635_s22 + $0xa8] sm:$0xff]  ;;  %v19614_v46 = vpack.c.bf16 %v15778_v38, %v15763_v17 }
 0x462   : > { %19609 = vst [vmem:[#allocation40_spill] sm:$0xff] %v16008_v31 }
 0x463   : > { %vm4327_vm1 = vcmp.gt.f32.partialorder %v4295_v11, 0.5  ;;  %v4518_v12 = vmul.f32 0.2, %v4295_v11 }
 0x464   : > { %v16001_v56 = vsel %vm4327_vm1, 1.0, %v19565_v9  ;;  %v4680_v30 = vld [vmem:[#allocation4 + $0xf1] sm:$0xff] }
 0x465   : > { %v4550_v4 = vsub.f32 1.0, %v16001_v56  ;;  %4615 = vst.msk [vmem:[#allocation4 + $0xf9] sm:$0xff] %vm477_vm4, %v16001_v56  ;;  %v4648_v42 = vld [vmem:[#allocation4 + $0xf0] sm:$0xff] }
 0x467   : > { %v16010_v0 = vmul.f32 %v4550_v4, %v4518_v12  ;;  %v16027_v4 = vadd.f32 %v2431_v22, %v674_v53  ;;  %v675_v22 = vld [vmem:[%s15635_s22 + $0xb0] sm:$0xff] }
 0x468   : > { %v4214_v2 = vpop.f32.mrf.mxu1  ;;  %4475 = vmatpush.bf16.xpose.msra.mxu2 %v4433_v59  ;;  %v4430_v59 = vsel %vm477_vm4, %v19614_v46, 0 }
 0x469   : > { %19610 = vst [vmem:[#allocation43_spill] sm:$0xff] %v16010_v0  ;;  %v4296_v11 = vadd.f32 %v16008_v31, %v4214_v2  ;;  %v2434_v0 = vadd.f32 %v15621_v41, %v2433_v26  ;;  %v2435_v53 = vpop.f32.mrf.mxu0  ;;  %v19617_v26 = vpack.c.bf16 %v15743_v63, %v15726_v49 }
 0x46a   : > { %19612 = vst [vmem:[#allocation45_spill] sm:$0xff] %v16027_v4 }
 0x46b   : > { %vm4328_vm2 = vcmp.gt.f32.partialorder %v4296_v11, 0.5  ;;  %v4519_v12 = vmul.f32 0.2, %v4296_v11  ;;  %v16048_v38 = vadd.f32 %v2434_v0, %v675_v22  ;;  %v4427_v46 = vsel %vm477_vm4, %v19617_v26, 0 }
 0x46c   : > { %v16020_v57 = vsel %vm4328_vm2, 1.0, %v19565_v9  ;;  %v4681_v27 = vld [vmem:[#allocation4 + $0xf9] sm:$0xff]  ;;  %vm6302_vm2 = vcmask 1043456  }
 0x46d   : > { %v4551_v13 = vsub.f32 1.0, %v16020_v57  ;;  %4616 = vst.msk [vmem:[#allocation4 + $0x109] sm:$0xff] %vm477_vm4, %v16020_v57  ;;  %v16025_v61 = vpack.i.bf16 %v4681_v27, %v4680_v30 }
 0x46e   : > { %19615 = vst [vmem:[#allocation58_spill] sm:$0xff] %v16048_v38 }
 0x46f   : > { %v16029_v62 = vmul.f32 %v4551_v13, %v4519_v12  ;;  %11209 = vrot.lane.b32.xlu2 %v16025_v61, %s12686_s26 }
 0x470   : > { %v4216_v2 = vpop.f32.mrf.mxu1  ;;  %4476 = vmatpush.bf16.xpose.msra.mxu2 %v4430_v59 }
 0x471   : > { %19613 = vst [vmem:[#allocation51_spill] sm:$0xff] %v16029_v62  ;;  %v4297_v11 = vadd.f32 %v16027_v4, %v4216_v2  ;;  %v676_v4 = vld [vmem:[%s15635_s22 + $0xb8] sm:$0xff]  ;;  %v2438_v63 = vpop.f32.mrf.mxu0 }
 0x473   : > { %vm4329_vm5 = vcmp.gt.f32.partialorder %v4297_v11, 0.5  ;;  %v4520_v27 = vmul.f32 0.2, %v4297_v11  ;;  %v2436_v11 = vadd.f32 %v15621_v41, %v2435_v53 }
 0x474   : > { %v16041_v30 = vsel %vm4329_vm5, 1.0, %v19565_v9  ;;  %v4682_v0 = vld [vmem:[#allocation4 + $0x109] sm:$0xff] }
 0x475   : > { %v4552_v12 = vsub.f32 1.0, %v16041_v30  ;;  %4617 = vst.msk [vmem:[#allocation4 + $0x111] sm:$0xff] %vm477_vm4, %v16041_v30  ;;  %v16067_v26 = vadd.f32 %v2436_v11, %v676_v4  ;;  %v677_v4 = vld [vmem:[%s15635_s22 + $0xc0] sm:$0xff] }
 0x477   : > { %v16050_v13 = vmul.f32 %v4552_v12, %v4520_v27  ;;  %19618 = vst [vmem:[#allocation62_spill] sm:$0xff] %v16067_v26 }
 0x478   : > { %v4219_v59 = vpop.f32.mrf.mxu1  ;;  %4477 = vmatpush.bf16.xpose.msra.mxu2 %v4427_v46  ;;  %v19620_v46 = vpack.c.bf16 %v15703_v3, %v15675_v33  ;;  %v679_v33 = vld [vmem:[%s15635_s22 + $0xd0] sm:$0xff] }
 0x479   : > { %19616 = vst [vmem:[#allocation61_spill] sm:$0xff] %v16050_v13  ;;  %v4298_v2 = vadd.f32 %v16048_v38, %v4219_v59 }
 0x47a   : > { %v4424_v59 = vsel %vm477_vm4, %v19620_v46, 0  ;;  %v2440_v46 = vpop.f32.mrf.mxu0 }
 0x47b   : > { %vm4330_vm6 = vcmp.gt.f32.partialorder %v4298_v2, 0.5  ;;  %v4521_v27 = vmul.f32 0.2, %v4298_v2 }
 0x47c   : > { %v16060_v62 = vsel %vm4330_vm6, 1.0, %v19565_v9  ;;  %v4683_v22 = vld [vmem:[#allocation4 + $0x111] sm:$0xff]  ;;  %vm5973_vm6 = vcmask 130048  }
 0x47d   : > { %v4553_v12 = vsub.f32 1.0, %v16060_v62  ;;  %4618 = vst.msk [vmem:[#allocation4 + $0x121] sm:$0xff] %vm477_vm4, %v16060_v62  ;;  %v16065_v49 = vpack.i.bf16 %v4683_v22, %v4682_v0  ;;  %v2439_v0 = vadd.f32 %v15621_v41, %v2438_v63 }
 0x47f   : > { %v16069_v53 = vmul.f32 %v4553_v12, %v4521_v27  ;;  %11214 = vrot.lane.b32.xlu0 %v16065_v49, %s12686_s26  ;;  %v16088_v3 = vadd.f32 %v2439_v0, %v677_v4 }
 0x480   : > { %v4221_v2 = vpop.f32.mrf.mxu1  ;;  %4478 = vmatpush.bf16.xpose.msra.mxu2 %v4424_v59 }
 0x481   : > { %19619 = vst [vmem:[#allocation8_spill] sm:$0xff] %v16069_v53  ;;  %v4299_v17 = vadd.f32 %v16067_v26, %v4221_v2  ;;  %v2441_v2 = vadd.f32 %v15621_v41, %v2440_v46 }
 0x482   : > { %19621 = vst [vmem:[#allocation63_spill] sm:$0xff] %v16088_v3 }
 0x483   : > { %vm4331_vm8 = vcmp.gt.f32.partialorder %v4299_v17, 0.5  ;;  %v4522_v22 = vmul.f32 0.2, %v4299_v17  ;;  %v678_v17 = vld [vmem:[%s15635_s22 + $0xc8] sm:$0xff] }
 0x484   : > { %v16081_v11 = vsel %vm4331_vm8, 1.0, %v19565_v9  ;;  %v4684_v38 = vld [vmem:[#allocation4 + $0x121] sm:$0xff]  ;;  %vm6038_vm8 = vcmask 261120  }
 0x485   : > { %v4554_v27 = vsub.f32 1.0, %v16081_v11  ;;  %4619 = vst.msk [vmem:[#allocation4 + $0x129] sm:$0xff] %vm477_vm4, %v16081_v11 }
 0x487   : > { %v16090_v12 = vmul.f32 %v4554_v27, %v4522_v22  ;;  %v16103_v22 = vadd.f32 %v2441_v2, %v678_v17 }
 0x488   : > { %v4224_v63 = vpop.f32.mrf.mxu1 }
 0x489   : > { %19622 = vst [vmem:[#allocation16_spill] sm:$0xff] %v16090_v12  ;;  %v4300_v59 = vadd.f32 %v16088_v3, %v4224_v63 }
 0x48a   : > { %19623 = vst [vmem:[#allocation19_spill] sm:$0xff] %v16103_v22 }
 0x48b   : > { %vm4332_vm9 = vcmp.gt.f32.partialorder %v4300_v59, 0.5  ;;  %v4523_v26 = vmul.f32 0.2, %v4300_v59  ;;  %v2444_v59 = vadd.f32 %v15621_v41, %v15551_v25 }
 0x48c   : > { %v16096_v53 = vsel %vm4332_vm9, 1.0, %v19565_v9  ;;  %v4685_v13 = vld [vmem:[#allocation4 + $0x129] sm:$0xff]  ;;  %vm6071_vm9 = vcmask 326656  }
 0x48d   : > { %v4555_v0 = vsub.f32 1.0, %v16096_v53  ;;  %4620 = vst.msk [vmem:[#allocation4 + $0x139] sm:$0xff] %vm477_vm4, %v16096_v53  ;;  %v16101_v4 = vpack.i.bf16 %v4685_v13, %v4684_v38  ;;  %v16121_v2 = vadd.f32 %v2444_v59, %v679_v33 }
 0x48f   : > { %v16105_v27 = vmul.f32 %v4555_v0, %v4523_v26  ;;  %11219 = vrot.lane.b32.xlu1 %v16101_v4, %s12686_s26  ;;  %19625 = vst [vmem:[#allocation64_spill] sm:$0xff] %v16121_v2  ;;  %v4693_v26 = vld [vmem:[#allocation4 + $0xa] sm:$0xff] }
 0x490   : > { %v4226_v46 = vpop.f32.mrf.mxu1 }
 0x491   : > { %19624 = vst [vmem:[#allocation9_spill] sm:$0xff] %v16105_v27  ;;  %v4301_v63 = vadd.f32 %v16103_v22, %v4226_v46  ;;  %v2446_v46 = vadd.f32 %v15621_v41, %v15553_v28 }
 0x493   : > { %vm4333_vm10 = vcmp.gt.f32.partialorder %v4301_v63, 0.5  ;;  %v4524_v38 = vmul.f32 0.2, %v4301_v63  ;;  %v680_v63 = vld [vmem:[%s15635_s22 + $0xd8] sm:$0xff] }
 0x494   : > { %v16114_v3 = vsel %vm4333_vm10, 1.0, %v19565_v9  ;;  %v4686_v27 = vld [vmem:[#allocation4 + $0x139] sm:$0xff]  ;;  %vm6136_vm10 = vcmask 457728  }
 0x495   : > { %v4556_v13 = vsub.f32 1.0, %v16114_v3  ;;  %4621 = vst.msk [vmem:[#allocation4 + $0x141] sm:$0xff] %vm477_vm4, %v16114_v3 }
 0x497   : > { %v16123_v17 = vmul.f32 %v4556_v13, %v4524_v38  ;;  %v16137_v38 = vadd.f32 %v2446_v46, %v680_v63 }
 0x498   : > { %v4229_v0 = vpop.f32.mrf.mxu1 }
 0x499   : > { %19626 = vst [vmem:[#allocation47_spill] sm:$0xff] %v16123_v17  ;;  %v4302_v25 = vadd.f32 %v16121_v2, %v4229_v0  ;;  %v4692_v0 = vld [vmem:[#allocation4 + $0x2] sm:$0xff] }
 0x49a   : > { %19627 = vst [vmem:[#allocation44_spill] sm:$0xff] %v16137_v38  ;;  %v11238_v2 = vpack.i.bf16 %v4693_v26, %v4692_v0  ;;  %v4699_v0 = vld [vmem:[#allocation4 + $0x52] sm:$0xff] }
 0x49b   : > { %vm4334_vm11 = vcmp.gt.f32.partialorder %v4302_v25, 0.5  ;;  %v4525_v31 = vmul.f32 0.2, %v4302_v25  ;;  %v2449_v25 = vadd.f32 %v15621_v41, %v15569_v21 }
 0x49c   : > { %v16130_v22 = vsel %vm4334_vm11, 1.0, %v19565_v9  ;;  %v4687_v12 = vld [vmem:[#allocation4 + $0x141] sm:$0xff]  ;;  %vm6169_vm11 = vcmask 523264  }
 0x49d   : > { %v4557_v33 = vsub.f32 1.0, %v16130_v22  ;;  %4622 = vst.msk [vmem:[#allocation4 + $0x151] sm:$0xff] %vm477_vm4, %v16130_v22  ;;  %v16135_v59 = vpack.i.bf16 %v4687_v12, %v4686_v27  ;;  %v681_v12 = vld [vmem:[%s15635_s22 + $0xe0] sm:$0xff] }
 0x49e   : > { %v16153_v63 = vadd.f32 %v2449_v25, %v681_v12 }
 0x49f   : > { %v16139_v13 = vmul.f32 %v4557_v33, %v4525_v31  ;;  %11224 = vrot.lane.b32.xlu2 %v16135_v59, %s12686_s26 }
 0x4a0   : > { %v4231_v28 = vpop.f32.mrf.mxu1  ;;  %19629 = vst [vmem:[#allocation66_spill] sm:$0xff] %v16153_v63 }
 0x4a1   : > { %19628 = vst [vmem:[#allocation13_spill] sm:$0xff] %v16139_v13  ;;  %v4303_v17 = vadd.f32 %v16137_v38, %v4231_v28  ;;  %v4698_v28 = vld [vmem:[#allocation4 + $0x4a] sm:$0xff] }
 0x4a2   : > { %v682_v38 = vld [vmem:[%s15635_s22 + $0xe8] sm:$0xff] }
 0x4a3   : > { %vm4335_vm3 = vcmp.gt.f32.partialorder %v4303_v17, 0.5  ;;  %v4526_v31 = vmul.f32 0.2, %v4303_v17  ;;  %v2451_v17 = vadd.f32 %v15621_v41, %v15574_v1 }
 0x4a4   : > { %v16148_v27 = vsel %vm4335_vm3, 1.0, %v19565_v9  ;;  %v4688_v25 = vld [vmem:[#allocation4 + $0x151] sm:$0xff] }
 0x4a5   : > { %v4558_v46 = vsub.f32 1.0, %v16148_v27  ;;  %4623 = vst.msk [vmem:[#allocation4 + $0x159] sm:$0xff] %vm477_vm4, %v16148_v27 }
 0x4a7   : > { %v16155_v33 = vmul.f32 %v4558_v46, %v4526_v31  ;;  %11239 = vrot.lane.b32.xlu2 %v11238_v2, %s19306_s28  ;;  %v16168_v2 = vpack.i.bf16 %v4699_v0, %v4698_v28  ;;  %v4695_v28 = vld [vmem:[#allocation4 + $0x22] sm:$0xff]  ;;  %v2454_v0 = vadd.f32 %v15621_v41, %v15594_v8 }
 0x4a8   : > { %v4234_v21 = vpop.f32.mrf.mxu1 }
 0x4a9   : > { %19630 = vst [vmem:[#allocation70_spill] sm:$0xff] %v16155_v33  ;;  %v4304_v26 = vadd.f32 %v16153_v63, %v4234_v21  ;;  %v16172_v63 = vadd.f32 %v2451_v17, %v682_v38  ;;  %v683_v38 = vld [vmem:[%s15635_s22 + $0xf0] sm:$0xff] }
 0x4ab   : > { %vm4336_vm13 = vcmp.gt.f32.partialorder %v4304_v26, 0.5  ;;  %v4527_v31 = vmul.f32 0.2, %v4304_v26  ;;  %19631 = vst [vmem:[#allocation68_spill] sm:$0xff] %v16172_v63 }
 0x4ac   : > { %v16163_v13 = vsel %vm4336_vm13, 1.0, %v19565_v9  ;;  %v4689_v12 = vld [vmem:[#allocation4 + $0x159] sm:$0xff] }
 0x4ad   : > { %v4559_v46 = vsub.f32 1.0, %v16163_v13  ;;  %4624 = vst.msk [vmem:[#allocation4 + $0x169] sm:$0xff] %vm477_vm4, %v16163_v13  ;;  %v16170_v21 = vpack.i.bf16 %v4689_v12, %v4688_v25 }
 0x4af   : > { %v16174_v1 = vmul.f32 %v4559_v46, %v4527_v31  ;;  %11254 = vrot.lane.b32.xlu2 %v16168_v2, %s19306_s28  ;;  %11229 = vrot.lane.b32.xlu0 %v16170_v21, %s12686_s26  ;;  %v16190_v31 = vpack.i.bf16 %v4705_v51, %v4704_v54  ;;  %v16192_v46 = vpack.i.bf16 %v4695_v28, %v4694_v36  ;;  %v4700_v36 = vld [vmem:[#allocation4 + $0x62] sm:$0xff]  ;;  %v4701_v51 = vld [vmem:[#allocation4 + $0x6a] sm:$0xff]  ;;  %v684_v28 = vld [vmem:[%s15635_s22 + $0xf8] sm:$0xff]  ;;  %s12692_s22 = smov 120  }
 0x4b0   : > { %v4236_v26 = vpop.f32.mrf.mxu1  ;;  %v2456_v54 = vadd.f32 %v15621_v41, %v15627_v14 }
 0x4b1   : > { %19632 = vst [vmem:[#allocation69_spill] sm:$0xff] %v16174_v1  ;;  %v4305_v33 = vadd.f32 %v16172_v63, %v4236_v26  ;;  %v16194_v26 = vadd.f32 %v2454_v0, %v683_v38  ;;  %v4710_v63 = vld [vmem:[#allocation4 + $0xda] sm:$0xff] }
 0x4b2   : > { %v16208_v6 = vpack.i.bf16 %v4711_v44, %v4710_v63  ;;  %v16214_v5 = vadd.f32 %v2456_v54, %v684_v28  ;;  %v4696_v63 = vld [vmem:[#allocation4 + $0x32] sm:$0xff]  ;;  %v4706_v54 = vld [vmem:[#allocation4 + $0xaa] sm:$0xff] }
 0x4b3   : > { %vm4337_vm14 = vcmp.gt.f32.partialorder %v4305_v33, 0.5  ;;  %v4528_v25 = vmul.f32 0.2, %v4305_v33  ;;  %19633 = vst [vmem:[#allocation27_spill] sm:$0xff] %v16194_v26 }
 0x4b4   : > { %v16185_v17 = vsel %vm4337_vm14, 1.0, %v19565_v9  ;;  %v4690_v38 = vld [vmem:[#allocation4 + $0x169] sm:$0xff]  ;;  %19635 = vst [vmem:[#allocation67_spill] sm:$0xff] %v16214_v5 }
 0x4b5   : > { %v4560_v12 = vsub.f32 1.0, %v16185_v17  ;;  %4625 = vst.msk [vmem:[#allocation4 + $0x171] sm:$0xff] %vm477_vm4, %v16185_v17 }
 0x4b7   : > { %v16196_v1 = vmul.f32 %v4560_v12, %v4528_v25  ;;  %11269 = vrot.lane.b32.xlu2 %v16190_v31, %s19306_s28  ;;  %11244 = vrot.lane.b32.xlu0 %v16192_v46, %s19306_s28 }
 0x4b8   : > { %v4239_v8 = vpop.f32.mrf.mxu1 }
 0x4b9   : > { %19634 = vst [vmem:[#allocation33_spill] sm:$0xff] %v16196_v1  ;;  %v4306_v33 = vadd.f32 %v16194_v26, %v4239_v8  ;;  %v16212_v26 = vpack.i.bf16 %v4701_v51, %v4700_v36  ;;  %v4716_v36 = vld [vmem:[#allocation4 + $0x122] sm:$0xff]  ;;  %v4717_v51 = vld [vmem:[#allocation4 + $0x12a] sm:$0xff] }
 0x4bb   : > { %vm4338_vm15 = vcmp.gt.f32.partialorder %v4306_v33, 0.5  ;;  %v4529_v12 = vmul.f32 0.2, %v4306_v33  ;;  %v4697_v33 = vld [vmem:[#allocation4 + $0x3a] sm:$0xff] }
 0x4bc   : > { %v9645_v0 = vsel %vm4338_vm15, 1.0, %v19565_v9  ;;  %v4691_v25 = vld [vmem:[#allocation4 + $0x171] sm:$0xff] }
 0x4bd   : > { %v4561_v1 = vsub.f32 1.0, %v9645_v0  ;;  %4626 = vst.msk [vmem:[#allocation4 + $0x181] sm:$0xff] %vm477_vm4, %v9645_v0  ;;  %v16210_v8 = vpack.i.bf16 %v4691_v25, %v4690_v38  ;;  %v16226_v38 = vpack.i.bf16 %v4697_v33, %v4696_v63  ;;  %v4722_v33 = vld [vmem:[#allocation4 + $0x16a] sm:$0xff] }
 0x4bf   : > { %v16216_v41 = vmul.f32 %v4561_v1, %v4529_v12  ;;  %11284 = vrot.lane.b32.xlu2 %v16208_v6, %s19306_s28  ;;  %11234 = vrot.lane.b32.xlu1 %v16210_v8, %s12686_s26  ;;  %v4707_v1 = vld [vmem:[#allocation4 + $0xb2] sm:$0xff] }
 0x4c0   : > { %11259 = vrot.lane.b32.xlu0 %v16212_v26, %s19306_s28  ;;  %v4241_v14 = vpop.f32.mrf.mxu1  ;;  %v16231_v50 = vpack.i.bf16 %v4707_v1, %v4706_v54  ;;  %v4713_v54 = vld [vmem:[#allocation4 + $0xfa] sm:$0xff]  ;;  %v4418_v1 = vpack.c.bf16 %v16185_v17, %v16163_v13  ;;  %v4708_v13 = vld [vmem:[#allocation4 + $0xc2] sm:$0xff]  ;;  %v4709_v17 = vld [vmem:[#allocation4 + $0xca] sm:$0xff] }
 0x4c1   : > { %19636 = vst [vmem:[#allocation65_spill] sm:$0xff] %v16216_v41  ;;  %v4307_v44 = vadd.f32 %v16214_v5, %v4241_v14  ;;  %v16229_v41 = vpack.i.bf16 %v4717_v51, %v4716_v36  ;;  %v4723_v36 = vld [vmem:[#allocation4 + $0x172] sm:$0xff] }
 0x4c2   : > { %v4712_v51 = vld [vmem:[#allocation4 + $0xf2] sm:$0xff] }
 0x4c3   : > { %vm4339_vm1 = vcmp.gt.f32.partialorder %v4307_v44, 0.5  ;;  %v4530_v25 = vmul.f32 0.2, %v4307_v44  ;;  %v4702_v44 = vld [vmem:[#allocation4 + $0x7a] sm:$0xff] }
 0x4c4   : > { %v9646_v28 = vsel %vm4339_vm1, 1.0, %v19565_v9 }
 0x4c5   : > { %v4562_v12 = vsub.f32 1.0, %v9646_v28  ;;  %4627 = vst.msk [vmem:[#allocation4 + $0x189] sm:$0xff] %vm477_vm4, %v9646_v28  ;;  %v4419_v18 = vpack.c.bf16 %v9646_v28, %v9645_v0  ;;  %v4703_v0 = vld [vmem:[#allocation4 + $0x82] sm:$0xff]  ;;  %v16244_v28 = vpack.i.bf16 %v4723_v36, %v4722_v33  ;;  %v4718_v33 = vld [vmem:[#allocation4 + $0x13a] sm:$0xff]  ;;  %v4417_v36 = vpack.c.bf16 %v16148_v27, %v16130_v22  ;;  %v4714_v27 = vld [vmem:[#allocation4 + $0x10a] sm:$0xff] }
 0x4c6   : > { %v4641_v22 = vld [vmem:[#allocation4 + $0x98] sm:$0xff] }
 0x4c7   : > { %v16233_v14 = vmul.f32 %v4562_v12, %v4530_v25  ;;  %11299 = vrot.lane.b32.xlu2 %v16229_v41, %s19306_s28  ;;  %11249 = vrot.lane.b32.xlu1 %v16226_v38, %s19306_s28  ;;  %v4469_v63 = vsel %vm477_vm4, %v4419_v18, 0  ;;  %v16246_v25 = vpack.i.bf16 %v4703_v0, %v4702_v44  ;;  %v16248_v12 = vpack.i.bf16 %v4713_v54, %v4712_v51  ;;  %v4719_v44 = vld [vmem:[#allocation4 + $0x142] sm:$0xff] }
 0x4c8   : > { %11274 = vrot.lane.b32.xlu0 %v16231_v50, %s19306_s28  ;;  %4484 = vmatpush.bf16.xpose.msra.mxu3 %v4469_v63  ;;  %v4466_v18 = vsel %vm477_vm4, %v4418_v1, 0  ;;  %v4635_v63 = vld [vmem:[#allocation4 + $0x50] sm:$0xff]  ;;  %v4634_v0 = vld [vmem:[#allocation4 + $0x48] sm:$0xff]  ;;  %v16259_v54 = vpack.i.bf16 %v4709_v17, %v4708_v13  ;;  %v4463_v1 = vsel %vm477_vm4, %v4417_v36, 0  ;;  %v16271_v13 = vld [vmem:[#allocation4 + $0x20] sm:$0xff] }
 0x4c9   : > { %19637 = vst [vmem:[#allocation35_spill] sm:$0xff] %v16233_v14  ;;  %v11328_v51 = vpack.i.bf16 %v4635_v63, %v4634_v0  ;;  %v16261_v14 = vpack.i.bf16 %v4719_v44, %v4718_v33  ;;  %v4715_v63 = vld [vmem:[#allocation4 + $0x112] sm:$0xff] }
 0x4ca   : > { %v4640_v17 = vld [vmem:[#allocation4 + $0x90] sm:$0xff]  ;;  %v16273_v33 = vld [vmem:[#allocation4 + $0x18] sm:$0xff]  ;;  %v16275_v0 = vpack.i.bf16 %v4715_v63, %v4714_v27 }
 0x4cb   : > { %v11343_v44 = vpack.i.bf16 %v4641_v22, %v4640_v17  ;;  %v11318_v36 = vpack.i.bf16 %v16271_v13, %v16273_v33  ;;  %v4647_v22 = vld [vmem:[#allocation4 + $0xe0] sm:$0xff]  ;;  %v4720_v27 = vld [vmem:[#allocation4 + $0x152] sm:$0xff]  ;;  %v4637_v17 = vld [vmem:[#allocation4 + $0x68] sm:$0xff] }
 0x4cc   : > { %v4721_v63 = vld [vmem:[#allocation4 + $0x15a] sm:$0xff]  ;;  %v11333_v55 = vpack.i.bf16 %v4637_v17, %v4636_v60  ;;  %v4643_v60 = vld [vmem:[#allocation4 + $0xb0] sm:$0xff] }
 0x4cd   : > { %v16291_v23 = vpack.i.bf16 %v4721_v63, %v4720_v27  ;;  %v4642_v27 = vld [vmem:[#allocation4 + $0xa8] sm:$0xff] }
 0x4cf   : > { %11314 = vrot.lane.b32.xlu2 %v16244_v28, %s19306_s28  ;;  %11264 = vrot.lane.b32.xlu1 %v16246_v25, %s19306_s28 }
 0x4d0   : > { %11289 = vrot.lane.b32.xlu0 %v16248_v12, %s19306_s28  ;;  %4485 = vmatpush.bf16.xpose.msra.mxu3 %v4466_v18  ;;  %v16269_v18 = vpop.permute.xlu2 %11164 }
 0x4d7   : > { %11329 = vrot.lane.b32.xlu2 %v11328_v51, %s12677_s29  ;;  %11279 = vrot.lane.b32.xlu1 %v16259_v54, %s19306_s28  ;;  %v19638_v51 = vpack.c.bf16 %v16114_v3, %v16096_v53  ;;  %v19639_v53 = vpack.c.bf16 %v16081_v11, %v16060_v62  ;;  %v16312_v11 = vpack.i.bf16 %v4643_v60, %v4642_v27  ;;  %v4649_v60 = vld [vmem:[#allocation4 + $0xf8] sm:$0xff]  ;;  %v4752_v27 = vld [vmem:[#allocation4 + $0x168] sm:$0xff] }
 0x4d8   : > { %11304 = vrot.lane.b32.xlu0 %v16261_v14, %s19306_s28  ;;  %4486 = vmatpush.bf16.xpose.msra.mxu3 %v4463_v1  ;;  %v16287_v5 = vpop.permute.xlu2 %11179  ;;  %v16327_v34 = vpack.i.bf16 %v4649_v60, %v4648_v42  ;;  %v4655_v42 = vld [vmem:[#allocation4 + $0x140] sm:$0xff]  ;;  %v4758_v60 = vld [vmem:[#allocation4 + $0x31] sm:$0xff] }
 0x4d9   : > { %v4460_v1 = vsel %vm477_vm4, %v19638_v51, 0  ;;  %v4457_v3 = vsel %vm477_vm4, %v19639_v53, 0  ;;  %v4747_v51 = vld [vmem:[#allocation4 + $0x128] sm:$0xff] }
 0x4df   : > { %11344 = vrot.lane.b32.xlu2 %v11343_v44, %s12677_s29  ;;  %11294 = vrot.lane.b32.xlu1 %v16275_v0, %s19306_s28  ;;  %v16289_v44 = vpack.i.bf16 %v4647_v22, %v4646_v19  ;;  %v16304_v19 = vld [vmem:[#allocation4 + $0x38] sm:$0xff]  ;;  %v4746_v22 = vld [vmem:[#allocation4 + $0x120] sm:$0xff] }
 0x4e0   : > { %11319 = vrot.lane.b32.xlu0 %v11318_v36, %s12677_s29  ;;  %4487 = vmatpush.bf16.xpose.msra.mxu3 %v4460_v1  ;;  %v16302_v36 = vpop.permute.xlu2 %11194  ;;  %v16306_v1 = vld [vmem:[#allocation4 + $0x30] sm:$0xff]  ;;  %v16308_v63 = vpack.i.bf16 %v4747_v51, %v4746_v22  ;;  %v4638_v22 = vld [vmem:[#allocation4 + $0x78] sm:$0xff] }
 0x4e1   : > { %v11323_v62 = vpack.i.bf16 %v16304_v19, %v16306_v1  ;;  %v4753_v51 = vld [vmem:[#allocation4 + $0x170] sm:$0xff] }
 0x4e2   : > { %v16325_v37 = vpack.i.bf16 %v4753_v51, %v4752_v27  ;;  %v4644_v51 = vld [vmem:[#allocation4 + $0xc0] sm:$0xff] }
 0x4e7   : > { %11359 = vrot.lane.b32.xlu2 %v16289_v44, %s12677_s29  ;;  %11309 = vrot.lane.b32.xlu1 %v16291_v23, %s19306_s28 }
 0x4e8   : > { %11334 = vrot.lane.b32.xlu0 %v11333_v55, %s12677_s29  ;;  %4488 = vmatpush.bf16.xpose.msra.mxu3 %v4457_v3  ;;  %v19640_v55 = vpack.c.bf16 %v16041_v30, %v16020_v57  ;;  %v16323_v53 = vpop.permute.xlu2 %11209  ;;  %v4639_v3 = vld [vmem:[#allocation4 + $0x80] sm:$0xff]  ;;  %v19642_v57 = vpack.c.bf16 %v16001_v56, %v15980_v45  ;;  %v19644_v45 = vpack.c.bf16 %v15964_v35, %v15944_v43  ;;  %v16364_v35 = vpop.permute.xlu1 %11159 }
 0x4e9   : > { %19641 = vst [vmem:[#allocation39_spill] sm:$0xff] %v16323_v53  ;;  %v4754_v43 = vld [vmem:[#allocation4 + $0x180] sm:$0xff] }
 0x4ea   : > { %v4454_v17 = vsel %vm477_vm4, %v19640_v55, 0  ;;  %v4451_v30 = vsel %vm477_vm4, %v19642_v57, 0  ;;  %v4448_v56 = vsel %vm477_vm4, %v19644_v45, 0  ;;  %v16356_v57 = vpop.permute.xlu0 %11169  ;;  %v4876_v53 = vld [vmem:[#allocation4 + $0x141] sm:$0xff] }
 0x4ef   : > { %11374 = vrot.lane.b32.xlu2 %v16308_v63, %s12677_s29  ;;  %11324 = vrot.lane.b32.xlu1 %v11323_v62, %s12677_s29  ;;  %v11338_v62 = vpack.i.bf16 %v4639_v3, %v4638_v22  ;;  %v4759_v3 = vld [vmem:[#allocation4 + $0x39] sm:$0xff] }
 0x4f0   : > { %11349 = vrot.lane.b32.xlu0 %v16312_v11, %s12677_s29  ;;  %4489 = vmatpush.bf16.xpose.msra.mxu3 %v4454_v17  ;;  %v4645_v17 = vld [vmem:[#allocation4 + $0xc8] sm:$0xff]  ;;  %v4654_v22 = vld [vmem:[#allocation4 + $0x138] sm:$0xff]  ;;  %v16340_v27 = vpack.i.bf16 %v4759_v3, %v4758_v60  ;;  %v16386_v29 = vpop.permute.xlu1 %11174 }
 0x4f1   : > { %v16344_v52 = vpack.i.bf16 %v4655_v42, %v4654_v22  ;;  %v4765_v3 = vld [vmem:[#allocation4 + $0x81] sm:$0xff]  ;;  %v4764_v60 = vld [vmem:[#allocation4 + $0x79] sm:$0xff] }
 0x4f2   : > { %v4755_v42 = vld [vmem:[#allocation4 + $0x188] sm:$0xff]  ;;  %v16360_v22 = vpack.i.bf16 %v4765_v3, %v4764_v60  ;;  %v4750_v60 = vld [vmem:[#allocation4 + $0x150] sm:$0xff] }
 0x4f3   : > { %v16366_v45 = vpack.i.bf16 %v4755_v42, %v4754_v43  ;;  %v4760_v42 = vld [vmem:[#allocation4 + $0x49] sm:$0xff] }
 0x4f7   : > { %11389 = vrot.lane.b32.xlu2 %v16325_v37, %s12677_s29  ;;  %11339 = vrot.lane.b32.xlu1 %v11338_v62, %s12677_s29  ;;  %v16342_v62 = vpack.i.bf16 %v4645_v17, %v4644_v51  ;;  %v4651_v17 = vld [vmem:[#allocation4 + $0x110] sm:$0xff]  ;;  %v4650_v51 = vld [vmem:[#allocation4 + $0x108] sm:$0xff] }
 0x4f8   : > { %11364 = vrot.lane.b32.xlu0 %v16327_v34, %s12677_s29  ;;  %4490 = vmatpush.bf16.xpose.msra.mxu3 %v4451_v30  ;;  %v16362_v48 = vpack.i.bf16 %v4651_v17, %v4650_v51  ;;  %v4751_v17 = vld [vmem:[#allocation4 + $0x158] sm:$0xff] }
 0x4f9   : > { %v16338_v55 = vpop.permute.xlu2 %11224  ;;  %v4761_v51 = vld [vmem:[#allocation4 + $0x51] sm:$0xff]  ;;  %v16378_v24 = vpack.i.bf16 %v4751_v17, %v4750_v60  ;;  %v4757_v17 = vld [vmem:[#allocation4 + $0x21] sm:$0xff]  ;;  %v4767_v60 = vld [vmem:[#allocation4 + $0x99] sm:$0xff] }
 0x4fa   : > { %19643 = vst [vmem:[#allocation26_spill] sm:$0xff] %v16338_v55  ;;  %v16380_v43 = vpack.i.bf16 %v4761_v51, %v4760_v42  ;;  %v11398_v51 = vpack.i.bf16 %v4757_v17, %v4756_v40  ;;  %v4766_v42 = vld [vmem:[#allocation4 + $0x91] sm:$0xff]  ;;  %v16407_v40 = vpack.i.bf16 %v4763_v58, %v4762_v32 }
 0x4fb   : > { %v16394_v20 = vpack.i.bf16 %v4767_v60, %v4766_v42  ;;  %v4768_v42 = vld [vmem:[#allocation4 + $0xa9] sm:$0xff] }
 0x4ff   : > { %11404 = vrot.lane.b32.xlu2 %v16340_v27, %s12688_s27  ;;  %11354 = vrot.lane.b32.xlu1 %v16342_v62, %s12677_s29 }
 0x500   : > { %11379 = vrot.lane.b32.xlu0 %v16344_v52, %s12677_s29  ;;  %4491 = vmatpush.bf16.xpose.msra.mxu3 %v4448_v56  ;;  %v16374_v56 = vpop.permute.xlu0 %11184 }
 0x501   : > { %v16358_v30 = vpop.permute.xlu2 %11239 }
 0x507   : > { %11419 = vrot.lane.b32.xlu2 %v16360_v22, %s12688_s27  ;;  %11369 = vrot.lane.b32.xlu1 %v16362_v48, %s12677_s29 }
 0x508   : > { %11394 = vrot.lane.b32.xlu0 %v16366_v45, %s12677_s29  ;;  %v16390_v16 = vpop.permute.xlu0 %11199 }
 0x509   : > { %v16376_v3 = vpop.permute.xlu2 %11254  ;;  %19645 = vst [vmem:[#allocation72_spill] sm:$0xff] %v16390_v16  ;;  %v4896_v16 = vld [vmem:[#allocation4 + $0xb2] sm:$0xff] }
 0x50f   : > { %11434 = vrot.lane.b32.xlu2 %v15949_v10, %s12688_s27  ;;  %11384 = vrot.lane.b32.xlu1 %v16378_v24, %s12677_s29  ;;  %v16399_v10 = vpop.permute.xlu1 %11189 }
 0x510   : > { %11409 = vrot.lane.b32.xlu0 %v16380_v43, %s12688_s27  ;;  %v16403_v47 = vpop.permute.xlu0 %11214 }
 0x511   : > { %v16392_v39 = vpop.permute.xlu2 %11269  ;;  %19646 = vst [vmem:[#allocation57_spill] sm:$0xff] %v16403_v47 }
 0x517   : > { %11449 = vrot.lane.b32.xlu2 %v16065_v49, %s12688_s27  ;;  %11399 = vrot.lane.b32.xlu1 %v11398_v51, %s12688_s27  ;;  %v16413_v49 = vpop.permute.xlu1 %11204  ;;  %v4769_v51 = vld [vmem:[#allocation4 + $0xb1] sm:$0xff] }
 0x518   : > { %11424 = vrot.lane.b32.xlu0 %v16394_v20, %s12688_s27  ;;  %19648 = vst [vmem:[#allocation79_spill] sm:$0xff] %v16413_v49  ;;  %v16421_v55 = vpack.i.bf16 %v4769_v51, %v4768_v42  ;;  %v4786_v42 = vld [vmem:[#allocation4 + $0x181] sm:$0xff]  ;;  %v4904_v49 = vld [vmem:[#allocation4 + $0x112] sm:$0xff] }
 0x519   : > { %v16405_v15 = vpop.permute.xlu2 %11284 }
 0x51a   : > { %19647 = vst [vmem:[#allocation71_spill] sm:$0xff] %v16405_v15  ;;  %v4903_v15 = vld [vmem:[#allocation4 + $0x10a] sm:$0xff] }
 0x51f   : > { %11464 = vrot.lane.b32.xlu2 %v16170_v21, %s12688_s27  ;;  %11414 = vrot.lane.b32.xlu1 %v16407_v40, %s12688_s27  ;;  %v16427_v32 = vpop.permute.xlu1 %11219 }
 0x520   : > { %11439 = vrot.lane.b32.xlu0 %v15985_v7, %s12688_s27  ;;  %19651 = vst [vmem:[#allocation80_spill] sm:$0xff] %v16427_v32 }
 0x521   : > { %v16417_v17 = vpop.permute.xlu2 %11299  ;;  %v16419_v60 = vpop.permute.xlu0 %11229 }
 0x522   : > { %19649 = vst [vmem:[#allocation56_spill] sm:$0xff] %v16417_v17  ;;  %v4825_v17 = vld [vmem:[#allocation4 + $0x60] sm:$0xff] }
 0x523   : > { %19650 = vst [vmem:[#allocation55_spill] sm:$0xff] %v16419_v60 }
 0x527   : > { %11479 = vrot.lane.b32.xlu2 %v16192_v46, %s12689_s16  ;;  %11429 = vrot.lane.b32.xlu1 %v16421_v55, %s12688_s27 }
 0x528   : > { %11454 = vrot.lane.b32.xlu0 %v16101_v4, %s12688_s27 }
 0x529   : > { %v16431_v58 = vpop.permute.xlu2 %11314  ;;  %v16433_v7 = vpop.permute.xlu0 %11244 }
 0x52a   : > { %19652 = vst [vmem:[#allocation81_spill] sm:$0xff] %v16431_v58 }
 0x52f   : > { %11494 = vrot.lane.b32.xlu2 %v16212_v26, %s12689_s16  ;;  %11444 = vrot.lane.b32.xlu1 %v16025_v61, %s12688_s27 }
 0x530   : > { %11469 = vrot.lane.b32.xlu0 %v16210_v8, %s12688_s27  ;;  %v4787_v8 = vld [vmem:[#allocation4 + $0x189] sm:$0xff] }
 0x531   : > { %v16441_v21 = vpop.permute.xlu2 %11329  ;;  %v16443_v46 = vpop.permute.xlu1 %11234  ;;  %v16459_v58 = vpack.i.bf16 %v4787_v8, %v4786_v42  ;;  %v4818_v42 = vld [vmem:[#allocation4 + $0x182] sm:$0xff] }
 0x532   : > { %19653 = vst [vmem:[#allocation82_spill] sm:$0xff] %v16443_v46  ;;  %v16445_v51 = vpop.permute.xlu0 %11259  ;;  %v4819_v46 = vld [vmem:[#allocation4 + $0x18a] sm:$0xff] }
 0x533   : > { %v16485_v60 = vpack.i.bf16 %v4819_v46, %v4818_v42  ;;  %v4822_v42 = vld [vmem:[#allocation4 + $0x38] sm:$0xff] }
 0x537   : > { %11509 = vrot.lane.b32.xlu2 %v16231_v50, %s12689_s16  ;;  %11459 = vrot.lane.b32.xlu1 %v16135_v59, %s12688_s27 }
 0x538   : > { %11484 = vrot.lane.b32.xlu0 %v16226_v38, %s12689_s16 }
 0x539   : > { %v16453_v4 = vpop.permute.xlu2 %11344  ;;  %v16455_v61 = vpop.permute.xlu1 %11249 }
 0x53a   : > { %v16457_v26 = vpop.permute.xlu0 %11274 }
 0x53f   : > { %11524 = vrot.lane.b32.xlu2 %v16248_v12, %s12689_s16  ;;  %11474 = vrot.lane.b32.xlu1 %v16459_v58, %s12688_s27 }
 0x540   : > { %11499 = vrot.lane.b32.xlu0 %v16246_v25, %s12689_s16 }
 0x541   : > { %v16467_v50 = vpop.permute.xlu2 %11359  ;;  %v16469_v59 = vpop.permute.xlu1 %11264 }
 0x542   : > { %19654 = vst [vmem:[#allocation83_spill] sm:$0xff] %v16467_v50  ;;  %v16471_v38 = vpop.permute.xlu0 %11289 }
 0x543   : > { %19655 = vst [vmem:[#allocation84_spill] sm:$0xff] %v16471_v38  ;;  %v4866_v38 = vld [vmem:[#allocation4 + $0xc9] sm:$0xff] }
 0x547   : > { %11539 = vrot.lane.b32.xlu2 %v16261_v14, %s12689_s16  ;;  %11489 = vrot.lane.b32.xlu1 %v16168_v2, %s12689_s16 }
 0x548   : > { %11514 = vrot.lane.b32.xlu0 %v16259_v54, %s12689_s16 }
 0x549   : > { %v16479_v12 = vpop.permute.xlu2 %11374  ;;  %v16481_v8 = vpop.permute.xlu1 %11279 }
 0x54a   : > { %19656 = vst [vmem:[#allocation85_spill] sm:$0xff] %v16479_v12  ;;  %v16483_v25 = vpop.permute.xlu0 %11304 }
 0x54b   : > { %19657 = vst [vmem:[#allocation86_spill] sm:$0xff] %v16481_v8  ;;  %v4900_v8 = vld [vmem:[#allocation4 + $0xe2] sm:$0xff] }
 0x54c   : > { %19658 = vst [vmem:[#allocation87_spill] sm:$0xff] %v16483_v25  ;;  %v4826_v25 = vld [vmem:[#allocation4 + $0x68] sm:$0xff] }
 0x54d   : > { %v11568_v32 = vpack.i.bf16 %v4826_v25, %v4825_v17  ;;  %v4827_v25 = vld [vmem:[#allocation4 + $0x78] sm:$0xff] }
 0x54f   : > { %11554 = vrot.lane.b32.xlu2 %v16485_v60, %s12689_s16  ;;  %11504 = vrot.lane.b32.xlu1 %v16190_v31, %s12689_s16 }
 0x550   : > { %11529 = vrot.lane.b32.xlu0 %v16275_v0, %s12689_s16 }
 0x551   : > { %v16493_v2 = vpop.permute.xlu2 %11389  ;;  %v16495_v14 = vpop.permute.xlu1 %11294 }
 0x552   : > { %19659 = vst [vmem:[#allocation88_spill] sm:$0xff] %v16493_v2  ;;  %v16497_v54 = vpop.permute.xlu0 %11319  ;;  %v4821_v2 = vld [vmem:[#allocation4 + $0x30] sm:$0xff] }
 0x553   : > { %19660 = vst [vmem:[#allocation89_spill] sm:$0xff] %v16495_v14  ;;  %v11558_v12 = vpack.i.bf16 %v4822_v42, %v4821_v2  ;;  %v4824_v2 = vld [vmem:[#allocation4 + $0x50] sm:$0xff]  ;;  %v4823_v42 = vld [vmem:[#allocation4 + $0x48] sm:$0xff] }
 0x554   : > { %v11563_v14 = vpack.i.bf16 %v4824_v2, %v4823_v42  ;;  %v4852_v2 = vld [vmem:[#allocation4 + $0x1a0] sm:$0xff] }
 0x557   : > { %11569 = vrot.lane.b32.xlu2 %v11568_v32, %s12681_s25  ;;  %11519 = vrot.lane.b32.xlu1 %v16208_v6, %s12689_s16  ;;  %v4828_v32 = vld [vmem:[#allocation4 + $0x80] sm:$0xff] }
 0x558   : > { %11544 = vrot.lane.b32.xlu0 %v16291_v23, %s12689_s16 }
 0x559   : > { %v16504_v31 = vpop.permute.xlu2 %11404  ;;  %v16506_v0 = vpop.permute.xlu1 %11309 }
 0x55a   : > { %19661 = vst [vmem:[#allocation90_spill] sm:$0xff] %v16506_v0  ;;  %v16508_v46 = vpop.permute.xlu0 %11334  ;;  %v11573_v0 = vpack.i.bf16 %v4828_v32, %v4827_v25  ;;  %v4830_v32 = vld [vmem:[#allocation4 + $0x98] sm:$0xff]  ;;  %v4829_v25 = vld [vmem:[#allocation4 + $0x90] sm:$0xff] }
 0x55b   : > { %v11578_v47 = vpack.i.bf16 %v4830_v32, %v4829_v25  ;;  %v4868_v25 = vld [vmem:[#allocation4 + $0xe1] sm:$0xff] }
 0x55f   : > { %11584 = vrot.lane.b32.xlu2 %v16312_v11, %s12681_s25  ;;  %11534 = vrot.lane.b32.xlu1 %v16229_v41, %s12689_s16 }
 0x560   : > { %11559 = vrot.lane.b32.xlu0 %v11558_v12, %s12681_s25 }
 0x561   : > { %v16515_v6 = vpop.permute.xlu2 %11419  ;;  %v16517_v23 = vpop.permute.xlu1 %11324 }
 0x562   : > { %v16519_v17 = vpop.permute.xlu0 %11349 }
 0x567   : > { %11599 = vrot.lane.b32.xlu2 %v16327_v34, %s12681_s25  ;;  %11549 = vrot.lane.b32.xlu1 %v16244_v28, %s12689_s16 }
 0x568   : > { %11574 = vrot.lane.b32.xlu0 %v11573_v0, %s12681_s25 }
 0x569   : > { %v16526_v41 = vpop.permute.xlu2 %11434  ;;  %v16528_v11 = vpop.permute.xlu1 %11339 }
 0x56a   : > { %19662 = vst [vmem:[#allocation91_spill] sm:$0xff] %v16526_v41  ;;  %v16530_v12 = vpop.permute.xlu0 %11364  ;;  %v4905_v41 = vld [vmem:[#allocation4 + $0x122] sm:$0xff] }
 0x56b   : > { %19663 = vst [vmem:[#allocation92_spill] sm:$0xff] %v16530_v12 }
 0x56f   : > { %11614 = vrot.lane.b32.xlu2 %v16344_v52, %s12681_s25  ;;  %11564 = vrot.lane.b32.xlu1 %v11563_v14, %s12681_s25 }
 0x570   : > { %11589 = vrot.lane.b32.xlu0 %v16342_v62, %s12681_s25 }
 0x571   : > { %v16537_v34 = vpop.permute.xlu2 %11449  ;;  %v16539_v28 = vpop.permute.xlu1 %11354 }
 0x572   : > { %19664 = vst [vmem:[#allocation93_spill] sm:$0xff] %v16537_v34  ;;  %v16541_v0 = vpop.permute.xlu0 %11379 }
 0x573   : > { %19665 = vst [vmem:[#allocation94_spill] sm:$0xff] %v16539_v28 }
 0x574   : > { %19666 = vst [vmem:[#allocation95_spill] sm:$0xff] %v16541_v0  ;;  %v4879_v0 = vld [vmem:[#allocation4 + $0x169] sm:$0xff] }
 0x577   : > { %11629 = vrot.lane.b32.xlu2 %v16366_v45, %s12681_s25  ;;  %11579 = vrot.lane.b32.xlu1 %v11578_v47, %s12681_s25 }
 0x578   : > { %11604 = vrot.lane.b32.xlu0 %v16362_v48, %s12681_s25  ;;  %v4851_v48 = vld [vmem:[#allocation4 + $0x198] sm:$0xff] }
 0x579   : > { %v16548_v52 = vpop.permute.xlu2 %11464  ;;  %v16550_v62 = vpop.permute.xlu1 %11369  ;;  %v11633_v32 = vpack.i.bf16 %v4852_v2, %v4851_v48  ;;  %v4874_v2 = vld [vmem:[#allocation4 + $0x129] sm:$0xff] }
 0x57a   : > { %19667 = vst [vmem:[#allocation96_spill] sm:$0xff] %v16548_v52  ;;  %v16552_v14 = vpop.permute.xlu0 %11394 }
 0x57b   : > { %19668 = vst [vmem:[#allocation97_spill] sm:$0xff] %v16550_v62  ;;  %v4869_v62 = vld [vmem:[#allocation4 + $0xf1] sm:$0xff] }
 0x57c   : > { %19669 = vst [vmem:[#allocation98_spill] sm:$0xff] %v16552_v14  ;;  %v4867_v14 = vld [vmem:[#allocation4 + $0xd9] sm:$0xff] }
 0x57d   : > { %v11673_v52 = vpack.i.bf16 %v4868_v25, %v4867_v14  ;;  %v4880_v14 = vld [vmem:[#allocation4 + $0x171] sm:$0xff]  ;;  %v4870_v25 = vld [vmem:[#allocation4 + $0xf9] sm:$0xff] }
 0x57e   : > { %v11703_v34 = vpack.i.bf16 %v4880_v14, %v4879_v0  ;;  %v4865_v0 = vld [vmem:[#allocation4 + $0xc1] sm:$0xff] }
 0x57f   : > { %11644 = vrot.lane.b32.xlu2 %v16380_v43, %s19268_s24  ;;  %11594 = vrot.lane.b32.xlu1 %v16289_v44, %s12681_s25 }
 0x580   : > { %11619 = vrot.lane.b32.xlu0 %v16378_v24, %s12681_s25 }
 0x581   : > { %v16560_v47 = vpop.permute.xlu2 %11479  ;;  %v16562_v45 = vpop.permute.xlu1 %11384 }
 0x582   : > { %19670 = vst [vmem:[#allocation99_spill] sm:$0xff] %v16562_v45  ;;  %v16564_v42 = vpop.permute.xlu0 %11409 }
 0x587   : > { %11659 = vrot.lane.b32.xlu2 %v16394_v20, %s19268_s24  ;;  %11609 = vrot.lane.b32.xlu1 %v16308_v63, %s12681_s25 }
 0x588   : > { %11634 = vrot.lane.b32.xlu0 %v11633_v32, %s12681_s25  ;;  %v4873_v32 = vld [vmem:[#allocation4 + $0x121] sm:$0xff] }
 0x589   : > { %v16571_v44 = vpop.permute.xlu2 %11494  ;;  %v16573_v24 = vpop.permute.xlu1 %11399  ;;  %v11688_v45 = vpack.i.bf16 %v4874_v2, %v4873_v32  ;;  %v11678_v2 = vpack.i.bf16 %v4870_v25, %v4869_v62  ;;  %v4885_v32 = vld [vmem:[#allocation4 + $0x32] sm:$0xff]  ;;  %v11668_v62 = vpack.i.bf16 %v4866_v38, %v4865_v0 }
 0x58a   : > { %v16575_v43 = vpop.permute.xlu0 %11424  ;;  %v4875_v25 = vld [vmem:[#allocation4 + $0x139] sm:$0xff] }
 0x58f   : > { %11674 = vrot.lane.b32.xlu2 %v11673_v52, %s19268_s24  ;;  %11624 = vrot.lane.b32.xlu1 %v16325_v37, %s12681_s25 }
 0x590   : > { %11649 = vrot.lane.b32.xlu0 %v16407_v40, %s19268_s24 }
 0x591   : > { %v16582_v20 = vpop.permute.xlu2 %11509  ;;  %v16584_v63 = vpop.permute.xlu1 %11414 }
 0x592   : > { %v16586_v48 = vpop.permute.xlu0 %11439 }
 0x593   : > { %19671 = vst [vmem:[#allocation100_spill] sm:$0xff] %v16586_v48  ;;  %v4910_v48 = vld [vmem:[#allocation4 + $0x15a] sm:$0xff] }
 0x597   : > { %11689 = vrot.lane.b32.xlu2 %v11688_v45, %s19268_s24  ;;  %11639 = vrot.lane.b32.xlu1 %v16340_v27, %s19268_s24 }
 0x598   : > { %11664 = vrot.lane.b32.xlu0 %v16421_v55, %s19268_s24 }
 0x599   : > { %v16593_v37 = vpop.permute.xlu2 %11524  ;;  %v16595_v40 = vpop.permute.xlu1 %11429 }
 0x59a   : > { %19672 = vst [vmem:[#allocation101_spill] sm:$0xff] %v16593_v37  ;;  %v16597_v52 = vpop.permute.xlu0 %11454  ;;  %v4892_v37 = vld [vmem:[#allocation4 + $0x82] sm:$0xff] }
 0x59b   : > { %19673 = vst [vmem:[#allocation102_spill] sm:$0xff] %v16597_v52  ;;  %v4886_v52 = vld [vmem:[#allocation4 + $0x3a] sm:$0xff] }
 0x59c   : > { %v11718_v14 = vpack.i.bf16 %v4886_v52, %v4885_v32  ;;  %v4871_v52 = vld [vmem:[#allocation4 + $0x109] sm:$0xff] }
 0x59f   : > { %11704 = vrot.lane.b32.xlu2 %v11703_v34, %s19268_s24  ;;  %11654 = vrot.lane.b32.xlu1 %v16360_v22, %s19268_s24  ;;  %v11693_v34 = vpack.i.bf16 %v4876_v53, %v4875_v25  ;;  %v4898_v25 = vld [vmem:[#allocation4 + $0xca] sm:$0xff] }
 0x5a0   : > { %11679 = vrot.lane.b32.xlu0 %v11678_v2, %s19268_s24 }
 0x5a1   : > { %v16603_v55 = vpop.permute.xlu2 %11539  ;;  %v16605_v27 = vpop.permute.xlu1 %11444 }
 0x5a2   : > { %19674 = vst [vmem:[#allocation103_spill] sm:$0xff] %v16603_v55  ;;  %v16607_v45 = vpop.permute.xlu0 %11469  ;;  %v4891_v55 = vld [vmem:[#allocation4 + $0x7a] sm:$0xff] }
 0x5a3   : > { %19675 = vst [vmem:[#allocation104_spill] sm:$0xff] %v16605_v27  ;;  %v4872_v27 = vld [vmem:[#allocation4 + $0x111] sm:$0xff]  ;;  %v11733_v38 = vpack.i.bf16 %v4892_v37, %v4891_v55 }
 0x5a4   : > { %19676 = vst [vmem:[#allocation105_spill] sm:$0xff] %v16607_v45  ;;  %v11683_v32 = vpack.i.bf16 %v4872_v27, %v4871_v52  ;;  %v4877_v37 = vld [vmem:[#allocation4 + $0x151] sm:$0xff] }
 0x5a7   : > { %11719 = vrot.lane.b32.xlu2 %v11718_v14, %s12691_s14  ;;  %11669 = vrot.lane.b32.xlu1 %v11668_v62, %s19268_s24  ;;  %v4897_v62 = vld [vmem:[#allocation4 + $0xc2] sm:$0xff] }
 0x5a8   : > { %11694 = vrot.lane.b32.xlu0 %v11693_v34, %s19268_s24  ;;  %v4878_v34 = vld [vmem:[#allocation4 + $0x159] sm:$0xff]  ;;  %v11748_v55 = vpack.i.bf16 %v4898_v25, %v4897_v62 }
 0x5a9   : > { %v16612_v22 = vpop.permute.xlu2 %11554  ;;  %v16614_v2 = vpop.permute.xlu1 %11459  ;;  %v11698_v27 = vpack.i.bf16 %v4878_v34, %v4877_v37  ;;  %v4893_v62 = vld [vmem:[#allocation4 + $0x92] sm:$0xff]  ;;  %v4894_v25 = vld [vmem:[#allocation4 + $0x9a] sm:$0xff] }
 0x5aa   : > { %19677 = vst [vmem:[#allocation106_spill] sm:$0xff] %v16612_v22  ;;  %v16616_v45 = vpop.permute.xlu0 %11484  ;;  %v4887_v22 = vld [vmem:[#allocation4 + $0x4a] sm:$0xff] }
 0x5ab   : > { %19678 = vst [vmem:[#allocation107_spill] sm:$0xff] %v16614_v2  ;;  %v4888_v2 = vld [vmem:[#allocation4 + $0x52] sm:$0xff] }
 0x5ac   : > { %v11723_v52 = vpack.i.bf16 %v4888_v2, %v4887_v22  ;;  %v11763_v22 = vpack.i.bf16 %v4904_v49, %v4903_v15  ;;  %v11738_v2 = vpack.i.bf16 %v4894_v25, %v4893_v62  ;;  %v4916_v25 = vld [vmem:[#allocation4 + $0x1a2] sm:$0xff] }
 0x5af   : > { %11734 = vrot.lane.b32.xlu2 %v11733_v38, %s12691_s14  ;;  %11684 = vrot.lane.b32.xlu1 %v11683_v32, %s19268_s24  ;;  %v4884_v38 = vld [vmem:[#allocation4 + $0x1a1] sm:$0xff] }
 0x5b0   : > { %11709 = vrot.lane.b32.xlu0 %v16459_v58, %s19268_s24  ;;  %v4883_v58 = vld [vmem:[#allocation4 + $0x199] sm:$0xff] }
 0x5b1   : > { %v16622_v53 = vpop.permute.xlu2 %11569  ;;  %v16624_v0 = vpop.permute.xlu1 %11474  ;;  %v11713_v50 = vpack.i.bf16 %v4884_v38, %v4883_v58  ;;  %v4890_v58 = vld [vmem:[#allocation4 + $0x6a] sm:$0xff]  ;;  %v4899_v38 = vld [vmem:[#allocation4 + $0xda] sm:$0xff] }
 0x5b2   : > { %19679 = vst [vmem:[#allocation108_spill] sm:$0xff] %v16624_v0  ;;  %v16626_v14 = vpop.permute.xlu0 %11499  ;;  %v11753_v62 = vpack.i.bf16 %v4900_v8, %v4899_v38 }
 0x5b7   : > { %11749 = vrot.lane.b32.xlu2 %v11748_v55, %s12691_s14  ;;  %11699 = vrot.lane.b32.xlu1 %v11698_v27, %s19268_s24  ;;  %v4889_v55 = vld [vmem:[#allocation4 + $0x62] sm:$0xff] }
 0x5b8   : > { %11724 = vrot.lane.b32.xlu0 %v11723_v52, %s12691_s14  ;;  %v4909_v52 = vld [vmem:[#allocation4 + $0x152] sm:$0xff]  ;;  %v11728_v49 = vpack.i.bf16 %v4890_v58, %v4889_v55 }
 0x5b9   : > { %v16631_v32 = vpop.permute.xlu2 %11584  ;;  %v16633_v0 = vpop.permute.xlu1 %11489  ;;  %v11778_v15 = vpack.i.bf16 %v4910_v48, %v4909_v52  ;;  %v4906_v48 = vld [vmem:[#allocation4 + $0x12a] sm:$0xff] }
 0x5ba   : > { %v16635_v12 = vpop.permute.xlu0 %11514  ;;  %v11768_v52 = vpack.i.bf16 %v4906_v48, %v4905_v41  ;;  %v4907_v48 = vld [vmem:[#allocation4 + $0x13a] sm:$0xff] }
 0x5bb   : > { %19680 = vst [vmem:[#allocation109_spill] sm:$0xff] %v16635_v12  ;;  %v11401_v12 = vunpack.i.l.bf16 %v16573_v24 }
 0x5bf   : > { %11764 = vrot.lane.b32.xlu2 %v11763_v22, %s12691_s14  ;;  %11714 = vrot.lane.b32.xlu1 %v11713_v50, %s19268_s24  ;;  %v4915_v50 = vld [vmem:[#allocation4 + $0x19a] sm:$0xff]  ;;  %s16935_s24 = scalar_lea.vmem [#allocation5], %s9815_s21 }
 0x5c0   : > { %11739 = vrot.lane.b32.xlu0 %v11738_v2, %s12691_s14  ;;  %v11793_v55 = vpack.i.bf16 %v4916_v25, %v4915_v50  ;;  %s9413_s17 = sshll.u32 %s16935_s24, 4  ;;  %s9414_s17 = int_to_ptr.vmem [resolvable:$true] %s9413_s17 }
 0x5c1   : > { %v16640_v34 = vpop.permute.xlu2 %11599  ;;  %v16642_v37 = vpop.permute.xlu1 %11504 }
 0x5c2   : > { %19681 = vst [vmem:[#allocation110_spill] sm:$0xff] %v16640_v34  ;;  %v16644_v27 = vpop.permute.xlu0 %11529  ;;  %v4895_v34 = vld [vmem:[#allocation4 + $0xaa] sm:$0xff] }
 0x5c3   : > { %19682 = vst [vmem:[#allocation111_spill] sm:$0xff] %v16644_v27  ;;  %v11743_v8 = vpack.i.bf16 %v4896_v16, %v4895_v34  ;;  %v6226_v34 = vld [vmem:[%s19042_s6 + $0x20] sm:$0xf] }
 0x5c7   : > { %11779 = vrot.lane.b32.xlu2 %v11778_v15, %s12691_s14  ;;  %11729 = vrot.lane.b32.xlu1 %v11728_v49, %s12691_s14  ;;  %v4901_v49 = vld [vmem:[#allocation4 + $0xf2] sm:$0xff] }
 0x5c8   : > { %11754 = vrot.lane.b32.xlu0 %v11753_v62, %s12691_s14  ;;  %v4902_v62 = vld [vmem:[#allocation4 + $0xfa] sm:$0xff] }
 0x5c9   : > { %v16649_v22 = vpop.permute.xlu2 %11614  ;;  %v16651_v2 = vpop.permute.xlu1 %11519 }
 0x5ca   : > { %19683 = vst [vmem:[#allocation112_spill] sm:$0xff] %v16649_v22  ;;  %v16653_v27 = vpop.permute.xlu0 %11544  ;;  %v4912_v22 = vld [vmem:[#allocation4 + $0x172] sm:$0xff] }
 0x5cb   : > { %19684 = vst [vmem:[#allocation113_spill] sm:$0xff] %v16651_v2  ;;  %v11758_v2 = vpack.i.bf16 %v4902_v62, %v4901_v49 }
 0x5cc   : > { %19685 = vst [vmem:[#allocation114_spill] sm:$0xff] %v16653_v27  ;;  %v4911_v27 = vld [vmem:[#allocation4 + $0x16a] sm:$0xff] }
 0x5cd   : > { %v11783_v50 = vpack.i.bf16 %v4912_v22, %v4911_v27  ;;  %v8639_v22 = vld [vmem:[%s19043_s7 + $0x20] sm:$0xf] }
 0x5cf   : > { %11744 = vrot.lane.b32.xlu1 %v11743_v8, %s12691_s14  ;;  %11794 = vrot.lane.b32.xlu2 %v11793_v55, %s12691_s14  ;;  %v4908_v55 = vld [vmem:[#allocation4 + $0x142] sm:$0xff]  ;;  %v6244_v8 = vunpack.c.l.b16 %v6226_v34 }
 0x5d0   : > { %11769 = vrot.lane.b32.xlu0 %v11768_v52, %s12691_s14  ;;  %v685_v52 = vlaneseq  ;;  %v11773_v49 = vpack.i.bf16 %v4908_v55, %v4907_v48  ;;  %v9801_v55 = vld [vmem:[%s19042_s6 + $0x18] sm:$0xff] }
 0x5d1   : > { %v16658_v58 = vpop.permute.xlu2 %11629  ;;  %v16660_v38 = vpop.permute.xlu1 %11534  ;;  %v6249_v27 = vpack.c.b16 %v6244_v8, %v6244_v8 }
 0x5d2   : > { %19686 = vst [vmem:[#allocation115_spill] sm:$0xff] %v16658_v58  ;;  %v16662_v15 = vpop.permute.xlu0 %11559  ;;  %v686_v62 = vshrl.u32 %v685_v52, 7 }
 0x5d3   : > { %19687 = vst [vmem:[#allocation116_spill] sm:$0xff] %v16660_v38  ;;  %v6304_v58 = vsel %vm6302_vm2, %v6249_v27, 0  ;;  %v11562_v28 = vunpack.i.h.bf16 %v16662_v15 }
 0x5d4   : > { %6309 = vmatpush.bf16.msrb.mxu2 %v6304_v58  ;;  %v9800_v58 = vld [vmem:[%s19042_s6 + $0x10] sm:$0xff] }
 0x5d7   : > { %11759 = vrot.lane.b32.xlu1 %v11758_v2, %s12691_s14  ;;  %v8657_v2 = vunpack.c.l.b16 %v8639_v22 }
 0x5d8   : > { %11784 = vrot.lane.b32.xlu0 %v11783_v50, %s12691_s14  ;;  %v688_v50 = vand.u32 127, %v685_v52  ;;  %6310 = vmatpush.bf16.msrb.mxu2 %v9801_v55 }
 0x5d9   : > { %v16666_v16 = vpop.permute.xlu2 %11644  ;;  %v16668_v41 = vpop.permute.xlu1 %11549 }
 0x5da   : > { %19688 = vst [vmem:[#allocation117_spill] sm:$0xff] %v16668_v41  ;;  %v16673_v25 = vpop.permute.xlu0 %11574  ;;  %v8662_v41 = vpack.c.b16 %v8657_v2, %v8657_v2  ;;  %vm689_vm5 = vcmp.eq.s32.totalorder %v686_v62, %v688_v50  ;;  %v9798_v62 = vld [vmem:[%s19042_s6] sm:$0xff] }
 0x5db   : > { %v9542_v48 = vsel %vm689_vm5, 1.0, %v19565_v9  ;;  %v4628_v9 = vld [vmem:[#allocation4] sm:$0xff] }
 0x5dc   : > { %v16689_v22 = vsel %vm6302_vm2, %v8662_v41, 0  ;;  %v16691_v52 = vpack.c.bf16 %v9542_v48, %v9542_v48  ;;  %6311 = vmatpush.bf16.msrb.mxu2 %v9800_v58 }
 0x5dd   : > { %19689 = vst [vmem:[#allocation118_spill] sm:$0xff] %v16689_v22  ;;  %8721 = vmatpush.bf16.msrb.mxu0 %v16689_v22  ;;  %v11162_v22 = vunpack.i.h.bf16 %v16364_v35 }
 0x5de   : > { %19690 = vst [vmem:[#allocation119_spill] sm:$0xff] %v16691_v52  ;;  %9647 = vmatmul.msk.bf16.vlgmr.msra.gmra.mxu2 %vm477_vm4, %v16691_v52  ;;  %9648 = vmatmul.msk.bf16.vlgmr.msra.gmra.mxu3 %vm477_vm4, %v16691_v52  ;;  %v4629_v52 = vld [vmem:[#allocation4 + $0x8] sm:$0xff] }
 0x5df   : > { %11774 = vrot.lane.b32.xlu1 %v11773_v49, %s12691_s14  ;;  %v9799_v49 = vld [vmem:[%s19042_s6 + $0x8] sm:$0xff] }
 0x5e0   : > { %6312 = vmatpush.bf16.msrb.mxu2 %v9799_v49  ;;  %v11161_v49 = vunpack.i.l.bf16 %v16364_v35  ;;  %v11402_v35 = vunpack.i.h.bf16 %v16573_v24  ;;  %v11481_v24 = vunpack.i.l.bf16 %v16560_v47 }
 0x5e1   : > { %v16679_v38 = vpop.permute.xlu2 %11659  ;;  %v16681_v34 = vpop.permute.xlu1 %11564 }
 0x5e2   : > { %v16687_v8 = vpop.permute.xlu0 %11589 }
 0x5e4   : > { %6313 = vmatpush.bf16.msrb.mxu2 %v9798_v62  ;;  %v5942_v62 = vsel %vm477_vm4, %v4629_v52, %v11162_v22 }
 0x5e7   : > { %11789 = vrot.lane.b32.xlu1 %v16485_v60, %s12691_s14 }
 0x5e9   : > { %v16703_v41 = vpop.permute.xlu1 %11579  ;;  %v16708_v27 = vpop.permute.xlu2 %11674 }
 0x5ea   : > { %19691 = vst [vmem:[#allocation120_spill] sm:$0xff] %v16708_v27  ;;  %v16710_v2 = vpop.permute.xlu0 %11604  ;;  %v11242_v27 = vunpack.i.h.bf16 %v16358_v30 }
 0x5eb   : > { %19692 = vst [vmem:[#allocation121_spill] sm:$0xff] %v16710_v2 }
 0x5ec   : > { %v5975_v22 = vsel %vm5973_vm6, %v5942_v62, %v11242_v27  ;;  %v11561_v27 = vunpack.i.l.bf16 %v16662_v15 }
 0x5f1   : > { %v16715_v50 = vpop.permute.xlu1 %11594  ;;  %v16719_v48 = vpop.permute.xlu2 %11689 }
 0x5f2   : > { %19693 = vst [vmem:[#allocation122_spill] sm:$0xff] %v16715_v50  ;;  %v16717_v60 = vpop.permute.xlu0 %11619 }
 0x5f3   : > { %19694 = vst [vmem:[#allocation123_spill] sm:$0xff] %v16717_v60  ;;  %v11241_v60 = vunpack.i.l.bf16 %v16358_v30 }
 0x5f4   : > { %19695 = vst [vmem:[#allocation124_spill] sm:$0xff] %v16719_v48  ;;  %v5941_v48 = vsel %vm477_vm4, %v4628_v9, %v11161_v49 }
 0x5f5   : > { %v5974_v52 = vsel %vm5973_vm6, %v5941_v48, %v11241_v60 }
 0x5f9   : > { %v16721_v55 = vpop.permute.xlu1 %11609  ;;  %v16727_v2 = vpop.permute.xlu2 %11704 }
 0x5fa   : > { %19696 = vst [vmem:[#allocation125_spill] sm:$0xff] %v16721_v55  ;;  %v16723_v58 = vpop.permute.xlu0 %11634  ;;  %v11322_v55 = vunpack.i.h.bf16 %v16497_v54 }
 0x5fb   : > { %19697 = vst [vmem:[#allocation126_spill] sm:$0xff] %v16723_v58  ;;  %v11321_v58 = vunpack.i.l.bf16 %v16497_v54 }
 0x5fc   : > { %19698 = vst [vmem:[#allocation127_spill] sm:$0xff] %v16727_v2  ;;  %v6007_v30 = vsel %vm2103_vm7, %v5975_v22, %v11322_v55 }
 0x5fd   : > { %v6006_v9 = vsel %vm2103_vm7, %v5974_v52, %v11321_v58  ;;  %v6040_v54 = vsel %vm6038_vm8, %v6007_v30, %v11402_v35 }
 0x5fe   : > { %v6039_v49 = vsel %vm6038_vm8, %v6006_v9, %v11401_v12 }
 0x5ff   : > { %v6072_v60 = vsel %vm6071_vm9, %v6039_v49, %v11481_v24 }
 0x600   : > { %v6104_v35 = vsel %vm2235_vm12, %v6072_v60, %v11561_v27  ;;  %v11166_v60 = vunpack.i.l.bf16 %v16269_v18 }
 0x601   : > { %v16735_v50 = vpop.permute.xlu1 %11624  ;;  %v11720_v62 = vpop.permute.xlu2 %11719 }
 0x602   : > { %19699 = vst [vmem:[#allocation128_spill] sm:$0xff] %v16735_v50  ;;  %v16739_v2 = vpop.permute.xlu0 %11649  ;;  %v11482_v50 = vunpack.i.h.bf16 %v16560_v47  ;;  %v11722_v52 = vunpack.i.h.bf16 %v11720_v62  ;;  %v11721_v30 = vunpack.i.l.bf16 %v11720_v62  ;;  %v11167_v62 = vunpack.i.h.bf16 %v16269_v18 }
 0x604   : > { %v6073_v48 = vsel %vm6071_vm9, %v6040_v54, %v11482_v50 }
 0x605   : > { %v6105_v47 = vsel %vm2235_vm12, %v6073_v48, %v11562_v28  ;;  %v11247_v48 = vunpack.i.h.bf16 %v16433_v7 }
 0x609   : > { %v11640_v55 = vpop.permute.xlu1 %11639 }
 0x60a   : > { %v11642_v58 = vunpack.i.h.bf16 %v11640_v55  ;;  %v11641_v12 = vunpack.i.l.bf16 %v11640_v55  ;;  %v16753_v22 = vpop.permute.xlu0 %11664 }
 0x60c   : > { %v6137_v15 = vsel %vm6136_vm10, %v6104_v35, %v11641_v12  ;;  %v6138_v9 = vsel %vm6136_vm10, %v6105_v47, %v11642_v58  ;;  %v11246_v58 = vunpack.i.l.bf16 %v16433_v7  ;;  %v11327_v12 = vunpack.i.h.bf16 %v16517_v23 }
 0x60d   : > { %v6170_v49 = vsel %vm6169_vm11, %v6137_v15, %v11721_v30  ;;  %v6171_v50 = vsel %vm6169_vm11, %v6138_v9, %v11722_v52  ;;  %v11326_v35 = vunpack.i.l.bf16 %v16517_v23  ;;  %v5943_v52 = vsel %vm477_vm4, %v16273_v33, %v11166_v60 }
 0x60e   : > { %v6202_v54 = vpack.c.bf16 %v6171_v50, %v6170_v49  ;;  %v5944_v30 = vsel %vm477_vm4, %v16271_v13, %v11167_v62  ;;  %v5976_v9 = vsel %vm5973_vm6, %v5943_v52, %v11246_v58  ;;  %v11487_v23 = vunpack.i.h.bf16 %v16616_v45 }
 0x60f   : > { %v5977_v18 = vsel %vm5973_vm6, %v5944_v30, %v11247_v48  ;;  %v6008_v7 = vsel %vm2103_vm7, %v5976_v9, %v11326_v35  ;;  %v11486_v50 = vunpack.i.l.bf16 %v16616_v45  ;;  %v11406_v33 = vunpack.i.l.bf16 %v16504_v31 }
 0x610   : > { %9665 = vmatmul.msk.bf16.vlgmr.msrb.gmra.mxu2 %vm3932_vm0, %v6202_v54  ;;  %v6009_v49 = vsel %vm2103_vm7, %v5977_v18, %v11327_v12  ;;  %v11407_v54 = vunpack.i.h.bf16 %v16504_v31  ;;  %v11567_v13 = vunpack.i.h.bf16 %v16681_v34  ;;  %v11566_v62 = vunpack.i.l.bf16 %v16681_v34 }
 0x611   : > { %v16762_v24 = vpop.permute.xlu1 %11654  ;;  %v6041_v60 = vsel %vm6038_vm8, %v6008_v7, %v11406_v33  ;;  %v11647_v31 = vunpack.i.h.bf16 %v16666_v16  ;;  %v11646_v30 = vunpack.i.l.bf16 %v16666_v16 }
 0x612   : > { %v16764_v55 = vpop.permute.xlu0 %11679  ;;  %v6042_v48 = vsel %vm6038_vm8, %v6009_v49, %v11407_v54  ;;  %v6074_v58 = vsel %vm6071_vm9, %v6041_v60, %v11486_v50  ;;  %v11172_v50 = vunpack.i.h.bf16 %v16356_v57 }
 0x613   : > { %v6075_v12 = vsel %vm6071_vm9, %v6042_v48, %v11487_v23  ;;  %v6106_v35 = vsel %vm2235_vm12, %v6074_v58, %v11566_v62  ;;  %v11171_v23 = vunpack.i.l.bf16 %v16356_v57  ;;  %v11251_v62 = vunpack.i.l.bf16 %v16455_v61 }
 0x614   : > { %v6107_v45 = vsel %vm2235_vm12, %v6075_v12, %v11567_v13  ;;  %v6139_v7 = vsel %vm6136_vm10, %v6106_v35, %v11646_v30  ;;  %v11252_v13 = vunpack.i.h.bf16 %v16455_v61  ;;  %v5946_v48 = vsel %vm477_vm4, %v16304_v19, %v11172_v50 }
 0x615   : > { %v6140_v49 = vsel %vm6136_vm10, %v6107_v45, %v11647_v31  ;;  %v5945_v60 = vsel %vm477_vm4, %v16306_v1, %v11171_v23  ;;  %v11412_v35 = vunpack.i.h.bf16 %v16564_v42  ;;  %v11411_v45 = vunpack.i.l.bf16 %v16564_v42 }
 0x616   : > { %v5978_v57 = vsel %vm5973_vm6, %v5945_v60, %v11251_v62  ;;  %v5979_v12 = vsel %vm5973_vm6, %v5946_v48, %v11252_v13  ;;  %v11332_v61 = vunpack.i.h.bf16 %v16441_v21  ;;  %v11331_v31 = vunpack.i.l.bf16 %v16441_v21 }
 0x617   : > { %v11492_v30 = vunpack.i.h.bf16 %v16633_v0  ;;  %v11491_v1 = vunpack.i.l.bf16 %v16633_v0  ;;  %v11651_v21 = vunpack.i.l.bf16 %v16739_v2  ;;  %v11572_v50 = vunpack.i.h.bf16 %v16622_v53 }
 0x618   : > { %v6010_v19 = vsel %vm2103_vm7, %v5978_v57, %v11331_v31  ;;  %v11571_v0 = vunpack.i.l.bf16 %v16622_v53  ;;  %v11177_v48 = vunpack.i.h.bf16 %v16386_v29  ;;  %v11176_v57 = vunpack.i.l.bf16 %v16386_v29 }
 0x619   : > { %v16766_v27 = vpop.permute.xlu1 %11669  ;;  %v11257_v53 = vunpack.i.h.bf16 %v16376_v3  ;;  %v11336_v31 = vunpack.i.l.bf16 %v16508_v46 }
 0x61a   : > { %v16768_v28 = vpop.permute.xlu0 %11694 }
 0x621   : > { %v16776_v47 = vpop.permute.xlu1 %11684 }
 0x622   : > { %v16782_v15 = vpop.permute.xlu0 %11709 }
 0x629   : > { %v16800_v52 = vpop.permute.xlu1 %11699 }
 0x62a   : > { %v11725_v18 = vpop.permute.xlu0 %11724 }
 0x62b   : > { %v11727_v34 = vunpack.i.h.bf16 %v11725_v18  ;;  %v11726_v9 = vunpack.i.l.bf16 %v11725_v18  ;;  %v6011_v18 = vsel %vm2103_vm7, %v5979_v12, %v11332_v61  ;;  %v11337_v61 = vunpack.i.h.bf16 %v16508_v46 }
 0x62d   : > { %v6172_v54 = vsel %vm6169_vm11, %v6139_v7, %v11726_v9  ;;  %v6173_v33 = vsel %vm6169_vm11, %v6140_v49, %v11727_v34  ;;  %v6043_v34 = vsel %vm6038_vm8, %v6010_v19, %v11411_v45  ;;  %v6044_v9 = vsel %vm6038_vm8, %v6011_v18, %v11412_v35  ;;  %v12575_v19 = vld [vmem:[#allocation4 + $0x48] sm:$0xff]  ;;  %v12576_v18 = vld [vmem:[#allocation4 + $0x50] sm:$0xff] }
 0x62e   : > { %v6203_v16 = vpack.c.bf16 %v6173_v33, %v6172_v54  ;;  %v6076_v7 = vsel %vm6071_vm9, %v6043_v34, %v11491_v1  ;;  %v6077_v42 = vsel %vm6071_vm9, %v6044_v9, %v11492_v30  ;;  %v11652_v49 = vunpack.i.h.bf16 %v16739_v2 }
 0x62f   : > { %v6108_v13 = vsel %vm2235_vm12, %v6076_v7, %v11571_v0  ;;  %v6109_v62 = vsel %vm2235_vm12, %v6077_v42, %v11572_v50  ;;  %v11256_v35 = vunpack.i.l.bf16 %v16376_v3  ;;  %v11417_v30 = vunpack.i.h.bf16 %v16584_v63 }
 0x630   : > { %9666 = vmatmul.msk.bf16.gmra.mxu2 %vm3932_vm0, %v6203_v16  ;;  %v6141_v16 = vsel %vm6136_vm10, %v6108_v13, %v11651_v21  ;;  %v6142_v60 = vsel %vm6136_vm10, %v6109_v62, %v11652_v49  ;;  %v11416_v1 = vunpack.i.l.bf16 %v16584_v63  ;;  %v5947_v29 = vsel %vm477_vm4, %v12575_v19, %v11176_v57  ;;  %v11735_v62 = vpop.permute.xlu2 %11734 }
 0x631   : > { %v16817_v58 = vpop.permute.xlu1 %11714  ;;  %v5948_v34 = vsel %vm477_vm4, %v12576_v18, %v11177_v48  ;;  %v5980_v9 = vsel %vm5973_vm6, %v5947_v29, %v11256_v35  ;;  %v11577_v49 = vunpack.i.h.bf16 %v16673_v25  ;;  %v11576_v21 = vunpack.i.l.bf16 %v16673_v25  ;;  %v12578_v29 = vld [vmem:[#allocation4 + $0x68] sm:$0xff] }
 0x632   : > { %v5981_v3 = vsel %vm5973_vm6, %v5948_v34, %v11257_v53  ;;  %v6012_v46 = vsel %vm2103_vm7, %v5980_v9, %v11336_v31  ;;  %v11497_v50 = vunpack.i.h.bf16 %v16571_v44  ;;  %v11496_v0 = vunpack.i.l.bf16 %v16571_v44 }
 0x633   : > { %v6013_v7 = vsel %vm2103_vm7, %v5981_v3, %v11337_v61  ;;  %v6045_v42 = vsel %vm6038_vm8, %v6012_v46, %v11416_v1  ;;  %v11737_v57 = vunpack.i.h.bf16 %v11735_v62  ;;  %v11181_v53 = vunpack.i.l.bf16 %v16287_v5  ;;  %v12577_v1 = vld [vmem:[#allocation4 + $0x60] sm:$0xff] }
 0x634   : > { %v6046_v63 = vsel %vm6038_vm8, %v6013_v7, %v11417_v30  ;;  %v11262_v35 = vunpack.i.h.bf16 %v16445_v51  ;;  %v11342_v61 = vunpack.i.h.bf16 %v16528_v11  ;;  %v11341_v31 = vunpack.i.l.bf16 %v16528_v11 }
 0x635   : > { %v6079_v13 = vsel %vm6071_vm9, %v6046_v63, %v11497_v50  ;;  %v5949_v19 = vsel %vm477_vm4, %v12577_v1, %v11181_v53  ;;  %v11502_v3 = vunpack.i.h.bf16 %v16626_v14  ;;  %v11501_v11 = vunpack.i.l.bf16 %v16626_v14  ;;  %v12580_v53 = vld [vmem:[#allocation4 + $0x78] sm:$0xff] }
 0x636   : > { %v11422_v7 = vunpack.i.h.bf16 %v16515_v6  ;;  %v11421_v46 = vunpack.i.l.bf16 %v16515_v6  ;;  %v11581_v63 = vunpack.i.l.bf16 %v16703_v41  ;;  %v11507_v1 = vunpack.i.h.bf16 %v16642_v37 }
 0x639   : > { %v11730_v23 = vpop.permute.xlu1 %11729 }
 0x63a   : > { %v11732_v54 = vunpack.i.h.bf16 %v11730_v23  ;;  %v11731_v33 = vunpack.i.l.bf16 %v11730_v23  ;;  %v11657_v23 = vunpack.i.h.bf16 %v16762_v24 }
 0x63c   : > { %v6174_v2 = vsel %vm6169_vm11, %v6141_v16, %v11731_v33  ;;  %v6175_v12 = vsel %vm6169_vm11, %v6142_v60, %v11732_v54  ;;  %v11656_v54 = vunpack.i.l.bf16 %v16762_v24  ;;  %v6078_v33 = vsel %vm6071_vm9, %v6045_v42, %v11496_v0 }
 0x63d   : > { %v6204_v45 = vpack.c.bf16 %v6175_v12, %v6174_v2  ;;  %v6110_v16 = vsel %vm2235_vm12, %v6078_v33, %v11576_v21  ;;  %v6111_v60 = vsel %vm2235_vm12, %v6079_v13, %v11577_v49  ;;  %v11736_v2 = vunpack.i.l.bf16 %v11735_v62  ;;  %v11740_v49 = vpop.permute.xlu0 %11739 }
 0x63e   : > { %v6143_v48 = vsel %vm6136_vm10, %v6110_v16, %v11656_v54  ;;  %v6144_v25 = vsel %vm6136_vm10, %v6111_v60, %v11657_v23  ;;  %v11182_v24 = vunpack.i.h.bf16 %v16287_v5  ;;  %v11582_v42 = vunpack.i.h.bf16 %v16703_v41 }
 0x63f   : > { %v6176_v44 = vsel %vm6169_vm11, %v6143_v48, %v11736_v2  ;;  %v6177_v12 = vsel %vm6169_vm11, %v6144_v25, %v11737_v57  ;;  %v11742_v33 = vunpack.i.h.bf16 %v11740_v49  ;;  %v11741_v6 = vunpack.i.l.bf16 %v11740_v49 }
 0x640   : > { %9667 = vmatmul.msk.bf16.gmra.mxu2 %vm3932_vm0, %v6204_v45  ;;  %v11261_v45 = vunpack.i.l.bf16 %v16445_v51  ;;  %v6205_v30 = vpack.c.bf16 %v6177_v12, %v6176_v44  ;;  %v5950_v18 = vsel %vm477_vm4, %v12578_v29, %v11182_v24  ;;  %v11662_v13 = vunpack.i.h.bf16 %v16679_v38 }
 0x641   : > { %v5983_v34 = vsel %vm5973_vm6, %v5950_v18, %v11262_v35  ;;  %v11661_v41 = vunpack.i.l.bf16 %v16679_v38  ;;  %v11187_v25 = vunpack.i.h.bf16 %v16374_v56  ;;  %v11186_v57 = vunpack.i.l.bf16 %v16374_v56  ;;  %v12579_v38 = vld [vmem:[#allocation4 + $0x80] sm:$0xff] }
 0x642   : > { %v5982_v5 = vsel %vm5973_vm6, %v5949_v19, %v11261_v45  ;;  %v6015_v51 = vsel %vm2103_vm7, %v5983_v34, %v11342_v61  ;;  %v11267_v2 = vunpack.i.h.bf16 %v16469_v59  ;;  %v11266_v44 = vunpack.i.l.bf16 %v16469_v59  ;;  %v11745_v34 = vpop.permute.xlu1 %11744 }
 0x643   : > { %v6014_v9 = vsel %vm2103_vm7, %v5982_v5, %v11341_v31  ;;  %v6048_v50 = vsel %vm6038_vm8, %v6015_v51, %v11422_v7  ;;  %v5952_v24 = vsel %vm477_vm4, %v12579_v38, %v11187_v25  ;;  %v5951_v35 = vsel %vm477_vm4, %v12580_v53, %v11186_v57 }
 0x644   : > { %v6047_v21 = vsel %vm6038_vm8, %v6014_v9, %v11421_v46  ;;  %v6081_v23 = vsel %vm6071_vm9, %v6048_v50, %v11502_v3  ;;  %v5984_v45 = vsel %vm5973_vm6, %v5951_v35, %v11266_v44  ;;  %v5985_v61 = vsel %vm5973_vm6, %v5952_v24, %v11267_v2 }
 0x645   : > { %v6080_v0 = vsel %vm6071_vm9, %v6047_v21, %v11501_v11  ;;  %v6113_v54 = vsel %vm2235_vm12, %v6081_v23, %v11582_v42  ;;  %v11427_v56 = vunpack.i.h.bf16 %v16575_v43  ;;  %v11426_v31 = vunpack.i.l.bf16 %v16575_v43 }
 0x646   : > { %v6112_v14 = vsel %vm2235_vm12, %v6080_v0, %v11581_v63  ;;  %v6146_v16 = vsel %vm6136_vm10, %v6113_v54, %v11662_v13  ;;  %v11347_v59 = vunpack.i.h.bf16 %v16453_v4  ;;  %v11506_v19 = vunpack.i.l.bf16 %v16642_v37 }
 0x647   : > { %v6145_v62 = vsel %vm6136_vm10, %v6112_v14, %v11661_v41  ;;  %v6179_v48 = vsel %vm6169_vm11, %v6146_v16, %v11742_v33  ;;  %v11666_v3 = vunpack.i.l.bf16 %v16753_v22  ;;  %v11587_v37 = vunpack.i.h.bf16 %v16631_v32  ;;  %v12581_v16 = vld [vmem:[#allocation4 + $0x98] sm:$0xff] }
 0x648   : > { %v6178_v60 = vsel %vm6169_vm11, %v6145_v62, %v11741_v6  ;;  %v6017_v18 = vsel %vm2103_vm7, %v5985_v61, %v11347_v59  ;;  %v11586_v11 = vunpack.i.l.bf16 %v16631_v32  ;;  %v11747_v7 = vunpack.i.h.bf16 %v11745_v34 }
 0x649   : > { %v6206_v12 = vpack.c.bf16 %v6179_v48, %v6178_v60  ;;  %v6050_v9 = vsel %vm6038_vm8, %v6017_v18, %v11427_v56  ;;  %v11746_v46 = vunpack.i.l.bf16 %v11745_v34  ;;  %v11192_v32 = vunpack.i.h.bf16 %v16399_v10  ;;  %v12582_v48 = vld [vmem:[#allocation4 + $0x90] sm:$0xff] }
 0x64a   : > { %v6083_v51 = vsel %vm6071_vm9, %v6050_v9, %v11507_v1  ;;  %v11191_v23 = vunpack.i.l.bf16 %v16399_v10  ;;  %v11272_v14 = vunpack.i.h.bf16 %v16392_v39  ;;  %v11271_v54 = vunpack.i.l.bf16 %v16392_v39 }
 0x64b   : > { %v6115_v49 = vsel %vm2235_vm12, %v6083_v51, %v11587_v37  ;;  %v11352_v33 = vunpack.i.h.bf16 %v16519_v17  ;;  %v11351_v6 = vunpack.i.l.bf16 %v16519_v17  ;;  %v11432_v41 = vunpack.i.h.bf16 %v16595_v40  ;;  %v12583_v37 = vld [vmem:[#allocation4 + $0xb0] sm:$0xff] }
 0x64c   : > { %v11431_v62 = vunpack.i.l.bf16 %v16595_v40  ;;  %v5954_v60 = vsel %vm477_vm4, %v12581_v16, %v11192_v32  ;;  %v5953_v25 = vsel %vm477_vm4, %v12582_v48, %v11191_v23  ;;  %v11591_v38 = vunpack.i.l.bf16 %v16687_v8  ;;  %v19703_v23 = vld [vmem:[#allocation122_spill] sm:$0xff] }
 0x64d   : > { %v5986_v39 = vsel %vm5973_vm6, %v5953_v25, %v11271_v54  ;;  %v5987_v57 = vsel %vm5973_vm6, %v5954_v60, %v11272_v14  ;;  %v11512_v24 = vunpack.i.h.bf16 %v16582_v20  ;;  %v11511_v53 = vunpack.i.l.bf16 %v16582_v20 }
 0x64e   : > { %v6019_v17 = vsel %vm2103_vm7, %v5987_v57, %v11352_v33  ;;  %v6018_v2 = vsel %vm2103_vm7, %v5986_v39, %v11351_v6  ;;  %v11672_v35 = vunpack.i.h.bf16 %v16766_v27  ;;  %v11196_v34 = vunpack.i.l.bf16 %v16302_v36  ;;  %v11755_v33 = vpop.permute.xlu0 %11754 }
 0x64f   : > { %v6051_v44 = vsel %vm6038_vm8, %v6018_v2, %v11431_v62  ;;  %v6052_v40 = vsel %vm6038_vm8, %v6019_v17, %v11432_v41  ;;  %v11276_v9 = vunpack.i.l.bf16 %v16457_v26  ;;  %v11597_v14 = vunpack.i.h.bf16 %v19703_v23 }
 0x650   : > { %9668 = vmatmul.msk.bf16.gmra.mxu2 %vm3932_vm0, %v6205_v30  ;;  %v11346_v30 = vunpack.i.l.bf16 %v16453_v4  ;;  %v11667_v4 = vunpack.i.h.bf16 %v16753_v22  ;;  %v6084_v61 = vsel %vm6071_vm9, %v6051_v44, %v11511_v53  ;;  %v6085_v56 = vsel %vm6071_vm9, %v6052_v40, %v11512_v24  ;;  %v19706_v53 = vld [vmem:[#allocation86_spill] sm:$0xff] }
 0x651   : > { %v6116_v59 = vsel %vm2235_vm12, %v6084_v61, %v11591_v38  ;;  %v11596_v54 = vunpack.i.l.bf16 %v19703_v23  ;;  %v11757_v48 = vunpack.i.h.bf16 %v11755_v33  ;;  %v11756_v25 = vunpack.i.l.bf16 %v11755_v33 }
 0x652   : > { %v6016_v29 = vsel %vm2103_vm7, %v5984_v45, %v11346_v30  ;;  %v6148_v50 = vsel %vm6136_vm10, %v6115_v49, %v11667_v4  ;;  %v11671_v45 = vunpack.i.l.bf16 %v16766_v27  ;;  %v11197_v27 = vunpack.i.h.bf16 %v16302_v36  ;;  %v19701_v49 = vld [vmem:[#allocation109_spill] sm:$0xff] }
 0x653   : > { %v6049_v5 = vsel %vm6038_vm8, %v6016_v29, %v11426_v31  ;;  %v6181_v0 = vsel %vm6169_vm11, %v6148_v50, %v11747_v7  ;;  %v11750_v31 = vpop.permute.xlu2 %11749  ;;  %v12584_v7 = vld [vmem:[#allocation4 + $0xa8] sm:$0xff]  ;;  %v11516_v50 = vunpack.i.l.bf16 %v19701_v49 }
 0x654   : > { %v6082_v43 = vsel %vm6071_vm9, %v6049_v5, %v11506_v19  ;;  %v6149_v1 = vsel %vm6136_vm10, %v6116_v59, %v11671_v45  ;;  %v11752_v19 = vunpack.i.h.bf16 %v11750_v31  ;;  %v11751_v29 = vunpack.i.l.bf16 %v11750_v31  ;;  %v12586_v59 = vld [vmem:[#allocation4 + $0xc0] sm:$0xff] }
 0x655   : > { %v6114_v63 = vsel %vm2235_vm12, %v6082_v43, %v11586_v11  ;;  %v11277_v5 = vunpack.i.h.bf16 %v16457_v26  ;;  %v19700_v43 = vld [vmem:[#allocation94_spill] sm:$0xff]  ;;  %v5956_v11 = vsel %vm477_vm4, %v12583_v37, %v11197_v27  ;;  %v11281_v45 = vunpack.i.l.bf16 %v19706_v53  ;;  %v11760_v37 = vpop.permute.xlu1 %11759 }
 0x656   : > { %v6147_v21 = vsel %vm6136_vm10, %v6114_v63, %v11666_v3  ;;  %v6182_v20 = vsel %vm6169_vm11, %v6149_v1, %v11751_v29  ;;  %v11357_v51 = vunpack.i.h.bf16 %v19700_v43  ;;  %v11356_v4 = vunpack.i.l.bf16 %v19700_v43 }
 0x657   : > { %v6180_v22 = vsel %vm6169_vm11, %v6147_v21, %v11746_v46  ;;  %v5955_v46 = vsel %vm477_vm4, %v12584_v7, %v11196_v34  ;;  %v11517_v21 = vunpack.i.h.bf16 %v19701_v49 }
 0x658   : > { %v6207_v13 = vpack.c.bf16 %v6181_v0, %v6180_v22  ;;  %v5988_v36 = vsel %vm5973_vm6, %v5955_v46, %v11276_v9  ;;  %v19702_v22 = vld [vmem:[#allocation91_spill] sm:$0xff] }
 0x659   : > { %v6020_v63 = vsel %vm2103_vm7, %v5988_v36, %v11356_v4  ;;  %v11437_v0 = vunpack.i.h.bf16 %v19702_v22  ;;  %v11436_v32 = vunpack.i.l.bf16 %v19702_v22  ;;  %v11682_v36 = vunpack.i.h.bf16 %v16764_v55 }
 0x65a   : > { %v11761_v22 = vunpack.i.l.bf16 %v11760_v37 }
 0x65b   : > { %v6053_v6 = vsel %vm6038_vm8, %v6020_v63, %v11436_v32  ;;  %v11681_v63 = vunpack.i.l.bf16 %v16764_v55  ;;  %v19711_v55 = vld [vmem:[#allocation79_spill] sm:$0xff] }
 0x65c   : > { %v6086_v41 = vsel %vm6071_vm9, %v6053_v6, %v11516_v50  ;;  %v11762_v50 = vunpack.i.h.bf16 %v11760_v37 }
 0x65d   : > { %v6118_v16 = vsel %vm2235_vm12, %v6086_v41, %v11596_v54  ;;  %v11206_v41 = vunpack.i.l.bf16 %v19711_v55 }
 0x660   : > { %9669 = vmatmul.msk.bf16.gmra.mxu2 %vm3932_vm0, %v6206_v12  ;;  %v11592_v12 = vunpack.i.h.bf16 %v16687_v8 }
 0x661   : > { %v4480_v42 = vpop.f32.mrf.mxu2 }
 0x662   : > { %4497 = vst [vmem:[%s16935_s24] sm:$0xff] %v4480_v42  ;;  %v6117_v30 = vsel %vm2235_vm12, %v6085_v56, %v11592_v12  ;;  %v5989_v42 = vsel %vm5973_vm6, %v5956_v11, %v11277_v5  ;;  %v19705_v12 = vld [vmem:[#allocation72_spill] sm:$0xff]  ;;  %v12585_v56 = vld [vmem:[#allocation4 + $0xc8] sm:$0xff]  ;;  %v19709_v5 = vld [vmem:[#allocation113_spill] sm:$0xff] }
 0x663   : > { %v6150_v8 = vsel %vm6136_vm10, %v6117_v30, %v11672_v35  ;;  %v6021_v26 = vsel %vm2103_vm7, %v5989_v42, %v11357_v51  ;;  %v11202_v38 = vunpack.i.h.bf16 %v19705_v12  ;;  %v11201_v24 = vunpack.i.l.bf16 %v19705_v12  ;;  %v12588_v12 = vld [vmem:[#allocation4 + $0xd8] sm:$0xff] }
 0x664   : > { %v6183_v18 = vsel %vm6169_vm11, %v6150_v8, %v11752_v19  ;;  %v11282_v35 = vunpack.i.h.bf16 %v19706_v53  ;;  %v19707_v19 = vld [vmem:[#allocation100_spill] sm:$0xff]  ;;  %v11522_v9 = vunpack.i.h.bf16 %v19709_v5  ;;  %v11521_v43 = vunpack.i.l.bf16 %v19709_v5 }
 0x665   : > { %v6208_v3 = vpack.c.bf16 %v6183_v18, %v6182_v20  ;;  %v5958_v31 = vsel %vm477_vm4, %v12585_v56, %v11202_v38  ;;  %v5957_v30 = vsel %vm477_vm4, %v12586_v59, %v11201_v24  ;;  %v11442_v29 = vunpack.i.h.bf16 %v19707_v19  ;;  %v19708_v18 = vld [vmem:[#allocation83_spill] sm:$0xff] }
 0x666   : > { %v5990_v1 = vsel %vm5973_vm6, %v5957_v30, %v11281_v45  ;;  %v5991_v8 = vsel %vm5973_vm6, %v5958_v31, %v11282_v35  ;;  %v11441_v20 = vunpack.i.l.bf16 %v19707_v19  ;;  %v11362_v27 = vunpack.i.h.bf16 %v19708_v18  ;;  %v19715_v31 = vld [vmem:[#allocation121_spill] sm:$0xff] }
 0x667   : > { %v11361_v34 = vunpack.i.l.bf16 %v19708_v18  ;;  %v5959_v38 = vsel %vm477_vm4, %v12588_v12, %v11206_v41  ;;  %v11607_v59 = vunpack.i.h.bf16 %v19715_v31  ;;  %v11606_v30 = vunpack.i.l.bf16 %v19715_v31 }
 0x669   : > { %v4482_v10 = vpop.f32.mrf.mxu2  ;;  %v6022_v4 = vsel %vm2103_vm7, %v5990_v1, %v11361_v34  ;;  %v19716_v1 = vld [vmem:[#allocation101_spill] sm:$0xff]  ;;  %v11765_v34 = vpop.permute.xlu2 %11764 }
 0x66a   : > { %v19704_v10 = vld [vmem:[#allocation120_spill] sm:$0xff]  ;;  %v6055_v11 = vsel %vm6038_vm8, %v6022_v4, %v11441_v20  ;;  %v11526_v19 = vunpack.i.l.bf16 %v19716_v1  ;;  %v11686_v20 = vunpack.i.l.bf16 %v16776_v47  ;;  %v11767_v4 = vunpack.i.h.bf16 %v11765_v34 }
 0x66b   : > { %v11677_v39 = vunpack.i.h.bf16 %v19704_v10  ;;  %v11676_v57 = vunpack.i.l.bf16 %v19704_v10  ;;  %v6088_v46 = vsel %vm6071_vm9, %v6055_v11, %v11521_v43 }
 0x66d   : > { %v6151_v17 = vsel %vm6136_vm10, %v6118_v16, %v11676_v57  ;;  %v19714_v57 = vld [vmem:[#allocation104_spill] sm:$0xff] }
 0x66e   : > { %v6184_v44 = vsel %vm6169_vm11, %v6151_v17, %v11756_v25  ;;  %v11447_v17 = vunpack.i.h.bf16 %v19714_v57 }
 0x670   : > { %9670 = vmatmul.msk.bf16.gmra.mxu2 %vm3932_vm0, %v6207_v13  ;;  %v6054_v13 = vsel %vm6038_vm8, %v6021_v26, %v11437_v0  ;;  %v19710_v26 = vld [vmem:[#allocation110_spill] sm:$0xff] }
 0x671   : > { %v6087_v62 = vsel %vm6071_vm9, %v6054_v13, %v11517_v21  ;;  %v11602_v49 = vunpack.i.h.bf16 %v19710_v26  ;;  %v11601_v21 = vunpack.i.l.bf16 %v19710_v26  ;;  %v11207_v13 = vunpack.i.h.bf16 %v19711_v55  ;;  %v19719_v26 = vld [vmem:[#allocation97_spill] sm:$0xff]  ;;  %v19720_v55 = vld [vmem:[#allocation111_spill] sm:$0xff] }
 0x672   : > { %v6119_v60 = vsel %vm2235_vm12, %v6087_v62, %v11597_v14  ;;  %v19712_v62 = vld [vmem:[#allocation71_spill] sm:$0xff]  ;;  %v11531_v41 = vunpack.i.l.bf16 %v19720_v55 }
 0x673   : > { %v6152_v2 = vsel %vm6136_vm10, %v6119_v60, %v11677_v39  ;;  %v6120_v0 = vsel %vm2235_vm12, %v6088_v46, %v11601_v21  ;;  %v11287_v16 = vunpack.i.h.bf16 %v19712_v62  ;;  %v11286_v60 = vunpack.i.l.bf16 %v19712_v62  ;;  %v19721_v62 = vld [vmem:[#allocation93_spill] sm:$0xff] }
 0x674   : > { %v6185_v40 = vsel %vm6169_vm11, %v6152_v2, %v11757_v48  ;;  %v6153_v23 = vsel %vm6136_vm10, %v6120_v0, %v11681_v63  ;;  %v19713_v48 = vld [vmem:[#allocation92_spill] sm:$0xff]  ;;  %v11446_v2 = vunpack.i.l.bf16 %v19714_v57  ;;  %v11371_v21 = vunpack.i.l.bf16 %v19719_v26  ;;  %v11770_v57 = vpop.permute.xlu0 %11769 }
 0x675   : > { %v6209_v61 = vpack.c.bf16 %v6185_v40, %v6184_v44  ;;  %v6186_v33 = vsel %vm6169_vm11, %v6153_v23, %v11761_v22  ;;  %v11367_v25 = vunpack.i.h.bf16 %v19713_v48  ;;  %v11366_v10 = vunpack.i.l.bf16 %v19713_v48  ;;  %v12587_v44 = vld [vmem:[#allocation4 + $0xe0] sm:$0xff]  ;;  %v12589_v22 = vld [vmem:[#allocation4 + $0xf8] sm:$0xff] }
 0x676   : > { %v5960_v40 = vsel %vm477_vm4, %v12587_v44, %v11207_v13  ;;  %v5992_v24 = vsel %vm5973_vm6, %v5959_v38, %v11286_v60  ;;  %v11532_v13 = vunpack.i.h.bf16 %v19720_v55  ;;  %v11451_v60 = vunpack.i.l.bf16 %v19721_v62  ;;  %v19722_v48 = vld [vmem:[#allocation125_spill] sm:$0xff] }
 0x677   : > { %v5993_v53 = vsel %vm5973_vm6, %v5960_v40, %v11287_v16  ;;  %v6024_v45 = vsel %vm2103_vm7, %v5992_v24, %v11366_v10  ;;  %v11452_v16 = vunpack.i.h.bf16 %v19721_v62  ;;  %v11611_v10 = vunpack.i.l.bf16 %v19722_v48 }
 0x678   : > { %v6025_v35 = vsel %vm2103_vm7, %v5993_v53, %v11367_v25  ;;  %v11612_v25 = vunpack.i.h.bf16 %v19722_v48  ;;  %v11772_v24 = vunpack.i.h.bf16 %v11770_v57  ;;  %v11771_v53 = vunpack.i.l.bf16 %v11770_v57 }
 0x679   : > { %v6058_v56 = vsel %vm6038_vm8, %v6025_v35, %v11447_v17  ;;  %v19723_v35 = vld [vmem:[#allocation124_spill] sm:$0xff] }
 0x680   : > { %9671 = vmatmul.msk.bf16.gmra.mxu2 %vm3932_vm0, %v6208_v3  ;;  %v6023_v3 = vsel %vm2103_vm7, %v5991_v8, %v11362_v27  ;;  %v11527_v8 = vunpack.i.h.bf16 %v19716_v1 }
 0x681   : > { %v6056_v7 = vsel %vm6038_vm8, %v6023_v3, %v11442_v29  ;;  %v11687_v29 = vunpack.i.h.bf16 %v16776_v47  ;;  %v11766_v3 = vunpack.i.l.bf16 %v11765_v34  ;;  %v19717_v47 = vld [vmem:[#allocation39_spill] sm:$0xff] }
 0x682   : > { %v6089_v42 = vsel %vm6071_vm9, %v6056_v7, %v11522_v9  ;;  %v6091_v27 = vsel %vm6071_vm9, %v6058_v56, %v11527_v8  ;;  %v11212_v7 = vunpack.i.h.bf16 %v19717_v47  ;;  %v11211_v46 = vunpack.i.l.bf16 %v19717_v47  ;;  %v19724_v8 = vld [vmem:[#allocation57_spill] sm:$0xff] }
 0x683   : > { %v6121_v32 = vsel %vm2235_vm12, %v6089_v42, %v11602_v49  ;;  %v6123_v9 = vsel %vm2235_vm12, %v6091_v27, %v11607_v59  ;;  %v19718_v42 = vld [vmem:[#allocation84_spill] sm:$0xff]  ;;  %v11372_v49 = vunpack.i.h.bf16 %v19719_v26 }
 0x684   : > { %v6154_v14 = vsel %vm6136_vm10, %v6121_v32, %v11682_v36  ;;  %v11292_v36 = vunpack.i.h.bf16 %v19718_v42  ;;  %v11291_v63 = vunpack.i.l.bf16 %v19718_v42  ;;  %v5962_v0 = vsel %vm477_vm4, %v12589_v22, %v11212_v7  ;;  %v12590_v32 = vld [vmem:[#allocation4 + $0xf0] sm:$0xff]  ;;  %v19727_v7 = vld [vmem:[#allocation85_spill] sm:$0xff]  ;;  %v11775_v22 = vpop.permute.xlu1 %11774 }
 0x685   : > { %v6187_v6 = vsel %vm6169_vm11, %v6154_v14, %v11762_v50  ;;  %v5961_v23 = vsel %vm477_vm4, %v12590_v32, %v11211_v46  ;;  %v11377_v46 = vunpack.i.h.bf16 %v19727_v7  ;;  %v11376_v42 = vunpack.i.l.bf16 %v19727_v7 }
 0x686   : > { %v6210_v39 = vpack.c.bf16 %v6187_v6, %v6186_v33  ;;  %v5995_v14 = vsel %vm5973_vm6, %v5962_v0, %v11292_v36  ;;  %v19728_v36 = vld [vmem:[#allocation116_spill] sm:$0xff]  ;;  %v11776_v62 = vunpack.i.l.bf16 %v11775_v22 }
 0x687   : > { %v6027_v6 = vsel %vm2103_vm7, %v5995_v14, %v11372_v49  ;;  %v11536_v26 = vunpack.i.l.bf16 %v19728_v36 }
 0x690   : > { %9672 = vmatmul.msk.bf16.gmra.mxu2 %vm3932_vm0, %v6209_v61  ;;  %v6057_v61 = vsel %vm6038_vm8, %v6024_v45, %v11446_v2  ;;  %v6060_v2 = vsel %vm6038_vm8, %v6027_v6, %v11452_v16  ;;  %v11692_v45 = vunpack.i.h.bf16 %v19723_v35  ;;  %v19729_v6 = vld [vmem:[#allocation112_spill] sm:$0xff] }
 0x691   : > { %v6090_v18 = vsel %vm6071_vm9, %v6057_v61, %v11526_v19  ;;  %v6093_v40 = vsel %vm6071_vm9, %v6060_v2, %v11532_v13  ;;  %v11691_v61 = vunpack.i.l.bf16 %v19723_v35  ;;  %v11217_v19 = vunpack.i.h.bf16 %v19724_v8 }
 0x692   : > { %v6122_v5 = vsel %vm2235_vm12, %v6090_v18, %v11606_v30  ;;  %v6125_v38 = vsel %vm2235_vm12, %v6093_v40, %v11612_v25  ;;  %v11617_v55 = vunpack.i.h.bf16 %v19729_v6  ;;  %v11616_v13 = vunpack.i.l.bf16 %v19729_v6  ;;  %v19738_v6 = vld [vmem:[#allocation99_spill] sm:$0xff] }
 0x693   : > { %v6315_v51 = vpop.f32.mrf.mxu2  ;;  %v6155_v43 = vsel %vm6136_vm10, %v6122_v5, %v11686_v20  ;;  %v6158_v31 = vsel %vm6136_vm10, %v6125_v38, %v11692_v45  ;;  %v19725_v20 = vld [vmem:[#allocation89_spill] sm:$0xff]  ;;  %v12591_v5 = vld [vmem:[#allocation4 + $0x110] sm:$0xff]  ;;  %v19732_v38 = vld [vmem:[#allocation95_spill] sm:$0xff] }
 0x694   : > { %6427 = vrot.lane.b32.xlu0 %v6315_v51, %s12686_s26  ;;  %v6156_v51 = vsel %vm6136_vm10, %v6123_v9, %v11687_v29  ;;  %v6188_v37 = vsel %vm6169_vm11, %v6155_v43, %v11766_v3  ;;  %v6191_v1 = vsel %vm6169_vm11, %v6158_v31, %v11772_v24  ;;  %v11216_v29 = vunpack.i.l.bf16 %v19724_v8  ;;  %v12592_v43 = vld [vmem:[#allocation4 + $0x108] sm:$0xff] }
 0x695   : > { %v6189_v11 = vsel %vm6169_vm11, %v6156_v51, %v11767_v4  ;;  %v11297_v18 = vunpack.i.h.bf16 %v19725_v20  ;;  %v11296_v27 = vunpack.i.l.bf16 %v19725_v20  ;;  %v5964_v9 = vsel %vm477_vm4, %v12591_v5, %v11217_v19  ;;  %v19733_v45 = vld [vmem:[#allocation107_spill] sm:$0xff] }
 0x696   : > { %v6211_v50 = vpack.c.bf16 %v6189_v11, %v6188_v37  ;;  %v5963_v51 = vsel %vm477_vm4, %v12592_v43, %v11216_v29  ;;  %v19726_v37 = vld [vmem:[#allocation102_spill] sm:$0xff]  ;;  %v11382_v24 = vunpack.i.h.bf16 %v19732_v38  ;;  %v12593_v31 = vld [vmem:[#allocation4 + $0x128] sm:$0xff] }
 0x697   : > { %v5996_v4 = vsel %vm5973_vm6, %v5963_v51, %v11296_v27  ;;  %v5997_v3 = vsel %vm5973_vm6, %v5964_v9, %v11297_v18  ;;  %v11457_v11 = vunpack.i.h.bf16 %v19726_v37  ;;  %v11456_v47 = vunpack.i.l.bf16 %v19726_v37  ;;  %v19735_v51 = vld [vmem:[#allocation103_spill] sm:$0xff] }
 0x698   : > { %v11702_v37 = vunpack.i.h.bf16 %v16800_v52 }
 0x69b   : > { %v6317_v54 = vpop.f32.mrf.mxu2 }
 0x69c   : > { %6429 = vrot.lane.b32.xlu1 %v6317_v54, %s12686_s26  ;;  %v5994_v54 = vsel %vm5973_vm6, %v5961_v23, %v11291_v63  ;;  %v11537_v63 = vunpack.i.h.bf16 %v19728_v36 }
 0x69d   : > { %v6026_v33 = vsel %vm2103_vm7, %v5994_v54, %v11371_v21  ;;  %v6028_v21 = vsel %vm2103_vm7, %v5996_v4, %v11376_v42  ;;  %v11697_v54 = vunpack.i.h.bf16 %v16768_v28  ;;  %v11542_v4 = vunpack.i.h.bf16 %v19735_v51 }
 0x69e   : > { %v6059_v17 = vsel %vm6038_vm8, %v6026_v33, %v11451_v60  ;;  %v6061_v0 = vsel %vm6038_vm8, %v6028_v21, %v11456_v47  ;;  %v11696_v33 = vunpack.i.l.bf16 %v16768_v28  ;;  %v19730_v28 = vld [vmem:[#allocation80_spill] sm:$0xff] }
 0x69f   : > { %v6092_v44 = vsel %vm6071_vm9, %v6059_v17, %v11531_v41  ;;  %v6094_v23 = vsel %vm6071_vm9, %v6061_v0, %v11536_v26  ;;  %v11777_v41 = vunpack.i.h.bf16 %v11775_v22  ;;  %v11222_v17 = vunpack.i.h.bf16 %v19730_v28  ;;  %v19736_v0 = vld [vmem:[#allocation26_spill] sm:$0xff] }
 0x6a0   : > { %9673 = vmatmul.msk.bf16.gmra.mxu2 %vm3932_vm0, %v6210_v39  ;;  %v6124_v12 = vsel %vm2235_vm12, %v6092_v44, %v11611_v10  ;;  %v6126_v16 = vsel %vm2235_vm12, %v6094_v23, %v11616_v13  ;;  %v11221_v2 = vunpack.i.l.bf16 %v19730_v28  ;;  %v19731_v44 = vld [vmem:[#allocation56_spill] sm:$0xff]  ;;  %v11226_v23 = vunpack.i.l.bf16 %v19736_v0  ;;  %v19739_v28 = vld [vmem:[#allocation114_spill] sm:$0xff] }
 0x6a1   : > { %v6157_v56 = vsel %vm6136_vm10, %v6124_v12, %v11691_v61  ;;  %v6159_v48 = vsel %vm6136_vm10, %v6126_v16, %v11696_v33  ;;  %v11302_v40 = vunpack.i.h.bf16 %v19731_v44  ;;  %v11301_v12 = vunpack.i.l.bf16 %v19731_v44  ;;  %v19740_v44 = vld [vmem:[#allocation96_spill] sm:$0xff] }
 0x6a2   : > { %v6190_v30 = vsel %vm6169_vm11, %v6157_v56, %v11771_v53  ;;  %v6192_v10 = vsel %vm6169_vm11, %v6159_v48, %v11776_v62  ;;  %v11381_v53 = vunpack.i.l.bf16 %v19732_v38  ;;  %v11462_v61 = vunpack.i.h.bf16 %v19733_v45  ;;  %v12595_v62 = vld [vmem:[#allocation4 + $0x140] sm:$0xff]  ;;  %v19741_v38 = vld [vmem:[#allocation128_spill] sm:$0xff] }
 0x6a3   : > { %v6212_v34 = vpack.c.bf16 %v6191_v1, %v6190_v30  ;;  %v11461_v56 = vunpack.i.l.bf16 %v19733_v45  ;;  %v12594_v30 = vld [vmem:[#allocation4 + $0x120] sm:$0xff]  ;;  %v11386_v13 = vunpack.i.l.bf16 %v19738_v6  ;;  %v11785_v45 = vpop.permute.xlu0 %11784 }
 0x6a4   : > { %v5965_v1 = vsel %vm477_vm4, %v12594_v30, %v11221_v2  ;;  %v11546_v2 = vunpack.i.l.bf16 %v19739_v28 }
 0x6a5   : > { %v5998_v8 = vsel %vm5973_vm6, %v5965_v1, %v11301_v12  ;;  %v11466_v12 = vunpack.i.l.bf16 %v19740_v44 }
 0x6a6   : > { %v6030_v20 = vsel %vm2103_vm7, %v5998_v8, %v11381_v53  ;;  %v11626_v53 = vunpack.i.l.bf16 %v19741_v38  ;;  %v11787_v8 = vunpack.i.h.bf16 %v11785_v45 }
 0x6a7   : > { %v6063_v18 = vsel %vm6038_vm8, %v6030_v20, %v11461_v56 }
 0x6b0   : > { %9674 = vmatmul.msk.bf16.gmra.mxu2 %vm3932_vm0, %v6211_v50  ;;  %v6029_v50 = vsel %vm2103_vm7, %v5997_v3, %v11377_v46  ;;  %v11541_v3 = vunpack.i.l.bf16 %v19735_v51  ;;  %v11780_v46 = vpop.permute.xlu2 %11779  ;;  %v19743_v51 = vld [vmem:[#allocation55_spill] sm:$0xff] }
 0x6b1   : > { %v6062_v32 = vsel %vm6038_vm8, %v6029_v50, %v11457_v11  ;;  %v11701_v11 = vunpack.i.l.bf16 %v16800_v52  ;;  %v11781_v21 = vunpack.i.l.bf16 %v11780_v46 }
 0x6b2   : > { %v6095_v14 = vsel %vm6071_vm9, %v6062_v32, %v11537_v63  ;;  %v6096_v47 = vsel %vm6071_vm9, %v6063_v18, %v11541_v3  ;;  %v11227_v32 = vunpack.i.h.bf16 %v19736_v0  ;;  %v11231_v3 = vunpack.i.l.bf16 %v19743_v51 }
 0x6b3   : > { %v6320_v39 = vpop.f32.mrf.mxu2  ;;  %v6127_v60 = vsel %vm2235_vm12, %v6095_v14, %v11617_v55  ;;  %v19737_v14 = vld [vmem:[#allocation87_spill] sm:$0xff]  ;;  %v11387_v55 = vunpack.i.h.bf16 %v19738_v6 }
 0x6b4   : > { %6431 = vrot.lane.b32.xlu2 %v6320_v39, %s12686_s26  ;;  %v6160_v25 = vsel %vm6136_vm10, %v6127_v60, %v11697_v54  ;;  %v11307_v54 = vunpack.i.h.bf16 %v19737_v14  ;;  %v11306_v33 = vunpack.i.l.bf16 %v19737_v14  ;;  %v5968_v16 = vsel %vm477_vm4, %v12595_v62, %v11227_v32  ;;  %v12596_v60 = vld [vmem:[#allocation4 + $0x138] sm:$0xff] }
 0x6b5   : > { %v6193_v39 = vsel %vm6169_vm11, %v6160_v25, %v11777_v41  ;;  %v5967_v48 = vsel %vm477_vm4, %v12596_v60, %v11226_v23  ;;  %v19747_v23 = vld [vmem:[#allocation117_spill] sm:$0xff] }
 0x6b6   : > { %v6213_v35 = vpack.c.bf16 %v6193_v39, %v6192_v10  ;;  %v6001_v25 = vsel %vm5973_vm6, %v5968_v16, %v11307_v54  ;;  %v6000_v10 = vsel %vm5973_vm6, %v5967_v48, %v11306_v33  ;;  %v11552_v14 = vunpack.i.h.bf16 %v19747_v23 }
 0x6b7   : > { %v6032_v39 = vsel %vm2103_vm7, %v6000_v10, %v11386_v13  ;;  %v11551_v54 = vunpack.i.l.bf16 %v19747_v23  ;;  %v11790_v13 = vpop.permute.xlu1 %11789  ;;  %v11712_v48 = vunpack.i.h.bf16 %v16782_v15  ;;  %v19748_v10 = vld [vmem:[#allocation115_spill] sm:$0xff] }
 0x6bb   : > { %v6322_v59 = vpop.f32.mrf.mxu2 }
 0x6bc   : > { %6433 = vrot.lane.b32.xlu0 %v6322_v59, %s12686_s26  ;;  %v5966_v59 = vsel %vm477_vm4, %v12593_v31, %v11222_v17  ;;  %v11547_v17 = vunpack.i.h.bf16 %v19739_v28  ;;  %v11792_v28 = vunpack.i.h.bf16 %v11790_v13 }
 0x6bd   : > { %v5999_v19 = vsel %vm5973_vm6, %v5966_v59, %v11302_v40  ;;  %v11467_v40 = vunpack.i.h.bf16 %v19740_v44 }
 0x6be   : > { %v6031_v29 = vsel %vm2103_vm7, %v5999_v19, %v11382_v24  ;;  %v11627_v24 = vunpack.i.h.bf16 %v19741_v38  ;;  %v11786_v19 = vunpack.i.l.bf16 %v11785_v45 }
 0x6bf   : > { %v6064_v27 = vsel %vm6038_vm8, %v6031_v29, %v11462_v61  ;;  %v6065_v61 = vsel %vm6038_vm8, %v6032_v39, %v11466_v12  ;;  %v19742_v29 = vld [vmem:[#allocation127_spill] sm:$0xff]  ;;  %v11632_v39 = vunpack.i.h.bf16 %v19748_v10 }
 0x6c0   : > { %9675 = vmatmul.msk.bf16.gmra.mxu2 %vm3932_vm0, %v6212_v34  ;;  %v19734_v34 = vld [vmem:[#allocation123_spill] sm:$0xff]  ;;  %v6097_v7 = vsel %vm6071_vm9, %v6064_v27, %v11542_v4  ;;  %v6098_v31 = vsel %vm6071_vm9, %v6065_v61, %v11546_v2  ;;  %v11707_v20 = vunpack.i.h.bf16 %v19742_v29  ;;  %v11706_v18 = vunpack.i.l.bf16 %v19742_v29  ;;  %v19749_v2 = vld [vmem:[#allocation82_spill] sm:$0xff]  ;;  %v19750_v61 = vld [vmem:[#allocation81_spill] sm:$0xff] }
 0x6c1   : > { %v11622_v5 = vunpack.i.h.bf16 %v19734_v34  ;;  %v11621_v9 = vunpack.i.l.bf16 %v19734_v34  ;;  %v6130_v30 = vsel %vm2235_vm12, %v6098_v31, %v11626_v53  ;;  %v11232_v4 = vunpack.i.h.bf16 %v19743_v51  ;;  %v12599_v31 = vld [vmem:[#allocation4 + $0x168] sm:$0xff] }
 0x6c2   : > { %v6163_v27 = vsel %vm6136_vm10, %v6130_v30, %v11706_v18  ;;  %v11236_v44 = vunpack.i.l.bf16 %v19749_v2  ;;  %v11237_v38 = vunpack.i.h.bf16 %v19749_v2  ;;  %v19751_v30 = vld [vmem:[#allocation98_spill] sm:$0xff] }
 0x6c3   : > { %v6325_v49 = vpop.f32.mrf.mxu2  ;;  %v6128_v42 = vsel %vm2235_vm12, %v6096_v47, %v11621_v9  ;;  %v6129_v36 = vsel %vm2235_vm12, %v6097_v7, %v11622_v5  ;;  %v6196_v5 = vsel %vm6169_vm11, %v6163_v27, %v11786_v19  ;;  %v11397_v29 = vunpack.i.h.bf16 %v19751_v30  ;;  %v19759_v2 = vld [vmem:[#allocation10_spill] sm:$0xff] }
 0x6c4   : > { %6435 = vrot.lane.b32.xlu1 %v6325_v49, %s12686_s26  ;;  %v6161_v63 = vsel %vm6136_vm10, %v6128_v42, %v11701_v11  ;;  %v6162_v26 = vsel %vm6136_vm10, %v6129_v36, %v11702_v37  ;;  %v11782_v49 = vunpack.i.h.bf16 %v11780_v46  ;;  %v19744_v37 = vld [vmem:[#allocation90_spill] sm:$0xff]  ;;  %v12597_v46 = vld [vmem:[#allocation4 + $0x158] sm:$0xff]  ;;  %v12598_v36 = vld [vmem:[#allocation4 + $0x150] sm:$0xff] }
 0x6c5   : > { %v6194_v52 = vsel %vm6169_vm11, %v6161_v63, %v11781_v21  ;;  %v11312_v11 = vunpack.i.h.bf16 %v19744_v37  ;;  %v11311_v47 = vunpack.i.l.bf16 %v19744_v37  ;;  %v5970_v42 = vsel %vm477_vm4, %v12597_v46, %v11232_v4  ;;  %v19745_v21 = vld [vmem:[#allocation105_spill] sm:$0xff]  ;;  %v19753_v37 = vld [vmem:[#allocation126_spill] sm:$0xff] }
 0x6c6   : > { %v6195_v22 = vsel %vm6169_vm11, %v6162_v26, %v11782_v49  ;;  %v5969_v63 = vsel %vm477_vm4, %v12598_v36, %v11231_v3 }
 0x6c7   : > { %v6214_v41 = vpack.c.bf16 %v6195_v22, %v6194_v52  ;;  %v6002_v26 = vsel %vm5973_vm6, %v5969_v63, %v11311_v47  ;;  %v6003_v49 = vsel %vm5973_vm6, %v5970_v42, %v11312_v11  ;;  %v11471_v52 = vunpack.i.l.bf16 %v19745_v21  ;;  %v19746_v22 = vld [vmem:[#allocation88_spill] sm:$0xff]  ;;  %v19754_v47 = vld [vmem:[#allocation106_spill] sm:$0xff] }
 0x6c8   : > { %v11392_v0 = vunpack.i.h.bf16 %v19746_v22  ;;  %v11391_v32 = vunpack.i.l.bf16 %v19746_v22  ;;  %v11636_v11 = vunpack.i.l.bf16 %v19753_v37  ;;  %v11637_v42 = vunpack.i.h.bf16 %v19753_v37  ;;  %v19766_v37 = vld [vmem:[#allocation29_spill] sm:$0xff] }
 0x6c9   : > { %v11557_v63 = vunpack.i.h.bf16 %v19754_v47 }
 0x6ca   : > { %v6034_v6 = vsel %vm2103_vm7, %v6002_v26, %v11391_v32  ;;  %v11717_v26 = vunpack.i.h.bf16 %v16817_v58 }
 0x6cb   : > { %v6327_v57 = vpop.f32.mrf.mxu2 }
 0x6cc   : > { %6437 = vrot.lane.b32.xlu2 %v6327_v57, %s12686_s26  ;;  %v6033_v57 = vsel %vm2103_vm7, %v6001_v25, %v11387_v55  ;;  %v6035_v55 = vsel %vm2103_vm7, %v6003_v49, %v11392_v0  ;;  %v11711_v25 = vunpack.i.l.bf16 %v16782_v15  ;;  %v11716_v49 = vunpack.i.l.bf16 %v16817_v58 }
 0x6cd   : > { %v6066_v56 = vsel %vm6038_vm8, %v6033_v57, %v11467_v40  ;;  %v11631_v57 = vunpack.i.l.bf16 %v19748_v10 }
 0x6ce   : > { %v6099_v59 = vsel %vm6071_vm9, %v6066_v56, %v11547_v17  ;;  %v11791_v17 = vunpack.i.l.bf16 %v11790_v13  ;;  %v11316_v56 = vunpack.i.l.bf16 %v19750_v61 }
 0x6cf   : > { %v6131_v1 = vsel %vm2235_vm12, %v6099_v59, %v11627_v24  ;;  %v5971_v59 = vsel %vm477_vm4, %v12599_v31, %v11236_v44 }
 0x6d0   : > { %9676 = vmatmul.msk.bf16.gmra.mxu2 %vm3932_vm0, %v6213_v35  ;;  %v6164_v34 = vsel %vm6136_vm10, %v6131_v1, %v11707_v20  ;;  %v11396_v1 = vunpack.i.l.bf16 %v19751_v30  ;;  %v19752_v20 = vld [vmem:[#allocation108_spill] sm:$0xff] }
 0x6d1   : > { %v6197_v9 = vsel %vm6169_vm11, %v6164_v34, %v11787_v8  ;;  %v12600_v8 = vld [vmem:[#allocation4 + $0x170] sm:$0xff]  ;;  %v11476_v18 = vunpack.i.l.bf16 %v19752_v20  ;;  %v11317_v34 = vunpack.i.h.bf16 %v19750_v61 }
 0x6d2   : > { %v6215_v7 = vpack.c.bf16 %v6197_v9, %v6196_v5  ;;  %v5972_v19 = vsel %vm477_vm4, %v12600_v8, %v11237_v38  ;;  %v11477_v5 = vunpack.i.h.bf16 %v19752_v20  ;;  %v6004_v9 = vsel %vm5973_vm6, %v5971_v59, %v11316_v56  ;;  %v19761_v30 = vld [vmem:[#allocation36_spill] sm:$0xff]  ;;  %v19763_v8 = vld [vmem:[#allocation18_spill] sm:$0xff] }
 0x6d3   : > { %v6330_v43 = vpop.f32.mrf.mxu2  ;;  %v6036_v51 = vsel %vm2103_vm7, %v6004_v9, %v11396_v1 }
 0x6d4   : > { %6439 = vrot.lane.b32.xlu0 %v6330_v43, %s12686_s26  ;;  %v6069_v3 = vsel %vm6038_vm8, %v6036_v51, %v11476_v18 }
 0x6db   : > { %v6332_v50 = vpop.f32.mrf.mxu2 }
 0x6dc   : > { %6441 = vrot.lane.b32.xlu1 %v6332_v50, %s12686_s26  ;;  %v11472_v50 = vunpack.i.h.bf16 %v19745_v21  ;;  %v11795_v21 = vpop.permute.xlu2 %11794 }
 0x6dd   : > { %v11797_v23 = vunpack.i.h.bf16 %v11795_v21 }
 0x6de   : > { %v6068_v62 = vsel %vm6038_vm8, %v6035_v55, %v11472_v50  ;;  %v19756_v55 = vmov 0.0  }
 0x6df   : > { %v6101_v60 = vsel %vm6071_vm9, %v6068_v62, %v11552_v14  ;;  %v11796_v14 = vunpack.i.l.bf16 %v11795_v21 }
 0x6e0   : > { %9677 = vmatmul.msk.bf16.gmra.mxu2 %vm3932_vm0, %v6214_v41  ;;  %v6067_v41 = vsel %vm6038_vm8, %v6034_v6, %v11471_v52  ;;  %v6133_v12 = vsel %vm2235_vm12, %v6101_v60, %v11632_v39 }
 0x6e1   : > { %v6100_v16 = vsel %vm6071_vm9, %v6067_v41, %v11551_v54  ;;  %v6166_v53 = vsel %vm6136_vm10, %v6133_v12, %v11712_v48  ;;  %v19755_v54 = vld [vmem:[#allocation74_spill] sm:$0xff] }
 0x6e2   : > { %v6132_v40 = vsel %vm2235_vm12, %v6100_v16, %v11631_v57 }
 0x6e3   : > { %v6335_v35 = vpop.f32.mrf.mxu2  ;;  %v6165_v24 = vsel %vm6136_vm10, %v6132_v40, %v11711_v25  ;;  %v19760_v40 = vld [vmem:[#allocation75_spill] sm:$0xff] }
 0x6e4   : > { %6443 = vrot.lane.b32.xlu2 %v6335_v35, %s12686_s26  ;;  %v6198_v15 = vsel %vm6169_vm11, %v6165_v24, %v11791_v17  ;;  %v6199_v35 = vsel %vm6169_vm11, %v6166_v53, %v11792_v28  ;;  %v19757_v28 = vld [vmem:[#allocation78_spill] sm:$0xff] }
 0x6e5   : > { %v6216_v27 = vpack.c.bf16 %v6199_v35, %v6198_v15 }
 0x6eb   : > { %v6337_v43 = vpop.f32.mrf.mxu2 }
 0x6ec   : > { %6445 = vrot.lane.b32.xlu0 %v6337_v43, %s12686_s26  ;;  %v6005_v43 = vsel %vm5973_vm6, %v5972_v19, %v11317_v34 }
 0x6ed   : > { %v6037_v4 = vsel %vm2103_vm7, %v6005_v43, %v11397_v29 }
 0x6ee   : > { %v6070_v46 = vsel %vm6038_vm8, %v6037_v4, %v11477_v5 }
 0x6ef   : > { %v6103_v52 = vsel %vm6071_vm9, %v6070_v46, %v11557_v63 }
 0x6f0   : > { %9678 = vmatmul.msk.bf16.gmra.mxu2 %vm3932_vm0, %v6215_v7  ;;  %v11556_v7 = vunpack.i.l.bf16 %v19754_v47  ;;  %v6135_v32 = vsel %vm2235_vm12, %v6103_v52, %v11637_v42  ;;  %v19768_v47 = vld [vmem:[#allocation22_spill] sm:$0xff] }
 0x6f1   : > { %v6168_v58 = vsel %vm6136_vm10, %v6135_v32, %v11717_v26 }
 0x6f2   : > { %v6102_v50 = vsel %vm6071_vm9, %v6069_v3, %v11556_v7  ;;  %v6201_v62 = vsel %vm6169_vm11, %v6168_v58, %v11797_v23 }
 0x6f3   : > { %v6340_v33 = vpop.f32.mrf.mxu2  ;;  %v6134_v22 = vsel %vm2235_vm12, %v6102_v50, %v11636_v11  ;;  %v19769_v50 = vld [vmem:[#allocation50_spill] sm:$0xff] }
 0x6f4   : > { %6447 = vrot.lane.b32.xlu1 %v6340_v33, %s12686_s26  ;;  %v6167_v6 = vsel %vm6136_vm10, %v6134_v22, %v11716_v49  ;;  %v19771_v22 = vld [vmem:[#allocation46_spill] sm:$0xff] }
 0x6f5   : > { %v6200_v41 = vsel %vm6169_vm11, %v6167_v6, %v11796_v14 }
 0x6f6   : > { %v6217_v57 = vpack.c.bf16 %v6201_v62, %v6200_v41  ;;  %v19772_v62 = vld [vmem:[#allocation11_spill] sm:$0xff] }
 0x6fb   : > { %v6342_v45 = vpop.f32.mrf.mxu2 }
 0x6fc   : > { %6449 = vrot.lane.b32.xlu2 %v6342_v45, %s12686_s26 }
 0x700   : > { %9679 = vmatmul.msk.bf16.gmra.mxu2 %vm3932_vm0, %v6216_v27  ;;  %v19765_v27 = vld [vmem:[#allocation73_spill] sm:$0xff] }
 0x703   : > { %v6345_v36 = vpop.f32.mrf.mxu2 }
 0x704   : > { %6451 = vrot.lane.b32.xlu0 %v6345_v36, %s12686_s26  ;;  %v19807_v36 = vld [vmem:[#allocation42_spill] sm:$0xff] }
 0x706   : > { %v6428_v0 = vpop.permute.xlu0 %6427 }
 0x707   : > { %v6523_v33 = vadd.f32 %v6428_v0, %v19755_v54 }
 0x709   : > { %vm6555_vm3 = vcmp.gt.f32.partialorder %v6523_v33, 0.5  ;;  %v6791_v16 = vmul.f32 0.2, %v6523_v33 }
 0x70a   : > { %v17265_v13 = vsel %vm6555_vm3, 1.0, %v19756_v55 }
 0x70b   : > { %v6823_v60 = vsub.f32 1.0, %v17265_v13  ;;  %v6347_v48 = vpop.f32.mrf.mxu2 }
 0x70c   : > { %6453 = vrot.lane.b32.xlu1 %v6347_v48, %s12686_s26 }
 0x70d   : > { %v6855_v25 = vmul.f32 %v6823_v60, %v6791_v16  ;;  %v19774_v60 = vld [vmem:[#allocation60_spill] sm:$0xff] }
 0x70e   : > { %v6432_v10 = vpop.permute.xlu2 %6431  ;;  %v6430_v39 = vpop.permute.xlu1 %6429 }
 0x70f   : > { %v17273_v17 = vsel %vm477_vm4, %v19757_v28, %v6855_v25  ;;  %v6525_v44 = vadd.f32 %v6432_v10, %v19759_v2  ;;  %v6524_v12 = vadd.f32 %v6430_v39, %v19760_v40  ;;  %v19829_v2 = vld [vmem:[#allocation13_spill] sm:$0xff] }
 0x710   : > { %19758 = vst [vmem:[#allocation94_spill] sm:$0xff] %v17273_v17  ;;  %9680 = vmatmul.msk.bf16.gmra.mxu2 %vm3932_vm0, %v6217_v57 }
 0x711   : > { %vm6557_vm13 = vcmp.gt.f32.partialorder %v6525_v44, 0.5  ;;  %vm6556_vm14 = vcmp.gt.f32.partialorder %v6524_v12, 0.5  ;;  %v6793_v24 = vmul.f32 0.2, %v6525_v44  ;;  %v6792_v35 = vmul.f32 0.2, %v6524_v12 }
 0x712   : > { %v17279_v38 = vsel %vm6557_vm13, 1.0, %v19756_v55  ;;  %v17282_v53 = vsel %vm6556_vm14, 1.0, %v19756_v55  ;;  %v19775_v12 = vld [vmem:[#allocation20_spill] sm:$0xff] }
 0x713   : > { %v6825_v15 = vsub.f32 1.0, %v17279_v38  ;;  %v6824_v61 = vsub.f32 1.0, %v17282_v53  ;;  %v6350_v56 = vpop.f32.mrf.mxu2 }
 0x714   : > { %6455 = vrot.lane.b32.xlu2 %v6350_v56, %s12686_s26 }
 0x715   : > { %v6857_v31 = vmul.f32 %v6825_v15, %v6793_v24  ;;  %v6856_v59 = vmul.f32 %v6824_v61, %v6792_v35  ;;  %v19777_v15 = vld [vmem:[#allocation14_spill] sm:$0xff] }
 0x717   : > { %v17291_v1 = vsel %vm477_vm4, %v19761_v30, %v6857_v31  ;;  %v17295_v19 = vsel %vm477_vm4, %v19763_v8, %v6856_v59 }
 0x718   : > { %19762 = vst [vmem:[#allocation109_spill] sm:$0xff] %v17291_v1 }
 0x719   : > { %19764 = vst [vmem:[#allocation91_spill] sm:$0xff] %v17295_v19  ;;  %v19810_v19 = vld [vmem:[#allocation40_spill] sm:$0xff] }
 0x71b   : > { %v6352_v29 = vpop.f32.mrf.mxu2 }
 0x71c   : > { %6457 = vrot.lane.b32.xlu0 %v6352_v29, %s12686_s26  ;;  %v19778_v29 = vld [vmem:[#allocation41_spill] sm:$0xff] }
 0x723   : > { %v6355_v20 = vpop.f32.mrf.mxu2 }
 0x724   : > { %6459 = vrot.lane.b32.xlu1 %v6355_v20, %s12686_s26 }
 0x726   : > { %v6438_v18 = vpop.permute.xlu2 %6437 }
 0x727   : > { %v6528_v34 = vadd.f32 %v6438_v18, %v19765_v27  ;;  %v19780_v18 = vld [vmem:[#allocation37_spill] sm:$0xff] }
 0x729   : > { %vm6560_vm15 = vcmp.gt.f32.partialorder %v6528_v34, 0.5  ;;  %v6796_v9 = vmul.f32 0.2, %v6528_v34 }
 0x72a   : > { %v17301_v5 = vsel %vm6560_vm15, 1.0, %v19756_v55 }
 0x72b   : > { %v6828_v43 = vsub.f32 1.0, %v17301_v5  ;;  %v6357_v51 = vpop.f32.mrf.mxu2 }
 0x72c   : > { %6461 = vrot.lane.b32.xlu2 %v6357_v51, %s12686_s26 }
 0x72d   : > { %v6860_v4 = vmul.f32 %v6828_v43, %v6796_v9 }
 0x72e   : > { %v6434_v3 = vpop.permute.xlu0 %6433 }
 0x72f   : > { %v17307_v11 = vsel %vm477_vm4, %v19766_v37, %v6860_v4  ;;  %v6526_v7 = vadd.f32 %v6434_v3, %v19768_v47 }
 0x730   : > { %19767 = vst [vmem:[#allocation122_spill] sm:$0xff] %v17307_v11 }
 0x731   : > { %vm6558_vm1 = vcmp.gt.f32.partialorder %v6526_v7, 0.5  ;;  %v6794_v42 = vmul.f32 0.2, %v6526_v7 }
 0x732   : > { %v17311_v46 = vsel %vm6558_vm1, 1.0, %v19756_v55 }
 0x733   : > { %v6826_v63 = vsub.f32 1.0, %v17311_v46  ;;  %v6360_v26 = vpop.f32.mrf.mxu2 }
 0x734   : > { %6463 = vrot.lane.b32.xlu0 %v6360_v26, %s12686_s26  ;;  %v19783_v26 = vld [vmem:[#allocation48_spill] sm:$0xff] }
 0x735   : > { %v6858_v49 = vmul.f32 %v6826_v63, %v6794_v42  ;;  %v19781_v42 = vld [vmem:[#allocation76_spill] sm:$0xff] }
 0x736   : > { %v6436_v21 = vpop.permute.xlu1 %6435 }
 0x737   : > { %v17319_v52 = vsel %vm477_vm4, %v19769_v50, %v6858_v49  ;;  %v6527_v0 = vadd.f32 %v6436_v21, %v19771_v22 }
 0x738   : > { %19770 = vst [vmem:[#allocation120_spill] sm:$0xff] %v17319_v52 }
 0x739   : > { %vm6559_vm2 = vcmp.gt.f32.partialorder %v6527_v0, 0.5  ;;  %v6795_v23 = vmul.f32 0.2, %v6527_v0 }
 0x73a   : > { %v17323_v32 = vsel %vm6559_vm2, 1.0, %v19756_v55 }
 0x73b   : > { %v6827_v14 = vsub.f32 1.0, %v17323_v32  ;;  %v6362_v6 = vpop.f32.mrf.mxu2 }
 0x73c   : > { %6465 = vrot.lane.b32.xlu1 %v6362_v6, %s12686_s26 }
 0x73d   : > { %v6859_v58 = vmul.f32 %v6827_v14, %v6795_v23 }
 0x73e   : > { %v6444_v41 = vpop.permute.xlu2 %6443 }
 0x73f   : > { %v17331_v16 = vsel %vm477_vm4, %v19772_v62, %v6859_v58  ;;  %v6531_v48 = vadd.f32 %v6444_v41, %v19774_v60  ;;  %v19784_v58 = vld [vmem:[#allocation34_spill] sm:$0xff]  ;;  %v19786_v62 = vld [vmem:[#allocation12_spill] sm:$0xff] }
 0x740   : > { %19773 = vst [vmem:[#allocation72_spill] sm:$0xff] %v17331_v16  ;;  %v19841_v60 = vld [vmem:[#allocation70_spill] sm:$0xff] }
 0x741   : > { %vm6563_vm5 = vcmp.gt.f32.partialorder %v6531_v48, 0.5  ;;  %v6799_v10 = vmul.f32 0.2, %v6531_v48 }
 0x742   : > { %v17335_v25 = vsel %vm6563_vm5, 1.0, %v19756_v55 }
 0x743   : > { %v6831_v39 = vsub.f32 1.0, %v17335_v25  ;;  %v6365_v57 = vpop.f32.mrf.mxu2 }
 0x744   : > { %6467 = vrot.lane.b32.xlu2 %v6365_v57, %s12686_s26 }
 0x745   : > { %v6863_v28 = vmul.f32 %v6831_v39, %v6799_v10 }
 0x746   : > { %v6440_v44 = vpop.permute.xlu0 %6439 }
 0x747   : > { %v17341_v24 = vsel %vm477_vm4, %v19775_v12, %v6863_v28  ;;  %v6529_v35 = vadd.f32 %v6440_v44, %v19777_v15 }
 0x748   : > { %19776 = vst [vmem:[#allocation86_spill] sm:$0xff] %v17341_v24 }
 0x749   : > { %vm6561_vm3 = vcmp.gt.f32.partialorder %v6529_v35, 0.5  ;;  %v6797_v56 = vmul.f32 0.2, %v6529_v35 }
 0x74a   : > { %v17345_v61 = vsel %vm6561_vm3, 1.0, %v19756_v55 }
 0x74b   : > { %v6829_v31 = vsub.f32 1.0, %v17345_v61  ;;  %v6367_v59 = vpop.f32.mrf.mxu2 }
 0x74c   : > { %6469 = vrot.lane.b32.xlu0 %v6367_v59, %s12686_s26  ;;  %v19789_v59 = vld [vmem:[#allocation24_spill] sm:$0xff] }
 0x74d   : > { %v6861_v30 = vmul.f32 %v6829_v31, %v6797_v56  ;;  %v19787_v56 = vld [vmem:[#allocation38_spill] sm:$0xff] }
 0x74e   : > { %v6442_v8 = vpop.permute.xlu1 %6441 }
 0x74f   : > { %v17351_v20 = vsel %vm477_vm4, %v19778_v29, %v6861_v30  ;;  %v6530_v34 = vadd.f32 %v6442_v8, %v19780_v18 }
 0x750   : > { %19779 = vst [vmem:[#allocation100_spill] sm:$0xff] %v17351_v20 }
 0x751   : > { %vm6562_vm13 = vcmp.gt.f32.partialorder %v6530_v34, 0.5  ;;  %v6798_v43 = vmul.f32 0.2, %v6530_v34 }
 0x752   : > { %v17355_v9 = vsel %vm6562_vm13, 1.0, %v19756_v55 }
 0x753   : > { %v6830_v4 = vsub.f32 1.0, %v17355_v9  ;;  %v6370_v3 = vpop.f32.mrf.mxu2 }
 0x754   : > { %6471 = vrot.lane.b32.xlu1 %v6370_v3, %s12686_s26 }
 0x755   : > { %v6862_v37 = vmul.f32 %v6830_v4, %v6798_v43 }
 0x756   : > { %v6450_v7 = vpop.permute.xlu2 %6449 }
 0x757   : > { %v17363_v63 = vsel %vm477_vm4, %v19781_v42, %v6862_v37  ;;  %v6534_v49 = vadd.f32 %v6450_v7, %v19783_v26  ;;  %v19790_v7 = vld [vmem:[#allocation53_spill] sm:$0xff] }
 0x758   : > { %19782 = vst [vmem:[#allocation83_spill] sm:$0xff] %v17363_v63 }
 0x759   : > { %vm6566_vm14 = vcmp.gt.f32.partialorder %v6534_v49, 0.5  ;;  %v6802_v50 = vmul.f32 0.2, %v6534_v49  ;;  %v19792_v49 = vld [vmem:[#allocation25_spill] sm:$0xff] }
 0x75a   : > { %v17367_v21 = vsel %vm6566_vm14, 1.0, %v19756_v55 }
 0x75b   : > { %v6834_v0 = vsub.f32 1.0, %v17367_v21  ;;  %v6372_v23 = vpop.f32.mrf.mxu2 }
 0x75c   : > { %6473 = vrot.lane.b32.xlu2 %v6372_v23, %s12686_s26 }
 0x75d   : > { %v6866_v14 = vmul.f32 %v6834_v0, %v6802_v50 }
 0x75e   : > { %v6446_v6 = vpop.permute.xlu0 %6445 }
 0x75f   : > { %v17373_v41 = vsel %vm477_vm4, %v19784_v58, %v6866_v14  ;;  %v6532_v48 = vadd.f32 %v6446_v6, %v19786_v62 }
 0x760   : > { %19785 = vst [vmem:[#allocation113_spill] sm:$0xff] %v17373_v41 }
 0x761   : > { %vm6564_vm15 = vcmp.gt.f32.partialorder %v6532_v48, 0.5  ;;  %v6800_v39 = vmul.f32 0.2, %v6532_v48 }
 0x762   : > { %v17377_v10 = vsel %vm6564_vm15, 1.0, %v19756_v55 }
 0x763   : > { %v6832_v28 = vsub.f32 1.0, %v17377_v10  ;;  %v6375_v44 = vpop.f32.mrf.mxu2  ;;  %v6655_v40 = vpack.c.bf16 %v17377_v10, %v17335_v25 }
 0x764   : > { %6475 = vrot.lane.b32.xlu0 %v6375_v44, %s12686_s26  ;;  %v19795_v44 = vld [vmem:[#allocation77_spill] sm:$0xff] }
 0x765   : > { %v6864_v12 = vmul.f32 %v6832_v28, %v6800_v39  ;;  %v19793_v39 = vld [vmem:[#allocation15_spill] sm:$0xff] }
 0x766   : > { %v6448_v35 = vpop.permute.xlu1 %6447 }
 0x767   : > { %v17385_v31 = vsel %vm477_vm4, %v19787_v56, %v6864_v12  ;;  %v6533_v30 = vadd.f32 %v6448_v35, %v19789_v59 }
 0x768   : > { %19788 = vst [vmem:[#allocation110_spill] sm:$0xff] %v17385_v31  ;;  %v19838_v31 = vld [vmem:[#allocation33_spill] sm:$0xff] }
 0x769   : > { %vm6565_vm1 = vcmp.gt.f32.partialorder %v6533_v30, 0.5  ;;  %v6801_v29 = vmul.f32 0.2, %v6533_v30 }
 0x76a   : > { %v17389_v8 = vsel %vm6565_vm1, 1.0, %v19756_v55 }
 0x76b   : > { %v6833_v34 = vsub.f32 1.0, %v17389_v8  ;;  %v6377_v4 = vpop.f32.mrf.mxu2 }
 0x76c   : > { %6477 = vrot.lane.b32.xlu1 %v6377_v4, %s12686_s26 }
 0x76d   : > { %v6865_v3 = vmul.f32 %v6833_v34, %v6801_v29 }
 0x76e   : > { %v6456_v37 = vpop.permute.xlu2 %6455 }
 0x76f   : > { %v17397_v42 = vsel %vm477_vm4, %v19790_v7, %v6865_v3  ;;  %v6537_v50 = vadd.f32 %v6456_v37, %v19792_v49  ;;  %v19796_v3 = vld [vmem:[#allocation21_spill] sm:$0xff]  ;;  %v19798_v7 = vld [vmem:[#allocation52_spill] sm:$0xff] }
 0x770   : > { %19791 = vst [vmem:[#allocation79_spill] sm:$0xff] %v17397_v42 }
 0x771   : > { %vm6569_vm2 = vcmp.gt.f32.partialorder %v6537_v50, 0.5  ;;  %v6805_v23 = vmul.f32 0.2, %v6537_v50 }
 0x772   : > { %v17401_v0 = vsel %vm6569_vm2, 1.0, %v19756_v55 }
 0x773   : > { %v6837_v14 = vsub.f32 1.0, %v17401_v0  ;;  %v6380_v6 = vpop.f32.mrf.mxu2 }
 0x774   : > { %6479 = vrot.lane.b32.xlu2 %v6380_v6, %s12686_s26  ;;  %v6654_v6 = vpack.c.bf16 %v17355_v9, %v17345_v61 }
 0x775   : > { %v6869_v58 = vmul.f32 %v6837_v14, %v6805_v23 }
 0x776   : > { %v6452_v48 = vpop.permute.xlu0 %6451 }
 0x777   : > { %v17407_v28 = vsel %vm477_vm4, %v19793_v39, %v6869_v58  ;;  %v6535_v12 = vadd.f32 %v6452_v48, %v19795_v44 }
 0x778   : > { %19794 = vst [vmem:[#allocation71_spill] sm:$0xff] %v17407_v28 }
 0x779   : > { %vm6567_vm5 = vcmp.gt.f32.partialorder %v6535_v12, 0.5  ;;  %v6803_v56 = vmul.f32 0.2, %v6535_v12 }
 0x77a   : > { %v17411_v35 = vsel %vm6567_vm5, 1.0, %v19756_v55 }
 0x77b   : > { %v6835_v30 = vsub.f32 1.0, %v17411_v35  ;;  %v6382_v29 = vpop.f32.mrf.mxu2 }
 0x77c   : > { %6481 = vrot.lane.b32.xlu0 %v6382_v29, %s12686_s26  ;;  %v19801_v29 = vld [vmem:[#allocation32_spill] sm:$0xff] }
 0x77d   : > { %v6867_v34 = vmul.f32 %v6835_v30, %v6803_v56  ;;  %v19799_v56 = vld [vmem:[#allocation28_spill] sm:$0xff] }
 0x77e   : > { %v6454_v4 = vpop.permute.xlu1 %6453 }
 0x77f   : > { %v17417_v37 = vsel %vm477_vm4, %v19796_v3, %v6867_v34  ;;  %v6536_v50 = vadd.f32 %v6454_v4, %v19798_v7 }
 0x780   : > { %19797 = vst [vmem:[#allocation92_spill] sm:$0xff] %v17417_v37 }
 0x781   : > { %vm6568_vm3 = vcmp.gt.f32.partialorder %v6536_v50, 0.5  ;;  %v6804_v14 = vmul.f32 0.2, %v6536_v50 }
 0x782   : > { %v17421_v23 = vsel %vm6568_vm3, 1.0, %v19756_v55 }
 0x783   : > { %v6836_v58 = vsub.f32 1.0, %v17421_v23  ;;  %v6385_v48 = vpop.f32.mrf.mxu2 }
 0x784   : > { %6483 = vrot.lane.b32.xlu1 %v6385_v48, %s12686_s26 }
 0x785   : > { %v6868_v39 = vmul.f32 %v6836_v58, %v6804_v14  ;;  %v19802_v14 = vld [vmem:[#allocation49_spill] sm:$0xff] }
 0x786   : > { %v6462_v12 = vpop.permute.xlu2 %6461 }
 0x787   : > { %v17429_v30 = vsel %vm477_vm4, %v19799_v56, %v6868_v39  ;;  %v6540_v34 = vadd.f32 %v6462_v12, %v19801_v29  ;;  %v19804_v39 = vld [vmem:[#allocation30_spill] sm:$0xff]  ;;  %v6651_v12 = vpack.c.bf16 %v17282_v53, %v17265_v13 }
 0x788   : > { %19800 = vst [vmem:[#allocation104_spill] sm:$0xff] %v17429_v30 }
 0x789   : > { %vm6572_vm13 = vcmp.gt.f32.partialorder %v6540_v34, 0.5  ;;  %v6808_v3 = vmul.f32 0.2, %v6540_v34 }
 0x78a   : > { %v17433_v4 = vsel %vm6572_vm13, 1.0, %v19756_v55 }
 0x78b   : > { %v6840_v50 = vsub.f32 1.0, %v17433_v4  ;;  %v6387_v43 = vpop.f32.mrf.mxu2 }
 0x78c   : > { %6485 = vrot.lane.b32.xlu2 %v6387_v43, %s12686_s26 }
 0x78d   : > { %v6872_v33 = vmul.f32 %v6840_v50, %v6808_v3 }
 0x78e   : > { %v6458_v48 = vpop.permute.xlu0 %6457 }
 0x78f   : > { %v17439_v58 = vsel %vm477_vm4, %v19802_v14, %v6872_v33  ;;  %v6538_v56 = vadd.f32 %v6458_v48, %v19804_v39  ;;  %v19805_v48 = vld [vmem:[#allocation17_spill] sm:$0xff] }
 0x790   : > { %19803 = vst [vmem:[#allocation121_spill] sm:$0xff] %v17439_v58 }
 0x791   : > { %vm6570_vm14 = vcmp.gt.f32.partialorder %v6538_v56, 0.5  ;;  %v6806_v34 = vmul.f32 0.2, %v6538_v56  ;;  %v6652_v56 = vpack.c.bf16 %v17311_v46, %v17279_v38 }
 0x792   : > { %v17445_v57 = vsel %vm6570_vm14, 1.0, %v19756_v55 }
 0x793   : > { %v6838_v43 = vsub.f32 1.0, %v17445_v57  ;;  %v6390_v3 = vpop.f32.mrf.mxu2 }
 0x794   : > { %6683 = vrot.lane.b32.xlu2 %v6651_v12, %s12692_s22  ;;  %6487 = vrot.lane.b32.xlu0 %v6390_v3, %s12686_s26 }
 0x795   : > { %v6870_v33 = vmul.f32 %v6838_v43, %v6806_v34  ;;  %v6657_v43 = vpack.c.bf16 %v17421_v23, %v17411_v35 }
 0x796   : > { %v6460_v50 = vpop.permute.xlu1 %6459 }
 0x797   : > { %v17454_v14 = vsel %vm477_vm4, %v19805_v48, %v6870_v33  ;;  %v6539_v51 = vadd.f32 %v6460_v50, %v19807_v36  ;;  %v19808_v48 = vld [vmem:[#allocation54_spill] sm:$0xff] }
 0x798   : > { %19806 = vst [vmem:[#allocation101_spill] sm:$0xff] %v17454_v14 }
 0x799   : > { %vm6571_vm15 = vcmp.gt.f32.partialorder %v6539_v51, 0.5  ;;  %v6807_v12 = vmul.f32 0.2, %v6539_v51 }
 0x79a   : > { %v17462_v45 = vsel %vm6571_vm15, 1.0, %v19756_v55 }
 0x79b   : > { %v6839_v34 = vsub.f32 1.0, %v17462_v45  ;;  %v6392_v3 = vpop.f32.mrf.mxu2  ;;  %v6659_v47 = vpack.c.bf16 %v17433_v4, %v17462_v45 }
 0x79c   : > { %6689 = vrot.lane.b32.xlu2 %v6654_v6, %s12692_s22  ;;  %6685 = vrot.lane.b32.xlu0 %v6652_v56, %s12692_s22  ;;  %v6653_v56 = vpack.c.bf16 %v17301_v5, %v17323_v32 }
 0x79d   : > { %v6871_v33 = vmul.f32 %v6839_v34, %v6807_v12  ;;  %6489 = vrot.lane.b32.xlu1 %v6392_v3, %s12686_s26 }
 0x79e   : > { %v6468_v50 = vpop.permute.xlu2 %6467 }
 0x79f   : > { %v17472_v36 = vsel %vm477_vm4, %v19808_v48, %v6871_v33  ;;  %v6543_v51 = vadd.f32 %v6468_v50, %v19810_v19  ;;  %v19811_v50 = vld [vmem:[#allocation51_spill] sm:$0xff] }
 0x7a0   : > { %19809 = vst [vmem:[#allocation39_spill] sm:$0xff] %v17472_v36  ;;  %v19813_v36 = vld [vmem:[#allocation59_spill] sm:$0xff] }
 0x7a1   : > { %vm6575_vm1 = vcmp.gt.f32.partialorder %v6543_v51, 0.5  ;;  %v6811_v12 = vmul.f32 0.2, %v6543_v51  ;;  %v6658_v51 = vpack.c.bf16 %v17445_v57, %v17401_v0 }
 0x7a2   : > { %v17480_v6 = vsel %vm6575_vm1, 1.0, %v19756_v55 }
 0x7a3   : > { %v6843_v34 = vsub.f32 1.0, %v17480_v6 }
 0x7a4   : > { %6695 = vrot.lane.b32.xlu2 %v6657_v43, %s12692_s22  ;;  %6691 = vrot.lane.b32.xlu0 %v6655_v40, %s12692_s22  ;;  %v6656_v40 = vpack.c.bf16 %v17367_v21, %v17389_v8 }
 0x7a5   : > { %v6875_v3 = vmul.f32 %v6843_v34, %v6811_v12  ;;  %6687 = vrot.lane.b32.xlu1 %v6653_v56, %s12692_s22 }
 0x7a6   : > { %v6464_v33 = vpop.permute.xlu0 %6463 }
 0x7a7   : > { %v17490_v48 = vsel %vm477_vm4, %v19811_v50, %v6875_v3  ;;  %v6541_v52 = vadd.f32 %v6464_v33, %v19813_v36  ;;  %v19814_v3 = vld [vmem:[#allocation31_spill] sm:$0xff] }
 0x7a8   : > { %19812 = vst [vmem:[#allocation84_spill] sm:$0xff] %v17490_v48  ;;  %v19816_v50 = vld [vmem:[#allocation23_spill] sm:$0xff] }
 0x7a9   : > { %vm6573_vm2 = vcmp.gt.f32.partialorder %v6541_v52, 0.5  ;;  %v6809_v43 = vmul.f32 0.2, %v6541_v52 }
 0x7aa   : > { %v17496_v58 = vsel %vm6573_vm2, 1.0, %v19756_v55 }
 0x7ab   : > { %v6841_v56 = vsub.f32 1.0, %v17496_v58 }
 0x7ac   : > { %6697 = vrot.lane.b32.xlu0 %v6658_v51, %s12692_s22 }
 0x7ad   : > { %v6873_v12 = vmul.f32 %v6841_v56, %v6809_v43  ;;  %6693 = vrot.lane.b32.xlu1 %v6656_v40, %s12692_s22 }
 0x7ae   : > { %v6466_v34 = vpop.permute.xlu1 %6465 }
 0x7af   : > { %v17505_v33 = vsel %vm477_vm4, %v19814_v3, %v6873_v12  ;;  %v6542_v36 = vadd.f32 %v6466_v34, %v19816_v50  ;;  %v19817_v34 = vld [vmem:[#allocation43_spill] sm:$0xff] }
 0x7b0   : > { %19815 = vst [vmem:[#allocation97_spill] sm:$0xff] %v17505_v33  ;;  %v19819_v33 = vld [vmem:[#allocation62_spill] sm:$0xff] }
 0x7b1   : > { %vm6574_vm5 = vcmp.gt.f32.partialorder %v6542_v36, 0.5  ;;  %v6810_v29 = vmul.f32 0.2, %v6542_v36 }
 0x7b2   : > { %v17511_v52 = vsel %vm6574_vm5, 1.0, %v19756_v55 }
 0x7b3   : > { %v6660_v40 = vpack.c.bf16 %v17511_v52, %v17496_v58  ;;  %v6842_v43 = vsub.f32 1.0, %v17511_v52 }
 0x7b5   : > { %v6874_v56 = vmul.f32 %v6842_v43, %v6810_v29  ;;  %6699 = vrot.lane.b32.xlu1 %v6659_v47, %s12692_s22  ;;  %6701 = vrot.lane.b32.xlu2 %v6660_v40, %s12692_s22  ;;  %v19820_v43 = vld [vmem:[#allocation16_spill] sm:$0xff]  ;;  %v19822_v40 = vld [vmem:[#allocation45_spill] sm:$0xff] }
 0x7b6   : > { %v6474_v12 = vpop.permute.xlu2 %6473 }
 0x7b7   : > { %v17522_v3 = vsel %vm477_vm4, %v19817_v34, %v6874_v56  ;;  %v6546_v36 = vadd.f32 %v6474_v12, %v19819_v33 }
 0x7b8   : > { %19818 = vst [vmem:[#allocation111_spill] sm:$0xff] %v17522_v3  ;;  %v19825_v3 = vld [vmem:[#allocation58_spill] sm:$0xff] }
 0x7b9   : > { %vm6578_vm3 = vcmp.gt.f32.partialorder %v6546_v36, 0.5  ;;  %v6814_v17 = vmul.f32 0.2, %v6546_v36 }
 0x7ba   : > { %v17526_v51 = vsel %vm6578_vm3, 1.0, %v19756_v55 }
 0x7bb   : > { %v6846_v11 = vsub.f32 1.0, %v17526_v51 }
 0x7bd   : > { %v6878_v48 = vmul.f32 %v6846_v11, %v6814_v17 }
 0x7be   : > { %v6470_v29 = vpop.permute.xlu0 %6469 }
 0x7bf   : > { %v17531_v47 = vsel %vm477_vm4, %v19820_v43, %v6878_v48  ;;  %v6544_v54 = vadd.f32 %v6470_v29, %v19822_v40  ;;  %v19823_v43 = vld [vmem:[#allocation61_spill] sm:$0xff] }
 0x7c0   : > { %19821 = vst [vmem:[#allocation93_spill] sm:$0xff] %v17531_v47 }
 0x7c1   : > { %vm6576_vm13 = vcmp.gt.f32.partialorder %v6544_v54, 0.5  ;;  %v6812_v12 = vmul.f32 0.2, %v6544_v54 }
 0x7c2   : > { %v17535_v56 = vsel %vm6576_vm13, 1.0, %v19756_v55 }
 0x7c3   : > { %v6661_v36 = vpack.c.bf16 %v17535_v56, %v17480_v6  ;;  %v6844_v17 = vsub.f32 1.0, %v17535_v56 }
 0x7c5   : > { %v6876_v11 = vmul.f32 %v6844_v17, %v6812_v12  ;;  %6703 = vrot.lane.b32.xlu0 %v6661_v36, %s12692_s22 }
 0x7c6   : > { %v6472_v48 = vpop.permute.xlu1 %6471 }
 0x7c7   : > { %v17545_v29 = vsel %vm477_vm4, %v19823_v43, %v6876_v11  ;;  %v6545_v27 = vadd.f32 %v6472_v48, %v19825_v3  ;;  %v19826_v11 = vld [vmem:[#allocation8_spill] sm:$0xff] }
 0x7c8   : > { %19824 = vst [vmem:[#allocation125_spill] sm:$0xff] %v17545_v29  ;;  %v19828_v43 = vld [vmem:[#allocation64_spill] sm:$0xff] }
 0x7c9   : > { %vm6577_vm14 = vcmp.gt.f32.partialorder %v6545_v27, 0.5  ;;  %v6813_v34 = vmul.f32 0.2, %v6545_v27 }
 0x7ca   : > { %v17549_v54 = vsel %vm6577_vm14, 1.0, %v19756_v55 }
 0x7cb   : > { %v6845_v50 = vsub.f32 1.0, %v17549_v54  ;;  %v6662_v12 = vpack.c.bf16 %v17526_v51, %v17549_v54 }
 0x7cd   : > { %v6877_v36 = vmul.f32 %v6845_v50, %v6813_v34  ;;  %6705 = vrot.lane.b32.xlu1 %v6662_v12, %s12692_s22  ;;  %v19831_v34 = vld [vmem:[#allocation63_spill] sm:$0xff] }
 0x7ce   : > { %v6480_v17 = vpop.permute.xlu2 %6479 }
 0x7cf   : > { %v17559_v48 = vsel %vm477_vm4, %v19826_v11, %v6877_v36  ;;  %v6549_v1 = vadd.f32 %v6480_v17, %v19828_v43 }
 0x7d0   : > { %19827 = vst [vmem:[#allocation124_spill] sm:$0xff] %v17559_v48 }
 0x7d1   : > { %vm6581_vm15 = vcmp.gt.f32.partialorder %v6549_v1, 0.5  ;;  %v6817_v47 = vmul.f32 0.2, %v6549_v1  ;;  %v19832_v1 = vld [vmem:[#allocation9_spill] sm:$0xff] }
 0x7d2   : > { %v17563_v27 = vsel %vm6581_vm15, 1.0, %v19756_v55 }
 0x7d3   : > { %v6849_v19 = vsub.f32 1.0, %v17563_v27 }
 0x7d5   : > { %v6881_v3 = vmul.f32 %v6849_v19, %v6817_v47  ;;  %v19834_v19 = vld [vmem:[#allocation19_spill] sm:$0xff] }
 0x7d6   : > { %v6476_v29 = vpop.permute.xlu0 %6475 }
 0x7d7   : > { %v17568_v50 = vsel %vm477_vm4, %v19829_v2, %v6881_v3  ;;  %v6547_v12 = vadd.f32 %v6476_v29, %v19831_v34 }
 0x7d8   : > { %19830 = vst [vmem:[#allocation57_spill] sm:$0xff] %v17568_v50 }
 0x7d9   : > { %vm6579_vm1 = vcmp.gt.f32.partialorder %v6547_v12, 0.5  ;;  %v6815_v17 = vmul.f32 0.2, %v6547_v12 }
 0x7da   : > { %v17572_v36 = vsel %vm6579_vm1, 1.0, %v19756_v55 }
 0x7db   : > { %v6847_v11 = vsub.f32 1.0, %v17572_v36 }
 0x7dd   : > { %v6879_v48 = vmul.f32 %v6847_v11, %v6815_v17  ;;  %v19835_v11 = vld [vmem:[#allocation47_spill] sm:$0xff] }
 0x7de   : > { %v6478_v33 = vpop.permute.xlu1 %6477 }
 0x7df   : > { %v17577_v20 = vsel %vm477_vm4, %v19832_v1, %v6879_v48  ;;  %v6548_v47 = vadd.f32 %v6478_v33, %v19834_v19  ;;  %v19837_v1 = vld [vmem:[#allocation68_spill] sm:$0xff] }
 0x7e0   : > { %19833 = vst [vmem:[#allocation89_spill] sm:$0xff] %v17577_v20 }
 0x7e1   : > { %vm6580_vm2 = vcmp.gt.f32.partialorder %v6548_v47, 0.5  ;;  %v6816_v3 = vmul.f32 0.2, %v6548_v47 }
 0x7e2   : > { %v17581_v2 = vsel %vm6580_vm2, 1.0, %v19756_v55 }
 0x7e3   : > { %v6663_v29 = vpack.c.bf16 %v17581_v2, %v17572_v36  ;;  %v6848_v12 = vsub.f32 1.0, %v17581_v2 }
 0x7e5   : > { %v6880_v24 = vmul.f32 %v6848_v12, %v6816_v3  ;;  %6707 = vrot.lane.b32.xlu2 %v6663_v29, %s12692_s22  ;;  %v19840_v29 = vld [vmem:[#allocation44_spill] sm:$0xff] }
 0x7e6   : > { %v6486_v17 = vpop.permute.xlu2 %6485 }
 0x7e7   : > { %v17589_v48 = vsel %vm477_vm4, %v19835_v11, %v6880_v24  ;;  %v6552_v33 = vadd.f32 %v6486_v17, %v19837_v1 }
 0x7e8   : > { %19836 = vst [vmem:[#allocation102_spill] sm:$0xff] %v17589_v48 }
 0x7e9   : > { %vm6584_vm5 = vcmp.gt.f32.partialorder %v6552_v33, 0.5  ;;  %v6820_v47 = vmul.f32 0.2, %v6552_v33 }
 0x7ea   : > { %v17593_v19 = vsel %vm6584_vm5, 1.0, %v19756_v55 }
 0x7eb   : > { %v6852_v40 = vsub.f32 1.0, %v17593_v19 }
 0x7ed   : > { %v6884_v16 = vmul.f32 %v6852_v40, %v6820_v47  ;;  %v19843_v47 = vld [vmem:[#allocation66_spill] sm:$0xff] }
 0x7ee   : > { %v6482_v15 = vpop.permute.xlu0 %6481 }
 0x7ef   : > { %v17598_v3 = vsel %vm477_vm4, %v19838_v31, %v6884_v16  ;;  %v6550_v12 = vadd.f32 %v6482_v15, %v19840_v29 }
 0x7f0   : > { %19839 = vst [vmem:[#allocation85_spill] sm:$0xff] %v17598_v3 }
 0x7f1   : > { %vm6582_vm3 = vcmp.gt.f32.partialorder %v6550_v12, 0.5  ;;  %v6818_v11 = vmul.f32 0.2, %v6550_v12 }
 0x7f2   : > { %v9708_v24 = vsel %vm6582_vm3, 1.0, %v19756_v55 }
 0x7f3   : > { %v6664_v17 = vpack.c.bf16 %v9708_v24, %v17563_v27  ;;  %v6850_v48 = vsub.f32 1.0, %v9708_v24 }
 0x7f5   : > { %v6882_v41 = vmul.f32 %v6850_v48, %v6818_v11  ;;  %6709 = vrot.lane.b32.xlu0 %v6664_v17, %s12692_s22  ;;  %v19844_v48 = vpack.i.bf16 %v17282_v53, %v17265_v13  ;;  %v19847_v11 = vpack.i.bf16 %v17355_v9, %v17345_v61  ;;  %v19849_v17 = vld [vmem:[#allocation27_spill] sm:$0xff]  ;;  %v19851_v61 = vpack.i.bf16 %v17377_v10, %v17335_v25 }
 0x7f6   : > { %v6484_v33 = vpop.permute.xlu1 %6483  ;;  %v19855_v25 = vpack.i.bf16 %v17511_v52, %v17496_v58  ;;  %v19856_v10 = vpack.i.bf16 %v17445_v57, %v17401_v0  ;;  %v19859_v58 = vpack.i.bf16 %v17535_v56, %v17480_v6  ;;  %v19860_v57 = vpack.i.bf16 %v17301_v5, %v17323_v32 }
 0x7f7   : > { %v17606_v40 = vsel %vm477_vm4, %v19841_v60, %v6882_v41  ;;  %v6551_v16 = vadd.f32 %v6484_v33, %v19843_v47  ;;  %v19845_v60 = vld [vmem:[#allocation69_spill] sm:$0xff]  ;;  %v19861_v6 = vpack.i.bf16 %v17367_v21, %v17389_v8  ;;  %v19862_v56 = vpack.i.bf16 %v17433_v4, %v17462_v45 }
 0x7f8   : > { %19842 = vst [vmem:[#allocation116_spill] sm:$0xff] %v17606_v40 }
 0x7f9   : > { %vm6583_vm13 = vcmp.gt.f32.partialorder %v6551_v16, 0.5  ;;  %v6819_v31 = vmul.f32 0.2, %v6551_v16  ;;  %v19850_v16 = vpack.i.bf16 %v17421_v23, %v17411_v35 }
 0x7fa   : > { %v9709_v15 = vsel %vm6583_vm13, 1.0, %v19756_v55 }
 0x7fb   : > { %v6851_v22 = vsub.f32 1.0, %v9709_v15  ;;  %v11868_v12 = vpack.i.bf16 %v17593_v19, %v9709_v15  ;;  %v6665_v62 = vpack.c.bf16 %v17593_v19, %v9709_v15 }
 0x7fd   : > { %v6883_v63 = vmul.f32 %v6851_v22, %v6819_v31  ;;  %11799 = vrot.lane.b32.xlu0 %v19844_v48, %s12692_s22  ;;  %6711 = vrot.lane.b32.xlu1 %v6665_v62, %s12692_s22  ;;  %v19848_v22 = vpack.i.bf16 %v17311_v46, %v17279_v38  ;;  %v19852_v46 = vld [vmem:[#allocation65_spill] sm:$0xff]  ;;  %v6684_v31 = vpop.permute.xlu2 %6683  ;;  %v19854_v48 = vld [vmem:[#allocation67_spill] sm:$0xff] }
 0x7fe   : > { %v6716_v4 = vsel %vm477_vm4, %v6684_v31, 0 }
 0x7ff   : > { %v17619_v41 = vsel %vm477_vm4, %v19845_v60, %v6883_v63 }
 0x800   : > { %19846 = vst [vmem:[#allocation112_spill] sm:$0xff] %v17619_v41 }
 0x805   : > { %11814 = vrot.lane.b32.xlu0 %v19847_v11, %s12692_s22  ;;  %11804 = vrot.lane.b32.xlu1 %v19848_v22, %s12692_s22 }
 0x806   : > { %v6488_v19 = vpop.permute.xlu0 %6487 }
 0x807   : > { %v6553_v13 = vadd.f32 %v6488_v19, %v19849_v17 }
 0x809   : > { %vm6585_vm14 = vcmp.gt.f32.partialorder %v6553_v13, 0.5  ;;  %v6821_v62 = vmul.f32 0.2, %v6553_v13 }
 0x80a   : > { %v9711_v53 = vsel %vm6585_vm14, 1.0, %v19756_v55 }
 0x80b   : > { %v6853_v33 = vsub.f32 1.0, %v9711_v53 }
 0x80d   : > { %v6885_v63 = vmul.f32 %v6853_v33, %v6821_v62  ;;  %11829 = vrot.lane.b32.xlu0 %v19850_v16, %s12692_s22  ;;  %11819 = vrot.lane.b32.xlu1 %v19851_v61, %s12692_s22  ;;  %v19857_v62 = vld [vmem:[#allocation35_spill] sm:$0xff]  ;;  %v11858_v16 = vpack.i.bf16 %v17581_v2, %v17572_v36 }
 0x80e   : > { %v6686_v38 = vpop.permute.xlu0 %6685 }
 0x80f   : > { %v17641_v9 = vsel %vm477_vm4, %v19852_v46, %v6885_v63  ;;  %v6490_v15 = vpop.permute.xlu1 %6489  ;;  %v6690_v63 = vpop.permute.xlu2 %6689  ;;  %v11863_v46 = vpack.i.bf16 %v9708_v24, %v17563_v27  ;;  %v19863_v24 = vpack.i.bf16 %v17526_v51, %v17549_v54  ;;  %v6719_v45 = vsel %vm477_vm4, %v6686_v38, 0  ;;  %v7080_v51 = vld [vmem:[#allocation4 + $0x9] sm:$0xff] }
 0x810   : > { %19853 = vst [vmem:[#allocation80_spill] sm:$0xff] %v17641_v9  ;;  %v6554_v60 = vadd.f32 %v6490_v15, %v19854_v48  ;;  %v6725_v8 = vsel %vm477_vm4, %v6690_v63, 0  ;;  %v7079_v15 = vld [vmem:[#allocation4 + $0x1] sm:$0xff] }
 0x812   : > { %vm6586_vm15 = vcmp.gt.f32.partialorder %v6554_v60, 0.5  ;;  %v6822_v22 = vmul.f32 0.2, %v6554_v60 }
 0x813   : > { %v9712_v11 = vsel %vm6586_vm15, 1.0, %v19756_v55 }
 0x814   : > { %v6666_v35 = vpack.c.bf16 %v9712_v11, %v9711_v53  ;;  %v6854_v23 = vsub.f32 1.0, %v9712_v11  ;;  %v11873_v36 = vpack.i.bf16 %v9712_v11, %v9711_v53  ;;  %v11878_v11 = vpack.i.bf16 %v7080_v51, %v7079_v15 }
 0x815   : > { %11844 = vrot.lane.b32.xlu0 %v19855_v25, %s12692_s22  ;;  %11834 = vrot.lane.b32.xlu1 %v19856_v10, %s12692_s22 }
 0x816   : > { %v6886_v19 = vmul.f32 %v6854_v23, %v6822_v22  ;;  %6713 = vrot.lane.b32.xlu2 %v6666_v35, %s12692_s22  ;;  %v6692_v13 = vpop.permute.xlu0 %6691 }
 0x817   : > { %v6688_v61 = vpop.permute.xlu1 %6687  ;;  %v6696_v2 = vpop.permute.xlu2 %6695  ;;  %v6728_v21 = vsel %vm477_vm4, %v6692_v13, 0 }
 0x818   : > { %v17656_v33 = vsel %vm477_vm4, %v19857_v62, %v6886_v19  ;;  %v6734_v5 = vsel %vm477_vm4, %v6696_v2, 0  ;;  %v6722_v53 = vsel %vm477_vm4, %v6688_v61, 0 }
 0x819   : > { %19858 = vst [vmem:[#allocation56_spill] sm:$0xff] %v17656_v33 }
 0x81d   : > { %11859 = vrot.lane.b32.xlu0 %v11858_v16, %s12692_s22  ;;  %11849 = vrot.lane.b32.xlu1 %v19859_v58, %s12692_s22 }
 0x81e   : > { %11809 = vrot.lane.b32.xlu2 %v19860_v57, %s12692_s22  ;;  %v6698_v0 = vpop.permute.xlu0 %6697 }
 0x81f   : > { %v6737_v52 = vsel %vm477_vm4, %v6698_v0, 0  ;;  %v6694_v32 = vpop.permute.xlu1 %6693  ;;  %v17699_v22 = vpop.permute.xlu2 %6701 }
 0x820   : > { %6763 = vmatpush.bf16.xpose.msrb.mxu3 %v6737_v52  ;;  %v6731_v27 = vsel %vm477_vm4, %v6694_v32, 0 }
 0x825   : > { %11864 = vrot.lane.b32.xlu1 %v11863_v46, %s12692_s22  ;;  %11874 = vrot.lane.b32.xlu0 %v11873_v36, %s12692_s22 }
 0x826   : > { %11824 = vrot.lane.b32.xlu2 %v19861_v6, %s12692_s22 }
 0x827   : > { %v17693_v54 = vpop.permute.xlu1 %6699 }
 0x828   : > { %6764 = vmatpush.bf16.xpose.msrb.mxu3 %v6734_v5 }
 0x82d   : > { %11879 = vrot.lane.b32.xlu1 %v11878_v11, %s12686_s26 }
 0x82e   : > { %11839 = vrot.lane.b32.xlu2 %v19862_v56, %s12692_s22 }
 0x830   : > { %6765 = vmatpush.bf16.xpose.msrb.mxu3 %v6731_v27 }
 0x836   : > { %11854 = vrot.lane.b32.xlu2 %v19863_v24, %s12692_s22 }
 0x837   : > { %v17695_v60 = vpop.permute.xlu0 %6703 }
 0x838   : > { %6766 = vmatpush.bf16.xpose.msrb.mxu3 %v6728_v21 }
 0x83e   : > { %11869 = vrot.lane.b32.xlu2 %v11868_v12, %s12692_s22  ;;  %v19864_v12 = vld [vmem:[#allocation119_spill] sm:$0xff] }
 0x83f   : > { %v17702_v35 = vpop.permute.xlu1 %6705  ;;  %v17704_v23 = vpop.permute.xlu2 %6707 }
 0x840   : > { %6767 = vmatpush.bf16.xpose.msrb.mxu3 %v6725_v8 }
 0x848   : > { %6768 = vmatpush.bf16.xpose.msrb.mxu3 %v6722_v53 }
 0x850   : > { %6769 = vmatpush.bf16.xpose.msrb.mxu3 %v6719_v45 }
 0x858   : > { %6770 = vmatpush.bf16.xpose.msrb.mxu3 %v6716_v4 }
 0x85f   : > { %9713 = vmatmul.msk.bf16.vlgmr.msrb.gmra.mxu3 %vm477_vm4, %v19864_v12 }
 0x867   : > { %v6710_v38 = vpop.permute.xlu0 %6709 }
 0x868   : > { %v6755_v4 = vsel %vm477_vm4, %v6710_v38, 0 }
 0x86f   : > { %v11800_v31 = vpop.permute.xlu0 %11799  ;;  %v6712_v25 = vpop.permute.xlu1 %6711 }
 0x870   : > { %v11802_v10 = vunpack.i.h.bf16 %v11800_v31  ;;  %v11801_v19 = vunpack.i.l.bf16 %v11800_v31  ;;  %v6714_v13 = vpop.permute.xlu2 %6713  ;;  %v6758_v46 = vsel %vm477_vm4, %v6712_v25, 0 }
 0x871   : > { %v6761_v62 = vsel %vm477_vm4, %v6714_v13, 0 }
 0x872   : > { %7015 = vst.msk [vmem:[#allocation4 + $0x19] sm:$0xff] %vm477_vm4, %v11801_v19  ;;  %6776 = vmatpush.bf16.xpose.msra.mxu3 %v6761_v62 }
 0x873   : > { %7016 = vst.msk [vmem:[#allocation4 + $0x21] sm:$0xff] %vm477_vm4, %v11802_v10 }
 0x877   : > { %v11815_v63 = vpop.permute.xlu0 %11814  ;;  %v11805_v16 = vpop.permute.xlu1 %11804 }
 0x878   : > { %v11817_v58 = vunpack.i.h.bf16 %v11815_v63  ;;  %v11816_v57 = vunpack.i.l.bf16 %v11815_v63  ;;  %v11810_v0 = vpop.permute.xlu2 %11809  ;;  %v11806_v2 = vunpack.i.l.bf16 %v11805_v16  ;;  %v11807_v5 = vunpack.i.h.bf16 %v11805_v16 }
 0x879   : > { %v11812_v52 = vunpack.i.h.bf16 %v11810_v0  ;;  %v11811_v61 = vunpack.i.l.bf16 %v11810_v0  ;;  %v7081_v36 = vld [vmem:[#allocation4 + $0x19] sm:$0xff] }
 0x87a   : > { %7021 = vst.msk [vmem:[#allocation4 + $0x61] sm:$0xff] %vm477_vm4, %v11816_v57  ;;  %6777 = vmatpush.bf16.xpose.msra.mxu3 %v6758_v46  ;;  %v7082_v6 = vld [vmem:[#allocation4 + $0x21] sm:$0xff] }
 0x87b   : > { %7022 = vst.msk [vmem:[#allocation4 + $0x69] sm:$0xff] %vm477_vm4, %v11817_v58  ;;  %v17712_v32 = vpack.i.bf16 %v7082_v6, %v7081_v36  ;;  %v6752_v36 = vsel %vm477_vm4, %v17704_v23, 0 }
 0x87c   : > { %7019 = vst.msk [vmem:[#allocation4 + $0x49] sm:$0xff] %vm477_vm4, %v11811_v61 }
 0x87d   : > { %7020 = vst.msk [vmem:[#allocation4 + $0x51] sm:$0xff] %vm477_vm4, %v11812_v52  ;;  %11884 = vrot.lane.b32.xlu2 %v17712_v32, %s12686_s26 }
 0x87e   : > { %7017 = vst.msk [vmem:[#allocation4 + $0x31] sm:$0xff] %vm477_vm4, %v11806_v2 }
 0x87f   : > { %7018 = vst.msk [vmem:[#allocation4 + $0x39] sm:$0xff] %vm477_vm4, %v11807_v5  ;;  %v11830_v56 = vpop.permute.xlu0 %11829  ;;  %v11820_v27 = vpop.permute.xlu1 %11819 }
 0x880   : > { %v11832_v24 = vunpack.i.h.bf16 %v11830_v56  ;;  %v11831_v21 = vunpack.i.l.bf16 %v11830_v56  ;;  %v11825_v8 = vpop.permute.xlu2 %11824  ;;  %v11821_v51 = vunpack.i.l.bf16 %v11820_v27  ;;  %v11822_v31 = vunpack.i.h.bf16 %v11820_v27 }
 0x881   : > { %v11827_v53 = vunpack.i.h.bf16 %v11825_v8  ;;  %v11826_v45 = vunpack.i.l.bf16 %v11825_v8  ;;  %v7087_v15 = vld [vmem:[#allocation4 + $0x61] sm:$0xff] }
 0x882   : > { %7027 = vst.msk [vmem:[#allocation4 + $0xa9] sm:$0xff] %vm477_vm4, %v11831_v21  ;;  %6778 = vmatpush.bf16.xpose.msra.mxu3 %v6755_v4  ;;  %v7088_v11 = vld [vmem:[#allocation4 + $0x69] sm:$0xff] }
 0x883   : > { %7028 = vst.msk [vmem:[#allocation4 + $0xb1] sm:$0xff] %vm477_vm4, %v11832_v24  ;;  %v17723_v25 = vpack.i.bf16 %v7088_v11, %v7087_v15  ;;  %v7085_v10 = vld [vmem:[#allocation4 + $0x49] sm:$0xff] }
 0x884   : > { %7025 = vst.msk [vmem:[#allocation4 + $0x91] sm:$0xff] %vm477_vm4, %v11826_v45  ;;  %v7086_v19 = vld [vmem:[#allocation4 + $0x51] sm:$0xff] }
 0x885   : > { %7026 = vst.msk [vmem:[#allocation4 + $0x99] sm:$0xff] %vm477_vm4, %v11827_v53  ;;  %11899 = vrot.lane.b32.xlu2 %v17723_v25, %s12686_s26  ;;  %v17729_v38 = vpack.i.bf16 %v7086_v19, %v7085_v10  ;;  %v7083_v13 = vld [vmem:[#allocation4 + $0x31] sm:$0xff] }
 0x886   : > { %7023 = vst.msk [vmem:[#allocation4 + $0x79] sm:$0xff] %vm477_vm4, %v11821_v51  ;;  %v7084_v62 = vld [vmem:[#allocation4 + $0x39] sm:$0xff] }
 0x887   : > { %7024 = vst.msk [vmem:[#allocation4 + $0x81] sm:$0xff] %vm477_vm4, %v11822_v31  ;;  %11894 = vrot.lane.b32.xlu1 %v17729_v38, %s12686_s26  ;;  %v17735_v63 = vpack.i.bf16 %v7084_v62, %v7083_v13  ;;  %v11845_v16 = vpop.permute.xlu0 %11844  ;;  %v11835_v58 = vpop.permute.xlu1 %11834  ;;  %v6749_v13 = vsel %vm477_vm4, %v17702_v35, 0 }
 0x888   : > { %v11847_v57 = vunpack.i.h.bf16 %v11845_v16  ;;  %v11846_v0 = vunpack.i.l.bf16 %v11845_v16  ;;  %v11840_v52 = vpop.permute.xlu2 %11839  ;;  %v11836_v6 = vunpack.i.l.bf16 %v11835_v58  ;;  %v11837_v56 = vunpack.i.h.bf16 %v11835_v58 }
 0x889   : > { %11889 = vrot.lane.b32.xlu0 %v17735_v63, %s12686_s26  ;;  %v11842_v61 = vunpack.i.h.bf16 %v11840_v52  ;;  %v11841_v46 = vunpack.i.l.bf16 %v11840_v52  ;;  %v7093_v2 = vld [vmem:[#allocation4 + $0xa9] sm:$0xff] }
 0x88a   : > { %7033 = vst.msk [vmem:[#allocation4 + $0xf1] sm:$0xff] %vm477_vm4, %v11846_v0  ;;  %6779 = vmatpush.bf16.xpose.msra.mxu3 %v6752_v36  ;;  %v7094_v5 = vld [vmem:[#allocation4 + $0xb1] sm:$0xff] }
 0x88b   : > { %7034 = vst.msk [vmem:[#allocation4 + $0xf9] sm:$0xff] %vm477_vm4, %v11847_v57  ;;  %v11913_v27 = vpack.i.bf16 %v7094_v5, %v7093_v2  ;;  %v7091_v24 = vld [vmem:[#allocation4 + $0x91] sm:$0xff] }
 0x88c   : > { %7031 = vst.msk [vmem:[#allocation4 + $0xd9] sm:$0xff] %vm477_vm4, %v11841_v46  ;;  %v7092_v21 = vld [vmem:[#allocation4 + $0x99] sm:$0xff] }
 0x88d   : > { %7032 = vst.msk [vmem:[#allocation4 + $0xe1] sm:$0xff] %vm477_vm4, %v11842_v61  ;;  %11914 = vrot.lane.b32.xlu2 %v11913_v27, %s12686_s26  ;;  %v11908_v8 = vpack.i.bf16 %v7092_v21, %v7091_v24  ;;  %v7089_v23 = vld [vmem:[#allocation4 + $0x79] sm:$0xff] }
 0x88e   : > { %7029 = vst.msk [vmem:[#allocation4 + $0xc1] sm:$0xff] %vm477_vm4, %v11836_v6  ;;  %v7090_v53 = vld [vmem:[#allocation4 + $0x81] sm:$0xff] }
 0x88f   : > { %7030 = vst.msk [vmem:[#allocation4 + $0xc9] sm:$0xff] %vm477_vm4, %v11837_v56  ;;  %11909 = vrot.lane.b32.xlu1 %v11908_v8, %s12686_s26  ;;  %v17749_v45 = vpack.i.bf16 %v7090_v53, %v7089_v23  ;;  %v11860_v4 = vpop.permute.xlu0 %11859  ;;  %v11850_v15 = vpop.permute.xlu1 %11849  ;;  %v6746_v23 = vsel %vm477_vm4, %v17695_v60, 0 }
 0x890   : > { %v11862_v51 = vunpack.i.h.bf16 %v11860_v4  ;;  %v11861_v11 = vunpack.i.l.bf16 %v11860_v4  ;;  %v11855_v31 = vpop.permute.xlu2 %11854  ;;  %v11851_v16 = vunpack.i.l.bf16 %v11850_v15  ;;  %v11852_v57 = vunpack.i.h.bf16 %v11850_v15 }
 0x891   : > { %11904 = vrot.lane.b32.xlu0 %v17749_v45, %s12686_s26  ;;  %v11857_v10 = vunpack.i.h.bf16 %v11855_v31  ;;  %v11856_v19 = vunpack.i.l.bf16 %v11855_v31  ;;  %v7099_v62 = vld [vmem:[#allocation4 + $0xf1] sm:$0xff] }
 0x892   : > { %7039 = vst.msk [vmem:[#allocation4 + $0x139] sm:$0xff] %vm477_vm4, %v11861_v11  ;;  %6780 = vmatpush.bf16.xpose.msra.mxu3 %v6749_v13  ;;  %v7100_v58 = vld [vmem:[#allocation4 + $0xf9] sm:$0xff]  ;;  %v17907_v34 = vld [vmem:[#allocation4 + $0xf0] sm:$0xff] }
 0x893   : > { %7040 = vst.msk [vmem:[#allocation4 + $0x141] sm:$0xff] %vm477_vm4, %v11862_v51  ;;  %v17757_v0 = vpack.i.bf16 %v7100_v58, %v7099_v62  ;;  %v7097_v52 = vld [vmem:[#allocation4 + $0xd9] sm:$0xff]  ;;  %v7111_v62 = vld [vmem:[#allocation4 + $0x2] sm:$0xff] }
 0x894   : > { %7037 = vst.msk [vmem:[#allocation4 + $0x121] sm:$0xff] %vm477_vm4, %v11856_v19  ;;  %v7098_v61 = vld [vmem:[#allocation4 + $0xe1] sm:$0xff]  ;;  %v17880_v26 = vld [vmem:[#allocation4 + $0xd8] sm:$0xff] }
 0x895   : > { %7038 = vst.msk [vmem:[#allocation4 + $0x129] sm:$0xff] %vm477_vm4, %v11857_v10  ;;  %11929 = vrot.lane.b32.xlu2 %v17757_v0, %s12686_s26  ;;  %v17763_v35 = vpack.i.bf16 %v7098_v61, %v7097_v52  ;;  %v7095_v46 = vld [vmem:[#allocation4 + $0xc1] sm:$0xff]  ;;  %v17909_v1 = vld [vmem:[#allocation4 + $0xf8] sm:$0xff] }
 0x896   : > { %7035 = vst.msk [vmem:[#allocation4 + $0x109] sm:$0xff] %vm477_vm4, %v11851_v16  ;;  %v7096_v36 = vld [vmem:[#allocation4 + $0xc9] sm:$0xff]  ;;  %v12083_v40 = vpack.i.bf16 %v17909_v1, %v17907_v34 }
 0x897   : > { %7036 = vst.msk [vmem:[#allocation4 + $0x111] sm:$0xff] %vm477_vm4, %v11852_v57  ;;  %11924 = vrot.lane.b32.xlu1 %v17763_v35, %s12686_s26  ;;  %v17769_v2 = vpack.i.bf16 %v7096_v36, %v7095_v46  ;;  %v11875_v6 = vpop.permute.xlu0 %11874  ;;  %v11865_v5 = vpop.permute.xlu1 %11864  ;;  %v7112_v16 = vld [vmem:[#allocation4 + $0xa] sm:$0xff]  ;;  %v6743_v57 = vsel %vm477_vm4, %v17699_v22, 0  ;;  %v7115_v22 = vld [vmem:[#allocation4 + $0x32] sm:$0xff] }
 0x898   : > { %v11877_v56 = vunpack.i.h.bf16 %v11875_v6  ;;  %v11876_v27 = vunpack.i.l.bf16 %v11875_v6  ;;  %v11870_v24 = vpop.permute.xlu2 %11869  ;;  %v11866_v4 = vunpack.i.l.bf16 %v11865_v5  ;;  %v11867_v51 = vunpack.i.h.bf16 %v11865_v5  ;;  %19866 = vst [vmem:[#allocation95_spill] sm:$0xff] %v17907_v34 }
 0x899   : > { %11919 = vrot.lane.b32.xlu0 %v17769_v2, %s12686_s26  ;;  %v11872_v21 = vunpack.i.h.bf16 %v11870_v24  ;;  %v11871_v8 = vunpack.i.l.bf16 %v11870_v24  ;;  %v7105_v53 = vld [vmem:[#allocation4 + $0x139] sm:$0xff]  ;;  %v11958_v52 = vpack.i.bf16 %v7112_v16, %v7111_v62  ;;  %v7119_v62 = vld [vmem:[#allocation4 + $0x62] sm:$0xff]  ;;  %v7120_v16 = vld [vmem:[#allocation4 + $0x6a] sm:$0xff]  ;;  %19867 = vst [vmem:[#allocation107_spill] sm:$0xff] %v17909_v1 }
 0x89a   : > { %7045 = vst.msk [vmem:[#allocation4 + $0x181] sm:$0xff] %vm477_vm4, %v11876_v27  ;;  %6781 = vmatpush.bf16.xpose.msra.mxu3 %v6746_v23  ;;  %v7106_v15 = vld [vmem:[#allocation4 + $0x141] sm:$0xff]  ;;  %v7117_v27 = vld [vmem:[#allocation4 + $0x4a] sm:$0xff]  ;;  %v7118_v24 = vld [vmem:[#allocation4 + $0x52] sm:$0xff] }
 0x89b   : > { %7046 = vst.msk [vmem:[#allocation4 + $0x189] sm:$0xff] %vm477_vm4, %v11877_v56  ;;  %v11943_v11 = vpack.i.bf16 %v7106_v15, %v7105_v53  ;;  %v7103_v31 = vld [vmem:[#allocation4 + $0x121] sm:$0xff]  ;;  %v11973_v23 = vpack.i.bf16 %v7118_v24, %v7117_v27  ;;  %v7126_v27 = vld [vmem:[#allocation4 + $0xb2] sm:$0xff] }
 0x89c   : > { %7043 = vst.msk [vmem:[#allocation4 + $0x169] sm:$0xff] %vm477_vm4, %v11871_v8  ;;  %v7104_v10 = vld [vmem:[#allocation4 + $0x129] sm:$0xff]  ;;  %v7116_v8 = vld [vmem:[#allocation4 + $0x3a] sm:$0xff] }
 0x89d   : > { %7044 = vst.msk [vmem:[#allocation4 + $0x171] sm:$0xff] %vm477_vm4, %v11872_v21  ;;  %11944 = vrot.lane.b32.xlu2 %v11943_v11, %s12686_s26  ;;  %v17780_v19 = vpack.i.bf16 %v7104_v10, %v7103_v31  ;;  %v7101_v60 = vld [vmem:[#allocation4 + $0x109] sm:$0xff]  ;;  %v6740_v21 = vsel %vm477_vm4, %v17693_v54, 0  ;;  %v19865_v53 = vld [vmem:[#allocation118_spill] sm:$0xff]  ;;  %v7123_v31 = vld [vmem:[#allocation4 + $0x92] sm:$0xff] }
 0x89e   : > { %7041 = vst.msk [vmem:[#allocation4 + $0x151] sm:$0xff] %vm477_vm4, %v11866_v4  ;;  %v7102_v13 = vld [vmem:[#allocation4 + $0x111] sm:$0xff]  ;;  %v7113_v4 = vld [vmem:[#allocation4 + $0x1a] sm:$0xff]  ;;  %v7114_v15 = vld [vmem:[#allocation4 + $0x22] sm:$0xff] }
 0x89f   : > { %7042 = vst.msk [vmem:[#allocation4 + $0x159] sm:$0xff] %vm477_vm4, %v11867_v51  ;;  %11939 = vrot.lane.b32.xlu1 %v17780_v19, %s12686_s26  ;;  %v17786_v58 = vpack.i.bf16 %v7102_v13, %v7101_v60  ;;  %v17799_v51 = vpack.i.bf16 %v7116_v8, %v7115_v22  ;;  %v17803_v11 = vpack.i.bf16 %v7114_v15, %v7113_v4  ;;  %v7124_v10 = vld [vmem:[#allocation4 + $0x9a] sm:$0xff]  ;;  %v7122_v60 = vld [vmem:[#allocation4 + $0x82] sm:$0xff]  ;;  %v7136_v8 = vld [vmem:[#allocation4 + $0x12a] sm:$0xff] }
 0x8a0   : > { %v7121_v54 = vld [vmem:[#allocation4 + $0x7a] sm:$0xff]  ;;  %v11988_v13 = vpack.i.bf16 %v7124_v10, %v7123_v31  ;;  %v7135_v22 = vld [vmem:[#allocation4 + $0x122] sm:$0xff]  ;;  %v7131_v15 = vld [vmem:[#allocation4 + $0xf2] sm:$0xff] }
 0x8a1   : > { %11934 = vrot.lane.b32.xlu0 %v17786_v58, %s12686_s26  ;;  %v17821_v4 = vpack.i.bf16 %v7136_v8, %v7135_v22  ;;  %v7132_v31 = vld [vmem:[#allocation4 + $0xfa] sm:$0xff]  ;;  %v7166_v18 = vld [vmem:[#allocation4 + $0x128] sm:$0xff]  ;;  %v7164_v47 = vld [vmem:[#allocation4 + $0x110] sm:$0xff] }
 0x8a2   : > { %6782 = vmatpush.bf16.xpose.msra.mxu3 %v6743_v57  ;;  %v11983_v57 = vpack.i.bf16 %v7122_v60, %v7121_v54  ;;  %v17829_v54 = vpack.i.bf16 %v7132_v31, %v7131_v15  ;;  %v17851_v8 = vld [vmem:[#allocation4 + $0x18] sm:$0xff]  ;;  %v7165_v3 = vld [vmem:[#allocation4 + $0x120] sm:$0xff]  ;;  %v7163_v43 = vld [vmem:[#allocation4 + $0x108] sm:$0xff] }
 0x8a3   : > { %v7109_v61 = vld [vmem:[#allocation4 + $0x169] sm:$0xff]  ;;  %v17905_v33 = vpack.i.bf16 %v7166_v18, %v7165_v3  ;;  %v17933_v44 = vld [vmem:[#allocation4 + $0x140] sm:$0xff] }
 0x8a4   : > { %v7110_v46 = vld [vmem:[#allocation4 + $0x171] sm:$0xff]  ;;  %v17920_v48 = vld [vmem:[#allocation4 + $0x168] sm:$0xff] }
 0x8a5   : > { %11959 = vrot.lane.b32.xlu2 %v11958_v52, %s19306_s28  ;;  %v11953_v36 = vpack.i.bf16 %v7110_v46, %v7109_v61  ;;  %v7107_v6 = vld [vmem:[#allocation4 + $0x151] sm:$0xff]  ;;  %v11978_v52 = vpack.i.bf16 %v7120_v16, %v7119_v62  ;;  %v7129_v61 = vld [vmem:[#allocation4 + $0xda] sm:$0xff]  ;;  %v7130_v46 = vld [vmem:[#allocation4 + $0xe2] sm:$0xff] }
 0x8a6   : > { %v7108_v5 = vld [vmem:[#allocation4 + $0x159] sm:$0xff]  ;;  %v7141_v60 = vld [vmem:[#allocation4 + $0x16a] sm:$0xff] }
 0x8a7   : > { %11954 = vrot.lane.b32.xlu1 %v11953_v36, %s12686_s26  ;;  %v11948_v56 = vpack.i.bf16 %v7108_v5, %v7107_v6  ;;  %v7127_v36 = vld [vmem:[#allocation4 + $0xc2] sm:$0xff]  ;;  %v7128_v6 = vld [vmem:[#allocation4 + $0xca] sm:$0xff]  ;;  %v17812_v5 = vpack.i.bf16 %v7130_v46, %v7129_v61  ;;  %v7139_v62 = vld [vmem:[#allocation4 + $0x152] sm:$0xff] }
 0x8a8   : > { %v17816_v24 = vpack.i.bf16 %v7128_v6, %v7127_v36  ;;  %v7140_v16 = vld [vmem:[#allocation4 + $0x15a] sm:$0xff]  ;;  %v7138_v61 = vld [vmem:[#allocation4 + $0x142] sm:$0xff]  ;;  %v17922_v18 = vld [vmem:[#allocation4 + $0x170] sm:$0xff] }
 0x8a9   : > { %11949 = vrot.lane.b32.xlu0 %v11948_v56, %s12686_s26  ;;  %v7125_v56 = vld [vmem:[#allocation4 + $0xaa] sm:$0xff]  ;;  %v12028_v46 = vpack.i.bf16 %v7140_v16, %v7139_v62  ;;  %v7151_v62 = vld [vmem:[#allocation4 + $0x78] sm:$0xff]  ;;  %v7152_v16 = vld [vmem:[#allocation4 + $0x80] sm:$0xff] }
 0x8aa   : > { %6783 = vmatpush.bf16.xpose.msra.mxu3 %v6740_v21  ;;  %v11993_v21 = vpack.i.bf16 %v7126_v27, %v7125_v56  ;;  %v17837_v6 = vld [vmem:[#allocation4 + $0x48] sm:$0xff]  ;;  %v17839_v56 = vld [vmem:[#allocation4 + $0x50] sm:$0xff]  ;;  %v17927_v29 = vld [vmem:[#allocation4 + $0x158] sm:$0xff] }
 0x8ab   : > { %v17843_v27 = vld [vmem:[#allocation4 + $0x30] sm:$0xff]  ;;  %v17849_v22 = vpack.i.bf16 %v17839_v56, %v17837_v6  ;;  %v7174_v17 = vld [vmem:[#allocation4 + $0x188] sm:$0xff] }
 0x8ac   : > { %v17925_v3 = vld [vmem:[#allocation4 + $0x150] sm:$0xff] }
 0x8ad   : > { %11974 = vrot.lane.b32.xlu2 %v11973_v23, %s19306_s28  ;;  %v7133_v23 = vld [vmem:[#allocation4 + $0x10a] sm:$0xff]  ;;  %v17938_v42 = vpack.i.bf16 %v17927_v29, %v17925_v3 }
 0x8af   : > { %11969 = vrot.lane.b32.xlu1 %v17799_v51, %s19306_s28 }
 0x8b1   : > { %11964 = vrot.lane.b32.xlu0 %v17803_v11, %s19306_s28  ;;  %9714 = vmatmul.msk.bf16.vlgmr.msra.gmra.mxu3 %vm477_vm4, %v19864_v12 }
 0x8b2   : > { %9810 = vmatpush.bf16.msrb.mxu3 %v19865_v53  ;;  %v7134_v53 = vld [vmem:[#allocation4 + $0x112] sm:$0xff] }
 0x8b3   : > { %v17825_v10 = vpack.i.bf16 %v7134_v53, %v7133_v23  ;;  %v17853_v23 = vld [vmem:[#allocation4 + $0x20] sm:$0xff] }
 0x8b4   : > { %v12038_v15 = vpack.i.bf16 %v17853_v23, %v17851_v8 }
 0x8b5   : > { %11989 = vrot.lane.b32.xlu2 %v11988_v13, %s19306_s28  ;;  %v7142_v13 = vld [vmem:[#allocation4 + $0x172] sm:$0xff] }
 0x8b7   : > { %11984 = vrot.lane.b32.xlu1 %v11983_v57, %s19306_s28  ;;  %v12033_v57 = vpack.i.bf16 %v7142_v13, %v7141_v60  ;;  %v7153_v60 = vld [vmem:[#allocation4 + $0x90] sm:$0xff]  ;;  %v7154_v13 = vld [vmem:[#allocation4 + $0x98] sm:$0xff] }
 0x8b9   : > { %11979 = vrot.lane.b32.xlu0 %v11978_v52, %s19306_s28  ;;  %v7137_v52 = vld [vmem:[#allocation4 + $0x13a] sm:$0xff] }
 0x8ba   : > { %v17835_v36 = vpack.i.bf16 %v7138_v61, %v7137_v52  ;;  %v17868_v52 = vld [vmem:[#allocation4 + $0x60] sm:$0xff]  ;;  %v17870_v61 = vld [vmem:[#allocation4 + $0x68] sm:$0xff] }
 0x8bb   : > { %v17876_v12 = vpack.i.bf16 %v17870_v61, %v17868_v52 }
 0x8bd   : > { %12004 = vrot.lane.b32.xlu2 %v17812_v5, %s19306_s28 }
 0x8bf   : > { %11999 = vrot.lane.b32.xlu1 %v17816_v24, %s19306_s28 }
 0x8c1   : > { %11994 = vrot.lane.b32.xlu0 %v11993_v21, %s19306_s28  ;;  %v17845_v21 = vld [vmem:[#allocation4 + $0x38] sm:$0xff] }
 0x8c2   : > { %v17859_v53 = vpack.i.bf16 %v17845_v21, %v17843_v27 }
 0x8c5   : > { %12019 = vrot.lane.b32.xlu2 %v17821_v4, %s19306_s28 }
 0x8c7   : > { %12014 = vrot.lane.b32.xlu1 %v17825_v10, %s19306_s28 }
 0x8c9   : > { %12009 = vrot.lane.b32.xlu0 %v17829_v54, %s19306_s28 }
 0x8cd   : > { %12034 = vrot.lane.b32.xlu2 %v12033_v57, %s19306_s28  ;;  %v12063_v57 = vpack.i.bf16 %v7154_v13, %v7153_v60  ;;  %v17886_v60 = vld [vmem:[#allocation4 + $0xc0] sm:$0xff]  ;;  %v17888_v13 = vld [vmem:[#allocation4 + $0xc8] sm:$0xff] }
 0x8cf   : > { %12029 = vrot.lane.b32.xlu1 %v12028_v46, %s19306_s28  ;;  %v12058_v46 = vpack.i.bf16 %v7152_v16, %v7151_v62  ;;  %v17892_v16 = vld [vmem:[#allocation4 + $0xa8] sm:$0xff] }
 0x8d1   : > { %12024 = vrot.lane.b32.xlu0 %v17835_v36, %s19306_s28 }
 0x8d5   : > { %12049 = vrot.lane.b32.xlu2 %v17849_v22, %s12677_s29 }
 0x8d7   : > { %12044 = vrot.lane.b32.xlu1 %v17859_v53, %s12677_s29  ;;  %v17865_v31 = vpop.permute.xlu2 %11884 }
 0x8d9   : > { %12039 = vrot.lane.b32.xlu0 %v12038_v15, %s12677_s29  ;;  %v17882_v15 = vld [vmem:[#allocation4 + $0xe0] sm:$0xff] }
 0x8da   : > { %v12078_v62 = vpack.i.bf16 %v17882_v15, %v17880_v26 }
 0x8dd   : > { %12064 = vrot.lane.b32.xlu2 %v12063_v57, %s12677_s29  ;;  %v17894_v57 = vld [vmem:[#allocation4 + $0xb0] sm:$0xff] }
 0x8de   : > { %v12068_v41 = vpack.i.bf16 %v17894_v57, %v17892_v16 }
 0x8df   : > { %12059 = vrot.lane.b32.xlu1 %v12058_v46, %s12677_s29  ;;  %v17878_v50 = vpop.permute.xlu2 %11899  ;;  %v12073_v46 = vpack.i.bf16 %v17888_v13, %v17886_v60 }
 0x8e1   : > { %12054 = vrot.lane.b32.xlu0 %v17876_v12, %s12677_s29 }
 0x8e5   : > { %12079 = vrot.lane.b32.xlu2 %v12078_v62, %s12677_s29 }
 0x8e7   : > { %12074 = vrot.lane.b32.xlu1 %v12073_v46, %s12677_s29  ;;  %v17902_v20 = vpop.permute.xlu2 %11914  ;;  %v12088_v46 = vpack.i.bf16 %v7164_v47, %v7163_v43  ;;  %v12108_v43 = vpack.i.bf16 %v17922_v18, %v17920_v48  ;;  %v17931_v47 = vld [vmem:[#allocation4 + $0x138] sm:$0xff] }
 0x8e8   : > { %v17944_v59 = vpack.i.bf16 %v17933_v44, %v17931_v47 }
 0x8e9   : > { %12069 = vrot.lane.b32.xlu0 %v12068_v41, %s12677_s29  ;;  %v17918_v41 = vpop.permute.xlu1 %11879 }
 0x8ed   : > { %12094 = vrot.lane.b32.xlu2 %v17905_v33, %s12677_s29 }
 0x8ef   : > { %12089 = vrot.lane.b32.xlu1 %v12088_v46, %s12677_s29  ;;  %v17916_v37 = vpop.permute.xlu2 %11929 }
 0x8f0   : > { %19868 = vst [vmem:[#allocation123_spill] sm:$0xff] %v17916_v37 }
 0x8f1   : > { %12084 = vrot.lane.b32.xlu0 %v12083_v40, %s12677_s29 }
 0x8f5   : > { %12109 = vrot.lane.b32.xlu2 %v12108_v43, %s12677_s29  ;;  %v7173_v43 = vld [vmem:[#allocation4 + $0x180] sm:$0xff] }
 0x8f6   : > { %v12113_v14 = vpack.i.bf16 %v7174_v17, %v7173_v43 }
 0x8f7   : > { %12104 = vrot.lane.b32.xlu1 %v17938_v42, %s12677_s29  ;;  %v17946_v30 = vpop.permute.xlu2 %11944 }
 0x8f9   : > { %12099 = vrot.lane.b32.xlu0 %v17944_v59, %s12677_s29  ;;  %v17950_v7 = vpop.permute.xlu1 %11894 }
 0x8fb   : > { %v17952_v9 = vpop.permute.xlu0 %11889 }
 0x8fd   : > { %12124 = vrot.lane.b32.xlu2 %v17735_v63, %s12688_s27 }
 0x8ff   : > { %12119 = vrot.lane.b32.xlu1 %v17712_v32, %s12688_s27  ;;  %v17958_v39 = vpop.permute.xlu2 %11959 }
 0x901   : > { %12114 = vrot.lane.b32.xlu0 %v12113_v14, %s12677_s29  ;;  %v17961_v28 = vpop.permute.xlu1 %11909  ;;  %s19874_s29 = smov 56  }
 0x902   : > { %19869 = vst [vmem:[#allocation103_spill] sm:$0xff] %v17961_v28 }
 0x903   : > { %v17963_v55 = vpop.permute.xlu0 %11904 }
 0x904   : > { %19870 = vst [vmem:[#allocation26_spill] sm:$0xff] %v17963_v55  ;;  %v7271_v55 = vld [vmem:[#allocation4 + $0x31] sm:$0xff] }
 0x905   : > { %12139 = vrot.lane.b32.xlu2 %v17749_v45, %s12688_s27 }
 0x907   : > { %12134 = vrot.lane.b32.xlu1 %v17723_v25, %s12688_s27  ;;  %v17969_v49 = vpop.permute.xlu2 %11974 }
 0x909   : > { %12129 = vrot.lane.b32.xlu0 %v17729_v38, %s12688_s27  ;;  %v17973_v17 = vpop.permute.xlu1 %11924 }
 0x90b   : > { %v17975_v32 = vpop.permute.xlu0 %11919 }
 0x90d   : > { %12154 = vrot.lane.b32.xlu2 %v12078_v62, %s12681_s25 }
 0x90f   : > { %12149 = vrot.lane.b32.xlu1 %v17816_v24, %s12689_s16  ;;  %v17980_v14 = vpop.permute.xlu2 %11989 }
 0x910   : > { %19871 = vst [vmem:[#allocation87_spill] sm:$0xff] %v17980_v14 }
 0x911   : > { %12144 = vrot.lane.b32.xlu0 %v17769_v2, %s12688_s27  ;;  %v17984_v25 = vpop.permute.xlu1 %11939 }
 0x912   : > { %19872 = vst [vmem:[#allocation99_spill] sm:$0xff] %v17984_v25 }
 0x913   : > { %v17986_v63 = vpop.permute.xlu0 %11934 }
 0x914   : > { %19873 = vst [vmem:[#allocation114_spill] sm:$0xff] %v17986_v63 }
 0x915   : > { %12169 = vrot.lane.b32.xlu2 %v17763_v35, %s12688_s27 }
 0x917   : > { %12164 = vrot.lane.b32.xlu1 %v17812_v5, %s12691_s14  ;;  %v17992_v38 = vpop.permute.xlu2 %12004 }
 0x919   : > { %12159 = vrot.lane.b32.xlu0 %v17763_v35, %s19874_s29  ;;  %v17996_v45 = vpop.permute.xlu1 %11954 }
 0x91b   : > { %v11950_v24 = vpop.permute.xlu0 %11949 }
 0x91d   : > { %12184 = vrot.lane.b32.xlu2 %v17757_v0, %s19874_s29 }
 0x91f   : > { %12179 = vrot.lane.b32.xlu1 %v12083_v40, %s12681_s25  ;;  %v18001_v2 = vpop.permute.xlu2 %12019 }
 0x920   : > { %19875 = vst [vmem:[#allocation96_spill] sm:$0xff] %v18001_v2  ;;  %v7272_v2 = vld [vmem:[#allocation4 + $0x39] sm:$0xff] }
 0x921   : > { %12174 = vrot.lane.b32.xlu0 %v17812_v5, %s12689_s16  ;;  %v18005_v62 = vpop.permute.xlu1 %11969  ;;  %v12238_v25 = vpack.i.bf16 %v7272_v2, %v7271_v55  ;;  %v11951_v2 = vunpack.i.l.bf16 %v11950_v24 }
 0x923   : > { %v18007_v43 = vpop.permute.xlu0 %11964  ;;  %v8387_v34 = vsel %vm477_vm4, %v17925_v3, %v11951_v2  ;;  %v11887_v3 = vunpack.i.h.bf16 %v17865_v31 }
 0x925   : > { %12199 = vrot.lane.b32.xlu2 %v17829_v54, %s12689_s16 }
 0x927   : > { %12194 = vrot.lane.b32.xlu1 %v17757_v0, %s12688_s27  ;;  %v18013_v35 = vpop.permute.xlu2 %12034 }
 0x929   : > { %12189 = vrot.lane.b32.xlu0 %v17829_v54, %s12691_s14  ;;  %v18017_v40 = vpop.permute.xlu1 %11984 }
 0x92a   : > { %19876 = vst [vmem:[#allocation128_spill] sm:$0xff] %v18017_v40 }
 0x92b   : > { %v18019_v14 = vpop.permute.xlu0 %11979 }
 0x92d   : > { %12214 = vrot.lane.b32.xlu2 %v17825_v10, %s12691_s14 }
 0x92f   : > { %12209 = vrot.lane.b32.xlu1 %v17786_v58, %s19874_s29  ;;  %v18025_v5 = vpop.permute.xlu2 %12049 }
 0x931   : > { %12204 = vrot.lane.b32.xlu0 %v12088_v46, %s12681_s25  ;;  %v18028_v0 = vpop.permute.xlu1 %11999 }
 0x933   : > { %v18030_v28 = vpop.permute.xlu0 %11994 }
 0x935   : > { %12229 = vrot.lane.b32.xlu2 %v17859_v53, %s12681_s25 }
 0x937   : > { %12224 = vrot.lane.b32.xlu1 %v17786_v58, %s12688_s27  ;;  %v18036_v54 = vpop.permute.xlu2 %12064 }
 0x938   : > { %19877 = vst [vmem:[#allocation127_spill] sm:$0xff] %v18036_v54 }
 0x939   : > { %12219 = vrot.lane.b32.xlu0 %v17803_v11, %s12689_s16  ;;  %v18040_v40 = vpop.permute.xlu1 %12014 }
 0x93a   : > { %19878 = vst [vmem:[#allocation55_spill] sm:$0xff] %v18040_v40 }
 0x93b   : > { %v18042_v46 = vpop.permute.xlu0 %12009 }
 0x93c   : > { %19879 = vst [vmem:[#allocation90_spill] sm:$0xff] %v18042_v46 }
 0x93d   : > { %12244 = vrot.lane.b32.xlu2 %v17905_v33, %s12681_s25 }
 0x93f   : > { %12239 = vrot.lane.b32.xlu1 %v12238_v25, %s19874_s29  ;;  %v18047_v53 = vpop.permute.xlu2 %12079  ;;  %v11952_v25 = vunpack.i.h.bf16 %v11950_v24 }
 0x941   : > { %12234 = vrot.lane.b32.xlu0 %v17825_v10, %s12689_s16  ;;  %v12030_v58 = vpop.permute.xlu1 %12029 }
 0x942   : > { %v12032_v10 = vunpack.i.h.bf16 %v12030_v58  ;;  %v12031_v40 = vunpack.i.l.bf16 %v12030_v58 }
 0x943   : > { %v18051_v54 = vpop.permute.xlu0 %12024 }
 0x944   : > { %v8419_v37 = vsel %vm5973_vm6, %v8387_v34, %v12031_v40  ;;  %v11967_v34 = vunpack.i.h.bf16 %v18007_v43  ;;  %v11966_v40 = vunpack.i.l.bf16 %v18007_v43 }
 0x945   : > { %12259 = vrot.lane.b32.xlu2 %v17821_v4, %s12691_s14 }
 0x947   : > { %12254 = vrot.lane.b32.xlu1 %v17780_v19, %s19874_s29  ;;  %v18057_v11 = vpop.permute.xlu2 %12094 }
 0x948   : > { %19880 = vst [vmem:[#allocation105_spill] sm:$0xff] %v18057_v11  ;;  %v8388_v11 = vsel %vm477_vm4, %v17927_v29, %v11952_v25  ;;  %v7273_v29 = vld [vmem:[#allocation4 + $0x49] sm:$0xff]  ;;  %v7274_v25 = vld [vmem:[#allocation4 + $0x51] sm:$0xff] }
 0x949   : > { %12249 = vrot.lane.b32.xlu0 %v17799_v51, %s12691_s14  ;;  %v12045_v55 = vpop.permute.xlu1 %12044  ;;  %v8420_v24 = vsel %vm5973_vm6, %v8388_v11, %v12032_v10 }
 0x94a   : > { %v12046_v11 = vunpack.i.l.bf16 %v12045_v55 }
 0x94b   : > { %v18061_v33 = vpop.permute.xlu0 %12039 }
 0x94d   : > { %12274 = vrot.lane.b32.xlu2 %v17849_v22, %s12681_s25 }
 0x94f   : > { %12269 = vrot.lane.b32.xlu1 %v17780_v19, %s12688_s27  ;;  %v12110_v63 = vpop.permute.xlu2 %12109 }
 0x950   : > { %v12112_v1 = vunpack.i.h.bf16 %v12110_v63  ;;  %v12111_v46 = vunpack.i.l.bf16 %v12110_v63  ;;  %v11886_v63 = vunpack.i.l.bf16 %v17865_v31 }
 0x951   : > { %12264 = vrot.lane.b32.xlu0 %v17799_v51, %s12689_s16  ;;  %v12060_v22 = vpop.permute.xlu1 %12059  ;;  %v12047_v51 = vunpack.i.h.bf16 %v12045_v55 }
 0x952   : > { %v18076_v58 = vsel %vm2103_vm7, %v8419_v37, %v12111_v46  ;;  %v18079_v19 = vsel %vm2103_vm7, %v8420_v24, %v12112_v1  ;;  %v12283_v37 = vpack.i.bf16 %v7274_v25, %v7273_v29  ;;  %v8362_v1 = vsel %vm477_vm4, %v17853_v23, %v11887_v3  ;;  %v7293_v25 = vld [vmem:[#allocation4 + $0x139] sm:$0xff]  ;;  %v7294_v3 = vld [vmem:[#allocation4 + $0x141] sm:$0xff] }
 0x953   : > { %19881 = vst [vmem:[#allocation88_spill] sm:$0xff] %v18079_v19  ;;  %v18083_v2 = vpop.permute.xlu0 %12054  ;;  %v8361_v46 = vsel %vm477_vm4, %v17851_v8, %v11886_v63  ;;  %v8394_v10 = vsel %vm5973_vm6, %v8362_v1, %v11967_v34  ;;  %v11902_v63 = vunpack.i.h.bf16 %v17878_v50  ;;  %v11901_v34 = vunpack.i.l.bf16 %v17878_v50 }
 0x954   : > { %v8393_v24 = vsel %vm5973_vm6, %v8361_v46, %v11966_v40  ;;  %v12062_v1 = vunpack.i.h.bf16 %v12060_v22  ;;  %v12298_v46 = vpack.i.bf16 %v7294_v3, %v7293_v25 }
 0x955   : > { %12289 = vrot.lane.b32.xlu2 %v17944_v59, %s12681_s25  ;;  %v8425_v55 = vsel %vm2103_vm7, %v8393_v24, %v12046_v11  ;;  %v8426_v59 = vsel %vm2103_vm7, %v8394_v10, %v12047_v51  ;;  %v11982_v51 = vunpack.i.h.bf16 %v18019_v14  ;;  %v7305_v11 = vld [vmem:[#allocation4 + $0x4a] sm:$0xff]  ;;  %v8367_v50 = vsel %vm477_vm4, %v17868_v52, %v11901_v34  ;;  %v9805_v52 = vld [vmem:[%s19043_s7 + $0x18] sm:$0xff] }
 0x956   : > { %9811 = vmatpush.bf16.msrb.mxu3 %v9805_v52  ;;  %8722 = vmatpush.bf16.msrb.mxu0 %v9805_v52  ;;  %v11947_v34 = vunpack.i.h.bf16 %v17946_v30  ;;  %v11881_v52 = vunpack.i.l.bf16 %v17918_v41 }
 0x957   : > { %12284 = vrot.lane.b32.xlu1 %v12283_v37, %s19874_s29  ;;  %v12125_v31 = vpop.permute.xlu2 %12124  ;;  %v7306_v37 = vld [vmem:[#allocation4 + $0x52] sm:$0xff] }
 0x958   : > { %v12127_v43 = vunpack.i.h.bf16 %v12125_v31  ;;  %v12126_v19 = vunpack.i.l.bf16 %v12125_v31  ;;  %v8368_v31 = vsel %vm477_vm4, %v17870_v61, %v11902_v63  ;;  %v12293_v10 = vpack.i.bf16 %v7306_v37, %v7305_v11 }
 0x959   : > { %12279 = vrot.lane.b32.xlu0 %v17821_v4, %s12689_s16  ;;  %v18100_v23 = vpop.permute.xlu1 %12074  ;;  %v11981_v4 = vunpack.i.l.bf16 %v18019_v14  ;;  %v8400_v14 = vsel %vm5973_vm6, %v8368_v31, %v11982_v51  ;;  %v11946_v51 = vunpack.i.l.bf16 %v17946_v30  ;;  %v12026_v11 = vunpack.i.l.bf16 %v18051_v54  ;;  %v9803_v30 = vld [vmem:[%s19043_s7 + $0x8] sm:$0xff] }
 0x95a   : > { %v18103_v8 = vsel %vm6038_vm8, %v8425_v55, %v12126_v19  ;;  %v18106_v29 = vsel %vm6038_vm8, %v8426_v59, %v12127_v43  ;;  %v12061_v19 = vunpack.i.l.bf16 %v12060_v22 }
 0x95b   : > { %v18110_v40 = vpop.permute.xlu0 %12069  ;;  %v8399_v43 = vsel %vm5973_vm6, %v8367_v50, %v11981_v4  ;;  %v12027_v4 = vunpack.i.h.bf16 %v18051_v54  ;;  %v8385_v54 = vsel %vm477_vm4, %v17931_v47, %v11946_v51  ;;  %v7275_v50 = vld [vmem:[#allocation4 + $0x61] sm:$0xff]  ;;  %v7327_v51 = vld [vmem:[#allocation4 + $0x152] sm:$0xff] }
 0x95c   : > { %19882 = vst [vmem:[#allocation117_spill] sm:$0xff] %v18110_v40  ;;  %v8431_v59 = vsel %vm2103_vm7, %v8399_v43, %v12061_v19  ;;  %v8417_v43 = vsel %vm5973_vm6, %v8385_v54, %v12026_v11  ;;  %v7048_v11 = vld [vmem:[#allocation4 + $0x8] sm:$0xff]  ;;  %v7296_v54 = vld [vmem:[#allocation4 + $0x159] sm:$0xff]  ;;  %v11962_v40 = vunpack.i.h.bf16 %v17958_v39 }
 0x95d   : > { %12304 = vrot.lane.b32.xlu2 %v17835_v36, %s12691_s14  ;;  %v8432_v36 = vsel %vm2103_vm7, %v8400_v14, %v12062_v1  ;;  %v9804_v1 = vld [vmem:[%s19043_s7 + $0x10] sm:$0xff]  ;;  %v7307_v14 = vld [vmem:[#allocation4 + $0x62] sm:$0xff] }
 0x95e   : > { %9812 = vmatpush.bf16.msrb.mxu3 %v9804_v1  ;;  %8723 = vmatpush.bf16.msrb.mxu0 %v9804_v1  ;;  %v7328_v1 = vld [vmem:[#allocation4 + $0x15a] sm:$0xff] }
 0x95f   : > { %12299 = vrot.lane.b32.xlu1 %v12298_v46, %s19874_s29  ;;  %v12140_v24 = vpop.permute.xlu2 %12139 }
 0x960   : > { %v12142_v55 = vunpack.i.h.bf16 %v12140_v24  ;;  %v12141_v22 = vunpack.i.l.bf16 %v12140_v24  ;;  %v7276_v24 = vld [vmem:[#allocation4 + $0x69] sm:$0xff] }
 0x961   : > { %12294 = vrot.lane.b32.xlu0 %v12293_v10, %s12691_s14  ;;  %v18126_v61 = vpop.permute.xlu1 %12089 }
 0x962   : > { %v18132_v25 = vsel %vm6038_vm8, %v8431_v59, %v12141_v22  ;;  %v18135_v3 = vsel %vm6038_vm8, %v8432_v36, %v12142_v55  ;;  %v7231_v22 = vld [vmem:[#allocation4 + $0x13a] sm:$0xff]  ;;  %v7232_v59 = vld [vmem:[#allocation4 + $0x142] sm:$0xff]  ;;  %v7308_v36 = vld [vmem:[#allocation4 + $0x6a] sm:$0xff]  ;;  %9813 = vmatpush.bf16.msrb.mxu3 %v9803_v30  ;;  %8724 = vmatpush.bf16.msrb.mxu0 %v9803_v30  ;;  %v11897_v30 = vunpack.i.h.bf16 %v17950_v7 }
 0x963   : > { %19883 = vst [vmem:[#allocation115_spill] sm:$0xff] %v18132_v25  ;;  %v18137_v63 = vpop.permute.xlu0 %12084  ;;  %v12041_v25 = vunpack.i.l.bf16 %v18061_v33 }
 0x964   : > { %19884 = vst [vmem:[#allocation82_spill] sm:$0xff] %v18135_v3  ;;  %v12042_v3 = vunpack.i.h.bf16 %v18061_v33  ;;  %v11896_v33 = vunpack.i.l.bf16 %v17950_v7 }
 0x965   : > { %12319 = vrot.lane.b32.xlu2 %v17876_v12, %s12681_s25  ;;  %v8386_v12 = vsel %vm477_vm4, %v17933_v44, %v11947_v34  ;;  %v11882_v44 = vunpack.i.h.bf16 %v17918_v41  ;;  %v11961_v41 = vunpack.i.l.bf16 %v17958_v39 }
 0x967   : > { %12314 = vrot.lane.b32.xlu1 %v12298_v46, %s12688_s27  ;;  %v18146_v37 = vpop.permute.xlu2 %12154 }
 0x969   : > { %12309 = vrot.lane.b32.xlu0 %v12293_v10, %s12689_s16  ;;  %v12105_v19 = vpop.permute.xlu1 %12104  ;;  %v8418_v10 = vsel %vm5973_vm6, %v8386_v12, %v12027_v4  ;;  %v7295_v4 = vld [vmem:[#allocation4 + $0x151] sm:$0xff]  ;;  %v12328_v12 = vpack.i.bf16 %v7276_v24, %v7275_v50  ;;  %v8360_v50 = vsel %vm477_vm4, %v7048_v11, %v11882_v44  ;;  %v18186_v24 = vpack.i.bf16 %v7328_v1, %v7327_v51 }
 0x96a   : > { %v12107_v46 = vunpack.i.h.bf16 %v12105_v19  ;;  %v12106_v31 = vunpack.i.l.bf16 %v12105_v19  ;;  %v7047_v19 = vld [vmem:[#allocation4] sm:$0xff] }
 0x96b   : > { %v18161_v55 = vpop.permute.xlu0 %12099  ;;  %v8359_v39 = vsel %vm477_vm4, %v7047_v19, %v11881_v52  ;;  %v8392_v52 = vsel %vm5973_vm6, %v8360_v50, %v11962_v40  ;;  %v11976_v50 = vunpack.i.l.bf16 %v17969_v49 }
 0x96c   : > { %v18166_v47 = vsel %vm2103_vm7, %v8417_v43, %v12106_v31  ;;  %v18169_v34 = vsel %vm2103_vm7, %v8418_v10, %v12107_v46  ;;  %v12323_v31 = vpack.i.bf16 %v7232_v59, %v7231_v22  ;;  %v18175_v43 = vpack.i.bf16 %v7308_v36, %v7307_v14 }
 0x96d   : > { %12334 = vrot.lane.b32.xlu2 %v17938_v42, %s12681_s25  ;;  %v11957_v46 = vunpack.i.h.bf16 %v17996_v45  ;;  %v11956_v10 = vunpack.i.l.bf16 %v17996_v45  ;;  %v18188_v14 = vpack.i.bf16 %v7296_v54, %v7295_v4  ;;  %v9802_v45 = vld [vmem:[%s19043_s7] sm:$0xff]  ;;  %v12037_v22 = vunpack.i.h.bf16 %v18013_v35 }
 0x96e   : > { %v12036_v59 = vunpack.i.l.bf16 %v18013_v35  ;;  %v8391_v44 = vsel %vm5973_vm6, %v8359_v39, %v11961_v41  ;;  %9814 = vmatpush.bf16.msrb.mxu3 %v9802_v45  ;;  %8725 = vmatpush.bf16.msrb.mxu0 %v9802_v45  ;;  %v8424_v19 = vsel %vm2103_vm7, %v8392_v52, %v12042_v3  ;;  %v7246_v3 = vld [vmem:[#allocation4 + $0x80] sm:$0xff]  ;;  %v8365_v52 = vsel %vm477_vm4, %v17837_v6, %v11896_v33 }
 0x96f   : > { %12329 = vrot.lane.b32.xlu1 %v12328_v12, %s19874_s29  ;;  %v18182_v42 = vpop.permute.xlu2 %12169  ;;  %v8390_v4 = vsel %vm477_vm4, %v17922_v18, %v11957_v46  ;;  %v8389_v7 = vsel %vm477_vm4, %v17920_v48, %v11956_v10  ;;  %v8423_v35 = vsel %vm2103_vm7, %v8391_v44, %v12041_v25  ;;  %v11891_v18 = vunpack.i.l.bf16 %v17952_v9  ;;  %v7245_v25 = vld [vmem:[#allocation4 + $0x78] sm:$0xff] }
 0x970   : > { %v8421_v46 = vsel %vm5973_vm6, %v8389_v7, %v12036_v59  ;;  %v8422_v48 = vsel %vm5973_vm6, %v8390_v4, %v12037_v22  ;;  %v11977_v10 = vunpack.i.h.bf16 %v17969_v49  ;;  %v11971_v59 = vunpack.i.l.bf16 %v18005_v62 }
 0x971   : > { %12324 = vrot.lane.b32.xlu0 %v12323_v31, %s12689_s16  ;;  %v12120_v36 = vpop.permute.xlu1 %12119  ;;  %v11892_v31 = vunpack.i.h.bf16 %v17952_v9  ;;  %v11972_v9 = vunpack.i.h.bf16 %v18005_v62  ;;  %v12057_v22 = vunpack.i.h.bf16 %v18083_v2  ;;  %v8366_v49 = vsel %vm477_vm4, %v17839_v56, %v11897_v30 }
 0x972   : > { %v12122_v51 = vunpack.i.h.bf16 %v12120_v36  ;;  %v12121_v1 = vunpack.i.l.bf16 %v12120_v36  ;;  %v12056_v36 = vunpack.i.l.bf16 %v18083_v2  ;;  %v12052_v2 = vunpack.i.h.bf16 %v18025_v5 }
 0x973   : > { %v12115_v11 = vpop.permute.xlu0 %12114  ;;  %v8364_v62 = vsel %vm477_vm4, %v17845_v21, %v11892_v31  ;;  %v12051_v4 = vunpack.i.l.bf16 %v18025_v5  ;;  %v8397_v56 = vsel %vm5973_vm6, %v8365_v52, %v11976_v50  ;;  %v8398_v30 = vsel %vm5973_vm6, %v8366_v49, %v11977_v10 }
 0x974   : > { %v18207_v12 = vsel %vm6038_vm8, %v8423_v35, %v12121_v1  ;;  %v18210_v40 = vsel %vm6038_vm8, %v8424_v19, %v12122_v51  ;;  %v12117_v54 = vunpack.i.h.bf16 %v12115_v11  ;;  %v12116_v41 = vunpack.i.l.bf16 %v12115_v11 }
 0x975   : > { %12349 = vrot.lane.b32.xlu2 %v18186_v24, %s12691_s14  ;;  %v12363_v51 = vpack.i.bf16 %v7246_v3, %v7245_v25  ;;  %v8363_v1 = vsel %vm477_vm4, %v17843_v27, %v11891_v18  ;;  %v8396_v27 = vsel %vm5973_vm6, %v8364_v62, %v11972_v9  ;;  %v8430_v21 = vsel %vm2103_vm7, %v8398_v30, %v12057_v22  ;;  %v7265_v9 = vld [vmem:[#allocation4 + $0x168] sm:$0xff] }
 0x976   : > { %v18221_v39 = vsel %vm2103_vm7, %v8422_v48, %v12117_v54  ;;  %v18224_v45 = vsel %vm2103_vm7, %v8421_v46, %v12116_v41  ;;  %v8395_v19 = vsel %vm5973_vm6, %v8363_v1, %v11971_v59  ;;  %v8429_v35 = vsel %vm2103_vm7, %v8397_v56, %v12056_v36  ;;  %v7266_v59 = vld [vmem:[#allocation4 + $0x170] sm:$0xff]  ;;  %v7278_v1 = vld [vmem:[#allocation4 + $0x81] sm:$0xff] }
 0x977   : > { %12344 = vrot.lane.b32.xlu1 %v18188_v14, %s19874_s29  ;;  %v18232_v44 = vpop.permute.xlu2 %12184  ;;  %v8427_v18 = vsel %vm2103_vm7, %v8395_v19, %v12051_v4  ;;  %v8428_v46 = vsel %vm2103_vm7, %v8396_v27, %v12052_v2  ;;  %v11917_v10 = vunpack.i.h.bf16 %v17902_v20  ;;  %v11916_v50 = vunpack.i.l.bf16 %v17902_v20 }
 0x978   : > { %v11997_v22 = vunpack.i.h.bf16 %v18030_v28  ;;  %v11996_v36 = vunpack.i.l.bf16 %v18030_v28  ;;  %v12077_v52 = vunpack.i.h.bf16 %v18100_v23  ;;  %v12378_v2 = vpack.i.bf16 %v7266_v59, %v7265_v9 }
 0x979   : > { %12339 = vrot.lane.b32.xlu0 %v18175_v43, %s12691_s14  ;;  %v12135_v7 = vpop.permute.xlu1 %12134  ;;  %v8374_v20 = vsel %vm477_vm4, %v17894_v57, %v11917_v10  ;;  %v8373_v4 = vsel %vm477_vm4, %v17892_v16, %v11916_v50  ;;  %v7298_v10 = vld [vmem:[#allocation4 + $0x171] sm:$0xff]  ;;  %v12157_v50 = vunpack.i.h.bf16 %v18146_v37  ;;  %v12156_v9 = vunpack.i.l.bf16 %v18146_v37 }
 0x97a   : > { %v12137_v6 = vunpack.i.h.bf16 %v12135_v7  ;;  %v12136_v33 = vunpack.i.l.bf16 %v12135_v7  ;;  %v8406_v56 = vsel %vm5973_vm6, %v8374_v20, %v11997_v22 }
 0x97b   : > { %v12130_v11 = vpop.permute.xlu0 %12129 }
 0x97c   : > { %v18253_v5 = vsel %vm6038_vm8, %v8429_v35, %v12136_v33  ;;  %v18256_v54 = vsel %vm6038_vm8, %v8430_v21, %v12137_v6  ;;  %v12132_v41 = vunpack.i.h.bf16 %v12130_v11  ;;  %v12131_v31 = vunpack.i.l.bf16 %v12130_v11  ;;  %v7329_v21 = vld [vmem:[#allocation4 + $0x16a] sm:$0xff]  ;;  %v7330_v35 = vld [vmem:[#allocation4 + $0x172] sm:$0xff] }
 0x97d   : > { %12364 = vrot.lane.b32.xlu2 %v12363_v51, %s12681_s25  ;;  %v7277_v51 = vld [vmem:[#allocation4 + $0x79] sm:$0xff]  ;;  %v8438_v6 = vsel %vm2103_vm7, %v8406_v56, %v12077_v52  ;;  %v7310_v52 = vld [vmem:[#allocation4 + $0x82] sm:$0xff] }
 0x97e   : > { %v18262_v48 = vsel %vm6038_vm8, %v8427_v18, %v12131_v31  ;;  %v18265_v25 = vsel %vm6038_vm8, %v8428_v46, %v12132_v41  ;;  %v12373_v30 = vpack.i.bf16 %v7278_v1, %v7277_v51  ;;  %v18297_v18 = vpack.i.bf16 %v7330_v35, %v7329_v21  ;;  %v7297_v46 = vld [vmem:[#allocation4 + $0x169] sm:$0xff] }
 0x97f   : > { %12359 = vrot.lane.b32.xlu1 %v18188_v14, %s12688_s27  ;;  %v18269_v3 = vpop.permute.xlu2 %12199  ;;  %v12076_v14 = vunpack.i.l.bf16 %v18100_v23  ;;  %v12172_v21 = vunpack.i.h.bf16 %v18182_v42  ;;  %v12171_v35 = vunpack.i.l.bf16 %v18182_v42 }
 0x981   : > { %12354 = vrot.lane.b32.xlu0 %v18175_v43, %s12689_s16  ;;  %v12150_v49 = vpop.permute.xlu1 %12149  ;;  %v8405_v43 = vsel %vm5973_vm6, %v8373_v4, %v11996_v36  ;;  %v11922_v4 = vunpack.i.h.bf16 %v17975_v32 }
 0x982   : > { %v8437_v23 = vsel %vm2103_vm7, %v8405_v43, %v12076_v14  ;;  %v12152_v33 = vunpack.i.h.bf16 %v12150_v49  ;;  %v12151_v19 = vunpack.i.l.bf16 %v12150_v49  ;;  %v7309_v49 = vld [vmem:[#allocation4 + $0x7a] sm:$0xff] }
 0x983   : > { %v12145_v62 = vpop.permute.xlu0 %12144  ;;  %v12383_v37 = vpack.i.bf16 %v7310_v52, %v7309_v49 }
 0x984   : > { %v12147_v7 = vunpack.i.h.bf16 %v12145_v62  ;;  %v12146_v28 = vunpack.i.l.bf16 %v12145_v62  ;;  %v12388_v62 = vpack.i.bf16 %v7298_v10, %v7297_v46 }
 0x985   : > { %12379 = vrot.lane.b32.xlu2 %v12378_v2, %s12681_s25 }
 0x986   : > { %v8469_v57 = vsel %vm6038_vm8, %v8437_v23, %v12146_v28  ;;  %v8470_v27 = vsel %vm6038_vm8, %v8438_v6, %v12147_v7  ;;  %v11921_v7 = vunpack.i.l.bf16 %v17975_v32  ;;  %v12001_v23 = vunpack.i.l.bf16 %v18028_v0 }
 0x987   : > { %12374 = vrot.lane.b32.xlu1 %v12373_v30, %s19874_s29  ;;  %v18291_v16 = vpop.permute.xlu2 %12214  ;;  %v8501_v41 = vsel %vm6071_vm9, %v8469_v57, %v12151_v19  ;;  %v8502_v31 = vsel %vm6071_vm9, %v8470_v27, %v12152_v33  ;;  %v12002_v30 = vunpack.i.h.bf16 %v18028_v0  ;;  %v7247_v33 = vld [vmem:[#allocation4 + $0x90] sm:$0xff]  ;;  %v7248_v19 = vld [vmem:[#allocation4 + $0x98] sm:$0xff]  ;;  %v12082_v57 = vunpack.i.h.bf16 %v18047_v53 }
 0x988   : > { %v8533_v51 = vsel %vm2235_vm12, %v8501_v41, %v12156_v9  ;;  %v8534_v1 = vsel %vm2235_vm12, %v8502_v31, %v12157_v50  ;;  %v12081_v27 = vunpack.i.l.bf16 %v18047_v53  ;;  %v8375_v0 = vsel %vm477_vm4, %v17886_v60, %v11921_v7 }
 0x989   : > { %12369 = vrot.lane.b32.xlu0 %v18186_v24, %s12689_s16  ;;  %v12165_v11 = vpop.permute.xlu1 %12164  ;;  %v12408_v31 = vpack.i.bf16 %v7248_v19, %v7247_v33  ;;  %v8407_v46 = vsel %vm5973_vm6, %v8375_v0, %v12001_v23  ;;  %v12187_v7 = vunpack.i.h.bf16 %v18232_v44  ;;  %v11927_v23 = vunpack.i.h.bf16 %v17973_v17 }
 0x98a   : > { %v12167_v59 = vunpack.i.h.bf16 %v12165_v11  ;;  %v12166_v22 = vunpack.i.l.bf16 %v12165_v11  ;;  %v8376_v11 = vsel %vm477_vm4, %v17888_v13, %v11922_v4  ;;  %v8439_v9 = vsel %vm2103_vm7, %v8407_v46, %v12081_v27 }
 0x98b   : > { %v12160_v36 = vpop.permute.xlu0 %12159  ;;  %v8408_v53 = vsel %vm5973_vm6, %v8376_v11, %v12002_v30 }
 0x98c   : > { %v12162_v14 = vunpack.i.h.bf16 %v12160_v36  ;;  %v12161_v24 = vunpack.i.l.bf16 %v12160_v36  ;;  %v8440_v42 = vsel %vm2103_vm7, %v8408_v53, %v12082_v57  ;;  %v12006_v57 = vunpack.i.l.bf16 %v17992_v38  ;;  %v7331_v53 = vld [vmem:[#allocation4 + $0x182] sm:$0xff] }
 0x98d   : > { %12394 = vrot.lane.b32.xlu2 %v18297_v18, %s12691_s14  ;;  %v8472_v13 = vsel %vm6038_vm8, %v8440_v42, %v12172_v21  ;;  %v12086_v21 = vunpack.i.l.bf16 %v18137_v63 }
 0x98e   : > { %v8565_v2 = vsel %vm6136_vm10, %v8533_v51, %v12161_v24  ;;  %v8566_v20 = vsel %vm6136_vm10, %v8534_v1, %v12162_v14  ;;  %v7267_v14 = vld [vmem:[#allocation4 + $0x180] sm:$0xff]  ;;  %v7268_v24 = vld [vmem:[#allocation4 + $0x188] sm:$0xff]  ;;  %v7279_v51 = vld [vmem:[#allocation4 + $0x91] sm:$0xff] }
 0x98f   : > { %v8597_v28 = vsel %vm6169_vm11, %v8565_v2, %v12166_v22  ;;  %v8598_v56 = vsel %vm6169_vm11, %v8566_v20, %v12167_v59  ;;  %12389 = vrot.lane.b32.xlu1 %v12388_v62, %s19874_s29  ;;  %v18312_v43 = vpop.permute.xlu2 %12229  ;;  %v8471_v59 = vsel %vm6038_vm8, %v8439_v9, %v12171_v35  ;;  %v7280_v1 = vld [vmem:[#allocation4 + $0x99] sm:$0xff]  ;;  %v12423_v30 = vpack.i.bf16 %v7268_v24, %v7267_v14 }
 0x990   : > { %v8622_v6 = vpack.c.bf16 %v8598_v56, %v8597_v28  ;;  %v12186_v28 = vunpack.i.l.bf16 %v18232_v44 }
 0x991   : > { %12384 = vrot.lane.b32.xlu0 %v12383_v37, %s12691_s14  ;;  %v12180_v32 = vpop.permute.xlu1 %12179 }
 0x992   : > { %9738 = vmatmul.msk.bf16.vlgmr.msrb.gmra.mxu3 %vm3932_vm0, %v8622_v6  ;;  %v12182_v22 = vunpack.i.h.bf16 %v12180_v32  ;;  %v12181_v60 = vunpack.i.l.bf16 %v12180_v32  ;;  %v11926_v6 = vunpack.i.l.bf16 %v17973_v17  ;;  %v12087_v32 = vunpack.i.h.bf16 %v18137_v63  ;;  %v7332_v63 = vld [vmem:[#allocation4 + $0x18a] sm:$0xff] }
 0x993   : > { %v12175_v41 = vpop.permute.xlu0 %12174 }
 0x994   : > { %v12177_v10 = vunpack.i.h.bf16 %v12175_v41  ;;  %v12176_v50 = vunpack.i.l.bf16 %v12175_v41  ;;  %v8377_v46 = vsel %vm477_vm4, %v17880_v26, %v11926_v6 }
 0x995   : > { %12409 = vrot.lane.b32.xlu2 %v12408_v31, %s12681_s25  ;;  %v8378_v31 = vsel %vm477_vm4, %v17882_v15, %v11927_v23  ;;  %v7299_v15 = vld [vmem:[#allocation4 + $0x181] sm:$0xff] }
 0x996   : > { %v8503_v36 = vsel %vm6071_vm9, %v8471_v59, %v12176_v50  ;;  %v8504_v49 = vsel %vm6071_vm9, %v8472_v13, %v12177_v10  ;;  %v8409_v10 = vsel %vm5973_vm6, %v8377_v46, %v12006_v57  ;;  %v7300_v13 = vld [vmem:[#allocation4 + $0x189] sm:$0xff]  ;;  %v12216_v57 = vunpack.i.l.bf16 %v18291_v16  ;;  %v19886_v46 = vld [vmem:[#allocation90_spill] sm:$0xff] }
 0x997   : > { %12404 = vrot.lane.b32.xlu1 %v12388_v62, %s12688_s27  ;;  %v18336_v52 = vpop.permute.xlu2 %12244  ;;  %v8535_v20 = vsel %vm2235_vm12, %v8503_v36, %v12181_v60  ;;  %v8536_v4 = vsel %vm2235_vm12, %v8504_v49, %v12182_v22  ;;  %v18343_v62 = vpack.i.bf16 %v7280_v1, %v7279_v51  ;;  %v8441_v59 = vsel %vm2103_vm7, %v8409_v10, %v12086_v21  ;;  %v7311_v51 = vld [vmem:[#allocation4 + $0x92] sm:$0xff]  ;;  %v7312_v1 = vld [vmem:[#allocation4 + $0x9a] sm:$0xff]  ;;  %v19885_v21 = vld [vmem:[#allocation123_spill] sm:$0xff] }
 0x998   : > { %v8567_v27 = vsel %vm6136_vm10, %v8535_v20, %v12186_v28  ;;  %v8568_v44 = vsel %vm6136_vm10, %v8536_v4, %v12187_v7  ;;  %v18373_v36 = vpack.i.bf16 %v7332_v63, %v7331_v53  ;;  %v12202_v49 = vunpack.i.h.bf16 %v18269_v3  ;;  %v7249_v10 = vld [vmem:[#allocation4 + $0xa8] sm:$0xff] }
 0x999   : > { %12399 = vrot.lane.b32.xlu0 %v12383_v37, %s12689_s16  ;;  %v12195_v2 = vpop.permute.xlu1 %12194  ;;  %v12007_v37 = vunpack.i.h.bf16 %v17992_v38  ;;  %v12011_v53 = vunpack.i.l.bf16 %v19886_v46 }
 0x99a   : > { %v12197_v11 = vunpack.i.h.bf16 %v12195_v2  ;;  %v12196_v0 = vunpack.i.l.bf16 %v12195_v2  ;;  %v12433_v2 = vpack.i.bf16 %v7300_v13, %v7299_v15  ;;  %v7313_v15 = vld [vmem:[#allocation4 + $0xaa] sm:$0xff]  ;;  %v7314_v13 = vld [vmem:[#allocation4 + $0xb2] sm:$0xff] }
 0x99b   : > { %v12190_v56 = vpop.permute.xlu0 %12189  ;;  %v8410_v50 = vsel %vm5973_vm6, %v8378_v31, %v12007_v37  ;;  %v12217_v37 = vunpack.i.h.bf16 %v18291_v16  ;;  %v12012_v16 = vunpack.i.h.bf16 %v19886_v46 }
 0x99c   : > { %v12192_v33 = vunpack.i.h.bf16 %v12190_v56  ;;  %v12191_v19 = vunpack.i.l.bf16 %v12190_v56  ;;  %v8442_v42 = vsel %vm2103_vm7, %v8410_v50, %v12087_v32  ;;  %v8473_v26 = vsel %vm6038_vm8, %v8441_v59, %v12196_v0  ;;  %v7281_v0 = vld [vmem:[#allocation4 + $0xa9] sm:$0xff] }
 0x99d   : > { %12424 = vrot.lane.b32.xlu2 %v12423_v30, %s12681_s25  ;;  %v8474_v22 = vsel %vm6038_vm8, %v8442_v42, %v12197_v11  ;;  %v12092_v50 = vunpack.i.h.bf16 %v18126_v61  ;;  %v7250_v59 = vld [vmem:[#allocation4 + $0xb0] sm:$0xff] }
 0x99e   : > { %v8599_v35 = vsel %vm6169_vm11, %v8567_v27, %v12191_v19  ;;  %v8600_v17 = vsel %vm6169_vm11, %v8568_v44, %v12192_v33  ;;  %v8506_v28 = vsel %vm6071_vm9, %v8474_v22, %v12202_v49 }
 0x99f   : > { %12419 = vrot.lane.b32.xlu1 %v18343_v62, %s19874_s29  ;;  %v8623_v38 = vpack.c.bf16 %v8600_v17, %v8599_v35  ;;  %v18358_v41 = vpop.permute.xlu2 %12259  ;;  %v11932_v35 = vunpack.i.h.bf16 %v19885_v21  ;;  %v11931_v17 = vunpack.i.l.bf16 %v19885_v21  ;;  %v7270_v21 = vld [vmem:[#allocation4 + $0x1a0] sm:$0xff] }
 0x9a1   : > { %12414 = vrot.lane.b32.xlu0 %v18297_v18, %s12689_s16  ;;  %v12210_v9 = vpop.permute.xlu1 %12209  ;;  %v12201_v18 = vunpack.i.l.bf16 %v18269_v3  ;;  %v12428_v3 = vpack.i.bf16 %v7312_v1, %v7311_v51 }
 0x9a2   : > { %9739 = vmatmul.msk.bf16.gmra.mxu3 %vm3932_vm0, %v8623_v38  ;;  %v12212_v20 = vunpack.i.h.bf16 %v12210_v9  ;;  %v12211_v4 = vunpack.i.l.bf16 %v12210_v9  ;;  %v7282_v38 = vld [vmem:[#allocation4 + $0xb1] sm:$0xff]  ;;  %v12091_v9 = vunpack.i.l.bf16 %v18126_v61 }
 0x9a3   : > { %v12205_v60 = vpop.permute.xlu0 %12204  ;;  %v8505_v7 = vsel %vm6071_vm9, %v8473_v26, %v12201_v18  ;;  %v18408_v42 = vpack.i.bf16 %v7282_v38, %v7281_v0  ;;  %v19887_v26 = vld [vmem:[#allocation107_spill] sm:$0xff]  ;;  %v12262_v0 = vunpack.i.h.bf16 %v18358_v41 }
 0x9a4   : > { %v12207_v14 = vunpack.i.h.bf16 %v12205_v60  ;;  %v12206_v24 = vunpack.i.l.bf16 %v12205_v60  ;;  %v8380_v22 = vsel %vm477_vm4, %v19887_v26, %v11932_v35  ;;  %v19888_v60 = vld [vmem:[#allocation95_spill] sm:$0xff] }
 0x9a5   : > { %12439 = vrot.lane.b32.xlu2 %v18373_v36, %s12691_s14 }
 0x9a6   : > { %v8537_v56 = vsel %vm2235_vm12, %v8505_v7, %v12206_v24  ;;  %v8538_v30 = vsel %vm2235_vm12, %v8506_v28, %v12207_v14  ;;  %v12478_v7 = vpack.i.bf16 %v7314_v13, %v7313_v15 }
 0x9a7   : > { %12434 = vrot.lane.b32.xlu1 %v12433_v2, %s19874_s29  ;;  %v18384_v23 = vpop.permute.xlu2 %12274  ;;  %v8569_v33 = vsel %vm6136_vm10, %v8537_v56, %v12211_v4  ;;  %v8570_v19 = vsel %vm6136_vm10, %v8538_v30, %v12212_v20  ;;  %v12458_v4 = vpack.i.bf16 %v7250_v59, %v7249_v10  ;;  %v12232_v30 = vunpack.i.h.bf16 %v18312_v43 }
 0x9a8   : > { %v8601_v44 = vsel %vm6169_vm11, %v8569_v33, %v12216_v57  ;;  %v8602_v32 = vsel %vm6169_vm11, %v8570_v19, %v12217_v37  ;;  %v7302_v33 = vld [vmem:[#allocation4 + $0x1a1] sm:$0xff]  ;;  %v12247_v19 = vunpack.i.h.bf16 %v18336_v52  ;;  %v12246_v37 = vunpack.i.l.bf16 %v18336_v52 }
 0x9a9   : > { %12429 = vrot.lane.b32.xlu0 %v12428_v3, %s12691_s14  ;;  %v12225_v6 = vpop.permute.xlu1 %12224  ;;  %v8624_v31 = vpack.c.bf16 %v8602_v32, %v8601_v44  ;;  %v7269_v32 = vld [vmem:[#allocation4 + $0x198] sm:$0xff] }
 0x9aa   : > { %v12227_v49 = vunpack.i.h.bf16 %v12225_v6  ;;  %v12226_v18 = vunpack.i.l.bf16 %v12225_v6  ;;  %v7301_v6 = vld [vmem:[#allocation4 + $0x199] sm:$0xff]  ;;  %v12473_v10 = vpack.i.bf16 %v7270_v21, %v7269_v32 }
 0x9ab   : > { %v12220_v27 = vpop.permute.xlu0 %12219  ;;  %v12483_v46 = vpack.i.bf16 %v7302_v33, %v7301_v6  ;;  %v7315_v33 = vld [vmem:[#allocation4 + $0xc2] sm:$0xff] }
 0x9ac   : > { %v12222_v24 = vunpack.i.h.bf16 %v12220_v27  ;;  %v12221_v51 = vunpack.i.l.bf16 %v12220_v27 }
 0x9ad   : > { %12454 = vrot.lane.b32.xlu2 %v12433_v2, %s12688_s27  ;;  %v8412_v2 = vsel %vm5973_vm6, %v8380_v22, %v12012_v16  ;;  %v12261_v16 = vunpack.i.l.bf16 %v18358_v41 }
 0x9ae   : > { %v8444_v56 = vsel %vm2103_vm7, %v8412_v2, %v12092_v50  ;;  %v8488_v35 = vsel %vm6071_vm9, %v18210_v40, %v12222_v24  ;;  %v7333_v2 = vld [vmem:[#allocation4 + $0x19a] sm:$0xff] }
 0x9af   : > { %12449 = vrot.lane.b32.xlu1 %v12428_v3, %s12689_s16  ;;  %v18397_v11 = vpop.permute.xlu2 %12289  ;;  %v12231_v3 = vunpack.i.l.bf16 %v18312_v43  ;;  %v8476_v27 = vsel %vm6038_vm8, %v8444_v56, %v12227_v49  ;;  %v8487_v43 = vsel %vm6071_vm9, %v18207_v12, %v12221_v51  ;;  %v8520_v50 = vsel %vm2235_vm12, %v8488_v35, %v12232_v30  ;;  %v4493_v56 = vpop.f32.mrf.mxu3  ;;  %v19889_v30 = vld [vmem:[#allocation114_spill] sm:$0xff] }
 0x9b0   : > { %v11936_v6 = vunpack.i.l.bf16 %v19889_v30  ;;  %4498 = vst [vmem:[%s16935_s24 + $0x8] sm:$0xff] %v4493_v56 }
 0x9b1   : > { %12444 = vrot.lane.b32.xlu0 %v18343_v62, %s12688_s27  ;;  %v18403_v63 = vpop.permute.xlu1 %12239  ;;  %v8379_v62 = vsel %vm477_vm4, %v19888_v60, %v11931_v17  ;;  %v8519_v40 = vsel %vm2235_vm12, %v8487_v43, %v12231_v3  ;;  %v11937_v3 = vunpack.i.h.bf16 %v19889_v30 }
 0x9b2   : > { %9740 = vmatmul.msk.bf16.gmra.mxu3 %vm3932_vm0, %v8624_v31  ;;  %v8411_v20 = vsel %vm5973_vm6, %v8379_v62, %v12011_v53  ;;  %v12242_v38 = vunpack.i.h.bf16 %v18403_v63 }
 0x9b3   : > { %v12235_v14 = vpop.permute.xlu0 %12234  ;;  %v8443_v28 = vsel %vm2103_vm7, %v8411_v20, %v12091_v9  ;;  %v7334_v20 = vld [vmem:[#allocation4 + $0x1a2] sm:$0xff] }
 0x9b4   : > { %v12237_v1 = vunpack.i.h.bf16 %v12235_v14  ;;  %v12236_v61 = vunpack.i.l.bf16 %v12235_v14  ;;  %v8475_v57 = vsel %vm6038_vm8, %v8443_v28, %v12226_v18  ;;  %v8552_v60 = vsel %vm6136_vm10, %v8520_v50, %v12242_v38  ;;  %v12602_v38 = vld [vmem:[#allocation4 + $0x108] sm:$0xff] }
 0x9b5   : > { %12469 = vrot.lane.b32.xlu2 %v18408_v42, %s19874_s29  ;;  %v12488_v28 = vpack.i.bf16 %v7334_v20, %v7333_v2  ;;  %v12292_v20 = vunpack.i.h.bf16 %v18397_v11 }
 0x9b6   : > { %v8507_v17 = vsel %vm6071_vm9, %v8475_v57, %v12236_v61  ;;  %v8508_v52 = vsel %vm6071_vm9, %v8476_v27, %v12237_v1 }
 0x9b7   : > { %12464 = vrot.lane.b32.xlu1 %v18373_v36, %s12689_s16  ;;  %v18428_v44 = vpop.permute.xlu2 %12304  ;;  %v12241_v36 = vunpack.i.l.bf16 %v18403_v63  ;;  %v8539_v9 = vsel %vm2235_vm12, %v8507_v17, %v12246_v37  ;;  %v8540_v59 = vsel %vm2235_vm12, %v8508_v52, %v12247_v19  ;;  %v7316_v19 = vld [vmem:[#allocation4 + $0xca] sm:$0xff]  ;;  %v7283_v17 = vld [vmem:[#allocation4 + $0xc1] sm:$0xff] }
 0x9b8   : > { %v19890_v37 = vld [vmem:[#allocation55_spill] sm:$0xff]  ;;  %v12513_v35 = vpack.i.bf16 %v7316_v19, %v7315_v33  ;;  %v12307_v30 = vunpack.i.h.bf16 %v18428_v44 }
 0x9b9   : > { %12459 = vrot.lane.b32.xlu0 %v12458_v4, %s12681_s25  ;;  %v12255_v31 = vpop.permute.xlu1 %12254  ;;  %v8551_v41 = vsel %vm6136_vm10, %v8519_v40, %v12241_v36  ;;  %v12017_v57 = vunpack.i.h.bf16 %v19890_v37  ;;  %v12016_v27 = vunpack.i.l.bf16 %v19890_v37  ;;  %v7284_v52 = vld [vmem:[#allocation4 + $0xc9] sm:$0xff]  ;;  %v8381_v36 = vsel %vm477_vm4, %v12602_v38, %v11936_v6 }
 0x9ba   : > { %v12257_v12 = vunpack.i.h.bf16 %v12255_v31  ;;  %v12256_v53 = vunpack.i.l.bf16 %v12255_v31 }
 0x9bb   : > { %v12250_v15 = vpop.permute.xlu0 %12249 }
 0x9bc   : > { %v8571_v63 = vsel %vm6136_vm10, %v8539_v9, %v12256_v53  ;;  %v8572_v13 = vsel %vm6136_vm10, %v8540_v59, %v12257_v12  ;;  %v12252_v26 = vunpack.i.h.bf16 %v12250_v15  ;;  %v12251_v22 = vunpack.i.l.bf16 %v12250_v15  ;;  %v7251_v53 = vld [vmem:[#allocation4 + $0xc0] sm:$0xff] }
 0x9bd   : > { %12484 = vrot.lane.b32.xlu2 %v12483_v46, %s19874_s29  ;;  %v8603_v62 = vsel %vm6169_vm11, %v8571_v63, %v12261_v16  ;;  %v8604_v49 = vsel %vm6169_vm11, %v8572_v13, %v12262_v0  ;;  %v12601_v0 = vld [vmem:[#allocation4 + $0x110] sm:$0xff]  ;;  %v8413_v15 = vsel %vm5973_vm6, %v8381_v36, %v12016_v27  ;;  %v12508_v13 = vpack.i.bf16 %v7284_v52, %v7283_v17 }
 0x9be   : > { %v8583_v18 = vsel %vm6169_vm11, %v8551_v41, %v12251_v22  ;;  %v8584_v14 = vsel %vm6169_vm11, %v8552_v60, %v12252_v26  ;;  %v8625_v24 = vpack.c.bf16 %v8604_v49, %v8603_v62  ;;  %v4495_v60 = vpop.f32.mrf.mxu3  ;;  %v12277_v62 = vunpack.i.h.bf16 %v18384_v23 }
 0x9bf   : > { %v8615_v51 = vpack.c.bf16 %v8584_v14, %v8583_v18  ;;  %12479 = vrot.lane.b32.xlu1 %v12478_v7, %s12691_s14  ;;  %v18457_v1 = vpop.permute.xlu2 %12319  ;;  %v12276_v49 = vunpack.i.l.bf16 %v18384_v23  ;;  %v12291_v23 = vunpack.i.l.bf16 %v18397_v11  ;;  %v12604_v60 = vld [vmem:[#allocation4 + $0x120] sm:$0xff] }
 0x9c1   : > { %12474 = vrot.lane.b32.xlu0 %v12473_v10, %s12681_s25  ;;  %9731 = vmatmul.msk.bf16.vlgmr.msrb.gmra.mxu0 %vm3932_vm0, %v8615_v51  ;;  %v12270_v61 = vpop.permute.xlu1 %12269  ;;  %v7252_v10 = vld [vmem:[#allocation4 + $0xc8] sm:$0xff] }
 0x9c2   : > { %9741 = vmatmul.msk.bf16.gmra.mxu3 %vm3932_vm0, %v8625_v24  ;;  %v12272_v31 = vunpack.i.h.bf16 %v12270_v61  ;;  %v12271_v46 = vunpack.i.l.bf16 %v12270_v61  ;;  %v12503_v41 = vpack.i.bf16 %v7252_v10, %v7251_v53  ;;  %v19892_v53 = vld [vmem:[#allocation99_spill] sm:$0xff] }
 0x9c3   : > { %v12265_v4 = vpop.permute.xlu0 %12264  ;;  %v11942_v10 = vunpack.i.h.bf16 %v19892_v53 }
 0x9c4   : > { %v12267_v40 = vunpack.i.h.bf16 %v12265_v4  ;;  %v12266_v50 = vunpack.i.l.bf16 %v12265_v4 }
 0x9c5   : > { %12499 = vrot.lane.b32.xlu2 %v12478_v7, %s12689_s16  ;;  %v19891_v7 = vld [vmem:[#allocation105_spill] sm:$0xff]  ;;  %s18697_s16 = scalar_lea.vmem %s19045_s9, %s12860_s23  ;;  %s12693_s23 = smov 112  }
 0x9c6   : > { %v12097_v21 = vunpack.i.h.bf16 %v19891_v7  ;;  %v12096_v43 = vunpack.i.l.bf16 %v19891_v7  ;;  %v8489_v24 = vsel %vm6071_vm9, %v18103_v8, %v12266_v50  ;;  %v8490_v51 = vsel %vm6071_vm9, %v18106_v29, %v12267_v40  ;;  %v6772_v38 = vpop.f32.mrf.mxu3 }
 0x9c7   : > { %12494 = vrot.lane.b32.xlu1 %v18408_v42, %s12688_s27  ;;  %v8382_v42 = vsel %vm477_vm4, %v12601_v0, %v11937_v3  ;;  %v18473_v16 = vpop.permute.xlu2 %12334  ;;  %v12306_v8 = vunpack.i.l.bf16 %v18428_v44  ;;  %v8521_v29 = vsel %vm2235_vm12, %v8489_v24, %v12276_v49  ;;  %v8522_v33 = vsel %vm2235_vm12, %v8490_v51, %v12277_v62  ;;  %6789 = vst [vmem:[%s16935_s24 + $0x10] sm:$0xff] %v6772_v38 }
 0x9c8   : > { %v8414_v63 = vsel %vm5973_vm6, %v8382_v42, %v12017_v57  ;;  %v8445_v26 = vsel %vm2103_vm7, %v8413_v15, %v12096_v43  ;;  %v11941_v40 = vunpack.i.l.bf16 %v19892_v53 }
 0x9c9   : > { %12489 = vrot.lane.b32.xlu0 %v12488_v28, %s12691_s14  ;;  %v12285_v32 = vpop.permute.xlu1 %12284  ;;  %v8446_v22 = vsel %vm2103_vm7, %v8414_v63, %v12097_v21  ;;  %v8477_v18 = vsel %vm6038_vm8, %v8445_v26, %v12271_v46  ;;  %v12101_v26 = vunpack.i.l.bf16 %v18161_v55 }
 0x9ca   : > { %v8478_v14 = vsel %vm6038_vm8, %v8446_v22, %v12272_v31  ;;  %v12287_v4 = vunpack.i.h.bf16 %v12285_v32  ;;  %v12286_v28 = vunpack.i.l.bf16 %v12285_v32  ;;  %v12603_v22 = vld [vmem:[#allocation4 + $0x128] sm:$0xff]  ;;  %v8383_v62 = vsel %vm477_vm4, %v12604_v60, %v11941_v40 }
 0x9cb   : > { %v12280_v12 = vpop.permute.xlu0 %12279 }
 0x9cc   : > { %v12282_v9 = vunpack.i.h.bf16 %v12280_v12  ;;  %v12281_v59 = vunpack.i.l.bf16 %v12280_v12  ;;  %v8553_v44 = vsel %vm6136_vm10, %v8521_v29, %v12286_v28  ;;  %v8554_v21 = vsel %vm6136_vm10, %v8522_v33, %v12287_v4 }
 0x9cd   : > { %12514 = vrot.lane.b32.xlu2 %v12513_v35, %s12691_s14  ;;  %v12322_v28 = vunpack.i.h.bf16 %v18457_v1  ;;  %s9816_s14 = smul.u32 48, %s12766_s13 }
 0x9ce   : > { %v8509_v61 = vsel %vm6071_vm9, %v8477_v18, %v12281_v59  ;;  %v8510_v2 = vsel %vm6071_vm9, %v8478_v14, %v12282_v9  ;;  %v6774_v12 = vpop.f32.mrf.mxu3  ;;  %v19893_v9 = vld [vmem:[#allocation96_spill] sm:$0xff] }
 0x9cf   : > { %12509 = vrot.lane.b32.xlu1 %v12508_v13, %s19874_s29  ;;  %v8541_v19 = vsel %vm2235_vm12, %v8509_v61, %v12291_v23  ;;  %v8542_v37 = vsel %vm2235_vm12, %v8510_v2, %v12292_v20  ;;  %v18504_v43 = vpop.permute.xlu2 %12349  ;;  %v12022_v59 = vunpack.i.h.bf16 %v19893_v9  ;;  %v12021_v15 = vunpack.i.l.bf16 %v19893_v9  ;;  %s9412_s21 = scalar_lea.hbm %s19044_s8, %s9816_s14  ;;  %s12629_s14 = scalar_lea.hbm %s19044_s8, 96 }
 0x9d0   : > { %v12102_v13 = vunpack.i.h.bf16 %v18161_v55  ;;  %s9415_s22 = sshll.u32 %s9412_s21, 4  ;;  %s9416_s22 = int_to_ptr.hbm [resolvable:$true] %s9415_s22 }
 0x9d1   : > { %12504 = vrot.lane.b32.xlu0 %v12503_v41, %s12681_s25  ;;  %v12300_v56 = vpop.permute.xlu1 %12299  ;;  %v8384_v41 = vsel %vm477_vm4, %v12603_v22, %v11942_v10  ;;  %v8415_v20 = vsel %vm5973_vm6, %v8383_v62, %v12021_v15  ;;  %s19969_s25 = sand.u32 1, %s12663_s10  }
 0x9d2   : > { %v12302_v3 = vunpack.i.h.bf16 %v12300_v56  ;;  %v12301_v6 = vunpack.i.l.bf16 %v12300_v56  ;;  %v8416_v23 = vsel %vm5973_vm6, %v8384_v41, %v12022_v59  ;;  %v8447_v4 = vsel %vm2103_vm7, %v8415_v20, %v12101_v26  ;;  %s9396_s27 = scalar_lea.sflag [#allocation6], %s19969_s25 }
 0x9d3   : > { %v12295_v11 = vpop.permute.xlu0 %12294  ;;  %v8448_v55 = vsel %vm2103_vm7, %v8416_v23, %v12102_v13  ;;  %v12321_v56 = vunpack.i.l.bf16 %v18457_v1  ;;  %v12336_v1 = vunpack.i.l.bf16 %v18473_v16 }
 0x9d4   : > { %v8573_v57 = vsel %vm6136_vm10, %v8541_v19, %v12301_v6  ;;  %v8574_v27 = vsel %vm6136_vm10, %v8542_v37, %v12302_v3  ;;  %v12297_v32 = vunpack.i.h.bf16 %v12295_v11  ;;  %v12296_v7 = vunpack.i.l.bf16 %v12295_v11 }
 0x9d5   : > { %v8605_v35 = vsel %vm6169_vm11, %v8573_v57, %v12306_v8  ;;  %v8606_v17 = vsel %vm6169_vm11, %v8574_v27, %v12307_v30  ;;  %v12337_v37 = vunpack.i.h.bf16 %v18473_v16 }
 0x9d6   : > { %v8585_v52 = vsel %vm6169_vm11, %v8553_v44, %v12296_v7  ;;  %v8586_v0 = vsel %vm6169_vm11, %v8554_v21, %v12297_v32  ;;  %v8626_v42 = vpack.c.bf16 %v8606_v17, %v8605_v35  ;;  %v6785_v3 = vpop.f32.mrf.mxu3  ;;  %v12352_v7 = vunpack.i.h.bf16 %v18504_v43 }
 0x9d7   : > { %v8616_v36 = vpack.c.bf16 %v8586_v0, %v8585_v52  ;;  %v18515_v50 = vpop.permute.xlu2 %12364  ;;  %6790 = vst [vmem:[%s16935_s24 + $0x18] sm:$0xff] %v6785_v3 }
 0x9d8   : > { %9742 = vmatmul.msk.bf16.gmra.mxu3 %vm3932_vm0, %v8626_v42 }
 0x9d9   : > { %9732 = vmatmul.msk.bf16.gmra.mxu0 %vm3932_vm0, %v8616_v36  ;;  %v12315_v31 = vpop.permute.xlu1 %12314 }
 0x9da   : > { %v12317_v49 = vunpack.i.h.bf16 %v12315_v31  ;;  %v12316_v18 = vunpack.i.l.bf16 %v12315_v31 }
 0x9db   : > { %v12310_v46 = vpop.permute.xlu0 %12309 }
 0x9dc   : > { %v12312_v24 = vunpack.i.h.bf16 %v12310_v46  ;;  %v12311_v51 = vunpack.i.l.bf16 %v12310_v46  ;;  %v8479_v30 = vsel %vm6038_vm8, %v8447_v4, %v12316_v18  ;;  %v8480_v8 = vsel %vm6038_vm8, %v8448_v55, %v12317_v49 }
 0x9de   : > { %v8491_v6 = vsel %vm6071_vm9, %v18262_v48, %v12311_v51  ;;  %v8492_v29 = vsel %vm6071_vm9, %v18265_v25, %v12312_v24  ;;  %v12351_v48 = vunpack.i.l.bf16 %v18504_v43  ;;  %v6787_v59 = vpop.f32.mrf.mxu3  ;;  %v12367_v51 = vunpack.i.h.bf16 %v18515_v50 }
 0x9df   : > { %v12380_v11 = vpop.permute.xlu2 %12379  ;;  %v8523_v25 = vsel %vm2235_vm12, %v8491_v6, %v12321_v56  ;;  %v8524_v35 = vsel %vm2235_vm12, %v8492_v29, %v12322_v28 }
 0x9e0   : > { %v12382_v56 = vunpack.i.h.bf16 %v12380_v11 }
 0x9e1   : > { %v12330_v63 = vpop.permute.xlu1 %12329 }
 0x9e2   : > { %v12332_v57 = vunpack.i.h.bf16 %v12330_v63  ;;  %v12331_v27 = vunpack.i.l.bf16 %v12330_v63 }
 0x9e3   : > { %v12325_v14 = vpop.permute.xlu0 %12324 }
 0x9e4   : > { %v12327_v61 = vunpack.i.h.bf16 %v12325_v14  ;;  %v12326_v2 = vunpack.i.l.bf16 %v12325_v14  ;;  %v8555_v31 = vsel %vm6136_vm10, %v8523_v25, %v12331_v27  ;;  %v8556_v43 = vsel %vm6136_vm10, %v8524_v35, %v12332_v57 }
 0x9e6   : > { %v8511_v33 = vsel %vm6071_vm9, %v8479_v30, %v12326_v2  ;;  %v8512_v19 = vsel %vm6071_vm9, %v8480_v8, %v12327_v61  ;;  %v12366_v61 = vunpack.i.l.bf16 %v18515_v50  ;;  %v12381_v30 = vunpack.i.l.bf16 %v12380_v11 }
 0x9e7   : > { %v8543_v17 = vsel %vm2235_vm12, %v8511_v33, %v12336_v1  ;;  %v8544_v52 = vsel %vm2235_vm12, %v8512_v19, %v12337_v37  ;;  %v12395_v63 = vpop.permute.xlu2 %12394 }
 0x9e8   : > { %v12397_v6 = vunpack.i.h.bf16 %v12395_v63 }
 0x9e9   : > { %v12345_v32 = vpop.permute.xlu1 %12344 }
 0x9ea   : > { %v12347_v44 = vunpack.i.h.bf16 %v12345_v32  ;;  %v12346_v21 = vunpack.i.l.bf16 %v12345_v32 }
 0x9eb   : > { %v12340_v0 = vpop.permute.xlu0 %12339 }
 0x9ec   : > { %v8575_v16 = vsel %vm6136_vm10, %v8543_v17, %v12346_v21  ;;  %v8576_v42 = vsel %vm6136_vm10, %v8544_v52, %v12347_v44  ;;  %v12342_v38 = vunpack.i.h.bf16 %v12340_v0  ;;  %v12341_v36 = vunpack.i.l.bf16 %v12340_v0 }
 0x9ed   : > { %v8607_v46 = vsel %vm6169_vm11, %v8575_v16, %v12351_v48  ;;  %v8608_v12 = vsel %vm6169_vm11, %v8576_v42, %v12352_v7 }
 0x9ee   : > { %v8587_v53 = vsel %vm6169_vm11, %v8555_v31, %v12341_v36  ;;  %v8588_v10 = vsel %vm6169_vm11, %v8556_v43, %v12342_v38  ;;  %v8627_v40 = vpack.c.bf16 %v8608_v12, %v8607_v46 }
 0x9ef   : > { %v8617_v9 = vpack.c.bf16 %v8588_v10, %v8587_v53  ;;  %v18556_v24 = vpop.permute.xlu2 %12409 }
 0x9f0   : > { %9743 = vmatmul.msk.bf16.gmra.mxu3 %vm3932_vm0, %v8627_v40  ;;  %v12411_v59 = vunpack.i.l.bf16 %v18556_v24 }
 0x9f1   : > { %9733 = vmatmul.msk.bf16.gmra.mxu0 %vm3932_vm0, %v8617_v9  ;;  %v12360_v15 = vpop.permute.xlu1 %12359  ;;  %v12412_v9 = vunpack.i.h.bf16 %v18556_v24 }
 0x9f2   : > { %v12362_v22 = vunpack.i.h.bf16 %v12360_v15  ;;  %v12361_v41 = vunpack.i.l.bf16 %v12360_v15 }
 0x9f3   : > { %v12355_v13 = vpop.permute.xlu0 %12354 }
 0x9f4   : > { %v12357_v62 = vunpack.i.h.bf16 %v12355_v13  ;;  %v12356_v49 = vunpack.i.l.bf16 %v12355_v13  ;;  %v8481_v2 = vsel %vm6038_vm8, %v18166_v47, %v12361_v41  ;;  %v8482_v20 = vsel %vm6038_vm8, %v18169_v34, %v12362_v22  ;;  %v19896_v41 = vld [vmem:[#allocation82_spill] sm:$0xff] }
 0x9f5   : > { %v12396_v47 = vunpack.i.l.bf16 %v12395_v63  ;;  %v19894_v63 = vld [vmem:[#allocation88_spill] sm:$0xff] }
 0x9f6   : > { %v8493_v23 = vsel %vm6071_vm9, %v18253_v5, %v12356_v49  ;;  %v8494_v55 = vsel %vm6071_vm9, %v18256_v54, %v12357_v62 }
 0x9f7   : > { %v8525_v34 = vsel %vm2235_vm12, %v8493_v23, %v12366_v61  ;;  %v8526_v5 = vsel %vm2235_vm12, %v8494_v55, %v12367_v51  ;;  %v12425_v17 = vpop.permute.xlu2 %12424 }
 0x9f9   : > { %v12375_v26 = vpop.permute.xlu1 %12374 }
 0x9fa   : > { %v12377_v8 = vunpack.i.h.bf16 %v12375_v26  ;;  %v12376_v50 = vunpack.i.l.bf16 %v12375_v26  ;;  %v19895_v26 = vld [vmem:[#allocation115_spill] sm:$0xff] }
 0x9fb   : > { %v12370_v60 = vpop.permute.xlu0 %12369 }
 0x9fc   : > { %v12372_v18 = vunpack.i.h.bf16 %v12370_v60  ;;  %v12371_v14 = vunpack.i.l.bf16 %v12370_v60  ;;  %v8557_v32 = vsel %vm6136_vm10, %v8525_v34, %v12376_v50  ;;  %v8558_v7 = vsel %vm6136_vm10, %v8526_v5, %v12377_v8 }
 0x9fe   : > { %v8513_v4 = vsel %vm6071_vm9, %v8481_v2, %v12371_v14  ;;  %v8514_v28 = vsel %vm6071_vm9, %v8482_v20, %v12372_v18  ;;  %v12427_v18 = vunpack.i.h.bf16 %v12425_v17  ;;  %v12426_v14 = vunpack.i.l.bf16 %v12425_v17  ;;  %v19899_v17 = vld [vmem:[#allocation127_spill] sm:$0xff] }
 0x9ff   : > { %v8545_v19 = vsel %vm2235_vm12, %v8513_v4, %v12381_v30  ;;  %v8546_v54 = vsel %vm2235_vm12, %v8514_v28, %v12382_v56  ;;  %v12440_v42 = vpop.permute.xlu2 %12439 }
 0xa00   : > { %v12442_v2 = vunpack.i.h.bf16 %v12440_v42 }
 0xa01   : > { %v12390_v3 = vpop.permute.xlu1 %12389 }
 0xa02   : > { %v12392_v29 = vunpack.i.h.bf16 %v12390_v3  ;;  %v12391_v33 = vunpack.i.l.bf16 %v12390_v3 }
 0xa03   : > { %v12385_v37 = vpop.permute.xlu0 %12384 }
 0xa04   : > { %v8577_v1 = vsel %vm6136_vm10, %v8545_v19, %v12391_v33  ;;  %v8578_v11 = vsel %vm6136_vm10, %v8546_v54, %v12392_v29  ;;  %v12387_v57 = vunpack.i.h.bf16 %v12385_v37  ;;  %v12386_v27 = vunpack.i.l.bf16 %v12385_v37 }
 0xa05   : > { %v8609_v48 = vsel %vm6169_vm11, %v8577_v1, %v12396_v47  ;;  %v8610_v44 = vsel %vm6169_vm11, %v8578_v11, %v12397_v6 }
 0xa06   : > { %v8589_v21 = vsel %vm6169_vm11, %v8557_v32, %v12386_v27  ;;  %v8590_v25 = vsel %vm6169_vm11, %v8558_v7, %v12387_v57  ;;  %v8628_v35 = vpack.c.bf16 %v8610_v44, %v8609_v48  ;;  %v19897_v32 = vld [vmem:[#allocation26_spill] sm:$0xff] }
 0xa07   : > { %v8618_v52 = vpack.c.bf16 %v8590_v25, %v8589_v21  ;;  %v18597_v55 = vpop.permute.xlu2 %12454  ;;  %v11907_v7 = vunpack.i.h.bf16 %v19897_v32  ;;  %v11906_v48 = vunpack.i.l.bf16 %v19897_v32  ;;  %v19898_v21 = vld [vmem:[#allocation128_spill] sm:$0xff] }
 0xa08   : > { %9744 = vmatmul.msk.bf16.gmra.mxu3 %vm3932_vm0, %v8628_v35  ;;  %v11987_v25 = vunpack.i.h.bf16 %v19898_v21  ;;  %v11986_v35 = vunpack.i.l.bf16 %v19898_v21 }
 0xa09   : > { %9734 = vmatmul.msk.bf16.gmra.mxu0 %vm3932_vm0, %v8618_v52  ;;  %v12405_v0 = vpop.permute.xlu1 %12404  ;;  %v12067_v52 = vunpack.i.h.bf16 %v19899_v17 }
 0xa0a   : > { %v12407_v36 = vunpack.i.h.bf16 %v12405_v0  ;;  %v12406_v31 = vunpack.i.l.bf16 %v12405_v0  ;;  %v12066_v0 = vunpack.i.l.bf16 %v19899_v17 }
 0xa0b   : > { %v12400_v16 = vpop.permute.xlu0 %12399 }
 0xa0c   : > { %v12402_v46 = vunpack.i.h.bf16 %v12400_v16  ;;  %v12401_v12 = vunpack.i.l.bf16 %v12400_v16  ;;  %v8483_v15 = vsel %vm6038_vm8, %v18076_v58, %v12406_v31  ;;  %v8484_v13 = vsel %vm6038_vm8, %v19894_v63, %v12407_v36  ;;  %v12606_v31 = vld [vmem:[#allocation4 + $0x78] sm:$0xff] }
 0xa0d   : > { %v12441_v58 = vunpack.i.l.bf16 %v12440_v42 }
 0xa0e   : > { %v8495_v22 = vsel %vm6071_vm9, %v19895_v26, %v12401_v12  ;;  %v8496_v60 = vsel %vm6071_vm9, %v19896_v41, %v12402_v46 }
 0xa0f   : > { %v8527_v4 = vsel %vm2235_vm12, %v8495_v22, %v12411_v59  ;;  %v8528_v28 = vsel %vm2235_vm12, %v8496_v60, %v12412_v9  ;;  %v12470_v44 = vpop.permute.xlu2 %12469 }
 0xa11   : > { %v12420_v38 = vpop.permute.xlu1 %12419 }
 0xa12   : > { %v12422_v51 = vunpack.i.h.bf16 %v12420_v38  ;;  %v12421_v24 = vunpack.i.l.bf16 %v12420_v38  ;;  %v12605_v38 = vld [vmem:[#allocation4 + $0x80] sm:$0xff] }
 0xa13   : > { %v12415_v43 = vpop.permute.xlu0 %12414  ;;  %v8370_v36 = vsel %vm477_vm4, %v12605_v38, %v11907_v7  ;;  %v19901_v7 = vld [vmem:[#allocation87_spill] sm:$0xff] }
 0xa14   : > { %v12417_v53 = vunpack.i.h.bf16 %v12415_v43  ;;  %v12416_v10 = vunpack.i.l.bf16 %v12415_v43  ;;  %v8559_v29 = vsel %vm6136_vm10, %v8527_v4, %v12421_v24  ;;  %v8560_v33 = vsel %vm6136_vm10, %v8528_v28, %v12422_v51 }
 0xa15   : > { %v8762_v40 = vpop.f32.mrf.mxu3  ;;  %v8369_v43 = vsel %vm477_vm4, %v12606_v31, %v11906_v48  ;;  %v12471_v51 = vunpack.i.l.bf16 %v12470_v44  ;;  %v12457_v4 = vunpack.i.h.bf16 %v18597_v55  ;;  %v12456_v28 = vunpack.i.l.bf16 %v18597_v55  ;;  %v12607_v31 = vld [vmem:[#allocation4 + $0x98] sm:$0xff] }
 0xa16   : > { %8867 = vrot.lane.b32.xlu0 %v8762_v40, %s19306_s28  ;;  %v8515_v62 = vsel %vm6071_vm9, %v8483_v15, %v12416_v10  ;;  %v8516_v49 = vsel %vm6071_vm9, %v8484_v13, %v12417_v53  ;;  %v8401_v12 = vsel %vm5973_vm6, %v8369_v43, %v11986_v35  ;;  %v8402_v53 = vsel %vm5973_vm6, %v8370_v36, %v11987_v25  ;;  %v19902_v25 = vld [vmem:[#allocation117_spill] sm:$0xff] }
 0xa17   : > { %v8547_v56 = vsel %vm2235_vm12, %v8515_v62, %v12426_v14  ;;  %v8548_v30 = vsel %vm2235_vm12, %v8516_v49, %v12427_v18  ;;  %v8433_v10 = vsel %vm2103_vm7, %v8401_v12, %v12066_v0  ;;  %v8434_v40 = vsel %vm2103_vm7, %v8402_v53, %v12067_v52  ;;  %v12485_v41 = vpop.permute.xlu2 %12484 }
 0xa18   : > { %v12472_v14 = vunpack.i.h.bf16 %v12470_v44  ;;  %v11992_v48 = vunpack.i.h.bf16 %v19901_v7  ;;  %v12072_v35 = vunpack.i.h.bf16 %v19902_v25  ;;  %v12071_v17 = vunpack.i.l.bf16 %v19902_v25  ;;  %v19905_v25 = vld [vmem:[#allocation71_spill] sm:$0xff] }
 0xa19   : > { %v12435_v61 = vpop.permute.xlu1 %12434 }
 0xa1a   : > { %v12437_v20 = vunpack.i.h.bf16 %v12435_v61  ;;  %v12436_v23 = vunpack.i.l.bf16 %v12435_v61 }
 0xa1b   : > { %v12430_v8 = vpop.permute.xlu0 %12429 }
 0xa1c   : > { %v8579_v50 = vsel %vm6136_vm10, %v8547_v56, %v12436_v23  ;;  %v8580_v3 = vsel %vm6136_vm10, %v8548_v30, %v12437_v20  ;;  %v12432_v6 = vunpack.i.h.bf16 %v12430_v8  ;;  %v12431_v47 = vunpack.i.l.bf16 %v12430_v8 }
 0xa1d   : > { %v8764_v34 = vpop.f32.mrf.mxu3  ;;  %v8611_v5 = vsel %vm6169_vm11, %v8579_v50, %v12441_v58  ;;  %v8612_v19 = vsel %vm6169_vm11, %v8580_v3, %v12442_v2 }
 0xa1e   : > { %v8591_v54 = vsel %vm6169_vm11, %v8559_v29, %v12431_v47  ;;  %v8592_v37 = vsel %vm6169_vm11, %v8560_v33, %v12432_v6  ;;  %8869 = vrot.lane.b32.xlu1 %v8764_v34, %s19306_s28  ;;  %v8629_v1 = vpack.c.bf16 %v8612_v19, %v8611_v5  ;;  %v8485_v29 = vsel %vm6038_vm8, %v18224_v45, %v12456_v28 }
 0xa1f   : > { %v8619_v11 = vpack.c.bf16 %v8592_v37, %v8591_v54  ;;  %v8486_v33 = vsel %vm6038_vm8, %v18221_v39, %v12457_v4  ;;  %v12487_v34 = vunpack.i.h.bf16 %v12485_v41  ;;  %v12486_v5 = vunpack.i.l.bf16 %v12485_v41  ;;  %v12500_v55 = vpop.permute.xlu2 %12499 }
 0xa20   : > { %9745 = vmatmul.msk.bf16.gmra.mxu3 %vm3932_vm0, %v8629_v1  ;;  %v11991_v39 = vunpack.i.l.bf16 %v19901_v7  ;;  %v12501_v41 = vunpack.i.l.bf16 %v12500_v55 }
 0xa21   : > { %9735 = vmatmul.msk.bf16.gmra.mxu0 %vm3932_vm0, %v8619_v11  ;;  %v12450_v57 = vpop.permute.xlu1 %12449 }
 0xa22   : > { %v12452_v9 = vunpack.i.h.bf16 %v12450_v57  ;;  %v12451_v59 = vunpack.i.l.bf16 %v12450_v57  ;;  %v19900_v57 = vld [vmem:[#allocation103_spill] sm:$0xff] }
 0xa23   : > { %v12445_v27 = vpop.permute.xlu0 %12444  ;;  %v11911_v32 = vunpack.i.l.bf16 %v19900_v57 }
 0xa24   : > { %v12447_v16 = vunpack.i.h.bf16 %v12445_v27  ;;  %v12446_v42 = vunpack.i.l.bf16 %v12445_v27  ;;  %v11912_v27 = vunpack.i.h.bf16 %v19900_v57 }
 0xa26   : > { %v8465_v63 = vsel %vm6038_vm8, %v8433_v10, %v12446_v42  ;;  %v8466_v13 = vsel %vm6038_vm8, %v8434_v40, %v12447_v16  ;;  %v8372_v43 = vsel %vm477_vm4, %v12607_v31, %v11912_v27 }
 0xa27   : > { %v8497_v60 = vsel %vm6071_vm9, %v8465_v63, %v12451_v59  ;;  %v8498_v62 = vsel %vm6071_vm9, %v8466_v13, %v12452_v9  ;;  %v8404_v40 = vsel %vm5973_vm6, %v8372_v43, %v11992_v48  ;;  %v18664_v63 = vpop.f32.mrf.mxu3 }
 0xa28   : > { %v8436_v9 = vsel %vm2103_vm7, %v8404_v40, %v12072_v35 }
 0xa29   : > { %v12465_v46 = vpop.permute.xlu1 %12464 }
 0xa2a   : > { %v12467_v8 = vunpack.i.h.bf16 %v12465_v46  ;;  %v12466_v50 = vunpack.i.l.bf16 %v12465_v46  ;;  %v12608_v46 = vld [vmem:[#allocation4 + $0x90] sm:$0xff] }
 0xa2b   : > { %v12460_v15 = vpop.permute.xlu0 %12459  ;;  %v8371_v12 = vsel %vm477_vm4, %v12608_v46, %v11911_v32  ;;  %v19904_v32 = vmov 0.0   ;;  %v19907_v46 = vld [vmem:[#allocation101_spill] sm:$0xff] }
 0xa2c   : > { %v12462_v26 = vunpack.i.h.bf16 %v12460_v15  ;;  %v12461_v22 = vunpack.i.l.bf16 %v12460_v15  ;;  %v8517_v19 = vsel %vm6071_vm9, %v8485_v29, %v12466_v50  ;;  %v8518_v54 = vsel %vm6071_vm9, %v8486_v33, %v12467_v8 }
 0xa2d   : > { %v8403_v10 = vsel %vm5973_vm6, %v8371_v12, %v11991_v39 }
 0xa2e   : > { %v8529_v49 = vsel %vm2235_vm12, %v8497_v60, %v12461_v22  ;;  %v8530_v18 = vsel %vm2235_vm12, %v8498_v62, %v12462_v26  ;;  %v8435_v59 = vsel %vm2103_vm7, %v8403_v10, %v12071_v17  ;;  %v12502_v22 = vunpack.i.h.bf16 %v12500_v55  ;;  %v12515_v60 = vpop.permute.xlu2 %12514  ;;  %v19906_v17 = vld [vmem:[#allocation30_spill] sm:$0xff] }
 0xa2f   : > { %v8561_v58 = vsel %vm6136_vm10, %v8529_v49, %v12471_v51  ;;  %v8562_v20 = vsel %vm6136_vm10, %v8530_v18, %v12472_v14  ;;  %v18677_v50 = vpop.f32.mrf.mxu3 }
 0xa31   : > { %v12480_v24 = vpop.permute.xlu1 %12479 }
 0xa32   : > { %v12482_v61 = vunpack.i.h.bf16 %v12480_v24  ;;  %v12481_v2 = vunpack.i.l.bf16 %v12480_v24 }
 0xa33   : > { %v12475_v23 = vpop.permute.xlu0 %12474 }
 0xa34   : > { %v8593_v56 = vsel %vm6169_vm11, %v8561_v58, %v12481_v2  ;;  %v8594_v30 = vsel %vm6169_vm11, %v8562_v20, %v12482_v61  ;;  %v12477_v6 = vunpack.i.h.bf16 %v12475_v23  ;;  %v12476_v47 = vunpack.i.l.bf16 %v12475_v23 }
 0xa35   : > { %v8620_v3 = vpack.c.bf16 %v8594_v30, %v8593_v56  ;;  %v12517_v2 = vunpack.i.h.bf16 %v12515_v60  ;;  %v12516_v58 = vunpack.i.l.bf16 %v12515_v60 }
 0xa36   : > { %v8549_v1 = vsel %vm2235_vm12, %v8517_v19, %v12476_v47  ;;  %v8550_v11 = vsel %vm2235_vm12, %v8518_v54, %v12477_v6 }
 0xa37   : > { %9736 = vmatmul.msk.bf16.gmra.mxu0 %vm3932_vm0, %v8620_v3  ;;  %v8581_v52 = vsel %vm6136_vm10, %v8549_v1, %v12486_v5  ;;  %v8582_v0 = vsel %vm6136_vm10, %v8550_v11, %v12487_v34  ;;  %v18679_v3 = vpop.f32.mrf.mxu3  ;;  %v19903_v11 = vld [vmem:[#allocation25_spill] sm:$0xff] }
 0xa39   : > { %v12495_v37 = vpop.permute.xlu1 %12494 }
 0xa3a   : > { %v12497_v16 = vunpack.i.h.bf16 %v12495_v37  ;;  %v12496_v42 = vunpack.i.l.bf16 %v12495_v37 }
 0xa3b   : > { %v12490_v45 = vpop.permute.xlu0 %12489 }
 0xa3c   : > { %v12492_v44 = vunpack.i.h.bf16 %v12490_v45  ;;  %v12491_v21 = vunpack.i.l.bf16 %v12490_v45  ;;  %v8467_v13 = vsel %vm6038_vm8, %v8435_v59, %v12496_v42  ;;  %v8468_v26 = vsel %vm6038_vm8, %v8436_v9, %v12497_v16 }
 0xa3d   : > { %v8499_v24 = vsel %vm6071_vm9, %v8467_v13, %v12501_v41  ;;  %v8500_v61 = vsel %vm6071_vm9, %v8468_v26, %v12502_v22 }
 0xa3e   : > { %v8613_v38 = vsel %vm6169_vm11, %v8581_v52, %v12491_v21  ;;  %v8614_v36 = vsel %vm6169_vm11, %v8582_v0, %v12492_v44  ;;  %v18681_v6 = vpop.f32.mrf.mxu0 }
 0xa3f   : > { %v8630_v53 = vpack.c.bf16 %v8614_v36, %v8613_v38  ;;  %v18683_v47 = vpop.f32.mrf.mxu3 }
 0xa41   : > { %9746 = vmatmul.msk.bf16.gmra.mxu3 %vm3932_vm0, %v8630_v53  ;;  %v12510_v15 = vpop.permute.xlu1 %12509 }
 0xa42   : > { %v12512_v62 = vunpack.i.h.bf16 %v12510_v15  ;;  %v12511_v49 = vunpack.i.l.bf16 %v12510_v15 }
 0xa43   : > { %v12505_v18 = vpop.permute.xlu0 %12504 }
 0xa44   : > { %v12507_v14 = vunpack.i.h.bf16 %v12505_v18  ;;  %v12506_v51 = vunpack.i.l.bf16 %v12505_v18 }
 0xa46   : > { %v8531_v20 = vsel %vm2235_vm12, %v8499_v24, %v12506_v51  ;;  %v8532_v23 = vsel %vm2235_vm12, %v8500_v61, %v12507_v14  ;;  %v18685_v29 = vpop.f32.mrf.mxu0  ;;  %v19908_v14 = vld [vmem:[#allocation27_spill] sm:$0xff] }
 0xa47   : > { %v8563_v4 = vsel %vm6136_vm10, %v8531_v20, %v12511_v49  ;;  %v8564_v28 = vsel %vm6136_vm10, %v8532_v23, %v12512_v62  ;;  %v8777_v33 = vpop.f32.mrf.mxu3  ;;  %v19909_v20 = vld [vmem:[#allocation80_spill] sm:$0xff] }
 0xa48   : > { %v8595_v56 = vsel %vm6169_vm11, %v8563_v4, %v12516_v58  ;;  %v8596_v30 = vsel %vm6169_vm11, %v8564_v28, %v12517_v2  ;;  %v19910_v28 = vld [vmem:[#allocation52_spill] sm:$0xff] }
 0xa49   : > { %v8621_v8 = vpack.c.bf16 %v8596_v30, %v8595_v56 }
 0xa4b   : > { %9737 = vmatmul.msk.bf16.gmra.mxu0 %vm3932_vm0, %v8621_v8 }
 0xa4f   : > { %v8779_v5 = vpop.f32.mrf.mxu3 }
 0xa56   : > { %v18687_v34 = vpop.f32.mrf.mxu0 }
 0xa5b   : > { %v8782_v19 = vpop.f32.mrf.mxu3 }
 0xa5e   : > { %v18689_v55 = vpop.f32.mrf.mxu0 }
 0xa63   : > { %v8784_v37 = vpop.f32.mrf.mxu3 }
 0xa6e   : > { %v8737_v54 = vpop.f32.mrf.mxu0 }
 0xa73   : > { %v8787_v39 = vpop.f32.mrf.mxu3 }
 0xa76   : > { %v8739_v27 = vpop.f32.mrf.mxu0 }
 0xa7b   : > { %v8789_v43 = vpop.f32.mrf.mxu3 }
 0xa86   : > { %v8742_v0 = vpop.f32.mrf.mxu0 }
 0xa88   : > { %v8868_v1 = vpop.permute.xlu0 %8867 }
 0xa89   : > { %v8949_v57 = vadd.f32 %v8868_v1, %v19903_v11 }
 0xa8b   : > { %vm8981_vm12 = vcmp.gt.f32.partialorder %v8949_v57, 0.5  ;;  %v9217_v7 = vmul.f32 0.2, %v8949_v57  ;;  %v8792_v10 = vpop.f32.mrf.mxu3 }
 0xa8c   : > { %v9761_v45 = vsel %vm8981_vm12, 1.0, %v19904_v32 }
 0xa8d   : > { %v9249_v48 = vsub.f32 1.0, %v9761_v45 }
 0xa8e   : > { %v8744_v53 = vpop.f32.mrf.mxu0 }
 0xa8f   : > { %v9281_v44 = vmul.f32 %v9249_v48, %v9217_v7  ;;  %v19914_v7 = vld [vmem:[#allocation77_spill] sm:$0xff] }
 0xa90   : > { %v8870_v21 = vpop.permute.xlu1 %8869 }
 0xa91   : > { %v9345_v35 = vsel %vm5973_vm6, %v19905_v25, %v9281_v44  ;;  %v8950_v52 = vadd.f32 %v8870_v21, %v19906_v17 }
 0xa92   : > { %9377 = vst.msk [vmem:[%s18697_s16 + $0x70] sm:$0xff] %vm2103_vm7, %v9345_v35 }
 0xa93   : > { %vm8982_vm0 = vcmp.gt.f32.partialorder %v8950_v52, 0.5  ;;  %v9218_v38 = vmul.f32 0.2, %v8950_v52  ;;  %v8794_v9 = vpop.f32.mrf.mxu3 }
 0xa94   : > { %v9762_v16 = vsel %vm8982_vm0, 1.0, %v19904_v32 }
 0xa95   : > { %v9070_v42 = vpack.c.bf16 %v9762_v16, %v9761_v45  ;;  %v9250_v36 = vsub.f32 1.0, %v9762_v16 }
 0xa97   : > { %v9282_v31 = vmul.f32 %v9250_v36, %v9218_v38  ;;  %v19916_v38 = vld [vmem:[#allocation67_spill] sm:$0xff] }
 0xa99   : > { %v9346_v12 = vsel %vm5973_vm6, %v19907_v46, %v9282_v31 }
 0xa9a   : > { %9378 = vst.msk [vmem:[%s18697_s16 + $0x78] sm:$0xff] %vm2103_vm7, %v9346_v12 }
 0xa9e   : > { %v8747_v40 = vpop.f32.mrf.mxu0 }
 0xaa3   : > { %v8797_v15 = vpop.f32.mrf.mxu3 }
 0xaa6   : > { %v8749_v59 = vpop.f32.mrf.mxu0 }
 0xaab   : > { %v8799_v26 = vpop.f32.mrf.mxu3 }
 0xab4   : > { %v8752_v13 = vpop.f32.mrf.mxu0 }
 0xabc   : > { %v8754_v22 = vpop.f32.mrf.mxu0 }
 0xac4   : > { %v8802_v41 = vpop.f32.mrf.mxu3 }
 0xac5   : > { %8899 = vrot.lane.b32.xlu2 %v8802_v41, %s19306_s28 }
 0xac8   : > { %v8757_v60 = vpop.f32.mrf.mxu0 }
 0xac9   : > { %8863 = vrot.lane.b32.xlu1 %v8757_v60, %s19306_s28  ;;  %v19920_v60 = vld [vmem:[#allocation63_spill] sm:$0xff] }
 0xacc   : > { %v8804_v62 = vpop.f32.mrf.mxu3 }
 0xacd   : > { %8901 = vrot.lane.b32.xlu0 %v8804_v62, %s19306_s28 }
 0xad0   : > { %v8759_v49 = vpop.f32.mrf.mxu0 }
 0xad1   : > { %8897 = vrot.lane.b32.xlu1 %v8799_v26, %s19306_s28  ;;  %8865 = vrot.lane.b32.xlu2 %v8759_v49, %s19306_s28 }
 0xad5   : > { %8895 = vrot.lane.b32.xlu0 %v8797_v15, %s19306_s28 }
 0xad9   : > { %8891 = vrot.lane.b32.xlu1 %v8792_v10, %s19306_s28  ;;  %8859 = vrot.lane.b32.xlu2 %v8752_v13, %s19306_s28 }
 0xadd   : > { %8861 = vrot.lane.b32.xlu0 %v8754_v22, %s19306_s28  ;;  %v19919_v22 = vld [vmem:[#allocation68_spill] sm:$0xff] }
 0xae1   : > { %8857 = vrot.lane.b32.xlu1 %v8749_v59, %s19306_s28  ;;  %8893 = vrot.lane.b32.xlu2 %v8794_v9, %s19306_s28  ;;  %v19918_v59 = vld [vmem:[#allocation116_spill] sm:$0xff] }
 0xae5   : > { %8855 = vrot.lane.b32.xlu0 %v8747_v40, %s19306_s28  ;;  %v19917_v40 = vld [vmem:[#allocation92_spill] sm:$0xff] }
 0xae9   : > { %8851 = vrot.lane.b32.xlu1 %v8742_v0, %s19306_s28  ;;  %8887 = vrot.lane.b32.xlu2 %v8787_v39, %s19306_s28  ;;  %v19915_v39 = vld [vmem:[#allocation44_spill] sm:$0xff] }
 0xaed   : > { %8889 = vrot.lane.b32.xlu0 %v8789_v43, %s19306_s28 }
 0xaf1   : > { %8885 = vrot.lane.b32.xlu1 %v8784_v37, %s19306_s28  ;;  %8853 = vrot.lane.b32.xlu2 %v8744_v53, %s19306_s28 }
 0xaf5   : > { %8883 = vrot.lane.b32.xlu0 %v8782_v19, %s19306_s28 }
 0xaf9   : > { %8879 = vrot.lane.b32.xlu1 %v8777_v33, %s19306_s28  ;;  %8847 = vrot.lane.b32.xlu2 %v8737_v54, %s19306_s28  ;;  %v19911_v33 = vld [vmem:[#allocation104_spill] sm:$0xff] }
 0xafd   : > { %8849 = vrot.lane.b32.xlu0 %v8739_v27, %s19306_s28  ;;  %v19913_v27 = vld [vmem:[#allocation79_spill] sm:$0xff] }
 0xb01   : > { %8881 = vrot.lane.b32.xlu2 %v8779_v5, %s19306_s28  ;;  %v19912_v5 = vld [vmem:[#allocation24_spill] sm:$0xff] }
 0xb05   : > { %9109 = vrot.lane.b32.xlu0 %v9070_v42, %s12693_s23 }
 0xb09   : > { %8843 = vrot.lane.b32.xlu2 %v18687_v34, %s19306_s28 }
 0xb0d   : > { %8845 = vrot.lane.b32.xlu0 %v18689_v55, %s19306_s28 }
 0xb11   : > { %8877 = vrot.lane.b32.xlu2 %v18683_v47, %s19306_s28 }
 0xb19   : > { %8839 = vrot.lane.b32.xlu2 %v18681_v6, %s19306_s28 }
 0xb1f   : > { %v8900_v18 = vpop.permute.xlu2 %8899 }
 0xb20   : > { %v8965_v51 = vadd.f32 %v8900_v18, %v19908_v14 }
 0xb21   : > { %8873 = vrot.lane.b32.xlu2 %v18677_v50, %s19306_s28 }
 0xb22   : > { %vm8997_vm8 = vcmp.gt.f32.partialorder %v8965_v51, 0.5  ;;  %v9233_v61 = vmul.f32 0.2, %v8965_v51  ;;  %v19921_v51 = vld [vmem:[#allocation56_spill] sm:$0xff] }
 0xb23   : > { %v9777_v24 = vsel %vm8997_vm8, 1.0, %v19904_v32 }
 0xb24   : > { %v9265_v2 = vsub.f32 1.0, %v9777_v24 }
 0xb26   : > { %v9297_v58 = vmul.f32 %v9265_v2, %v9233_v61 }
 0xb28   : > { %v9361_v23 = vsel %vm5973_vm6, %v19909_v20, %v9297_v58  ;;  %v19922_v58 = vld [vmem:[#allocation66_spill] sm:$0xff] }
 0xb29   : > { %9393 = vst.msk [vmem:[%s18697_s16 + $0xf0] sm:$0xff] %vm2103_vm7, %v9361_v23 }
 0xb2b   : > { %v8866_v4 = vpop.permute.xlu2 %8865 }
 0xb2c   : > { %v8948_v56 = vadd.f32 %v8866_v4, %v19910_v28 }
 0xb2e   : > { %vm8980_vm9 = vcmp.gt.f32.partialorder %v8948_v56, 0.5  ;;  %v9216_v8 = vmul.f32 0.2, %v8948_v56 }
 0xb2f   : > { %v9760_v30 = vsel %vm8980_vm9, 1.0, %v19904_v32 }
 0xb30   : > { %v9248_v50 = vsub.f32 1.0, %v9760_v30 }
 0xb32   : > { %v9280_v6 = vmul.f32 %v9248_v50, %v9216_v8 }
 0xb33   : > { %v8860_v47 = vpop.permute.xlu2 %8859 }
 0xb34   : > { %v9344_v34 = vsel %vm5973_vm6, %v19911_v33, %v9280_v6  ;;  %v8945_v55 = vadd.f32 %v8860_v47, %v19912_v5 }
 0xb35   : > { %9376 = vst.msk [vmem:[%s18697_s16 + $0x68] sm:$0xff] %vm2103_vm7, %v9344_v34  ;;  %v19923_v34 = vld [vmem:[#allocation64_spill] sm:$0xff] }
 0xb36   : > { %vm8977_vm10 = vcmp.gt.f32.partialorder %v8945_v55, 0.5  ;;  %v9213_v54 = vmul.f32 0.2, %v8945_v55  ;;  %v19924_v55 = vld [vmem:[#allocation37_spill] sm:$0xff] }
 0xb37   : > { %v18756_v19 = vsel %vm8977_vm10, 1.0, %v19904_v32 }
 0xb38   : > { %v9245_v37 = vsub.f32 1.0, %v18756_v19 }
 0xb3a   : > { %v9277_v1 = vmul.f32 %v9245_v37, %v9213_v54  ;;  %v19925_v37 = vld [vmem:[#allocation85_spill] sm:$0xff] }
 0xb3b   : > { %v8864_v11 = vpop.permute.xlu1 %8863  ;;  %v8894_v57 = vpop.permute.xlu2 %8893 }
 0xb3c   : > { %v9341_v45 = vsel %vm5973_vm6, %v19913_v27, %v9277_v1  ;;  %v8947_v48 = vadd.f32 %v8864_v11, %v19914_v7  ;;  %v8962_v44 = vadd.f32 %v8894_v57, %v19915_v39  ;;  %v19926_v11 = vld [vmem:[#allocation89_spill] sm:$0xff]  ;;  %v19927_v39 = vld [vmem:[#allocation112_spill] sm:$0xff] }
 0xb3d   : > { %9373 = vst.msk [vmem:[%s18697_s16 + $0x50] sm:$0xff] %vm2103_vm7, %v9341_v45 }
 0xb3e   : > { %vm8979_vm11 = vcmp.gt.f32.partialorder %v8947_v48, 0.5  ;;  %vm8994_vm1 = vcmp.gt.f32.partialorder %v8962_v44, 0.5  ;;  %v9215_v25 = vmul.f32 0.2, %v8947_v48  ;;  %v9230_v17 = vmul.f32 0.2, %v8962_v44 }
 0xb3f   : > { %v9759_v21 = vsel %vm8979_vm11, 1.0, %v19904_v32  ;;  %v18767_v35 = vsel %vm8994_vm1, 1.0, %v19904_v32  ;;  %v8902_v52 = vpop.permute.xlu0 %8901 }
 0xb40   : > { %v9069_v0 = vpack.c.bf16 %v9760_v30, %v9759_v21  ;;  %v9247_v16 = vsub.f32 1.0, %v9759_v21  ;;  %v9262_v42 = vsub.f32 1.0, %v18767_v35  ;;  %v8966_v36 = vadd.f32 %v8902_v52, %v19916_v38 }
 0xb42   : > { %v9279_v31 = vmul.f32 %v9247_v16, %v9215_v25  ;;  %v9294_v43 = vmul.f32 %v9262_v42, %v9230_v17  ;;  %vm8998_vm2 = vcmp.gt.f32.partialorder %v8966_v36, 0.5  ;;  %9107 = vrot.lane.b32.xlu0 %v9069_v0, %s12693_s23  ;;  %v9234_v12 = vmul.f32 0.2, %v8966_v36 }
 0xb43   : > { %v9778_v46 = vsel %vm8998_vm2, 1.0, %v19904_v32  ;;  %v8898_v53 = vpop.permute.xlu1 %8897  ;;  %v8888_v10 = vpop.permute.xlu2 %8887 }
 0xb44   : > { %v9343_v9 = vsel %vm5973_vm6, %v19917_v40, %v9279_v31  ;;  %v9358_v15 = vsel %vm5973_vm6, %v19918_v59, %v9294_v43  ;;  %v9078_v13 = vpack.c.bf16 %v9778_v46, %v9777_v24  ;;  %v9266_v26 = vsub.f32 1.0, %v9778_v46  ;;  %v19929_v31 = vld [vmem:[#allocation57_spill] sm:$0xff]  ;;  %v19930_v46 = vld [vmem:[#allocation83_spill] sm:$0xff] }
 0xb45   : > { %9375 = vst.msk [vmem:[%s18697_s16 + $0x60] sm:$0xff] %vm2103_vm7, %v9343_v9  ;;  %v8964_v41 = vadd.f32 %v8898_v53, %v19919_v22  ;;  %v8959_v62 = vadd.f32 %v8888_v10, %v19920_v60  ;;  %v19931_v10 = vld [vmem:[#allocation12_spill] sm:$0xff] }
 0xb46   : > { %9390 = vst.msk [vmem:[%s18697_s16 + $0xd8] sm:$0xff] %vm2103_vm7, %v9358_v15  ;;  %v9298_v49 = vmul.f32 %v9266_v26, %v9234_v12  ;;  %9125 = vrot.lane.b32.xlu1 %v9078_v13, %s12693_s23  ;;  %v19932_v13 = vld [vmem:[#allocation46_spill] sm:$0xff] }
 0xb47   : > { %vm8996_vm5 = vcmp.gt.f32.partialorder %v8964_v41, 0.5  ;;  %v9232_v18 = vmul.f32 0.2, %v8964_v41  ;;  %vm8991_vm3 = vcmp.gt.f32.partialorder %v8959_v62, 0.5  ;;  %v8896_v14 = vpop.permute.xlu0 %8895  ;;  %v9227_v4 = vmul.f32 0.2, %v8959_v62 }
 0xb48   : > { %v9362_v24 = vsel %vm5973_vm6, %v19921_v51, %v9298_v49  ;;  %v9776_v61 = vsel %vm8996_vm5, 1.0, %v19904_v32  ;;  %v18788_v2 = vsel %vm8991_vm3, 1.0, %v19904_v32  ;;  %v8963_v20 = vadd.f32 %v8896_v14, %v19922_v58  ;;  %v19934_v51 = vld [vmem:[#allocation113_spill] sm:$0xff] }
 0xb49   : > { %9394 = vst.msk [vmem:[%s18697_s16 + $0xf8] sm:$0xff] %vm2103_vm7, %v9362_v24  ;;  %v9264_v23 = vsub.f32 1.0, %v9776_v61  ;;  %v9259_v28 = vsub.f32 1.0, %v18788_v2 }
 0xb4a   : > { %vm8995_vm13 = vcmp.gt.f32.partialorder %v8963_v20, 0.5  ;;  %8841 = vrot.lane.b32.xlu0 %v18685_v29, %s19306_s28  ;;  %v9231_v47 = vmul.f32 0.2, %v8963_v20 }
 0xb4b   : > { %v9296_v56 = vmul.f32 %v9264_v23, %v9232_v18  ;;  %v9291_v30 = vmul.f32 %v9259_v28, %v9227_v4  ;;  %v9775_v8 = vsel %vm8995_vm13, 1.0, %v19904_v32  ;;  %v8892_v50 = vpop.permute.xlu1 %8891  ;;  %v8854_v6 = vpop.permute.xlu2 %8853  ;;  %v19933_v18 = vld [vmem:[#allocation60_spill] sm:$0xff] }
 0xb4c   : > { %v9263_v33 = vsub.f32 1.0, %v9775_v8  ;;  %v8961_v5 = vadd.f32 %v8892_v50, %v19923_v34  ;;  %v8942_v54 = vadd.f32 %v8854_v6, %v19924_v55  ;;  %v9077_v42 = vpack.c.bf16 %v9776_v61, %v9775_v8  ;;  %v19935_v8 = vld [vmem:[#allocation110_spill] sm:$0xff] }
 0xb4d   : > { %v9360_v1 = vsel %vm5973_vm6, %v19925_v37, %v9296_v56  ;;  %v9355_v29 = vsel %vm5973_vm6, %v19926_v11, %v9291_v30 }
 0xb4e   : > { %9392 = vst.msk [vmem:[%s18697_s16 + $0xe8] sm:$0xff] %vm2103_vm7, %v9360_v1  ;;  %v9295_v57 = vmul.f32 %v9263_v33, %v9231_v47  ;;  %vm8993_vm14 = vcmp.gt.f32.partialorder %v8961_v5, 0.5  ;;  %vm8974_vm15 = vcmp.gt.f32.partialorder %v8942_v54, 0.5  ;;  %8875 = vrot.lane.b32.xlu1 %v18679_v3, %s19306_s28  ;;  %v9229_v45 = vmul.f32 0.2, %v8961_v5  ;;  %v19928_v3 = vld [vmem:[#allocation48_spill] sm:$0xff] }
 0xb4f   : > { %9387 = vst.msk [vmem:[%s18697_s16 + $0xc0] sm:$0xff] %vm2103_vm7, %v9355_v29  ;;  %v18810_v27 = vsel %vm8993_vm14, 1.0, %v19904_v32  ;;  %v18813_v7 = vsel %vm8974_vm15, 1.0, %v19904_v32  ;;  %v8862_v48 = vpop.permute.xlu0 %8861  ;;  %v9210_v25 = vmul.f32 0.2, %v8942_v54  ;;  %v19936_v33 = vld [vmem:[#allocation14_spill] sm:$0xff] }
 0xb50   : > { %v9359_v44 = vsel %vm5973_vm6, %v19927_v39, %v9295_v57  ;;  %v9261_v21 = vsub.f32 1.0, %v18810_v27  ;;  %v9242_v17 = vsub.f32 1.0, %v18813_v7  ;;  %v8946_v52 = vadd.f32 %v8862_v48, %v19928_v3  ;;  %v19937_v5 = vld [vmem:[#allocation72_spill] sm:$0xff]  ;;  %v19938_v54 = vld [vmem:[#allocation45_spill] sm:$0xff]  ;;  %v19939_v57 = vld [vmem:[#allocation86_spill] sm:$0xff] }
 0xb51   : > { %9391 = vst.msk [vmem:[%s18697_s16 + $0xe0] sm:$0xff] %vm2103_vm7, %v9359_v44 }
 0xb52   : > { %v9293_v0 = vmul.f32 %v9261_v21, %v9229_v45  ;;  %v9274_v16 = vmul.f32 %v9242_v17, %v9210_v25  ;;  %vm8978_vm12 = vcmp.gt.f32.partialorder %v8946_v52, 0.5  ;;  %v9214_v59 = vmul.f32 0.2, %v8946_v52  ;;  %v19940_v25 = vld [vmem:[#allocation19_spill] sm:$0xff] }
 0xb53   : > { %v8858_v38 = vpop.permute.xlu1 %8857  ;;  %v8848_v36 = vpop.permute.xlu2 %8847  ;;  %v9758_v53 = vsel %vm8978_vm12, 1.0, %v19904_v32  ;;  %v9076_v52 = vpack.c.bf16 %v18767_v35, %v18810_v27 }
 0xb54   : > { %v9357_v43 = vsel %vm5973_vm6, %v19929_v31, %v9293_v0  ;;  %v9338_v12 = vsel %vm5973_vm6, %v19930_v46, %v9274_v16  ;;  %v8944_v40 = vadd.f32 %v8858_v38, %v19931_v10  ;;  %v9068_v9 = vpack.c.bf16 %v9758_v53, %v18756_v19  ;;  %v19941_v38 = vld [vmem:[#allocation100_spill] sm:$0xff]  ;;  %v19944_v10 = vld [vmem:[#allocation125_spill] sm:$0xff] }
 0xb55   : > { %9389 = vst.msk [vmem:[%s18697_s16 + $0xd0] sm:$0xff] %vm2103_vm7, %v9357_v43  ;;  %v9246_v15 = vsub.f32 1.0, %v9758_v53  ;;  %v8939_v26 = vadd.f32 %v8848_v36, %v19932_v13  ;;  %v19942_v43 = vld [vmem:[#allocation62_spill] sm:$0xff] }
 0xb56   : > { %9370 = vst.msk [vmem:[%s18697_s16 + $0x38] sm:$0xff] %vm2103_vm7, %v9338_v12  ;;  %vm8976_vm0 = vcmp.gt.f32.partialorder %v8944_v40, 0.5  ;;  %9123 = vrot.lane.b32.xlu1 %v9077_v42, %s12693_s23  ;;  %9105 = vrot.lane.b32.xlu0 %v9068_v9, %s12693_s23  ;;  %v9212_v62 = vmul.f32 0.2, %v8944_v40  ;;  %v19943_v12 = vld [vmem:[#allocation10_spill] sm:$0xff] }
 0xb57   : > { %v9278_v22 = vmul.f32 %v9246_v15, %v9214_v59  ;;  %v9756_v41 = vsel %vm8976_vm0, 1.0, %v19904_v32  ;;  %vm8971_vm8 = vcmp.gt.f32.partialorder %v8939_v26, 0.5  ;;  %v8856_v60 = vpop.permute.xlu0 %8855  ;;  %v9207_v61 = vmul.f32 0.2, %v8939_v26 }
 0xb58   : > { %v9244_v49 = vsub.f32 1.0, %v9756_v41  ;;  %v18838_v19 = vsel %vm8971_vm8, 1.0, %v19904_v32  ;;  %v8943_v14 = vadd.f32 %v8856_v60, %v19933_v18  ;;  %v19946_v18 = vld [vmem:[#allocation102_spill] sm:$0xff] }
 0xb59   : > { %v9342_v24 = vsel %vm5973_vm6, %v19934_v51, %v9278_v22  ;;  %v9239_v58 = vsub.f32 1.0, %v18838_v19 }
 0xb5a   : > { %9374 = vst.msk [vmem:[%s18697_s16 + $0x58] sm:$0xff] %vm2103_vm7, %v9342_v24  ;;  %v9276_v20 = vmul.f32 %v9244_v49, %v9212_v62  ;;  %vm8975_vm9 = vcmp.gt.f32.partialorder %v8943_v14, 0.5  ;;  %v9211_v28 = vmul.f32 0.2, %v8943_v14  ;;  %v19945_v62 = vld [vmem:[#allocation58_spill] sm:$0xff] }
 0xb5b   : > { %v9271_v23 = vmul.f32 %v9239_v58, %v9207_v61  ;;  %v9755_v4 = vsel %vm8975_vm9, 1.0, %v19904_v32  ;;  %v8852_v56 = vpop.permute.xlu1 %8851  ;;  %v8882_v30 = vpop.permute.xlu2 %8881 }
 0xb5c   : > { %v9340_v50 = vsel %vm5973_vm6, %v19935_v8, %v9276_v20  ;;  %v9067_v6 = vpack.c.bf16 %v9756_v41, %v9755_v4  ;;  %v9243_v47 = vsub.f32 1.0, %v9755_v4  ;;  %v8941_v34 = vadd.f32 %v8852_v56, %v19936_v33 }
 0xb5d   : > { %9372 = vst.msk [vmem:[%s18697_s16 + $0x48] sm:$0xff] %vm2103_vm7, %v9340_v50  ;;  %v9335_v55 = vsel %vm5973_vm6, %v19937_v5, %v9271_v23  ;;  %v8956_v37 = vadd.f32 %v8882_v30, %v19938_v54  ;;  %v19948_v30 = vld [vmem:[#allocation109_spill] sm:$0xff] }
 0xb5e   : > { %9367 = vst.msk [vmem:[%s18697_s16 + $0x20] sm:$0xff] %vm2103_vm7, %v9335_v55  ;;  %v9275_v1 = vmul.f32 %v9243_v47, %v9211_v28  ;;  %vm8973_vm10 = vcmp.gt.f32.partialorder %v8941_v34, 0.5  ;;  %8871 = vrot.lane.b32.xlu1 %v18664_v63, %s19306_s28  ;;  %9103 = vrot.lane.b32.xlu2 %v9067_v6, %s12693_s23  ;;  %v9209_v48 = vmul.f32 0.2, %v8941_v34  ;;  %v19947_v28 = vld [vmem:[#allocation93_spill] sm:$0xff]  ;;  %v19949_v47 = vld [vmem:[#allocation40_spill] sm:$0xff] }
 0xb5f   : > { %v9753_v11 = vsel %vm8973_vm10, 1.0, %v19904_v32  ;;  %vm8988_vm11 = vcmp.gt.f32.partialorder %v8956_v37, 0.5  ;;  %v8890_v29 = vpop.permute.xlu0 %8889  ;;  %v9224_v21 = vmul.f32 0.2, %v8956_v37  ;;  %v19950_v34 = vld [vmem:[#allocation23_spill] sm:$0xff]  ;;  %v19951_v37 = vld [vmem:[#allocation124_spill] sm:$0xff] }
 0xb60   : > { %v9339_v45 = vsel %vm5973_vm6, %v19939_v57, %v9275_v1  ;;  %v9241_v39 = vsub.f32 1.0, %v9753_v11  ;;  %v18864_v44 = vsel %vm8988_vm11, 1.0, %v19904_v32  ;;  %v8960_v17 = vadd.f32 %v8890_v29, %v19940_v25  ;;  %v19952_v57 = vld [vmem:[#allocation73_spill] sm:$0xff] }
 0xb61   : > { %9371 = vst.msk [vmem:[%s18697_s16 + $0x40] sm:$0xff] %vm2103_vm7, %v9339_v45  ;;  %v9256_v63 = vsub.f32 1.0, %v18864_v44  ;;  %v9066_v61 = vpack.c.bf16 %v18813_v7, %v9753_v11 }
 0xb62   : > { %v9273_v3 = vmul.f32 %v9241_v39, %v9209_v48  ;;  %vm8992_vm1 = vcmp.gt.f32.partialorder %v8960_v17, 0.5  ;;  %v9228_v27 = vmul.f32 0.2, %v8960_v17 }
 0xb63   : > { %v9288_v0 = vmul.f32 %v9256_v63, %v9224_v21  ;;  %v8886_v16 = vpop.permute.xlu1 %8885  ;;  %v8844_v42 = vpop.permute.xlu2 %8843  ;;  %v9772_v31 = vsel %vm8992_vm1, 1.0, %v19904_v32 }
 0xb64   : > { %v9337_v36 = vsel %vm5973_vm6, %v19941_v38, %v9273_v3  ;;  %v8958_v46 = vadd.f32 %v8886_v16, %v19942_v43  ;;  %v8937_v53 = vadd.f32 %v8844_v42, %v19943_v12  ;;  %v9075_v35 = vpack.c.bf16 %v9772_v31, %v18788_v2  ;;  %v19953_v38 = vld [vmem:[#allocation74_spill] sm:$0xff] }
 0xb65   : > { %9369 = vst.msk [vmem:[%s18697_s16 + $0x30] sm:$0xff] %vm2103_vm7, %v9337_v36  ;;  %v9352_v40 = vsel %vm5973_vm6, %v19944_v10, %v9288_v0  ;;  %v9260_v9 = vsub.f32 1.0, %v9772_v31  ;;  %v19954_v31 = vld [vmem:[#allocation84_spill] sm:$0xff]  ;;  %v19956_v10 = vld [vmem:[#allocation122_spill] sm:$0xff] }
 0xb66   : > { %9384 = vst.msk [vmem:[%s18697_s16 + $0xa8] sm:$0xff] %vm2103_vm7, %v9352_v40  ;;  %vm8990_vm2 = vcmp.gt.f32.partialorder %v8958_v46, 0.5  ;;  %vm8969_vm5 = vcmp.gt.f32.partialorder %v8937_v53, 0.5  ;;  %9121 = vrot.lane.b32.xlu1 %v9076_v52, %s12693_s23  ;;  %v9226_v13 = vmul.f32 0.2, %v8958_v46  ;;  %9119 = vrot.lane.b32.xlu0 %v9075_v35, %s12693_s23  ;;  %v19955_v46 = vld [vmem:[#allocation111_spill] sm:$0xff] }
 0xb67   : > { %v9292_v59 = vmul.f32 %v9260_v9, %v9228_v27  ;;  %v9770_v15 = vsel %vm8990_vm2, 1.0, %v19904_v32  ;;  %v18887_v26 = vsel %vm8969_vm5, 1.0, %v19904_v32  ;;  %v8884_v22 = vpop.permute.xlu0 %8883  ;;  %v9205_v41 = vmul.f32 0.2, %v8937_v53 }
 0xb68   : > { %v9258_v2 = vsub.f32 1.0, %v9770_v15  ;;  %v9237_v60 = vsub.f32 1.0, %v18887_v26  ;;  %v8957_v49 = vadd.f32 %v8884_v22, %v19945_v62 }
 0xb69   : > { %v9356_v14 = vsel %vm5973_vm6, %v19946_v18, %v9292_v59 }
 0xb6a   : > { %9388 = vst.msk [vmem:[%s18697_s16 + $0xc8] sm:$0xff] %vm2103_vm7, %v9356_v14  ;;  %v9290_v51 = vmul.f32 %v9258_v2, %v9226_v13  ;;  %v9269_v24 = vmul.f32 %v9237_v60, %v9205_v41  ;;  %vm8989_vm3 = vcmp.gt.f32.partialorder %v8957_v49, 0.5  ;;  %v9225_v20 = vmul.f32 0.2, %v8957_v49  ;;  %v19957_v13 = vld [vmem:[#allocation94_spill] sm:$0xff]  ;;  %v19958_v2 = vld [vmem:[#allocation32_spill] sm:$0xff] }
 0xb6b   : > { %v9769_v58 = vsel %vm8989_vm3, 1.0, %v19904_v32  ;;  %v8880_v23 = vpop.permute.xlu1 %8879  ;;  %v8878_v4 = vpop.permute.xlu2 %8877  ;;  %v19959_v14 = vld [vmem:[#allocation22_spill] sm:$0xff] }
 0xb6c   : > { %v9354_v56 = vsel %vm5973_vm6, %v19947_v28, %v9290_v51  ;;  %v9333_v8 = vsel %vm5973_vm6, %v19948_v30, %v9269_v24  ;;  %v9074_v50 = vpack.c.bf16 %v9770_v15, %v9769_v58  ;;  %v9257_v6 = vsub.f32 1.0, %v9769_v58  ;;  %v19960_v58 = vld [vmem:[#allocation121_spill] sm:$0xff]  ;;  %v19961_v30 = vld [vmem:[#allocation120_spill] sm:$0xff] }
 0xb6d   : > { %9386 = vst.msk [vmem:[%s18697_s16 + $0xb8] sm:$0xff] %vm2103_vm7, %v9354_v56  ;;  %v8955_v33 = vadd.f32 %v8880_v23, %v19949_v47  ;;  %v8954_v7 = vadd.f32 %v8878_v4, %v19950_v34  ;;  %v19962_v34 = vld [vmem:[#allocation75_spill] sm:$0xff] }
 0xb6e   : > { %9365 = vst.msk [vmem:[%s18697_s16 + $0x10] sm:$0xff] %vm2103_vm7, %v9333_v8  ;;  %v9289_v5 = vmul.f32 %v9257_v6, %v9225_v20  ;;  %9117 = vrot.lane.b32.xlu2 %v9074_v50, %s12693_s23  ;;  %9101 = vrot.lane.b32.xlu1 %v9066_v61, %s12693_s23 }
 0xb6f   : > { %vm8987_vm13 = vcmp.gt.f32.partialorder %v8955_v33, 0.5  ;;  %v9223_v55 = vmul.f32 0.2, %v8955_v33  ;;  %vm8986_vm14 = vcmp.gt.f32.partialorder %v8954_v7, 0.5  ;;  %v8850_v54 = vpop.permute.xlu0 %8849  ;;  %v9222_v39 = vmul.f32 0.2, %v8954_v7 }
 0xb70   : > { %v9353_v1 = vsel %vm5973_vm6, %v19951_v37, %v9289_v5  ;;  %v9767_v11 = vsel %vm8987_vm13, 1.0, %v19904_v32  ;;  %v18914_v29 = vsel %vm8986_vm14, 1.0, %v19904_v32  ;;  %v8940_v45 = vadd.f32 %v8850_v54, %v19952_v57 }
 0xb71   : > { %9385 = vst.msk [vmem:[%s18697_s16 + $0xb0] sm:$0xff] %vm2103_vm7, %v9353_v1  ;;  %v9255_v48 = vsub.f32 1.0, %v9767_v11  ;;  %v9254_v21 = vsub.f32 1.0, %v18914_v29  ;;  %v9073_v63 = vpack.c.bf16 %v18864_v44, %v9767_v11  ;;  %v19963_v11 = vld [vmem:[#allocation59_spill] sm:$0xff] }
 0xb72   : > { %vm8972_vm15 = vcmp.gt.f32.partialorder %v8940_v45, 0.5  ;;  %v9208_v16 = vmul.f32 0.2, %v8940_v45 }
 0xb73   : > { %v9287_v25 = vmul.f32 %v9255_v48, %v9223_v55  ;;  %v9286_v17 = vmul.f32 %v9254_v21, %v9222_v39  ;;  %v9752_v3 = vsel %vm8972_vm15, 1.0, %v19904_v32  ;;  %v8840_v52 = vpop.permute.xlu2 %8839  ;;  %v19964_v39 = vld [vmem:[#allocation91_spill] sm:$0xff] }
 0xb74   : > { %v9065_v0 = vpack.c.bf16 %v9752_v3, %v18838_v19  ;;  %v9240_v42 = vsub.f32 1.0, %v9752_v3  ;;  %v8935_v36 = vadd.f32 %v8840_v52, %v19953_v38 }
 0xb75   : > { %v9351_v43 = vsel %vm5973_vm6, %v19954_v31, %v9287_v25  ;;  %v9350_v12 = vsel %vm5973_vm6, %v19955_v46, %v9286_v17 }
 0xb76   : > { %9383 = vst.msk [vmem:[%s18697_s16 + $0xa0] sm:$0xff] %vm2103_vm7, %v9351_v43  ;;  %v9272_v44 = vmul.f32 %v9240_v42, %v9208_v16  ;;  %vm8967_vm12 = vcmp.gt.f32.partialorder %v8935_v36, 0.5  ;;  %9099 = vrot.lane.b32.xlu0 %v9065_v0, %s12693_s23  ;;  %9115 = vrot.lane.b32.xlu1 %v9073_v63, %s12693_s23  ;;  %v9203_v35 = vmul.f32 0.2, %v8935_v36  ;;  %v19965_v0 = vld [vmem:[#allocation97_spill] sm:$0xff]  ;;  %v19966_v43 = vld [vmem:[#allocation42_spill] sm:$0xff] }
 0xb77   : > { %9382 = vst.msk [vmem:[%s18697_s16 + $0x98] sm:$0xff] %vm2103_vm7, %v9350_v12  ;;  %v9747_v19 = vsel %vm8967_vm12, 1.0, %v19904_v32  ;;  %v9110_v53 = vpop.permute.xlu0 %9109 }
 0xb78   : > { %v9336_v40 = vsel %vm5973_vm6, %v19956_v10, %v9272_v44  ;;  %v9235_v27 = vsub.f32 1.0, %v9747_v19  ;;  %v9149_v9 = vsel %vm477_vm4, %v9110_v53, 0 }
 0xb79   : > { %9368 = vst.msk [vmem:[%s18697_s16 + $0x28] sm:$0xff] %vm2103_vm7, %v9336_v40  ;;  %9175 = vmatpush.bf16.xpose.msra.mxu0 %v9149_v9 }
 0xb7a   : > { %v9267_v59 = vmul.f32 %v9235_v27, %v9203_v35  ;;  %v19967_v27 = vld [vmem:[#allocation39_spill] sm:$0xff] }
 0xb7b   : > { %v8874_v15 = vpop.permute.xlu2 %8873 }
 0xb7c   : > { %v9331_v22 = vsel %vm5973_vm6, %v19957_v13, %v9267_v59  ;;  %v8952_v41 = vadd.f32 %v8874_v15, %v19958_v2 }
 0xb7d   : > { %9363 = vst.msk [vmem:[%s18697_s16] sm:$0xff] %vm2103_vm7, %v9331_v22 }
 0xb7e   : > { %vm8984_vm0 = vcmp.gt.f32.partialorder %v8952_v41, 0.5  ;;  %v9220_v49 = vmul.f32 0.2, %v8952_v41 }
 0xb7f   : > { %v9764_v60 = vsel %vm8984_vm0, 1.0, %v19904_v32  ;;  %v8846_v62 = vpop.permute.xlu0 %8845 }
 0xb80   : > { %v9252_v18 = vsub.f32 1.0, %v9764_v60  ;;  %v8938_v51 = vadd.f32 %v8846_v62, %v19959_v14 }
 0xb82   : > { %v9284_v24 = vmul.f32 %v9252_v18, %v9220_v49  ;;  %vm8970_vm8 = vcmp.gt.f32.partialorder %v8938_v51, 0.5  ;;  %v9206_v4 = vmul.f32 0.2, %v8938_v51 }
 0xb83   : > { %v9750_v61 = vsel %vm8970_vm8, 1.0, %v19904_v32 }
 0xb84   : > { %v9348_v20 = vsel %vm5973_vm6, %v19960_v58, %v9284_v24  ;;  %v9064_v23 = vpack.c.bf16 %v9750_v61, %v18887_v26  ;;  %v9238_v28 = vsub.f32 1.0, %v9750_v61 }
 0xb85   : > { %9380 = vst.msk [vmem:[%s18697_s16 + $0x88] sm:$0xff] %vm2103_vm7, %v9348_v20 }
 0xb86   : > { %v9270_v56 = vmul.f32 %v9238_v28, %v9206_v4  ;;  %9097 = vrot.lane.b32.xlu2 %v9064_v23, %s12693_s23  ;;  %v19968_v23 = vld [vmem:[#allocation119_spill] sm:$0xff] }
 0xb88   : > { %v9334_v8 = vsel %vm5973_vm6, %v19961_v30, %v9270_v56 }
 0xb89   : > { %9366 = vst.msk [vmem:[%s18697_s16 + $0x18] sm:$0xff] %vm2103_vm7, %v9334_v8 }
 0xbb4   : > { %v9108_v50 = vpop.permute.xlu0 %9107 }
 0xbb5   : > { %v9146_v6 = vsel %vm477_vm4, %v9108_v50, 0 }
 0xbb6   : > { %9176 = vmatpush.bf16.xpose.msra.mxu0 %v9146_v6 }
 0xbb8   : > { %v9126_v47 = vpop.permute.xlu1 %9125 }
 0xbb9   : > { %v9173_v33 = vsel %vm477_vm4, %v9126_v47, 0 }
 0xbba   : > { %9188 = vmatpush.bf16.xpose.msra.mxu1 %v9173_v33 }
 0xbbc   : > { %v8842_v26 = vpop.permute.xlu0 %8841 }
 0xbbd   : > { %v8936_v7 = vadd.f32 %v8842_v26, %v19962_v34 }
 0xbbf   : > { %vm8968_vm9 = vcmp.gt.f32.partialorder %v8936_v7, 0.5  ;;  %v9204_v37 = vmul.f32 0.2, %v8936_v7 }
 0xbc0   : > { %v9748_v5 = vsel %vm8968_vm9, 1.0, %v19904_v32  ;;  %v8876_v55 = vpop.permute.xlu1 %8875 }
 0xbc1   : > { %v9063_v54 = vpack.c.bf16 %v9748_v5, %v9747_v19  ;;  %v9236_v1 = vsub.f32 1.0, %v9748_v5  ;;  %v8953_v57 = vadd.f32 %v8876_v55, %v19963_v11 }
 0xbc3   : > { %v9268_v45 = vmul.f32 %v9236_v1, %v9204_v37  ;;  %vm8985_vm10 = vcmp.gt.f32.partialorder %v8953_v57, 0.5  ;;  %9095 = vrot.lane.b32.xlu1 %v9063_v54, %s12693_s23  ;;  %v9221_v25 = vmul.f32 0.2, %v8953_v57 }
 0xbc4   : > { %v9765_v48 = vsel %vm8985_vm10, 1.0, %v19904_v32 }
 0xbc5   : > { %v9332_v21 = vsel %vm5973_vm6, %v19964_v39, %v9268_v45  ;;  %v9072_v63 = vpack.c.bf16 %v18914_v29, %v9765_v48  ;;  %v9253_v17 = vsub.f32 1.0, %v9765_v48  ;;  %v9104_v29 = vpop.permute.xlu2 %9103 }
 0xbc6   : > { %9364 = vst.msk [vmem:[%s18697_s16 + $0x8] sm:$0xff] %vm2103_vm7, %v9332_v21  ;;  %v9140_v12 = vsel %vm477_vm4, %v9104_v29, 0 }
 0xbc7   : > { %v9285_v3 = vmul.f32 %v9253_v17, %v9221_v25  ;;  %9113 = vrot.lane.b32.xlu0 %v9072_v63, %s12693_s23 }
 0xbc8   : > { %v9124_v52 = vpop.permute.xlu1 %9123  ;;  %v9106_v38 = vpop.permute.xlu0 %9105 }
 0xbc9   : > { %v9349_v16 = vsel %vm5973_vm6, %v19965_v0, %v9285_v3  ;;  %v9170_v42 = vsel %vm477_vm4, %v9124_v52, 0  ;;  %v9143_v36 = vsel %vm477_vm4, %v9106_v38, 0 }
 0xbca   : > { %9381 = vst.msk [vmem:[%s18697_s16 + $0x90] sm:$0xff] %vm2103_vm7, %v9349_v16  ;;  %9189 = vmatpush.bf16.xpose.msra.mxu1 %v9170_v42  ;;  %9177 = vmatpush.bf16.xpose.msra.mxu0 %v9143_v36 }
 0xbcd   : > { %v9118_v2 = vpop.permute.xlu2 %9117 }
 0xbd0   : > { %v8872_v31 = vpop.permute.xlu1 %8871 }
 0xbd1   : > { %v8951_v46 = vadd.f32 %v8872_v31, %v19966_v43 }
 0xbd2   : > { %9178 = vmatpush.bf16.xpose.msra.mxu0 %v9140_v12 }
 0xbd3   : > { %vm8983_vm11 = vcmp.gt.f32.partialorder %v8951_v46, 0.5  ;;  %v9219_v53 = vmul.f32 0.2, %v8951_v46 }
 0xbd4   : > { %v9763_v44 = vsel %vm8983_vm11, 1.0, %v19904_v32 }
 0xbd5   : > { %v9071_v19 = vpack.c.bf16 %v9764_v60, %v9763_v44  ;;  %v9251_v10 = vsub.f32 1.0, %v9763_v44  ;;  %v9161_v60 = vsel %vm477_vm4, %v9118_v2, 0 }
 0xbd7   : > { %v9283_v40 = vmul.f32 %v9251_v10, %v9219_v53  ;;  %9111 = vrot.lane.b32.xlu2 %v9071_v19, %s12693_s23 }
 0xbd8   : > { %v9122_v35 = vpop.permute.xlu1 %9121  ;;  %v9120_v15 = vpop.permute.xlu0 %9119 }
 0xbd9   : > { %v9347_v9 = vsel %vm5973_vm6, %v19967_v27, %v9283_v40  ;;  %v9167_v59 = vsel %vm477_vm4, %v9122_v35, 0  ;;  %v9164_v22 = vsel %vm477_vm4, %v9120_v15, 0 }
 0xbda   : > { %9379 = vst.msk [vmem:[%s18697_s16 + $0x80] sm:$0xff] %vm2103_vm7, %v9347_v9  ;;  %9190 = vmatpush.bf16.xpose.msra.mxu1 %v9167_v59  ;;  %s12623_s16 = sshra.s32 %s9416_s22, 4  ;;  %s12624_s16 = int_to_ptr.hbm [resolvable:$true] %s12623_s16 }
 0xbdb   : > { %s12625_s23 = scalar_lea.hbm %s12624_s16, 48  ;;  %p12630_p0 = scmp.lt.s32.totalorder %s12624_s16, %s19044_s8 }
 0xbdc   : > { %p12626_p11 = scmp.ne.s32.totalorder %s12624_s16, %s12625_s23  ;;  %p12631_p1 = scmp.lt.s32.totalorder %s12629_s14, %s12625_s23 }
 0xbde   : > { %p12627_p12 = pnand %p12626_p11, %p12783_p5  ;;  %p12632_p2 = por %p12631_p1, %p12630_p0 }
 0xbe0   : > { %v9102_v13 = vpop.permute.xlu1 %9101  ;;  %v9098_v49 = vpop.permute.xlu2 %9097  ;;  %p12628_p13 = pneg %p12627_p12 }
 0xbe1   : > { %v9137_v32 = vsel %vm477_vm4, %v9102_v13, 0  ;;  %v9131_v14 = vsel %vm477_vm4, %v9098_v49, 0 }
 0xbe2   : > { %9179 = vmatpush.bf16.xpose.msra.mxu0 %v9137_v32  ;;  %9191 = vmatpush.bf16.xpose.msra.mxu1 %v9164_v22  ;;  %p12633_p3 = pnand %p12632_p2, %p12628_p13 }
 0xbe8   : > { %v9100_v41 = vpop.permute.xlu0 %9099  ;;  %v9116_v18 = vpop.permute.xlu1 %9115 }
 0xbe9   : > { %v9134_v62 = vsel %vm477_vm4, %v9100_v41, 0  ;;  %v9158_v51 = vsel %vm477_vm4, %v9116_v18, 0 }
 0xbea   : > { %9180 = vmatpush.bf16.xpose.msra.mxu0 %v9134_v62  ;;  %9192 = vmatpush.bf16.xpose.msra.mxu1 %v9161_v60 }
 0xbf2   : > { %9181 = vmatpush.bf16.xpose.msra.mxu0 %v9131_v14  ;;  %9193 = vmatpush.bf16.xpose.msra.mxu1 %v9158_v51 }
 0xc31   : > { %v9112_v4 = vpop.permute.xlu2 %9111 }
 0xc32   : > { %v9152_v28 = vsel %vm477_vm4, %v9112_v4, 0 }
 0xc35   : > { %v9096_v24 = vpop.permute.xlu1 %9095 }
 0xc36   : > { %v9128_v61 = vsel %vm477_vm4, %v9096_v24, 0 }
 0xc37   : > { %9182 = vmatpush.bf16.xpose.msra.mxu0 %v9128_v61 }
 0xc39   : > { %v9114_v58 = vpop.permute.xlu0 %9113 }
 0xc3a   : > { %v9155_v20 = vsel %vm477_vm4, %v9114_v58, 0 }
 0xc3b   : > { %9194 = vmatpush.bf16.xpose.msra.mxu1 %v9155_v20 }
 0xc3e   : > { %9779 = vmatmul.msk.bf16.vlgmr.msra.gmra.mxu0 %vm477_vm4, %v19968_v23 }
 0xc43   : > { %9195 = vmatpush.bf16.xpose.msra.mxu1 %v9152_v28 }
 0xc4a   : > { %9780 = vmatmul.msk.bf16.vlgmr.msra.gmra.mxu1 %vm477_vm4, %v19968_v23 }
 0xcbb   : > { %v9184_v56 = vpop.f32.mrf.mxu0 }
 0xcbc   : > { %9201 = vst [vmem:[%s16935_s24 + $0x20] sm:$0xff] %v9184_v56 }
 0xcc3   : > { %v9186_v30 = vpop.f32.mrf.mxu0 }
 0xcc7   : > { %v9197_v8 = vpop.f32.mrf.mxu1 }
 0xcc8   : > { %9202 = vst [vmem:[%s16935_s24 + $0x28] sm:$0xff] %v9197_v8 }
 0xcc9   : > { %12636 = shalt.err (!%p12633_p3)
}
 0xcca   : > { %s12694_s24 = smov 256   ;;  %s19970_s21 = smov 16  }
 0xccb   : > { %9817 = dma.vmem_to_hbm [thread:$0]  (%p12783_p5), %s9414_s17, 768, %s9416_s22, %s9396_s27, %s12694_s24, %s12694_s24, %s19970_s21  }
 0xccf   : > { %v9199_v50 = vpop.f32.mrf.mxu1 }
 0xcd0 PF: > { %p9823_p4 = scmp.ge.s32.totalorder %s12671_s12, 2  ;;  %s9433_s28 = sand.u32 1, %s12659_s30  }
 0xcd1   : > { %s9434_s25 = scalar_lea.sflag [#allocation6], %s9433_s28 }
 0xcd2   : > { %p9820_p7 = pnand %p9823_p4, %p12787_p6 }
 0xcd4   : > { %p9821_p8 = pneg %p9820_p7 }
 0xcd6   : > { %12654 = dma.done.wait (%p9821_p8), %s9434_s25, 768  }
 0xcd7   : > { %12656 = vsyncadd (%p9821_p8), %s9434_s25, 4294966528  ;;  %p20_p9 = scmp.ge.s32.totalorder %s12770_s15, 4   ;;  %s19971_s30 = smov %s12663_s10 }
 0xcd8   : > { %s19972_s10 = smov %s12667_s11  ;;  %s19973_s11 = smov %s12781_s18 }
 0xcd9   : > { %s19974_s12 = smov %s12770_s15  ;;  %22 = sbr.rel (!%p20_p9) target bundleno = 3 (0x3), region = 114 }
 0xcde   :  { %9448 = vsyncpa [#allocation6], 1 }
 0xcdf   :  { %9450 = vsyncpa [#allocation6 + $0x1], 1 }

</bundles_post_ra>
